<compile_context>
chip_gen: v7x
topology: tpu7x:2x2x1
jax: 0.10.0
libtpu: 0.0.40
codegen_flags: <defaults>
</compile_context>

<pallas_src>
import functools

import jax
import jax.numpy as jnp
from jax.experimental import pallas as pl
from jax.experimental.pallas import tpu as pltpu


def _round_up(x, m):
    return (x + m - 1) // m * m


def _cdiv(a, b):
    return (a + b - 1) // b


# ----------------------------------------------------------------------------
# Pallas kernel: act(X @ W + b), bf16 inputs, f32 accumulation, f32 epilogue.
# ----------------------------------------------------------------------------
def _matmul_bias_act_kernel(x_ref, w_ref, b_ref, o_ref, *, act):
    acc = jnp.dot(x_ref[...], w_ref[...], preferred_element_type=jnp.float32)
    acc = acc + b_ref[...]
    if act == "relu":
        acc = jnp.maximum(acc, 0.0)
    elif act == "sigmoid":
        acc = 1.0 / (1.0 + jnp.exp(-acc))
    o_ref[...] = acc.astype(o_ref.dtype)


def pallas_matmul_bias_act(x, w_pad, b_pad, n_true, act, out_dtype):
    """act(x @ w + b).  x:(M,K) bf16, w_pad:(Kp,Np) bf16, b_pad:(1,Np) f32."""
    M, K = x.shape
    Kp, Np = w_pad.shape
    # Per-layer M tiling: at least 2 grid steps (megacore on v7x) and no
    # padding of tiny layers up to a fixed 256-row tile.
    num_blocks = max(2, _cdiv(M, 256))
    tm = _round_up(_cdiv(M, num_blocks), 16)
    Mp = tm * num_blocks
    xp = jnp.pad(x.astype(jnp.bfloat16), ((0, Mp - M), (0, Kp - K)))

    out = pl.pallas_call(
        functools.partial(_matmul_bias_act_kernel, act=act),
        out_shape=jax.ShapeDtypeStruct((Mp, Np), out_dtype),
        grid_spec=pltpu.PrefetchScalarGridSpec(
            num_scalar_prefetch=0,
            grid=(num_blocks,),
            in_specs=[
                pl.BlockSpec((tm, Kp), lambda i: (i, 0)),
                pl.BlockSpec((Kp, Np), lambda i: (0, 0)),
                pl.BlockSpec((1, Np), lambda i: (0, 0)),
            ],
            out_specs=pl.BlockSpec((tm, Np), lambda i: (i, 0)),
        ),
        compiler_params=pltpu.CompilerParams(
            dimension_semantics=("parallel",),
            # Worst-case layer (K=2304, N=1024, bf16) double-buffered ~10 MiB;
            # 32 MiB fits every generation's physical VMEM (v7x = 64 MiB).
            vmem_limit_bytes=32 * 1024 * 1024,
        ),
    )(xp, w_pad, b_pad)
    return out[:M, :n_true]


# ----------------------------------------------------------------------------
# ConvTranspose2d as dense sub-pixel conv (conv + depth-to-space).
# ----------------------------------------------------------------------------
def _phase_tables(k, s, p):
    """Per-output-phase tap info for ConvTranspose(kernel=k, stride=s, pad=p)."""
    info = []
    d_min = None
    d_max = None
    for ph in range(s):
        r = (ph + p) % s            # kernel-tap residue used by this output phase
        t_n = _cdiv(k - r, s)       # number of taps for this phase
        c = (ph + p) // s           # input offset of tap t=0
        info.append((r, t_n, c))
        lo, hi = c - (t_n - 1), c
        d_min = lo if d_min is None else min(d_min, lo)
        d_max = hi if d_max is None else max(d_max, hi)
    return info, d_min, d_max


def decoder_layer_cfgs(in_channels, features):
    f0, f1, f2, f3 = features
    # (Cin, Cout, kernel, stride, padding) -- matches the PyTorch Decoder.
    return [
        (f3, f3, 5, 2, 1),
        (f3, f2, 3, 2, 1),
        (f2, f1, 3, 2, 1),
        (f1, f0, 3, 2, 1),
        (f0, in_channels, 2, 2, 1),
    ]


def init_decoder_params(key, layer_cfgs):
    """Deterministic init (uniform, PyTorch-like bound 1/sqrt(fan_in)); weights
    are in PyTorch ConvTranspose2d layout (Cin, Cout, kh, kw)."""
    params = []
    for idx, (cin, cout, k, _, _) in enumerate(layer_cfgs):
        kw_, kb = jax.random.split(jax.random.fold_in(key, idx))
        bound = 1.0 / float((cin * k * k) ** 0.5)
        w = jax.random.uniform(kw_, (cin, cout, k, k), jnp.float32, -bound, bound)
        b = jax.random.uniform(kb, (cout,), jnp.float32, -bound, bound)
        params.append((w, b))
    return params


def prepare_decoder_params(params, layer_cfgs):
    """One-time (init-time) repack of ConvT weights into padded bf16 GEMM
    matrices (sub-pixel layout) + f32 bias rows + static per-layer metadata."""
    gemm_params = []
    metas = []
    for (w_t, b), (_, _, k, s, p) in zip(params, layer_cfgs):
        cin, cout = int(w_t.shape[0]), int(w_t.shape[1])
        info, d_min, d_max = _phase_tables(k, s, p)
        win = d_max - d_min + 1     # unified dense spatial window (per dim)

        # wm[pos_h, pos_w, ci, phase, co]: phase = ph*s + pw
        wm = jnp.zeros((win, win, cin, s * s, cout), jnp.float32)
        for ph in range(s):
            r_h, t_h_n, c_h = info[ph]
            for pw in range(s):
                r_w, t_w_n, c_w = info[pw]
                for th in range(t_h_n):
                    kh_idx = s * th + r_h
                    pos_h = c_h - th - d_min
                    for tw in range(t_w_n):
                        kw_idx = s * tw + r_w
                        pos_w = c_w - tw - d_min
                        wm = wm.at[pos_h, pos_w, :, ph * s + pw, :].set(
                            w_t[:, :, kh_idx, kw_idx])

        kdim = win * win * cin
        ndim = s * s * cout
        kp = _round_up(kdim, 128)
        np_ = _round_up(ndim, 128)
        w_mat = wm.reshape(kdim, ndim)
        w_pad = jnp.pad(w_mat, ((0, kp - kdim), (0, np_ - ndim))).astype(jnp.bfloat16)
        b_gemm = jnp.tile(b.astype(jnp.float32), s * s)
        b_pad = jnp.pad(b_gemm, (0, np_ - ndim)).reshape(1, np_)

        gemm_params.append((w_pad, b_pad))
        metas.append(dict(k=k, s=s, p=p, win=win, d_min=d_min,
                          cout=cout, n_true=ndim))
    return gemm_params, metas


def conv_transpose2d_subpixel(x_nhwc, w_pad, b_pad, meta, act, out_dtype):
    """PyTorch-equivalent ConvTranspose2d via dense sub-pixel conv + GEMM."""
    n, h, w, cin = x_nhwc.shape
    k, s, p = meta["k"], meta["s"], meta["p"]
    win, d_min = meta["win"], meta["d_min"]
    cout, n_true = meta["cout"], meta["n_true"]
    d_max = d_min + win - 1

    ho = (h - 1) * s - 2 * p + k
    wo = (w - 1) * s - 2 * p + k
    a = _cdiv(ho, s)                 # phase-rows computed per phase
    bb = _cdiv(wo, s)                # phase-cols computed per phase

    pad_lo = max(0, -d_min)
    pad_hi_h = max(0, (a - 1) + d_max - (h - 1))
    pad_hi_w = max(0, (bb - 1) + d_max - (w - 1))

    xb = x_nhwc.astype(jnp.bfloat16)
    xp = jnp.pad(xb, ((0, 0), (pad_lo, pad_hi_h), (pad_lo, pad_hi_w), (0, 0)))
    off = d_min + pad_lo

    # Dense im2col over the *un-dilated* input (win x win window).
    # TODO(synk): the window extraction / depth-to-space interleave stays in XLA
    # glue; it is <1 MiB per layer at these sizes so fusing it into the kernel
    # was not worth the complexity.
    cols = [xp[:, off + i:off + i + a, off + j:off + j + bb, :]
            for i in range(win) for j in range(win)]
    patches = jnp.concatenate(cols, axis=-1).reshape(n * a * bb, win * win * cin)

    out = pallas_matmul_bias_act(patches, w_pad, b_pad, n_true, act, out_dtype)

    # depth-to-space: (n, a, bb, ph, pw, cout) -> (n, a*s, bb*s, cout)
    out = out.reshape(n, a, bb, s, s, cout)
    out = jnp.transpose(out, (0, 1, 3, 2, 4, 5)).reshape(n, a * s, bb * s, cout)
    return out[:, :ho, :wo, :]


def make_decoder_forward(metas):
    n_layers = len(metas)
    acts = ["relu"] * (n_layers - 1) + ["sigmoid"]

    def fwd(gemm_params, x_nchw):
        x = jnp.transpose(x_nchw, (0, 2, 3, 1))          # NCHW -> NHWC
        for (w_pad, b_pad), meta, act in zip(gemm_params, metas, acts):
            out_dtype = jnp.float32 if act == "sigmoid" else jnp.bfloat16
            x = conv_transpose2d_subpixel(x, w_pad, b_pad, meta, act, out_dtype)
        return jnp.transpose(x, (0, 3, 1, 2)).astype(jnp.float32)   # NHWC -> NCHW

    return jax.jit(fwd)


# ----------------------------------------------------------------------------
# Pure-JAX f32 reference (dilated-conv formulation) for correctness checking.
# ----------------------------------------------------------------------------
def decoder_forward_reference(params, layer_cfgs, x_nchw):
    x = jnp.transpose(x_nchw, (0, 2, 3, 1)).astype(jnp.float32)
    n_layers = len(params)
    for idx, ((w_t, b), (_, _, k, s, p)) in enumerate(zip(params, layer_cfgs)):
        w_hwio = jnp.transpose(w_t[:, :, ::-1, ::-1], (2, 3, 0, 1))
        x = jax.lax.conv_general_dilated(
            x, w_hwio, window_strides=(1, 1),
            padding=((k - 1 - p, k - 1 - p), (k - 1 - p, k - 1 - p)),
            lhs_dilation=(s, s),
            dimension_numbers=("NHWC", "HWIO", "NHWC"))
        x = x + b
        x = jnp.maximum(x, 0.0) if idx < n_layers - 1 else jax.nn.sigmoid(x)
    return jnp.transpose(x, (0, 3, 1, 2))


if __name__ == "__main__":
    key = jax.random.PRNGKey(0)
    in_channels = 4
    features = [32, 64, 128, 256]

    cfgs = decoder_layer_cfgs(in_channels, features)
    params = init_decoder_params(jax.random.fold_in(key, 123), cfgs)
    gemm_params, metas = prepare_decoder_params(params, cfgs)
    decoder_forward = make_decoder_forward(metas)

    # Decoder input has features[3] channels; spatial 2 -> 5 -> 9 -> 17 -> 33 -> 64.
    x = jax.random.normal(jax.random.fold_in(key, 7),
                          (2, features[3], 2, 2), jnp.float32)

    out = jax.block_until_ready(decoder_forward(gemm_params, x))

    assert out.shape == (2, in_channels, 64, 64), out.shape
    assert bool(jnp.all(jnp.isfinite(out)))
    assert bool(jnp.all((out >= 0.0) & (out <= 1.0)))     # final Sigmoid range

    # Cross-check vs a pure-JAX f32 reference (bf16 matmuls -> relaxed tolerance).
    ref = jax.block_until_ready(decoder_forward_reference(params, cfgs, x))
    max_err = float(jnp.max(jnp.abs(out - ref)))
    assert max_err < 5e-2, max_err

    print("KERNEL_OK")
</pallas_src>

<mosaic_0001>
module attributes {stable_mosaic.version = 11 : i64} {
  func.func @_matmul_bias_act_kernel(%arg0: i32, %arg1: memref<16x2304xbf16, #tpu.memory_space<vmem>>, %arg2: memref<2304x1024xbf16, #tpu.memory_space<vmem>>, %arg3: memref<1x1024xf32, #tpu.memory_space<vmem>>, %arg4: memref<16x1024xbf16, #tpu.memory_space<vmem>>) attributes {dimension_semantics = [#tpu.dimension_semantics<parallel>], iteration_bounds = array<i64: 2>, scalar_prefetch = 0 : i64, scratch_operands = 0 : i64, tpu.core_type = #tpu.core_type<tc>, window_params = [{transform_indices = @transform_0, window_bounds = array<i64: 16, 2304>}, {pipeline_mode = #tpu.pipeline_mode<synchronous>, transform_indices = @transform_1, window_bounds = array<i64: 2304, 1024>}, {pipeline_mode = #tpu.pipeline_mode<synchronous>, transform_indices = @transform_2, window_bounds = array<i64: 1, 1024>}, {transform_indices = @transform_3, window_bounds = array<i64: 16, 1024>}]} {
    %c0 = arith.constant 0 : index
    %c0_0 = arith.constant 0 : index
    %0 = vector.load %arg1[%c0, %c0_0] : memref<16x2304xbf16, #tpu.memory_space<vmem>>, vector<16x2304xbf16>
    %c0_1 = arith.constant 0 : index
    %c0_2 = arith.constant 0 : index
    %1 = vector.load %arg2[%c0_1, %c0_2] : memref<2304x1024xbf16, #tpu.memory_space<vmem>>, vector<2304x1024xbf16>
    %cst = arith.constant dense<0.000000e+00> : vector<16x1024xf32>
    %2 = tpu.matmul %0, %1, %cst {dimension_numbers = #tpu.dot_dimension_numbers<[1], [0], [0], [1], [0, 0, 1, 1], [], []>} : vector<16x2304xbf16>, vector<2304x1024xbf16>, vector<16x1024xf32> -> vector<16x1024xf32>
    %c0_3 = arith.constant 0 : index
    %c0_4 = arith.constant 0 : index
    %3 = vector.load %arg3[%c0_3, %c0_4] : memref<1x1024xf32, #tpu.memory_space<vmem>>, vector<1x1024xf32>
    %4 = vector.broadcast %3 : vector<1x1024xf32> to vector<16x1024xf32>
    %5 = arith.addf %2, %4 : vector<16x1024xf32>
    %cst_5 = arith.constant 0.000000e+00 : f32
    %6 = vector.broadcast %cst_5 : f32 to vector<16x1024xf32>
    %7 = arith.maximumf %5, %6 : vector<16x1024xf32>
    %8 = arith.truncf %7 : vector<16x1024xf32> to vector<16x1024xbf16>
    %c0_6 = arith.constant 0 : index
    %c0_7 = arith.constant 0 : index
    %9 = vector.load %arg4[%c0_6, %c0_7] : memref<16x1024xbf16, #tpu.memory_space<vmem>>, vector<16x1024xbf16>
    tpu.vector_store %arg4[%c0_6, %c0_7], %8 {strides = array<i32>} : memref<16x1024xbf16, #tpu.memory_space<vmem>>, vector<16x1024xbf16>,
    return
  }
  func.func @transform_0(%arg0: i32) -> (i32, i32) {
    %c0_i32 = arith.constant 0 : i32
    %c0_i32_0 = arith.constant 0 : i32
    return %arg0, %c0_i32 : i32, i32
  }
  func.func @transform_1(%arg0: i32) -> (i32, i32) {
    %c0_i32 = arith.constant 0 : i32
    %c0_i32_0 = arith.constant 0 : i32
    %c0_i32_1 = arith.constant 0 : i32
    return %c0_i32, %c0_i32_0 : i32, i32
  }
  func.func @transform_2(%arg0: i32) -> (i32, i32) {
    %c0_i32 = arith.constant 0 : i32
    %c0_i32_0 = arith.constant 0 : i32
    %c0_i32_1 = arith.constant 0 : i32
    return %c0_i32, %c0_i32_0 : i32, i32
  }
  func.func @transform_3(%arg0: i32) -> (i32, i32) {
    %c0_i32 = arith.constant 0 : i32
    %c0_i32_0 = arith.constant 0 : i32
    return %arg0, %c0_i32 : i32, i32
  }
}

module attributes {stable_mosaic.version = 11 : i64} {
  func.func @_matmul_bias_act_kernel(%arg0: i32, %arg1: memref<32x1024xbf16, #tpu.memory_space<vmem>>, %arg2: memref<1024x512xbf16, #tpu.memory_space<vmem>>, %arg3: memref<1x512xf32, #tpu.memory_space<vmem>>, %arg4: memref<32x512xbf16, #tpu.memory_space<vmem>>) attributes {dimension_semantics = [#tpu.dimension_semantics<parallel>], iteration_bounds = array<i64: 2>, scalar_prefetch = 0 : i64, scratch_operands = 0 : i64, tpu.core_type = #tpu.core_type<tc>, window_params = [{transform_indices = @transform_0, window_bounds = array<i64: 32, 1024>}, {pipeline_mode = #tpu.pipeline_mode<synchronous>, transform_indices = @transform_1, window_bounds = array<i64: 1024, 512>}, {pipeline_mode = #tpu.pipeline_mode<synchronous>, transform_indices = @transform_2, window_bounds = array<i64: 1, 512>}, {transform_indices = @transform_3, window_bounds = array<i64: 32, 512>}]} {
    %c0 = arith.constant 0 : index
    %c0_0 = arith.constant 0 : index
    %0 = vector.load %arg1[%c0, %c0_0] : memref<32x1024xbf16, #tpu.memory_space<vmem>>, vector<32x1024xbf16>
    %c0_1 = arith.constant 0 : index
    %c0_2 = arith.constant 0 : index
    %1 = vector.load %arg2[%c0_1, %c0_2] : memref<1024x512xbf16, #tpu.memory_space<vmem>>, vector<1024x512xbf16>
    %cst = arith.constant dense<0.000000e+00> : vector<32x512xf32>
    %2 = tpu.matmul %0, %1, %cst {dimension_numbers = #tpu.dot_dimension_numbers<[1], [0], [0], [1], [0, 0, 1, 1], [], []>} : vector<32x1024xbf16>, vector<1024x512xbf16>, vector<32x512xf32> -> vector<32x512xf32>
    %c0_3 = arith.constant 0 : index
    %c0_4 = arith.constant 0 : index
    %3 = vector.load %arg3[%c0_3, %c0_4] : memref<1x512xf32, #tpu.memory_space<vmem>>, vector<1x512xf32>
    %4 = vector.broadcast %3 : vector<1x512xf32> to vector<32x512xf32>
    %5 = arith.addf %2, %4 : vector<32x512xf32>
    %cst_5 = arith.constant 0.000000e+00 : f32
    %6 = vector.broadcast %cst_5 : f32 to vector<32x512xf32>
    %7 = arith.maximumf %5, %6 : vector<32x512xf32>
    %8 = arith.truncf %7 : vector<32x512xf32> to vector<32x512xbf16>
    %c0_6 = arith.constant 0 : index
    %c0_7 = arith.constant 0 : index
    %9 = vector.load %arg4[%c0_6, %c0_7] : memref<32x512xbf16, #tpu.memory_space<vmem>>, vector<32x512xbf16>
    tpu.vector_store %arg4[%c0_6, %c0_7], %8 {strides = array<i32>} : memref<32x512xbf16, #tpu.memory_space<vmem>>, vector<32x512xbf16>,
    return
  }
  func.func @transform_0(%arg0: i32) -> (i32, i32) {
    %c0_i32 = arith.constant 0 : i32
    %c0_i32_0 = arith.constant 0 : i32
    return %arg0, %c0_i32 : i32, i32
  }
  func.func @transform_1(%arg0: i32) -> (i32, i32) {
    %c0_i32 = arith.constant 0 : i32
    %c0_i32_0 = arith.constant 0 : i32
    %c0_i32_1 = arith.constant 0 : i32
    return %c0_i32, %c0_i32_0 : i32, i32
  }
  func.func @transform_2(%arg0: i32) -> (i32, i32) {
    %c0_i32 = arith.constant 0 : i32
    %c0_i32_0 = arith.constant 0 : i32
    %c0_i32_1 = arith.constant 0 : i32
    return %c0_i32, %c0_i32_0 : i32, i32
  }
  func.func @transform_3(%arg0: i32) -> (i32, i32) {
    %c0_i32 = arith.constant 0 : i32
    %c0_i32_0 = arith.constant 0 : i32
    return %arg0, %c0_i32 : i32, i32
  }
}

module attributes {stable_mosaic.version = 11 : i64} {
  func.func @_matmul_bias_act_kernel(%arg0: i32, %arg1: memref<96x512xbf16, #tpu.memory_space<vmem>>, %arg2: memref<512x256xbf16, #tpu.memory_space<vmem>>, %arg3: memref<1x256xf32, #tpu.memory_space<vmem>>, %arg4: memref<96x256xbf16, #tpu.memory_space<vmem>>) attributes {dimension_semantics = [#tpu.dimension_semantics<parallel>], iteration_bounds = array<i64: 2>, scalar_prefetch = 0 : i64, scratch_operands = 0 : i64, tpu.core_type = #tpu.core_type<tc>, window_params = [{transform_indices = @transform_0, window_bounds = array<i64: 96, 512>}, {pipeline_mode = #tpu.pipeline_mode<synchronous>, transform_indices = @transform_1, window_bounds = array<i64: 512, 256>}, {pipeline_mode = #tpu.pipeline_mode<synchronous>, transform_indices = @transform_2, window_bounds = array<i64: 1, 256>}, {transform_indices = @transform_3, window_bounds = array<i64: 96, 256>}]} {
    %c0 = arith.constant 0 : index
    %c0_0 = arith.constant 0 : index
    %0 = vector.load %arg1[%c0, %c0_0] : memref<96x512xbf16, #tpu.memory_space<vmem>>, vector<96x512xbf16>
    %c0_1 = arith.constant 0 : index
    %c0_2 = arith.constant 0 : index
    %1 = vector.load %arg2[%c0_1, %c0_2] : memref<512x256xbf16, #tpu.memory_space<vmem>>, vector<512x256xbf16>
    %cst = arith.constant dense<0.000000e+00> : vector<96x256xf32>
    %2 = tpu.matmul %0, %1, %cst {dimension_numbers = #tpu.dot_dimension_numbers<[1], [0], [0], [1], [0, 0, 1, 1], [], []>} : vector<96x512xbf16>, vector<512x256xbf16>, vector<96x256xf32> -> vector<96x256xf32>
    %c0_3 = arith.constant 0 : index
    %c0_4 = arith.constant 0 : index
    %3 = vector.load %arg3[%c0_3, %c0_4] : memref<1x256xf32, #tpu.memory_space<vmem>>, vector<1x256xf32>
    %4 = vector.broadcast %3 : vector<1x256xf32> to vector<96x256xf32>
    %5 = arith.addf %2, %4 : vector<96x256xf32>
    %cst_5 = arith.constant 0.000000e+00 : f32
    %6 = vector.broadcast %cst_5 : f32 to vector<96x256xf32>
    %7 = arith.maximumf %5, %6 : vector<96x256xf32>
    %8 = arith.truncf %7 : vector<96x256xf32> to vector<96x256xbf16>
    %c0_6 = arith.constant 0 : index
    %c0_7 = arith.constant 0 : index
    %9 = vector.load %arg4[%c0_6, %c0_7] : memref<96x256xbf16, #tpu.memory_space<vmem>>, vector<96x256xbf16>
    tpu.vector_store %arg4[%c0_6, %c0_7], %8 {strides = array<i32>} : memref<96x256xbf16, #tpu.memory_space<vmem>>, vector<96x256xbf16>,
    return
  }
  func.func @transform_0(%arg0: i32) -> (i32, i32) {
    %c0_i32 = arith.constant 0 : i32
    %c0_i32_0 = arith.constant 0 : i32
    return %arg0, %c0_i32 : i32, i32
  }
  func.func @transform_1(%arg0: i32) -> (i32, i32) {
    %c0_i32 = arith.constant 0 : i32
    %c0_i32_0 = arith.constant 0 : i32
    %c0_i32_1 = arith.constant 0 : i32
    return %c0_i32, %c0_i32_0 : i32, i32
  }
  func.func @transform_2(%arg0: i32) -> (i32, i32) {
    %c0_i32 = arith.constant 0 : i32
    %c0_i32_0 = arith.constant 0 : i32
    %c0_i32_1 = arith.constant 0 : i32
    return %c0_i32, %c0_i32_0 : i32, i32
  }
  func.func @transform_3(%arg0: i32) -> (i32, i32) {
    %c0_i32 = arith.constant 0 : i32
    %c0_i32_0 = arith.constant 0 : i32
    return %arg0, %c0_i32 : i32, i32
  }
}

module attributes {stable_mosaic.version = 11 : i64} {
  func.func @_matmul_bias_act_kernel(%arg0: i32, %arg1: memref<208x256xbf16, #tpu.memory_space<vmem>>, %arg2: memref<256x128xbf16, #tpu.memory_space<vmem>>, %arg3: memref<1x128xf32, #tpu.memory_space<vmem>>, %arg4: memref<208x128xbf16, #tpu.memory_space<vmem>>) attributes {dimension_semantics = [#tpu.dimension_semantics<parallel>], iteration_bounds = array<i64: 3>, scalar_prefetch = 0 : i64, scratch_operands = 0 : i64, tpu.core_type = #tpu.core_type<tc>, window_params = [{transform_indices = @transform_0, window_bounds = array<i64: 208, 256>}, {pipeline_mode = #tpu.pipeline_mode<synchronous>, transform_indices = @transform_1, window_bounds = array<i64: 256, 128>}, {pipeline_mode = #tpu.pipeline_mode<synchronous>, transform_indices = @transform_2, window_bounds = array<i64: 1, 128>}, {transform_indices = @transform_3, window_bounds = array<i64: 208, 128>}]} {
    %c0 = arith.constant 0 : index
    %c0_0 = arith.constant 0 : index
    %0 = vector.load %arg1[%c0, %c0_0] : memref<208x256xbf16, #tpu.memory_space<vmem>>, vector<208x256xbf16>
    %c0_1 = arith.constant 0 : index
    %c0_2 = arith.constant 0 : index
    %1 = vector.load %arg2[%c0_1, %c0_2] : memref<256x128xbf16, #tpu.memory_space<vmem>>, vector<256x128xbf16>
    %cst = arith.constant dense<0.000000e+00> : vector<208x128xf32>
    %2 = tpu.matmul %0, %1, %cst {dimension_numbers = #tpu.dot_dimension_numbers<[1], [0], [0], [1], [0, 0, 1, 1], [], []>} : vector<208x256xbf16>, vector<256x128xbf16>, vector<208x128xf32> -> vector<208x128xf32>
    %c0_3 = arith.constant 0 : index
    %c0_4 = arith.constant 0 : index
    %3 = vector.load %arg3[%c0_3, %c0_4] : memref<1x128xf32, #tpu.memory_space<vmem>>, vector<1x128xf32>
    %4 = vector.broadcast %3 : vector<1x128xf32> to vector<208x128xf32>
    %5 = arith.addf %2, %4 : vector<208x128xf32>
    %cst_5 = arith.constant 0.000000e+00 : f32
    %6 = vector.broadcast %cst_5 : f32 to vector<208x128xf32>
    %7 = arith.maximumf %5, %6 : vector<208x128xf32>
    %8 = arith.truncf %7 : vector<208x128xf32> to vector<208x128xbf16>
    %c0_6 = arith.constant 0 : index
    %c0_7 = arith.constant 0 : index
    %9 = vector.load %arg4[%c0_6, %c0_7] : memref<208x128xbf16, #tpu.memory_space<vmem>>, vector<208x128xbf16>
    tpu.vector_store %arg4[%c0_6, %c0_7], %8 {strides = array<i32>} : memref<208x128xbf16, #tpu.memory_space<vmem>>, vector<208x128xbf16>,
    return
  }
  func.func @transform_0(%arg0: i32) -> (i32, i32) {
    %c0_i32 = arith.constant 0 : i32
    %c0_i32_0 = arith.constant 0 : i32
    return %arg0, %c0_i32 : i32, i32
  }
  func.func @transform_1(%arg0: i32) -> (i32, i32) {
    %c0_i32 = arith.constant 0 : i32
    %c0_i32_0 = arith.constant 0 : i32
    %c0_i32_1 = arith.constant 0 : i32
    return %c0_i32, %c0_i32_0 : i32, i32
  }
  func.func @transform_2(%arg0: i32) -> (i32, i32) {
    %c0_i32 = arith.constant 0 : i32
    %c0_i32_0 = arith.constant 0 : i32
    %c0_i32_1 = arith.constant 0 : i32
    return %c0_i32, %c0_i32_0 : i32, i32
  }
  func.func @transform_3(%arg0: i32) -> (i32, i32) {
    %c0_i32 = arith.constant 0 : i32
    %c0_i32_0 = arith.constant 0 : i32
    return %arg0, %c0_i32 : i32, i32
  }
}

module attributes {stable_mosaic.version = 11 : i64} {
  func.func @_matmul_bias_act_kernel(%arg0: i32, %arg1: memref<256x128xbf16, #tpu.memory_space<vmem>>, %arg2: memref<128x128xbf16, #tpu.memory_space<vmem>>, %arg3: memref<1x128xf32, #tpu.memory_space<vmem>>, %arg4: memref<256x128xf32, #tpu.memory_space<vmem>>) attributes {dimension_semantics = [#tpu.dimension_semantics<parallel>], iteration_bounds = array<i64: 8>, scalar_prefetch = 0 : i64, scratch_operands = 0 : i64, tpu.core_type = #tpu.core_type<tc>, window_params = [{transform_indices = @transform_0, window_bounds = array<i64: 256, 128>}, {pipeline_mode = #tpu.pipeline_mode<synchronous>, transform_indices = @transform_1, window_bounds = array<i64: 128, 128>}, {pipeline_mode = #tpu.pipeline_mode<synchronous>, transform_indices = @transform_2, window_bounds = array<i64: 1, 128>}, {transform_indices = @transform_3, window_bounds = array<i64: 256, 128>}]} {
    %c0 = arith.constant 0 : index
    %c0_0 = arith.constant 0 : index
    %0 = vector.load %arg1[%c0, %c0_0] : memref<256x128xbf16, #tpu.memory_space<vmem>>, vector<256x128xbf16>
    %c0_1 = arith.constant 0 : index
    %c0_2 = arith.constant 0 : index
    %1 = vector.load %arg2[%c0_1, %c0_2] : memref<128x128xbf16, #tpu.memory_space<vmem>>, vector<128x128xbf16>
    %cst = arith.constant dense<0.000000e+00> : vector<256x128xf32>
    %2 = tpu.matmul %0, %1, %cst {dimension_numbers = #tpu.dot_dimension_numbers<[1], [0], [0], [1], [0, 0, 1, 1], [], []>} : vector<256x128xbf16>, vector<128x128xbf16>, vector<256x128xf32> -> vector<256x128xf32>
    %c0_3 = arith.constant 0 : index
    %c0_4 = arith.constant 0 : index
    %3 = vector.load %arg3[%c0_3, %c0_4] : memref<1x128xf32, #tpu.memory_space<vmem>>, vector<1x128xf32>
    %4 = vector.broadcast %3 : vector<1x128xf32> to vector<256x128xf32>
    %5 = arith.addf %2, %4 : vector<256x128xf32>
    %cst_5 = arith.constant 0.000000e+00 : f32
    %6 = vector.broadcast %cst_5 : f32 to vector<256x128xf32>
    %7 = arith.subf %6, %5 : vector<256x128xf32>
    %8 = math.exp %7 : vector<256x128xf32>
    %cst_6 = arith.constant 1.000000e+00 : f32
    %9 = vector.broadcast %cst_6 : f32 to vector<256x128xf32>
    %10 = arith.addf %9, %8 : vector<256x128xf32>
    %cst_7 = arith.constant 1.000000e+00 : f32
    %11 = vector.broadcast %cst_7 : f32 to vector<256x128xf32>
    %12 = arith.divf %11, %10 : vector<256x128xf32>
    %c0_8 = arith.constant 0 : index
    %c0_9 = arith.constant 0 : index
    %13 = vector.load %arg4[%c0_8, %c0_9] : memref<256x128xf32, #tpu.memory_space<vmem>>, vector<256x128xf32>
    tpu.vector_store %arg4[%c0_8, %c0_9], %12 {strides = array<i32>} : memref<256x128xf32, #tpu.memory_space<vmem>>, vector<256x128xf32>,
    return
  }
  func.func @transform_0(%arg0: i32) -> (i32, i32) {
    %c0_i32 = arith.constant 0 : i32
    %c0_i32_0 = arith.constant 0 : i32
    return %arg0, %c0_i32 : i32, i32
  }
  func.func @transform_1(%arg0: i32) -> (i32, i32) {
    %c0_i32 = arith.constant 0 : i32
    %c0_i32_0 = arith.constant 0 : i32
    %c0_i32_1 = arith.constant 0 : i32
    return %c0_i32, %c0_i32_0 : i32, i32
  }
  func.func @transform_2(%arg0: i32) -> (i32, i32) {
    %c0_i32 = arith.constant 0 : i32
    %c0_i32_0 = arith.constant 0 : i32
    %c0_i32_1 = arith.constant 0 : i32
    return %c0_i32, %c0_i32_0 : i32, i32
  }
  func.func @transform_3(%arg0: i32) -> (i32, i32) {
    %c0_i32 = arith.constant 0 : i32
    %c0_i32_0 = arith.constant 0 : i32
    return %arg0, %c0_i32 : i32, i32
  }
}

</mosaic_0001>

<bundles_post_ra>
// kernel: fwd.6
= control target key start
LH: loop header
LB: loop body
LE: loop exit
PB: predicated region body
PF: predicated region fallthrough
CT: control target
= control target key end

     0   :  { %s3174_s12 = smov 0   ;;  %s4020_s0 = inlined_call_operand.vmem [shape: bf16[64,1024], index: 0, kind: input, shape index: {}]   ;;  %s4021_s1 = inlined_call_operand.vmem [shape: bf16[1024,512], index: 1, kind: input, shape index: {}]   ;;  %s4022_s2 = inlined_call_operand.vmem [shape: f32[1,512], index: 2, kind: input, shape index: {}]   ;;  %s4023_s3 = inlined_call_operand.vmem [shape: bf16[64,512], index: 3, kind: output, shape index: {}]  }
   0x1 LB: > { %s2387_s13 = sadd.s32 4294967295, %s3152_s12   ;;  %p2391_p0 = scmp.ge.s32.totalorder %s3152_s12, 1  ;;  %s3152_s12 = sphi %s3174_s12, %s13_s12  }
   0x2   : > { %p139_p1 = scmp.lt.s32.totalorder %s3152_s12, 3 }
   0x4   : > { %p140_p2 = pnand %p2391_p0, %p139_p1 }
   0x5   : > { %v2762_v0 = vld [vmem:[%s4021_s1 + $0x4] ss:$16 sps:$4 sm:$0xff] (!%p140_p2)   ;;  %v2764_v1 = vld [vmem:[%s4021_s1 + $0xc] ss:$16 sps:$4 sm:$0xff] (!%p140_p2)   ;;  %v2766_v2 = vld [vmem:[%s4021_s1] ss:$16 sps:$4 sm:$0xff] (!%p140_p2)  }
   0x6   : > { %143 = sbr.rel (%p140_p2) target bundleno = 492 (0x1ec), region = 32  ;;  %1833 = vmatprep.subr.bf16.mxu0 (!%p140_p2), %v2762_v0  ;;  %v2767_v3 = vld [vmem:[%s4021_s1 + $0x8] ss:$16 sps:$4 sm:$0xff] (!%p140_p2)   ;;  %2045 = vmatprep.subr.bf16.mxu1 (!%p140_p2), %v2764_v1  ;;  %v2768_v4 = vld [vmem:[%s4021_s1 + $0x24] ss:$16 sps:$4 sm:$0xff] (!%p140_p2)   ;;  %s2392_s24 = sshll.u32 (!%p140_p2), %s2387_s13, 2 }
   0x7   : > { %1834 = vmatpush1.bf16.msra.mxu0 (!%p140_p2), %v2766_v2  ;;  %2046 = vmatpush1.bf16.msra.mxu1 (!%p140_p2), %v2767_v3  ;;  %v2770_v5 = vld [vmem:[%s4021_s1 + $0x2c] ss:$16 sps:$4 sm:$0xff] (!%p140_p2)   ;;  %v2772_v6 = vld [vmem:[%s4021_s1 + $0x20] ss:$16 sps:$4 sm:$0xff] (!%p140_p2)   ;;  %v2773_v7 = vld [vmem:[%s4021_s1 + $0x28] ss:$16 sps:$4 sm:$0xff] (!%p140_p2)  }
   0x8   : > { %1835 = vmatprep.subr.bf16.mxu0 (!%p140_p2), %v2768_v4  ;;  %2047 = vmatprep.subr.bf16.mxu1 (!%p140_p2), %v2770_v5  ;;  %v2774_v8 = vld [vmem:[%s4021_s1 + $0x44] ss:$16 sps:$4 sm:$0xff] (!%p140_p2)   ;;  %v2776_v9 = vld [vmem:[%s4021_s1 + $0x4c] ss:$16 sps:$4 sm:$0xff] (!%p140_p2)   ;;  %v2778_v10 = vld [vmem:[%s4021_s1 + $0x40] ss:$16 sps:$4 sm:$0xff] (!%p140_p2)  }
   0x9   : > { %v2779_v11 = vld [vmem:[%s4021_s1 + $0x48] ss:$16 sps:$4 sm:$0xff] (!%p140_p2)   ;;  %v2780_v12 = vld [vmem:[%s4021_s1 + $0x64] ss:$16 sps:$4 sm:$0xff] (!%p140_p2)   ;;  %v2782_v13 = vld [vmem:[%s4021_s1 + $0x6c] ss:$16 sps:$4 sm:$0xff] (!%p140_p2)  }
   0xa   : > { %v2784_v14 = vld [vmem:[%s4021_s1 + $0x60] ss:$16 sps:$4 sm:$0xff] (!%p140_p2)   ;;  %v2785_v15 = vld [vmem:[%s4021_s1 + $0x68] ss:$16 sps:$4 sm:$0xff] (!%p140_p2)   ;;  %v2786_v16 = vld [vmem:[%s4021_s1 + $0x84] ss:$16 sps:$4 sm:$0xff] (!%p140_p2)  }
   0xb   : > { %1836 = vmatpush1.bf16.msra.mxu0 (!%p140_p2), %v2772_v6  ;;  %2048 = vmatpush1.bf16.msra.mxu1 (!%p140_p2), %v2773_v7  ;;  %v2788_v17 = vld [vmem:[%s4021_s1 + $0x8c] ss:$16 sps:$4 sm:$0xff] (!%p140_p2)   ;;  %v2790_v18 = vld [vmem:[%s4021_s1 + $0x80] ss:$16 sps:$4 sm:$0xff] (!%p140_p2)   ;;  %v2791_v19 = vld [vmem:[%s4021_s1 + $0x88] ss:$16 sps:$4 sm:$0xff] (!%p140_p2)  }
   0xc   : > { %1837 = vmatprep.subr.bf16.mxu0 (!%p140_p2), %v2774_v8  ;;  %2049 = vmatprep.subr.bf16.mxu1 (!%p140_p2), %v2776_v9  ;;  %v2792_v20 = vld [vmem:[%s4021_s1 + $0xa4] ss:$16 sps:$4 sm:$0xff] (!%p140_p2)   ;;  %v2794_v21 = vld [vmem:[%s4021_s1 + $0xac] ss:$16 sps:$4 sm:$0xff] (!%p140_p2)   ;;  %v2796_v22 = vld [vmem:[%s4021_s1 + $0xa0] ss:$16 sps:$4 sm:$0xff] (!%p140_p2)  }
   0xd   : > { %v2797_v23 = vld [vmem:[%s4021_s1 + $0xa8] ss:$16 sps:$4 sm:$0xff]   ;;  %v2798_v24 = vld [vmem:[%s4021_s1 + $0xc4] ss:$16 sps:$4 sm:$0xff]   ;;  %v2800_v25 = vld [vmem:[%s4021_s1 + $0xcc] ss:$16 sps:$4 sm:$0xff]  }
   0xe   : > { %v2802_v26 = vld [vmem:[%s4021_s1 + $0xc0] ss:$16 sps:$4 sm:$0xff]   ;;  %v2803_v27 = vld [vmem:[%s4021_s1 + $0xc8] ss:$16 sps:$4 sm:$0xff]   ;;  %v2804_v28 = vld [vmem:[%s4021_s1 + $0xe4] ss:$16 sps:$4 sm:$0xff]  }
   0xf   : > { %1838 = vmatpush1.bf16.msra.mxu0 %v2778_v10  ;;  %2050 = vmatpush1.bf16.msra.mxu1 %v2779_v11  ;;  %v2806_v29 = vld [vmem:[%s4021_s1 + $0xec] ss:$16 sps:$4 sm:$0xff]   ;;  %v2808_v30 = vld [vmem:[%s4021_s1 + $0xe0] ss:$16 sps:$4 sm:$0xff]   ;;  %v2809_v31 = vld [vmem:[%s4021_s1 + $0xe8] ss:$16 sps:$4 sm:$0xff]  }
  0x10   : > { %1839 = vmatprep.subr.bf16.mxu0 %v2780_v12  ;;  %2051 = vmatprep.subr.bf16.mxu1 %v2782_v13  ;;  %v2810_v32 = vld [vmem:[%s4021_s1 + $0x104] ss:$16 sps:$4 sm:$0xff]   ;;  %p166_p3 = scmp.lt.s32.totalorder %s2392_s24, 7  ;;  %v2812_v33 = vld [vmem:[%s4021_s1 + $0x10c] ss:$16 sps:$4 sm:$0xff]  }
  0x11   : > { %v2814_v34 = vld [vmem:[%s4021_s1 + $0x100] ss:$16 sps:$4 sm:$0xff]   ;;  %v2815_v35 = vld [vmem:[%s4021_s1 + $0x108] ss:$16 sps:$4 sm:$0xff]   ;;  %v2816_v36 = vld [vmem:[%s4021_s1 + $0x124] ss:$16 sps:$4 sm:$0xff]  }
  0x12   : > { %s4025_s24 = smov (!%p166_p3, %s2392_s24), 7  ;;  %v2818_v37 = vld [vmem:[%s4021_s1 + $0x12c] ss:$16 sps:$4 sm:$0xff]   ;;  %v2820_v38 = vld [vmem:[%s4021_s1 + $0x120] ss:$16 sps:$4 sm:$0xff]  }
  0x13   : > { %1840 = vmatpush1.bf16.msra.mxu0 %v2784_v14  ;;  %2052 = vmatpush1.bf16.msra.mxu1 %v2785_v15  ;;  %v2821_v39 = vld [vmem:[%s4021_s1 + $0x128] ss:$16 sps:$4 sm:$0xff]   ;;  %v2822_v40 = vld [vmem:[%s4021_s1 + $0x144] ss:$16 sps:$4 sm:$0xff]   ;;  %s2680_s21 = sshll.u32 %s4025_s24, 5  ;;  %s2681_s23 = sshll.u32 %s4025_s24, 4 }
  0x14   : > { %1841 = vmatprep.subr.bf16.mxu0 %v2786_v16  ;;  %2053 = vmatprep.subr.bf16.mxu1 %v2788_v17  ;;  %v2824_v41 = vld [vmem:[%s4021_s1 + $0x14c] ss:$16 sps:$4 sm:$0xff]   ;;  %v2826_v42 = vld [vmem:[%s4021_s1 + $0x140] ss:$16 sps:$4 sm:$0xff]   ;;  %v2827_v43 = vld [vmem:[%s4021_s1 + $0x148] ss:$16 sps:$4 sm:$0xff]   ;;  %s3322_s4 = scalar_lea.vmem %s4020_s0, %s2680_s21  ;;  %s4007_s27 = scalar_lea.vmem %s4023_s3, %s2681_s23 }
  0x15   : > { %v2828_v44 = vld [vmem:[%s4021_s1 + $0x164] ss:$16 sps:$4 sm:$0xff]   ;;  %v2830_v45 = vld [vmem:[%s4021_s1 + $0x16c] ss:$16 sps:$4 sm:$0xff]   ;;  %v2832_v48 = vld [vmem:[%s4021_s1 + $0x160] ss:$16 sps:$4 sm:$0xff]  }
  0x16   : > { %v179_v46 = vld [vmem:[%s3322_s4] sm:$0xff]  ;;  %v2833_v49 = vld [vmem:[%s4021_s1 + $0x168] ss:$16 sps:$4 sm:$0xff]   ;;  %v2836_v52 = vld [vmem:[%s4021_s1 + $0x18c] ss:$16 sps:$4 sm:$0xff]  }
  0x17   : > { %1842 = vmatpush1.bf16.msra.mxu0 %v2790_v18  ;;  %2054 = vmatpush1.bf16.msra.mxu1 %v2791_v19  ;;  %v183_v47 = vld [vmem:[%s3322_s4 + $0x20] sm:$0xff]  ;;  %v2839_v54 = vld [vmem:[%s4021_s1 + $0x188] ss:$16 sps:$4 sm:$0xff]   ;;  %v2842_v56 = vld [vmem:[%s4021_s1 + $0x1ac] ss:$16 sps:$4 sm:$0xff]  }
  0x18   : > { %1843 = vmatprep.subr.bf16.mxu0 %v2792_v20  ;;  %2055 = vmatprep.subr.bf16.mxu1 %v2794_v21  ;;  %v2399_v50 = vcombine.high %v179_v46, %v183_v47  ;;  %v2834_v51 = vld [vmem:[%s4021_s1 + $0x184] ss:$16 sps:$4 sm:$0xff]   ;;  %v2838_v53 = vld [vmem:[%s4021_s1 + $0x180] ss:$16 sps:$4 sm:$0xff]   ;;  %v2845_v58 = vld [vmem:[%s4021_s1 + $0x1a8] ss:$16 sps:$4 sm:$0xff]   ;;  %v2398_v5 = vcombine.low %v179_v46, %v183_v47 }
  0x19   : > { %v2840_v55 = vld [vmem:[%s4021_s1 + $0x1a4] ss:$16 sps:$4 sm:$0xff]   ;;  %v2844_v57 = vld [vmem:[%s4021_s1 + $0x1a0] ss:$16 sps:$4 sm:$0xff]   ;;  %v2848_v60 = vld [vmem:[%s4021_s1 + $0x1cc] ss:$16 sps:$4 sm:$0xff]  }
  0x1a   : > { %1865 = vmatprep.mubr.bf16.mxu0 %v2399_v50  ;;  %2077 = vmatprep.mubr.bf16.mxu1 %v2399_v50  ;;  %v2846_v59 = vld [vmem:[%s4021_s1 + $0x1c4] ss:$16 sps:$4 sm:$0xff]   ;;  %v2850_v61 = vld [vmem:[%s4021_s1 + $0x1c0] ss:$16 sps:$4 sm:$0xff]   ;;  %v2851_v62 = vld [vmem:[%s4021_s1 + $0x1c8] ss:$16 sps:$4 sm:$0xff]  }
  0x1b   : > { %1844 = vmatpush1.bf16.msra.mxu0 %v2796_v22  ;;  %2056 = vmatpush1.bf16.msra.mxu1 %v2797_v23  ;;  %v2852_v63 = vld [vmem:[%s4021_s1 + $0x1e4] ss:$16 sps:$4 sm:$0xff]   ;;  %v2854_v0 = vld [vmem:[%s4021_s1 + $0x1ec] ss:$16 sps:$4 sm:$0xff]   ;;  %v2856_v1 = vld [vmem:[%s4021_s1 + $0x1e0] ss:$16 sps:$4 sm:$0xff]  }
  0x1c   : > { %1845 = vmatprep.subr.bf16.mxu0 %v2798_v24  ;;  %2057 = vmatprep.subr.bf16.mxu1 %v2800_v25  ;;  %v2857_v2 = vld [vmem:[%s4021_s1 + $0x1e8] ss:$16 sps:$4 sm:$0xff]   ;;  %v2860_v3 = vld [vmem:[%s4021_s1 + $0x204] ss:$16 sps:$4 sm:$0xff]   ;;  %v2863_v4 = vld [vmem:[%s4021_s1 + $0x20c] ss:$16 sps:$4 sm:$0xff]  }
  0x1d   : > { %v2858_v6 = vld [vmem:[%s4021_s1 + $0x200] ss:$16 sps:$4 sm:$0xff]   ;;  %v2861_v7 = vld [vmem:[%s4021_s1 + $0x208] ss:$16 sps:$4 sm:$0xff]   ;;  %v2866_v8 = vld [vmem:[%s4021_s1 + $0x224] ss:$16 sps:$4 sm:$0xff]  }
  0x1e   : > { %v2869_v9 = vld [vmem:[%s4021_s1 + $0x22c] ss:$16 sps:$4 sm:$0xff]   ;;  %v2864_v10 = vld [vmem:[%s4021_s1 + $0x220] ss:$16 sps:$4 sm:$0xff]   ;;  %v2867_v11 = vld [vmem:[%s4021_s1 + $0x228] ss:$16 sps:$4 sm:$0xff]  }
  0x1f   : > { %1846 = vmatpush1.bf16.msra.mxu0 %v2802_v26  ;;  %2058 = vmatpush1.bf16.msra.mxu1 %v2803_v27  ;;  %v2872_v12 = vld [vmem:[%s4021_s1 + $0x244] ss:$16 sps:$4 sm:$0xff]   ;;  %v2875_v13 = vld [vmem:[%s4021_s1 + $0x24c] ss:$16 sps:$4 sm:$0xff]   ;;  %v2870_v14 = vld [vmem:[%s4021_s1 + $0x240] ss:$16 sps:$4 sm:$0xff]  }
  0x20   : > { %1847 = vmatprep.subr.bf16.mxu0 %v2804_v28  ;;  %2059 = vmatprep.subr.bf16.mxu1 %v2806_v29  ;;  %v2873_v15 = vld [vmem:[%s4021_s1 + $0x248] ss:$16 sps:$4 sm:$0xff]   ;;  %v2878_v16 = vld [vmem:[%s4021_s1 + $0x264] ss:$16 sps:$4 sm:$0xff]   ;;  %v2881_v17 = vld [vmem:[%s4021_s1 + $0x26c] ss:$16 sps:$4 sm:$0xff]  }
  0x21   : > { %v2876_v18 = vld [vmem:[%s4021_s1 + $0x260] ss:$16 sps:$4 sm:$0xff]   ;;  %v2879_v19 = vld [vmem:[%s4021_s1 + $0x268] ss:$16 sps:$4 sm:$0xff]   ;;  %v2884_v20 = vld [vmem:[%s4021_s1 + $0x284] ss:$16 sps:$4 sm:$0xff]  }
  0x22   : > { %v2887_v21 = vld [vmem:[%s4021_s1 + $0x28c] ss:$16 sps:$4 sm:$0xff]   ;;  %v2882_v22 = vld [vmem:[%s4021_s1 + $0x280] ss:$16 sps:$4 sm:$0xff]   ;;  %v2885_v23 = vld [vmem:[%s4021_s1 + $0x288] ss:$16 sps:$4 sm:$0xff]  }
  0x23   : > { %1848 = vmatpush1.bf16.msra.mxu0 %v2808_v30  ;;  %2060 = vmatpush1.bf16.msra.mxu1 %v2809_v31  ;;  %v2890_v24 = vld [vmem:[%s4021_s1 + $0x2a4] ss:$16 sps:$4 sm:$0xff]   ;;  %v2893_v25 = vld [vmem:[%s4021_s1 + $0x2ac] ss:$16 sps:$4 sm:$0xff]   ;;  %v2888_v29 = vld [vmem:[%s4021_s1 + $0x2a0] ss:$16 sps:$4 sm:$0xff]  }
  0x24   : > { %1849 = vmatprep.subr.bf16.mxu0 %v2810_v32  ;;  %2061 = vmatprep.subr.bf16.mxu1 %v2812_v33  ;;  %v187_v26 = vld [vmem:[%s3322_s4 + $0x40] sm:$0xff]  ;;  %v2891_v30 = vld [vmem:[%s4021_s1 + $0x2a8] ss:$16 sps:$4 sm:$0xff]   ;;  %v2899_v33 = vld [vmem:[%s4021_s1 + $0x2cc] ss:$16 sps:$4 sm:$0xff]  }
  0x25   : > { %v191_v27 = vld [vmem:[%s3322_s4 + $0x60] sm:$0xff]  ;;  %v2909_v46 = vld [vmem:[%s4021_s1 + $0x308] ss:$16 sps:$4 sm:$0xff]  }
  0x26   : > { %v2407_v28 = vcombine.high %v187_v26, %v191_v27  ;;  %v2406_v31 = vcombine.low %v187_v26, %v191_v27  ;;  %v2896_v32 = vld [vmem:[%s4021_s1 + $0x2c4] ss:$16 sps:$4 sm:$0xff]   ;;  %v2915_v50 = vld [vmem:[%s4021_s1 + $0x328] ss:$16 sps:$4 sm:$0xff]  }
  0x27   : > { %1850 = vmatpush1.bf16.msra.mxu0 %v2814_v34  ;;  %2062 = vmatpush1.bf16.msra.mxu1 %v2815_v35  ;;  %v3467_v34 = vld [vmem:[%s3322_s4 + $0x8] sm:$0xff]  ;;  %v2914_v47 = vld [vmem:[%s4021_s1 + $0x324] ss:$16 sps:$4 sm:$0xff]  }
  0x28   : > { %1851 = vmatprep.subr.bf16.mxu0 %v2816_v36  ;;  %2063 = vmatprep.subr.bf16.mxu1 %v2818_v37  ;;  %v3470_v35 = vld [vmem:[%s3322_s4 + $0x28] sm:$0xff]  ;;  %v2894_v36 = vld [vmem:[%s4021_s1 + $0x2c0] ss:$16 sps:$4 sm:$0xff]  }
  0x29   : > { %v2897_v37 = vld [vmem:[%s4021_s1 + $0x2c8] ss:$16 sps:$4 sm:$0xff]   ;;  %v3626_v27 = vld [vmem:[%s3322_s4 + $0x30] sm:$0xff] }
  0x2b   : > { %1852 = vmatpush1.bf16.msra.mxu0 %v2820_v38  ;;  %2064 = vmatpush1.bf16.msra.mxu1 %v2821_v39  ;;  %v2401_v38 = vcombine.high %v3467_v34, %v3470_v35  ;;  %v2902_v39 = vld [vmem:[%s4021_s1 + $0x2e4] ss:$16 sps:$4 sm:$0xff]  }
  0x2c   : > { %1853 = vmatprep.subr.bf16.mxu0 %v2822_v40  ;;  %2065 = vmatprep.subr.bf16.mxu1 %v2824_v41  ;;  %v2905_v40 = vld [vmem:[%s4021_s1 + $0x2ec] ss:$16 sps:$4 sm:$0xff]   ;;  %v2900_v41 = vld [vmem:[%s4021_s1 + $0x2e0] ss:$16 sps:$4 sm:$0xff]  }
  0x2f   : > { %1854 = vmatpush1.bf16.msra.mxu0 %v2826_v42  ;;  %2066 = vmatpush1.bf16.msra.mxu1 %v2827_v43  ;;  %v2903_v42 = vld [vmem:[%s4021_s1 + $0x2e8] ss:$16 sps:$4 sm:$0xff]   ;;  %v2908_v43 = vld [vmem:[%s4021_s1 + $0x304] ss:$16 sps:$4 sm:$0xff]  }
  0x30   : > { %1855 = vmatprep.subr.bf16.mxu0 %v2828_v44  ;;  %2067 = vmatprep.subr.bf16.mxu1 %v2830_v45  ;;  %v2911_v44 = vld [vmem:[%s4021_s1 + $0x30c] ss:$16 sps:$4 sm:$0xff]   ;;  %v2906_v45 = vld [vmem:[%s4021_s1 + $0x300] ss:$16 sps:$4 sm:$0xff]  }
  0x33   : > { %1856 = vmatpush1.bf16.msra.mxu0 %v2832_v48  ;;  %2068 = vmatpush1.bf16.msra.mxu1 %v2833_v49  ;;  %v2917_v48 = vld [vmem:[%s4021_s1 + $0x32c] ss:$16 sps:$4 sm:$0xff]   ;;  %v2912_v49 = vld [vmem:[%s4021_s1 + $0x320] ss:$16 sps:$4 sm:$0xff]  }
  0x34   : > { %1857 = vmatprep.subr.bf16.mxu0 %v2834_v51  ;;  %2069 = vmatprep.subr.bf16.mxu1 %v2836_v52  ;;  %v2920_v51 = vld [vmem:[%s4021_s1 + $0x344] ss:$16 sps:$4 sm:$0xff]   ;;  %v2923_v52 = vld [vmem:[%s4021_s1 + $0x34c] ss:$16 sps:$4 sm:$0xff]  }
  0x37   : > { %1858 = vmatpush1.bf16.msra.mxu0 %v2838_v53  ;;  %2070 = vmatpush1.bf16.msra.mxu1 %v2839_v54  ;;  %v2918_v53 = vld [vmem:[%s4021_s1 + $0x340] ss:$16 sps:$4 sm:$0xff]   ;;  %v2921_v54 = vld [vmem:[%s4021_s1 + $0x348] ss:$16 sps:$4 sm:$0xff]  }
  0x38   : > { %1859 = vmatprep.subr.bf16.mxu0 %v2840_v55  ;;  %2071 = vmatprep.subr.bf16.mxu1 %v2842_v56  ;;  %v2926_v55 = vld [vmem:[%s4021_s1 + $0x364] ss:$16 sps:$4 sm:$0xff]   ;;  %v2929_v56 = vld [vmem:[%s4021_s1 + $0x36c] ss:$16 sps:$4 sm:$0xff]  }
  0x3b   : > { %1860 = vmatpush1.bf16.msra.mxu0 %v2844_v57  ;;  %2072 = vmatpush1.bf16.msra.mxu1 %v2845_v58  ;;  %v2924_v57 = vld [vmem:[%s4021_s1 + $0x360] ss:$16 sps:$4 sm:$0xff]   ;;  %v2927_v58 = vld [vmem:[%s4021_s1 + $0x368] ss:$16 sps:$4 sm:$0xff]  }
  0x3c   : > { %1861 = vmatprep.subr.bf16.mxu0 %v2846_v59  ;;  %2073 = vmatprep.subr.bf16.mxu1 %v2848_v60  ;;  %v2932_v59 = vld [vmem:[%s4021_s1 + $0x384] ss:$16 sps:$4 sm:$0xff]   ;;  %v2935_v60 = vld [vmem:[%s4021_s1 + $0x38c] ss:$16 sps:$4 sm:$0xff]  }
  0x3f   : > { %1862 = vmatpush1.bf16.msra.mxu0 %v2850_v61  ;;  %2074 = vmatpush1.bf16.msra.mxu1 %v2851_v62  ;;  %v2930_v61 = vld [vmem:[%s4021_s1 + $0x380] ss:$16 sps:$4 sm:$0xff]   ;;  %v2933_v62 = vld [vmem:[%s4021_s1 + $0x388] ss:$16 sps:$4 sm:$0xff]  }
  0x40   : > { %1863 = vmatprep.subr.bf16.mxu0 %v2852_v63  ;;  %2075 = vmatprep.subr.bf16.mxu1 %v2854_v0  ;;  %v2938_v63 = vld [vmem:[%s4021_s1 + $0x3a4] ss:$16 sps:$4 sm:$0xff]   ;;  %v2941_v0 = vld [vmem:[%s4021_s1 + $0x3ac] ss:$16 sps:$4 sm:$0xff]  }
  0x43   : > { %1864 = vmatpush1.bf16.msra.mxu0 %v2856_v1  ;;  %2076 = vmatpush1.bf16.msra.mxu1 %v2857_v2  ;;  %v2936_v1 = vld [vmem:[%s4021_s1 + $0x3a0] ss:$16 sps:$4 sm:$0xff]   ;;  %v2939_v2 = vld [vmem:[%s4021_s1 + $0x3a8] ss:$16 sps:$4 sm:$0xff]  }
  0x44   : > { %1886 = vmatprep.subr.bf16.mxu0 %v2860_v3  ;;  %2098 = vmatprep.subr.bf16.mxu1 %v2863_v4  ;;  %v2944_v3 = vld [vmem:[%s4021_s1 + $0x3c4] ss:$16 sps:$4 sm:$0xff]   ;;  %v2947_v4 = vld [vmem:[%s4021_s1 + $0x3cc] ss:$16 sps:$4 sm:$0xff]  }
  0x46   : > { %1866 = vmatmul.mubr.bf16.vlgmr.msra.gmra.mrb[0].mxu0 %v2398_v5  ;;  %2078 = vmatmul.mubr.bf16.vlgmr.msra.gmra.mrb[0].mxu1 %v2398_v5  ;;  %v2942_v5 = vld [vmem:[%s4021_s1 + $0x3c0] ss:$16 sps:$4 sm:$0xff]  }
  0x47   : > { %1887 = vmatpush1.bf16.msra.mxu0 %v2858_v6  ;;  %2099 = vmatpush1.bf16.msra.mxu1 %v2861_v7  ;;  %v2945_v6 = vld [vmem:[%s4021_s1 + $0x3c8] ss:$16 sps:$4 sm:$0xff]   ;;  %v2950_v7 = vld [vmem:[%s4021_s1 + $0x3e4] ss:$16 sps:$4 sm:$0xff]  }
  0x48   : > { %1888 = vmatprep.subr.bf16.mxu0 %v2866_v8  ;;  %2100 = vmatprep.subr.bf16.mxu1 %v2869_v9  ;;  %v2953_v8 = vld [vmem:[%s4021_s1 + $0x3ec] ss:$16 sps:$4 sm:$0xff]   ;;  %v2948_v9 = vld [vmem:[%s4021_s1 + $0x3e0] ss:$16 sps:$4 sm:$0xff]  }
  0x49   : > { %1875 = vmatprep.mubr.bf16.mxu0 %v2407_v28  ;;  %2087 = vmatprep.mubr.bf16.mxu1 %v2407_v28  ;;  %v2966_v28 = vld [vmem:[%s4021_s1 + $0x440] ss:$16 sps:$4 sm:$0xff]  }
  0x4b   : > { %1889 = vmatpush1.bf16.msra.mxu0 %v2864_v10  ;;  %2101 = vmatpush1.bf16.msra.mxu1 %v2867_v11  ;;  %v2951_v10 = vld [vmem:[%s4021_s1 + $0x3e8] ss:$16 sps:$4 sm:$0xff]   ;;  %v2956_v11 = vld [vmem:[%s4021_s1 + $0x404] ss:$16 sps:$4 sm:$0xff]  }
  0x4c   : > { %1890 = vmatprep.subr.bf16.mxu0 %v2872_v12  ;;  %2102 = vmatprep.subr.bf16.mxu1 %v2875_v13  ;;  %v2959_v12 = vld [vmem:[%s4021_s1 + $0x40c] ss:$16 sps:$4 sm:$0xff]   ;;  %v2954_v13 = vld [vmem:[%s4021_s1 + $0x400] ss:$16 sps:$4 sm:$0xff]  }
  0x4e   : > { %1876 = vmatmul.mubr.bf16.gmra.mrb[4].mxu0 %v2406_v31  ;;  %2088 = vmatmul.mubr.bf16.gmra.mrb[4].mxu1 %v2406_v31  ;;  %v2977_v31 = vld [vmem:[%s4021_s1 + $0x46c] ss:$16 sps:$4 sm:$0xff]  }
  0x4f   : > { %1891 = vmatpush1.bf16.msra.mxu0 %v2870_v14  ;;  %2103 = vmatpush1.bf16.msra.mxu1 %v2873_v15  ;;  %v2957_v14 = vld [vmem:[%s4021_s1 + $0x408] ss:$16 sps:$4 sm:$0xff]   ;;  %v2400_v15 = vcombine.low %v3467_v34, %v3470_v35  ;;  %v2980_v35 = vld [vmem:[%s4021_s1 + $0x484] ss:$16 sps:$4 sm:$0xff]  }
  0x50   : > { %1892 = vmatprep.subr.bf16.mxu0 %v2878_v16  ;;  %2104 = vmatprep.subr.bf16.mxu1 %v2881_v17  ;;  %v188_v16 = vld [vmem:[%s3322_s4 + $0x48] sm:$0xff] }
  0x51   : > { %1918 = vmatprep.mubr.bf16.mxu0 %v2401_v38  ;;  %2130 = vmatprep.mubr.bf16.mxu1 %v2401_v38  ;;  %v192_v17 = vld [vmem:[%s3322_s4 + $0x68] sm:$0xff] }
  0x52   : > { %v2408_v26 = vcombine.low %v188_v16, %v192_v17  ;;  %v2975_v34 = vld [vmem:[%s4021_s1 + $0x468] ss:$16 sps:$4 sm:$0xff]  }
  0x53   : > { %1893 = vmatpush1.bf16.msra.mxu0 %v2876_v18  ;;  %2105 = vmatpush1.bf16.msra.mxu1 %v2879_v19  ;;  %v2962_v18 = vld [vmem:[%s4021_s1 + $0x424] ss:$16 sps:$4 sm:$0xff]   ;;  %v2965_v19 = vld [vmem:[%s4021_s1 + $0x42c] ss:$16 sps:$4 sm:$0xff]   ;;  %v2981_v38 = vld [vmem:[%s4021_s1 + $0x488] ss:$16 sps:$4 sm:$0xff]  }
  0x54   : > { %1894 = vmatprep.subr.bf16.mxu0 %v2884_v20  ;;  %2106 = vmatprep.subr.bf16.mxu1 %v2887_v21  ;;  %v2409_v20 = vcombine.high %v188_v16, %v192_v17  ;;  %v2960_v21 = vld [vmem:[%s4021_s1 + $0x420] ss:$16 sps:$4 sm:$0xff]   ;;  %v3049_v16 = vld [vmem:[%s4021_s1 + $0x5ec] ss:$16 sps:$4 sm:$0xff]  }
  0x55   : > { %v3044_v17 = vld [vmem:[%s4021_s1 + $0x5e0] ss:$16 sps:$4 sm:$0xff]  }
  0x57   : > { %1895 = vmatpush1.bf16.msra.mxu0 %v2882_v22  ;;  %2107 = vmatpush1.bf16.msra.mxu1 %v2885_v23  ;;  %v2963_v22 = vld [vmem:[%s4021_s1 + $0x428] ss:$16 sps:$4 sm:$0xff]   ;;  %v2968_v23 = vld [vmem:[%s4021_s1 + $0x444] ss:$16 sps:$4 sm:$0xff]  }
  0x58   : > { %1896 = vmatprep.subr.bf16.mxu0 %v2890_v24  ;;  %2108 = vmatprep.subr.bf16.mxu1 %v2893_v25  ;;  %v2971_v24 = vld [vmem:[%s4021_s1 + $0x44c] ss:$16 sps:$4 sm:$0xff]   ;;  %v3623_v25 = vld [vmem:[%s3322_s4 + $0x10] sm:$0xff] }
  0x5b   : > { %1897 = vmatpush1.bf16.msra.mxu0 %v2888_v29  ;;  %2109 = vmatpush1.bf16.msra.mxu1 %v2891_v30  ;;  %v2969_v29 = vld [vmem:[%s4021_s1 + $0x448] ss:$16 sps:$4 sm:$0xff]   ;;  %v2974_v30 = vld [vmem:[%s4021_s1 + $0x464] ss:$16 sps:$4 sm:$0xff]  }
  0x5c   : > { %1898 = vmatprep.subr.bf16.mxu0 %v2896_v32  ;;  %2110 = vmatprep.subr.bf16.mxu1 %v2899_v33  ;;  %v2403_v32 = vcombine.high %v3623_v25, %v3626_v27  ;;  %v2972_v33 = vld [vmem:[%s4021_s1 + $0x460] ss:$16 sps:$4 sm:$0xff]  }
  0x5f   : > { %1899 = vmatpush1.bf16.msra.mxu0 %v2894_v36  ;;  %2111 = vmatpush1.bf16.msra.mxu1 %v2897_v37  ;;  %v2983_v36 = vld [vmem:[%s4021_s1 + $0x48c] ss:$16 sps:$4 sm:$0xff]   ;;  %v2978_v37 = vld [vmem:[%s4021_s1 + $0x480] ss:$16 sps:$4 sm:$0xff]  }
  0x60   : > { %1900 = vmatprep.subr.bf16.mxu0 %v2902_v39  ;;  %2112 = vmatprep.subr.bf16.mxu1 %v2905_v40  ;;  %v2986_v39 = vld [vmem:[%s4021_s1 + $0x4a4] ss:$16 sps:$4 sm:$0xff]   ;;  %v2989_v40 = vld [vmem:[%s4021_s1 + $0x4ac] ss:$16 sps:$4 sm:$0xff]  }
  0x63   : > { %1901 = vmatpush1.bf16.msra.mxu0 %v2900_v41  ;;  %2113 = vmatpush1.bf16.msra.mxu1 %v2903_v42  ;;  %v2984_v41 = vld [vmem:[%s4021_s1 + $0x4a0] ss:$16 sps:$4 sm:$0xff]   ;;  %v2987_v42 = vld [vmem:[%s4021_s1 + $0x4a8] ss:$16 sps:$4 sm:$0xff]  }
  0x64   : > { %1902 = vmatprep.subr.bf16.mxu0 %v2908_v43  ;;  %2114 = vmatprep.subr.bf16.mxu1 %v2911_v44  ;;  %v2992_v43 = vld [vmem:[%s4021_s1 + $0x4c4] ss:$16 sps:$4 sm:$0xff]   ;;  %v2995_v44 = vld [vmem:[%s4021_s1 + $0x4cc] ss:$16 sps:$4 sm:$0xff]  }
  0x67   : > { %1903 = vmatpush1.bf16.msra.mxu0 %v2906_v45  ;;  %2115 = vmatpush1.bf16.msra.mxu1 %v2909_v46  ;;  %v2990_v45 = vld [vmem:[%s4021_s1 + $0x4c0] ss:$16 sps:$4 sm:$0xff]   ;;  %v2993_v46 = vld [vmem:[%s4021_s1 + $0x4c8] ss:$16 sps:$4 sm:$0xff]  }
  0x68   : > { %1904 = vmatprep.subr.bf16.mxu0 %v2914_v47  ;;  %2116 = vmatprep.subr.bf16.mxu1 %v2917_v48  ;;  %v2998_v47 = vld [vmem:[%s4021_s1 + $0x4e4] ss:$16 sps:$4 sm:$0xff]   ;;  %v3001_v48 = vld [vmem:[%s4021_s1 + $0x4ec] ss:$16 sps:$4 sm:$0xff]  }
  0x6b   : > { %1905 = vmatpush1.bf16.msra.mxu0 %v2912_v49  ;;  %2117 = vmatpush1.bf16.msra.mxu1 %v2915_v50  ;;  %v2996_v49 = vld [vmem:[%s4021_s1 + $0x4e0] ss:$16 sps:$4 sm:$0xff]   ;;  %v2999_v50 = vld [vmem:[%s4021_s1 + $0x4e8] ss:$16 sps:$4 sm:$0xff]  }
  0x6c   : > { %1906 = vmatprep.subr.bf16.mxu0 %v2920_v51  ;;  %2118 = vmatprep.subr.bf16.mxu1 %v2923_v52  ;;  %v3004_v51 = vld [vmem:[%s4021_s1 + $0x504] ss:$16 sps:$4 sm:$0xff]   ;;  %v3007_v52 = vld [vmem:[%s4021_s1 + $0x50c] ss:$16 sps:$4 sm:$0xff]  }
  0x6f   : > { %1907 = vmatpush1.bf16.msra.mxu0 %v2918_v53  ;;  %2119 = vmatpush1.bf16.msra.mxu1 %v2921_v54  ;;  %v3002_v53 = vld [vmem:[%s4021_s1 + $0x500] ss:$16 sps:$4 sm:$0xff]   ;;  %v3005_v54 = vld [vmem:[%s4021_s1 + $0x508] ss:$16 sps:$4 sm:$0xff]  }
  0x70   : > { %1908 = vmatprep.subr.bf16.mxu0 %v2926_v55  ;;  %2120 = vmatprep.subr.bf16.mxu1 %v2929_v56  ;;  %v3010_v55 = vld [vmem:[%s4021_s1 + $0x524] ss:$16 sps:$4 sm:$0xff]   ;;  %v3013_v56 = vld [vmem:[%s4021_s1 + $0x52c] ss:$16 sps:$4 sm:$0xff]  }
  0x73   : > { %1909 = vmatpush1.bf16.msra.mxu0 %v2924_v57  ;;  %2121 = vmatpush1.bf16.msra.mxu1 %v2927_v58  ;;  %v3008_v57 = vld [vmem:[%s4021_s1 + $0x520] ss:$16 sps:$4 sm:$0xff]   ;;  %v3011_v58 = vld [vmem:[%s4021_s1 + $0x528] ss:$16 sps:$4 sm:$0xff]  }
  0x74   : > { %1910 = vmatprep.subr.bf16.mxu0 %v2932_v59  ;;  %2122 = vmatprep.subr.bf16.mxu1 %v2935_v60  ;;  %v3016_v59 = vld [vmem:[%s4021_s1 + $0x544] ss:$16 sps:$4 sm:$0xff]   ;;  %v3019_v60 = vld [vmem:[%s4021_s1 + $0x54c] ss:$16 sps:$4 sm:$0xff]  }
  0x77   : > { %1911 = vmatpush1.bf16.msra.mxu0 %v2930_v61  ;;  %2123 = vmatpush1.bf16.msra.mxu1 %v2933_v62  ;;  %v3014_v61 = vld [vmem:[%s4021_s1 + $0x540] ss:$16 sps:$4 sm:$0xff]   ;;  %v3017_v62 = vld [vmem:[%s4021_s1 + $0x548] ss:$16 sps:$4 sm:$0xff]  }
  0x78   : > { %1912 = vmatprep.subr.bf16.mxu0 %v2938_v63  ;;  %2124 = vmatprep.subr.bf16.mxu1 %v2941_v0  ;;  %v3022_v63 = vld [vmem:[%s4021_s1 + $0x564] ss:$16 sps:$4 sm:$0xff]   ;;  %v3025_v0 = vld [vmem:[%s4021_s1 + $0x56c] ss:$16 sps:$4 sm:$0xff]  }
  0x7b   : > { %1913 = vmatpush1.bf16.msra.mxu0 %v2936_v1  ;;  %2125 = vmatpush1.bf16.msra.mxu1 %v2939_v2  ;;  %v3020_v1 = vld [vmem:[%s4021_s1 + $0x560] ss:$16 sps:$4 sm:$0xff]   ;;  %v3023_v2 = vld [vmem:[%s4021_s1 + $0x568] ss:$16 sps:$4 sm:$0xff]  }
  0x7c   : > { %1914 = vmatprep.subr.bf16.mxu0 %v2944_v3  ;;  %2126 = vmatprep.subr.bf16.mxu1 %v2947_v4  ;;  %v3028_v3 = vld [vmem:[%s4021_s1 + $0x584] ss:$16 sps:$4 sm:$0xff]   ;;  %v3031_v4 = vld [vmem:[%s4021_s1 + $0x58c] ss:$16 sps:$4 sm:$0xff]  }
  0x7f   : > { %1915 = vmatpush1.bf16.msra.mxu0 %v2942_v5  ;;  %2127 = vmatpush1.bf16.msra.mxu1 %v2945_v6  ;;  %v3026_v5 = vld [vmem:[%s4021_s1 + $0x580] ss:$16 sps:$4 sm:$0xff]   ;;  %v3029_v6 = vld [vmem:[%s4021_s1 + $0x588] ss:$16 sps:$4 sm:$0xff]  }
  0x80   : > { %1916 = vmatprep.subr.bf16.mxu0 %v2950_v7  ;;  %2128 = vmatprep.subr.bf16.mxu1 %v2953_v8  ;;  %v3034_v7 = vld [vmem:[%s4021_s1 + $0x5a4] ss:$16 sps:$4 sm:$0xff]   ;;  %v3037_v8 = vld [vmem:[%s4021_s1 + $0x5ac] ss:$16 sps:$4 sm:$0xff]  }
  0x83   : > { %1917 = vmatpush1.bf16.msra.mxu0 %v2948_v9  ;;  %2129 = vmatpush1.bf16.msra.mxu1 %v2951_v10  ;;  %v3032_v9 = vld [vmem:[%s4021_s1 + $0x5a0] ss:$16 sps:$4 sm:$0xff]   ;;  %v3035_v10 = vld [vmem:[%s4021_s1 + $0x5a8] ss:$16 sps:$4 sm:$0xff]  }
  0x84   : > { %1939 = vmatprep.subr.bf16.mxu0 %v2956_v11  ;;  %2151 = vmatprep.subr.bf16.mxu1 %v2959_v12  ;;  %v3040_v11 = vld [vmem:[%s4021_s1 + $0x5c4] ss:$16 sps:$4 sm:$0xff]   ;;  %v3043_v12 = vld [vmem:[%s4021_s1 + $0x5cc] ss:$16 sps:$4 sm:$0xff]  }
  0x86   : > { %1919 = vmatmul.mubr.bf16.vlgmr.msra.gmra.mrb[0].mxu0 %v2400_v15  ;;  %2131 = vmatmul.mubr.bf16.vlgmr.msra.gmra.mrb[0].mxu1 %v2400_v15  ;;  %v3046_v15 = vld [vmem:[%s4021_s1 + $0x5e4] ss:$16 sps:$4 sm:$0xff]  }
  0x87   : > { %1940 = vmatpush1.bf16.msra.mxu0 %v2954_v13  ;;  %2152 = vmatpush1.bf16.msra.mxu1 %v2957_v14  ;;  %v3038_v13 = vld [vmem:[%s4021_s1 + $0x5c0] ss:$16 sps:$4 sm:$0xff]   ;;  %v3041_v14 = vld [vmem:[%s4021_s1 + $0x5c8] ss:$16 sps:$4 sm:$0xff]  }
  0x88   : > { %1941 = vmatprep.subr.bf16.mxu0 %v2962_v18  ;;  %2153 = vmatprep.subr.bf16.mxu1 %v2965_v19  ;;  %v3047_v18 = vld [vmem:[%s4021_s1 + $0x5e8] ss:$16 sps:$4 sm:$0xff]   ;;  %v3052_v19 = vld [vmem:[%s4021_s1 + $0x604] ss:$16 sps:$4 sm:$0xff]  }
  0x89   : > { %1928 = vmatprep.mubr.bf16.mxu0 %v2409_v20  ;;  %2140 = vmatprep.mubr.bf16.mxu1 %v2409_v20  ;;  %v3055_v20 = vld [vmem:[%s4021_s1 + $0x60c] ss:$16 sps:$4 sm:$0xff]  }
  0x8b   : > { %1942 = vmatpush1.bf16.msra.mxu0 %v2960_v21  ;;  %2154 = vmatpush1.bf16.msra.mxu1 %v2963_v22  ;;  %v2402_v21 = vcombine.low %v3623_v25, %v3626_v27  ;;  %v189_v22 = vld [vmem:[%s3322_s4 + $0x50] sm:$0xff]  ;;  %v3061_v25 = vld [vmem:[%s4021_s1 + $0x62c] ss:$16 sps:$4 sm:$0xff]  }
  0x8c   : > { %1943 = vmatprep.subr.bf16.mxu0 %v2968_v23  ;;  %2155 = vmatprep.subr.bf16.mxu1 %v2971_v24  ;;  %v193_v23 = vld [vmem:[%s3322_s4 + $0x70] sm:$0xff] }
  0x8d   : > { %v3050_v24 = vld [vmem:[%s4021_s1 + $0x600] ss:$16 sps:$4 sm:$0xff]   ;;  %v2411_v27 = vcombine.high %v189_v22, %v193_v23 }
  0x8e   : > { %1929 = vmatmul.mubr.bf16.gmra.mrb[4].mxu0 %v2408_v26  ;;  %2141 = vmatmul.mubr.bf16.gmra.mrb[4].mxu1 %v2408_v26  ;;  %v3053_v26 = vld [vmem:[%s4021_s1 + $0x608] ss:$16 sps:$4 sm:$0xff]  }
  0x8f   : > { %1944 = vmatpush1.bf16.msra.mxu0 %v2966_v28  ;;  %2156 = vmatpush1.bf16.msra.mxu1 %v2969_v29  ;;  %v3058_v28 = vld [vmem:[%s4021_s1 + $0x624] ss:$16 sps:$4 sm:$0xff]   ;;  %v3056_v29 = vld [vmem:[%s4021_s1 + $0x620] ss:$16 sps:$4 sm:$0xff]  }
  0x90   : > { %1945 = vmatprep.subr.bf16.mxu0 %v2974_v30  ;;  %2157 = vmatprep.subr.bf16.mxu1 %v2977_v31  ;;  %v3059_v30 = vld [vmem:[%s4021_s1 + $0x628] ss:$16 sps:$4 sm:$0xff]   ;;  %v3064_v31 = vld [vmem:[%s4021_s1 + $0x644] ss:$16 sps:$4 sm:$0xff]  }
  0x91   : > { %1971 = vmatprep.mubr.bf16.mxu0 %v2403_v32  ;;  %2183 = vmatprep.mubr.bf16.mxu1 %v2403_v32  ;;  %v3067_v32 = vld [vmem:[%s4021_s1 + $0x64c] ss:$16 sps:$4 sm:$0xff]  }
  0x93   : > { %1946 = vmatpush1.bf16.msra.mxu0 %v2972_v33  ;;  %2158 = vmatpush1.bf16.msra.mxu1 %v2975_v34  ;;  %v2410_v33 = vcombine.low %v189_v22, %v193_v23  ;;  %v3827_v34 = vld [vmem:[%s3322_s4 + $0x18] sm:$0xff]  ;;  %v3142_v23 = vld [vmem:[%s4021_s1 + $0x7e4] ss:$16 sps:$4 sm:$0xff]  }
  0x94   : > { %1947 = vmatprep.subr.bf16.mxu0 %v2980_v35  ;;  %2159 = vmatprep.subr.bf16.mxu1 %v2983_v36  ;;  %v3830_v35 = vld [vmem:[%s3322_s4 + $0x38] sm:$0xff]  ;;  %v3062_v36 = vld [vmem:[%s4021_s1 + $0x640] ss:$16 sps:$4 sm:$0xff]  }
  0x95   : > { %v3137_v22 = vld [vmem:[%s4021_s1 + $0x7c8] ss:$16 sps:$4 sm:$0xff]  }
  0x97   : > { %1948 = vmatpush1.bf16.msra.mxu0 %v2978_v37  ;;  %2160 = vmatpush1.bf16.msra.mxu1 %v2981_v38  ;;  %v3065_v37 = vld [vmem:[%s4021_s1 + $0x648] ss:$16 sps:$4 sm:$0xff]   ;;  %v3070_v38 = vld [vmem:[%s4021_s1 + $0x664] ss:$16 sps:$4 sm:$0xff]  }
  0x98   : > { %1949 = vmatprep.subr.bf16.mxu0 %v2986_v39  ;;  %2161 = vmatprep.subr.bf16.mxu1 %v2989_v40  ;;  %v3073_v39 = vld [vmem:[%s4021_s1 + $0x66c] ss:$16 sps:$4 sm:$0xff]   ;;  %v2405_v40 = vcombine.high %v3827_v34, %v3830_v35 }
  0x9b   : > { %1950 = vmatpush1.bf16.msra.mxu0 %v2984_v41  ;;  %2162 = vmatpush1.bf16.msra.mxu1 %v2987_v42  ;;  %v3068_v41 = vld [vmem:[%s4021_s1 + $0x660] ss:$16 sps:$4 sm:$0xff]   ;;  %v3071_v42 = vld [vmem:[%s4021_s1 + $0x668] ss:$16 sps:$4 sm:$0xff]  }
  0x9c   : > { %1951 = vmatprep.subr.bf16.mxu0 %v2992_v43  ;;  %2163 = vmatprep.subr.bf16.mxu1 %v2995_v44  ;;  %v3076_v43 = vld [vmem:[%s4021_s1 + $0x684] ss:$16 sps:$4 sm:$0xff]   ;;  %v3079_v44 = vld [vmem:[%s4021_s1 + $0x68c] ss:$16 sps:$4 sm:$0xff]  }
  0x9f   : > { %1952 = vmatpush1.bf16.msra.mxu0 %v2990_v45  ;;  %2164 = vmatpush1.bf16.msra.mxu1 %v2993_v46  ;;  %v3074_v45 = vld [vmem:[%s4021_s1 + $0x680] ss:$16 sps:$4 sm:$0xff]   ;;  %v3077_v46 = vld [vmem:[%s4021_s1 + $0x688] ss:$16 sps:$4 sm:$0xff]  }
  0xa0   : > { %1953 = vmatprep.subr.bf16.mxu0 %v2998_v47  ;;  %2165 = vmatprep.subr.bf16.mxu1 %v3001_v48  ;;  %v3082_v47 = vld [vmem:[%s4021_s1 + $0x6a4] ss:$16 sps:$4 sm:$0xff]   ;;  %v3085_v48 = vld [vmem:[%s4021_s1 + $0x6ac] ss:$16 sps:$4 sm:$0xff]  }
  0xa3   : > { %1954 = vmatpush1.bf16.msra.mxu0 %v2996_v49  ;;  %2166 = vmatpush1.bf16.msra.mxu1 %v2999_v50  ;;  %v3080_v49 = vld [vmem:[%s4021_s1 + $0x6a0] ss:$16 sps:$4 sm:$0xff]   ;;  %v3083_v50 = vld [vmem:[%s4021_s1 + $0x6a8] ss:$16 sps:$4 sm:$0xff]  }
  0xa4   : > { %1955 = vmatprep.subr.bf16.mxu0 %v3004_v51  ;;  %2167 = vmatprep.subr.bf16.mxu1 %v3007_v52  ;;  %v3088_v51 = vld [vmem:[%s4021_s1 + $0x6c4] ss:$16 sps:$4 sm:$0xff]   ;;  %v3091_v52 = vld [vmem:[%s4021_s1 + $0x6cc] ss:$16 sps:$4 sm:$0xff]  }
  0xa7   : > { %1956 = vmatpush1.bf16.msra.mxu0 %v3002_v53  ;;  %2168 = vmatpush1.bf16.msra.mxu1 %v3005_v54  ;;  %v3086_v53 = vld [vmem:[%s4021_s1 + $0x6c0] ss:$16 sps:$4 sm:$0xff]   ;;  %v3089_v54 = vld [vmem:[%s4021_s1 + $0x6c8] ss:$16 sps:$4 sm:$0xff]  }
  0xa8   : > { %1957 = vmatprep.subr.bf16.mxu0 %v3010_v55  ;;  %2169 = vmatprep.subr.bf16.mxu1 %v3013_v56  ;;  %v3094_v55 = vld [vmem:[%s4021_s1 + $0x6e4] ss:$16 sps:$4 sm:$0xff]   ;;  %v3097_v56 = vld [vmem:[%s4021_s1 + $0x6ec] ss:$16 sps:$4 sm:$0xff]  }
  0xab   : > { %1958 = vmatpush1.bf16.msra.mxu0 %v3008_v57  ;;  %2170 = vmatpush1.bf16.msra.mxu1 %v3011_v58  ;;  %v3092_v57 = vld [vmem:[%s4021_s1 + $0x6e0] ss:$16 sps:$4 sm:$0xff]   ;;  %v3095_v58 = vld [vmem:[%s4021_s1 + $0x6e8] ss:$16 sps:$4 sm:$0xff]  }
  0xac   : > { %1959 = vmatprep.subr.bf16.mxu0 %v3016_v59  ;;  %2171 = vmatprep.subr.bf16.mxu1 %v3019_v60  ;;  %v3100_v59 = vld [vmem:[%s4021_s1 + $0x704] ss:$16 sps:$4 sm:$0xff]   ;;  %v3103_v60 = vld [vmem:[%s4021_s1 + $0x70c] ss:$16 sps:$4 sm:$0xff]  }
  0xaf   : > { %1960 = vmatpush1.bf16.msra.mxu0 %v3014_v61  ;;  %2172 = vmatpush1.bf16.msra.mxu1 %v3017_v62  ;;  %v3098_v61 = vld [vmem:[%s4021_s1 + $0x700] ss:$16 sps:$4 sm:$0xff]   ;;  %v3101_v62 = vld [vmem:[%s4021_s1 + $0x708] ss:$16 sps:$4 sm:$0xff]  }
  0xb0   : > { %1961 = vmatprep.subr.bf16.mxu0 %v3022_v63  ;;  %2173 = vmatprep.subr.bf16.mxu1 %v3025_v0  ;;  %v3106_v63 = vld [vmem:[%s4021_s1 + $0x724] ss:$16 sps:$4 sm:$0xff]   ;;  %v3109_v0 = vld [vmem:[%s4021_s1 + $0x72c] ss:$16 sps:$4 sm:$0xff]  }
  0xb3   : > { %1962 = vmatpush1.bf16.msra.mxu0 %v3020_v1  ;;  %2174 = vmatpush1.bf16.msra.mxu1 %v3023_v2  ;;  %v3104_v1 = vld [vmem:[%s4021_s1 + $0x720] ss:$16 sps:$4 sm:$0xff]   ;;  %v3107_v2 = vld [vmem:[%s4021_s1 + $0x728] ss:$16 sps:$4 sm:$0xff]  }
  0xb4   : > { %1963 = vmatprep.subr.bf16.mxu0 %v3028_v3  ;;  %2175 = vmatprep.subr.bf16.mxu1 %v3031_v4  ;;  %v3112_v3 = vld [vmem:[%s4021_s1 + $0x744] ss:$16 sps:$4 sm:$0xff]   ;;  %v3115_v4 = vld [vmem:[%s4021_s1 + $0x74c] ss:$16 sps:$4 sm:$0xff]  }
  0xb7   : > { %1964 = vmatpush1.bf16.msra.mxu0 %v3026_v5  ;;  %2176 = vmatpush1.bf16.msra.mxu1 %v3029_v6  ;;  %v3110_v5 = vld [vmem:[%s4021_s1 + $0x740] ss:$16 sps:$4 sm:$0xff]   ;;  %v3113_v6 = vld [vmem:[%s4021_s1 + $0x748] ss:$16 sps:$4 sm:$0xff]  }
  0xb8   : > { %1965 = vmatprep.subr.bf16.mxu0 %v3034_v7  ;;  %2177 = vmatprep.subr.bf16.mxu1 %v3037_v8  ;;  %v3118_v7 = vld [vmem:[%s4021_s1 + $0x764] ss:$16 sps:$4 sm:$0xff]   ;;  %v3121_v8 = vld [vmem:[%s4021_s1 + $0x76c] ss:$16 sps:$4 sm:$0xff]  }
  0xbb   : > { %1966 = vmatpush1.bf16.msra.mxu0 %v3032_v9  ;;  %2178 = vmatpush1.bf16.msra.mxu1 %v3035_v10  ;;  %v3116_v9 = vld [vmem:[%s4021_s1 + $0x760] ss:$16 sps:$4 sm:$0xff]   ;;  %v3119_v10 = vld [vmem:[%s4021_s1 + $0x768] ss:$16 sps:$4 sm:$0xff]  }
  0xbc   : > { %1967 = vmatprep.subr.bf16.mxu0 %v3040_v11  ;;  %2179 = vmatprep.subr.bf16.mxu1 %v3043_v12  ;;  %v3124_v11 = vld [vmem:[%s4021_s1 + $0x784] ss:$16 sps:$4 sm:$0xff]   ;;  %v3127_v12 = vld [vmem:[%s4021_s1 + $0x78c] ss:$16 sps:$4 sm:$0xff]  }
  0xbf   : > { %1968 = vmatpush1.bf16.msra.mxu0 %v3038_v13  ;;  %2180 = vmatpush1.bf16.msra.mxu1 %v3041_v14  ;;  %v3122_v13 = vld [vmem:[%s4021_s1 + $0x780] ss:$16 sps:$4 sm:$0xff]   ;;  %v3125_v14 = vld [vmem:[%s4021_s1 + $0x788] ss:$16 sps:$4 sm:$0xff]  }
  0xc0   : > { %1969 = vmatprep.subr.bf16.mxu0 %v3046_v15  ;;  %2181 = vmatprep.subr.bf16.mxu1 %v3049_v16  ;;  %v3130_v15 = vld [vmem:[%s4021_s1 + $0x7a4] ss:$16 sps:$4 sm:$0xff]   ;;  %v3133_v16 = vld [vmem:[%s4021_s1 + $0x7ac] ss:$16 sps:$4 sm:$0xff]  }
  0xc3   : > { %1970 = vmatpush1.bf16.msra.mxu0 %v3044_v17  ;;  %2182 = vmatpush1.bf16.msra.mxu1 %v3047_v18  ;;  %v3128_v17 = vld [vmem:[%s4021_s1 + $0x7a0] ss:$16 sps:$4 sm:$0xff]   ;;  %v3131_v18 = vld [vmem:[%s4021_s1 + $0x7a8] ss:$16 sps:$4 sm:$0xff]  }
  0xc4   : > { %1992 = vmatprep.subr.bf16.mxu0 %v3052_v19  ;;  %2204 = vmatprep.subr.bf16.mxu1 %v3055_v20  ;;  %v3136_v19 = vld [vmem:[%s4021_s1 + $0x7c4] ss:$16 sps:$4 sm:$0xff]   ;;  %v3139_v20 = vld [vmem:[%s4021_s1 + $0x7cc] ss:$16 sps:$4 sm:$0xff]  }
  0xc6   : > { %1972 = vmatmul.mubr.bf16.vlgmr.msra.gmra.mrb[0].mxu0 %v2402_v21  ;;  %2184 = vmatmul.mubr.bf16.vlgmr.msra.gmra.mrb[0].mxu1 %v2402_v21  ;;  %v3134_v21 = vld [vmem:[%s4021_s1 + $0x7c0] ss:$16 sps:$4 sm:$0xff]  }
  0xc7   : > { %1993 = vmatpush1.bf16.msra.mxu0 %v3050_v24  ;;  %2205 = vmatpush1.bf16.msra.mxu1 %v3053_v26  ;;  %v3145_v24 = vld [vmem:[%s4021_s1 + $0x7ec] ss:$16 sps:$4 sm:$0xff]   ;;  %v3140_v26 = vld [vmem:[%s4021_s1 + $0x7e0] ss:$16 sps:$4 sm:$0xff]  }
  0xc8   : > { %1994 = vmatprep.subr.bf16.mxu0 %v3058_v28  ;;  %2206 = vmatprep.subr.bf16.mxu1 %v3061_v25  ;;  %v3143_v28 = vld [vmem:[%s4021_s1 + $0x7e8] ss:$16 sps:$4 sm:$0xff]  }
  0xc9   : > { %1981 = vmatprep.mubr.bf16.mxu0 %v2411_v27  ;;  %2193 = vmatprep.mubr.bf16.mxu1 %v2411_v27  ;;  %v190_v25 = vld [vmem:[%s3322_s4 + $0x58] sm:$0xff] }
  0xca   : > { %v194_v27 = vld [vmem:[%s3322_s4 + $0x78] sm:$0xff] }
  0xcb   : > { %1995 = vmatpush1.bf16.msra.mxu0 %v3056_v29  ;;  %2207 = vmatpush1.bf16.msra.mxu1 %v3059_v30  ;;  %v2404_v29 = vcombine.low %v3827_v34, %v3830_v35  ;;  %v2413_v30 = vcombine.high %v190_v25, %v194_v27 }
  0xcc   : > { %1996 = vmatprep.subr.bf16.mxu0 %v3064_v31  ;;  %2208 = vmatprep.subr.bf16.mxu1 %v3067_v32  ;;  %v2412_v31 = vcombine.low %v190_v25, %v194_v27  ;;  %v453_v32 = vlaneseq }
  0xce   : > { %1982 = vmatmul.mubr.bf16.gmra.mrb[4].mxu0 %v2410_v33  ;;  %2194 = vmatmul.mubr.bf16.gmra.mrb[4].mxu1 %v2410_v33  ;;  %v454_v33 = vshrl.u32 %v453_v32, 7 }
  0xcf   : > { %1997 = vmatpush1.bf16.msra.mxu0 %v3062_v36  ;;  %2209 = vmatpush1.bf16.msra.mxu1 %v3065_v37 }
  0xd0   : > { %1998 = vmatprep.subr.bf16.mxu0 %v3070_v38  ;;  %2210 = vmatprep.subr.bf16.mxu1 %v3073_v39  ;;  %v455_v36 = vsub.s32 0, %v454_v33  ;;  %v463_v37 = vsub.s32 2, %v454_v33  ;;  %v451_v38 = vld [vmem:[%s4022_s2] sm:$0xf]  ;;  %v459_v34 = vsub.s32 1, %v454_v33  ;;  %v467_v35 = vsub.s32 3, %v454_v33 }
  0xd1   : > { %2024 = vmatprep.mubr.bf16.mxu0 %v2405_v40  ;;  %2236 = vmatprep.mubr.bf16.mxu1 %v2405_v40 }
  0xd2   : > { %v456_v39 = vrot.slane %v451_v38, %v455_v36  ;;  %v464_v40 = vrot.slane %v451_v38, %v463_v37 }
  0xd3   : > { %1999 = vmatpush1.bf16.msra.mxu0 %v3068_v41  ;;  %2211 = vmatpush1.bf16.msra.mxu1 %v3071_v42  ;;  %v460_v41 = vrot.slane %v451_v38, %v459_v34  ;;  %v468_v42 = vrot.slane %v451_v38, %v467_v35 }
  0xd4   : > { %2000 = vmatprep.subr.bf16.mxu0 %v3076_v43  ;;  %2212 = vmatprep.subr.bf16.mxu1 %v3079_v44 }
  0xd7   : > { %2001 = vmatpush1.bf16.msra.mxu0 %v3074_v45  ;;  %2213 = vmatpush1.bf16.msra.mxu1 %v3077_v46 }
  0xd8   : > { %2002 = vmatprep.subr.bf16.mxu0 %v3082_v47  ;;  %2214 = vmatprep.subr.bf16.mxu1 %v3085_v48 }
  0xdb   : > { %2003 = vmatpush1.bf16.msra.mxu0 %v3080_v49  ;;  %2215 = vmatpush1.bf16.msra.mxu1 %v3083_v50 }
  0xdc   : > { %2004 = vmatprep.subr.bf16.mxu0 %v3088_v51  ;;  %2216 = vmatprep.subr.bf16.mxu1 %v3091_v52 }
  0xdf   : > { %2005 = vmatpush1.bf16.msra.mxu0 %v3086_v53  ;;  %2217 = vmatpush1.bf16.msra.mxu1 %v3089_v54 }
  0xe0   : > { %2006 = vmatprep.subr.bf16.mxu0 %v3094_v55  ;;  %2218 = vmatprep.subr.bf16.mxu1 %v3097_v56 }
  0xe3   : > { %2007 = vmatpush1.bf16.msra.mxu0 %v3092_v57  ;;  %2219 = vmatpush1.bf16.msra.mxu1 %v3095_v58 }
  0xe4   : > { %2008 = vmatprep.subr.bf16.mxu0 %v3100_v59  ;;  %2220 = vmatprep.subr.bf16.mxu1 %v3103_v60 }
  0xe7   : > { %2009 = vmatpush1.bf16.msra.mxu0 %v3098_v61  ;;  %2221 = vmatpush1.bf16.msra.mxu1 %v3101_v62 }
  0xe8   : > { %2010 = vmatprep.subr.bf16.mxu0 %v3106_v63  ;;  %2222 = vmatprep.subr.bf16.mxu1 %v3109_v0 }
  0xeb   : > { %2011 = vmatpush1.bf16.msra.mxu0 %v3104_v1  ;;  %2223 = vmatpush1.bf16.msra.mxu1 %v3107_v2 }
  0xec   : > { %2012 = vmatprep.subr.bf16.mxu0 %v3112_v3  ;;  %2224 = vmatprep.subr.bf16.mxu1 %v3115_v4 }
  0xef   : > { %2013 = vmatpush1.bf16.msra.mxu0 %v3110_v5  ;;  %2225 = vmatpush1.bf16.msra.mxu1 %v3113_v6 }
  0xf0   : > { %2014 = vmatprep.subr.bf16.mxu0 %v3118_v7  ;;  %2226 = vmatprep.subr.bf16.mxu1 %v3121_v8 }
  0xf3   : > { %2015 = vmatpush1.bf16.msra.mxu0 %v3116_v9  ;;  %2227 = vmatpush1.bf16.msra.mxu1 %v3119_v10 }
  0xf4   : > { %2016 = vmatprep.subr.bf16.mxu0 %v3124_v11  ;;  %2228 = vmatprep.subr.bf16.mxu1 %v3127_v12 }
  0xf7   : > { %2017 = vmatpush1.bf16.msra.mxu0 %v3122_v13  ;;  %2229 = vmatpush1.bf16.msra.mxu1 %v3125_v14 }
  0xf8   : > { %2018 = vmatprep.subr.bf16.mxu0 %v3130_v15  ;;  %2230 = vmatprep.subr.bf16.mxu1 %v3133_v16 }
  0xfb   : > { %2019 = vmatpush1.bf16.msra.mxu0 %v3128_v17  ;;  %2231 = vmatpush1.bf16.msra.mxu1 %v3131_v18 }
  0xfc   : > { %2020 = vmatprep.subr.bf16.mxu0 %v3136_v19  ;;  %2232 = vmatprep.subr.bf16.mxu1 %v3139_v20 }
  0xff   : > { %2021 = vmatpush1.bf16.msra.mxu0 %v3134_v21  ;;  %2233 = vmatpush1.bf16.msra.mxu1 %v3137_v22 }
 0x100   : > { %2022 = vmatprep.subr.bf16.mxu0 %v3142_v23  ;;  %2234 = vmatprep.subr.bf16.mxu1 %v3145_v24 }
 0x103   : > { %2023 = vmatpush1.bf16.msra.mxu0 %v3140_v26  ;;  %2235 = vmatpush1.bf16.msra.mxu1 %v3143_v28 }
 0x106   : > { %2025 = vmatmul.mubr.bf16.vlgmr.msra.gmra.mrb[0].mxu0 %v2404_v29  ;;  %2237 = vmatmul.mubr.bf16.vlgmr.msra.gmra.mrb[0].mxu1 %v2404_v29 }
 0x107   : > { %2034 = vmatprep.mubr.bf16.mxu0 %v2413_v30  ;;  %2246 = vmatprep.mubr.bf16.mxu1 %v2413_v30 }
 0x10e   : > { %2035 = vmatmul.mubr.bf16.gmra.mrb[4].mxu0 %v2412_v31  ;;  %2247 = vmatmul.mubr.bf16.gmra.mrb[4].mxu1 %v2412_v31 }
 0x1d9   : > { %v2026_v43 = vpop.f32.mrb[0].mxu0  ;;  %v2238_v44 = vpop.f32.mrb[0].mxu1 }
 0x1da   : > { %v2690_v45 = vadd.f32 %v2026_v43, %v456_v39  ;;  %v2698_v46 = vadd.f32 %v2238_v44, %v464_v40  ;;  %v2028_v47 = vpop.f32.mrb[1].mxu0  ;;  %v2240_v48 = vpop.f32.mrb[1].mxu1 }
 0x1db   : > { %v2691_v49 = vadd.f32 %v2028_v47, %v460_v41  ;;  %v2699_v50 = vadd.f32 %v2240_v48, %v468_v42  ;;  %v2030_v51 = vpop.f32.mrb[2].mxu0  ;;  %v2242_v52 = vpop.f32.mrb[2].mxu1 }
 0x1dc   : > { %v2257_v53 = vmax.f32 %v2690_v45, 0.0  ;;  %v2259_v54 = vmax.f32 %v2698_v46, 0.0  ;;  %v2692_v55 = vadd.f32 %v2030_v51, %v456_v39  ;;  %v2700_v56 = vadd.f32 %v2242_v52, %v464_v40  ;;  %v2032_v57 = vpop.f32.mrb[3].mxu0  ;;  %v2244_v58 = vpop.f32.mrb[3].mxu1 }
 0x1dd   : > { %v2258_v59 = vmax.f32 %v2691_v49, 0.0  ;;  %v2260_v60 = vmax.f32 %v2699_v50, 0.0  ;;  %v2693_v61 = vadd.f32 %v2032_v57, %v460_v41  ;;  %v2701_v62 = vadd.f32 %v2244_v58, %v468_v42 }
 0x1de   : > { %v2261_v63 = vmax.f32 %v2692_v55, 0.0  ;;  %v2263_v0 = vmax.f32 %v2700_v56, 0.0 }
 0x1df   : > { %v2682_v1 = vpack.c.bf16 %v2258_v59, %v2257_v53  ;;  %v2683_v2 = vpack.c.bf16 %v2260_v60, %v2259_v54  ;;  %v2262_v3 = vmax.f32 %v2693_v61, 0.0  ;;  %v2264_v4 = vmax.f32 %v2701_v62, 0.0 }
 0x1e1   : > { %2321 = vst [vmem:[%s4007_s27] sm:$0xff] %v2682_v1  ;;  %2322 = vst [vmem:[%s4007_s27 + $0x8] sm:$0xff] %v2683_v2  ;;  %v2684_v5 = vpack.c.bf16 %v2262_v3, %v2261_v63  ;;  %v2685_v6 = vpack.c.bf16 %v2264_v4, %v2263_v0  ;;  %v2036_v7 = vpop.f32.mrb[4].mxu0  ;;  %v2248_v8 = vpop.f32.mrb[4].mxu1 }
 0x1e2   : > { %v2694_v9 = vadd.f32 %v2036_v7, %v456_v39  ;;  %v2702_v10 = vadd.f32 %v2248_v8, %v464_v40  ;;  %v2038_v11 = vpop.f32.mrb[5].mxu0  ;;  %v2250_v12 = vpop.f32.mrb[5].mxu1 }
 0x1e3   : > { %2323 = vst [vmem:[%s4007_s27 + $0x10] sm:$0xff] %v2684_v5  ;;  %2324 = vst [vmem:[%s4007_s27 + $0x18] sm:$0xff] %v2685_v6  ;;  %v2695_v13 = vadd.f32 %v2038_v11, %v460_v41  ;;  %v2703_v14 = vadd.f32 %v2250_v12, %v468_v42  ;;  %v2040_v15 = vpop.f32.mrb[6].mxu0  ;;  %v2252_v16 = vpop.f32.mrb[6].mxu1 }
 0x1e4   : > { %v2265_v17 = vmax.f32 %v2694_v9, 0.0  ;;  %v2267_v18 = vmax.f32 %v2702_v10, 0.0  ;;  %v2696_v19 = vadd.f32 %v2040_v15, %v456_v39  ;;  %v2704_v20 = vadd.f32 %v2252_v16, %v464_v40  ;;  %v2042_v21 = vpop.f32.mrb[7].mxu0  ;;  %v2254_v22 = vpop.f32.mrb[7].mxu1 }
 0x1e5   : > { %v2266_v23 = vmax.f32 %v2695_v13, 0.0  ;;  %v2268_v24 = vmax.f32 %v2703_v14, 0.0  ;;  %v2697_v26 = vadd.f32 %v2042_v21, %v460_v41  ;;  %v2705_v28 = vadd.f32 %v2254_v22, %v468_v42 }
 0x1e6   : > { %v2269_v25 = vmax.f32 %v2696_v19, 0.0  ;;  %v2271_v27 = vmax.f32 %v2704_v20, 0.0 }
 0x1e7   : > { %v2686_v29 = vpack.c.bf16 %v2266_v23, %v2265_v17  ;;  %v2687_v30 = vpack.c.bf16 %v2268_v24, %v2267_v18  ;;  %v2270_v31 = vmax.f32 %v2697_v26, 0.0  ;;  %v2272_v32 = vmax.f32 %v2705_v28, 0.0 }
 0x1e9   : > { %2325 = vst [vmem:[%s4007_s27 + $0x20] sm:$0xff] %v2686_v29  ;;  %2326 = vst [vmem:[%s4007_s27 + $0x28] sm:$0xff] %v2687_v30  ;;  %v2688_v33 = vpack.c.bf16 %v2270_v31, %v2269_v25  ;;  %v2689_v36 = vpack.c.bf16 %v2272_v32, %v2271_v27 }
 0x1eb   : > { %2327 = vst [vmem:[%s4007_s27 + $0x30] sm:$0xff] %v2688_v33  ;;  %2328 = vst [vmem:[%s4007_s27 + $0x38] sm:$0xff] %v2689_v36 }
 0x1ec PF: > { %s13_s12 = sadd.s32 1, %s3152_s12  }
 0x1ed   : > { %p10_p4 = scmp.ge.s32.totalorder %s13_s12, 4  }
 0x1ef   :  { %12 = sbr.rel (!%p10_p4) target bundleno = 1 (0x1), region = 62 }

// kernel: fwd.5
= control target key start
LH: loop header
LB: loop body
LE: loop exit
PB: predicated region body
PF: predicated region fallthrough
CT: control target
= control target key end

     0   :  { %8 = vsyncpa [#allocation3], 0  ;;  %s10652_s0 = inlined_call_operand.vmem [shape: bf16[32,2304], index: 0, kind: input, shape index: {}]   ;;  %s10653_s1 = inlined_call_operand.hbm [shape: bf16[2304,1024], index: 1, kind: input, shape index: {}]   ;;  %s10654_s2 = inlined_call_operand.hbm [shape: f32[1,1024], index: 2, kind: input, shape index: {}]   ;;  %s10655_s3 = inlined_call_operand.vmem [shape: bf16[32,1024], index: 3, kind: output, shape index: {}]  }
   0x1   :  { %9 = vsyncpa [#allocation5], 0  ;;  %s10490_s12 = smov 0  }
   0x2 LB: > { %s8969_s13 = sadd.s32 4294967295, %s10464_s12   ;;  %p8971_p0 = scmp.ge.s32.totalorder %s10464_s12, 1  ;;  %s10464_s12 = sphi %s10490_s12, %s15_s12  }
   0x3   : > { %p114_p1 = scmp.lt.s32.totalorder %s10464_s12, 3  ;;  %s10466_s14 = smov [#allocation2]  }
   0x4   : > { %s126_s15 = sshll.u32 %s10466_s14, 4  ;;  %p10504_p3 = scmp.eq.s32.totalorder %s8969_s13, 0  ;;  %s127_s15 = int_to_ptr.vmem [resolvable:$true] %s126_s15 }
   0x5   : > { %p10498_p2 = pnand %p8971_p0, %p114_p1  ;;  %s10467_s18 = smov [#allocation4]  }
   0x6   : > { %s10660_s17 = scalar_select %p10504_p3, 1, 0 }
   0x7   : > { %s10659_s16 = scalar_select %p10498_p2, 1, 0 }
   0x8   : > { %p10325_p4 = pneg %p10498_p2  ;;  %s140_s19 = sshll.u32 %s10467_s18, 4  ;;  %s10516_s19 = int_to_ptr.vmem [resolvable:$true] %s140_s19 }
   0x9   : > { %s10394_s23 = scalar_lea.hbm %s10653_s1, 147456 }
   0xa   : > { %p10512_p5 = pnand %p10504_p3, %p10325_p4  ;;  %p10395_p6 = scmp.ne.s32.totalorder %s10653_s1, %s10394_s23 }
   0xb   : > { %p10401_p10 = scmp.lt.u32.totalorder %s10394_s23, %s10653_s1 }
   0xc   : > { %p10396_p7 = pneg %p10512_p5 }
   0xe   : > { %p10397_p8 = pnand %p10396_p7, %p10395_p6 }
  0x10   : > { %p10398_p9 = pneg %p10397_p8 }
  0x12   : > { %p10403_p11 = pnand %p10401_p10, %p10398_p9 }
  0x14   : > { %10406 = shalt.err (!%p10403_p11)
}
  0x15   : > { %s10407_s28 = scalar_lea.vmem %s127_s15, 147456  ;;  %p10415_p1 = scmp.lt.s32.totalorder %s127_s15, %s127_s15 }
  0x16   : > { %p10408_p12 = scmp.ne.s32.totalorder %s127_s15, %s10407_s28  ;;  %p10416_p4 = scmp.lt.s32.totalorder %s10407_s28, %s10407_s28 }
  0x18   : > { %p10410_p13 = pnand %p10408_p12, %p10396_p7  ;;  %p10417_p3 = por %p10416_p4, %p10415_p1 }
  0x1a   : > { %p10411_p0 = pneg %p10410_p13 }
  0x1c   : > { %p10418_p2 = pnand %p10417_p3, %p10411_p0 }
  0x1e   : > { %10421 = shalt.err (!%p10418_p2)
}
  0x1f   : > { %s10468_s29 = smov 512   ;;  %s10469_s30 = smov 32  }
  0x20   : > { %10328 = dma.hbm_to_vmem [thread:$0]  (!%p10512_p5), %s10653_s1, 147456, %s127_s15, [#allocation3], %s10468_s29, %s10468_s29, %s10469_s30  }
  0x21   : > { %s10422_s8 = scalar_lea.hbm %s10654_s2, 128 }
  0x22   : > { %p10423_p6 = scmp.ne.s32.totalorder %s10654_s2, %s10422_s8  ;;  %p10429_p8 = scmp.lt.u32.totalorder %s10422_s8, %s10654_s2 }
  0x24   : > { %p10425_p2 = pnand %p10423_p6, %p10396_p7 }
  0x26   : > { %p10426_p3 = pneg %p10425_p2 }
  0x28   : > { %p10431_p9 = pnand %p10429_p8, %p10426_p3 }
  0x2a   : > { %10434 = shalt.err (!%p10431_p9)
}
  0x2b   : > { %s10435_s15 = scalar_lea.vmem %s10516_s19, 128  ;;  %p10443_p13 = scmp.lt.s32.totalorder %s10516_s19, %s10516_s19 }
  0x2c   : > { %p10436_p10 = scmp.ne.s32.totalorder %s10516_s19, %s10435_s15  ;;  %p10444_p0 = scmp.lt.s32.totalorder %s10435_s15, %s10435_s15 }
  0x2e   : > { %p10438_p11 = pnand %p10436_p10, %p10396_p7  ;;  %p10445_p1 = por %p10444_p0, %p10443_p13 }
  0x30   : > { %p10439_p12 = pneg %p10438_p11 }
  0x32   : > { %p10446_p4 = pnand %p10445_p1, %p10439_p12 }
  0x34   : > { %10449 = shalt.err (!%p10446_p4)
}
  0x35   : > { %10331 = dma.hbm_to_vmem [thread:$0]  (!%p10512_p5), %s10654_s2, 128, %s10516_s19, [#allocation5]  }
  0x36   : > { %p10662_p6 = scmp.ne.s32.totalorder %s10659_s16, 0 }
  0x37   : > { %p10663_p2 = scmp.ne.s32.totalorder (!%p10662_p6), %s10660_s17, 0 }
  0x38   : > { %163 = sbr.rel (%p10662_p6) target bundleno = 1444 (0x5a4), region = 32 }
  0x3f   : > { %10455 = dma.done.wait (%p10663_p2), [#allocation3], 147456  }
  0x40   : > { %10457 = vsyncadd (%p10663_p2), [#allocation3], 4294819840 }
  0x41   : > { %10459 = dma.done.wait (%p10663_p2), [#allocation5], 128  }
  0x42   : > { %10461 = vsyncadd (%p10663_p2), [#allocation5], 4294967168  ;;  %v225_v0 = vld [vmem:[#allocation2] sm:$0xff]  ;;  %v226_v2 = vld [vmem:[#allocation2 + $0x8] sm:$0xff]  ;;  %s8978_s16 = sshll.u32 %s8969_s13, 1 }
  0x43   : > { %v229_v1 = vld [vmem:[#allocation2 + $0x20] sm:$0xff]  ;;  %v230_v4 = vld [vmem:[#allocation2 + $0x28] sm:$0xff]  ;;  %p194_p5 = scmp.lt.s32.totalorder %s8978_s16, 3 }
  0x44   : > { %v9002_v3 = vcombine.high %v225_v0, %v229_v1  ;;  %v9001_v5 = vcombine.low %v225_v0, %v229_v1  ;;  %v233_v6 = vld [vmem:[#allocation2 + $0x40] sm:$0xff]  ;;  %v9004_v8 = vcombine.high %v226_v2, %v230_v4  ;;  %v9003_v9 = vcombine.low %v226_v2, %v230_v4  ;;  %v234_v11 = vld [vmem:[#allocation2 + $0x48] sm:$0xff] }
  0x45   : > { %v237_v7 = vld [vmem:[#allocation2 + $0x60] sm:$0xff]  ;;  %v238_v12 = vld [vmem:[#allocation2 + $0x68] sm:$0xff]  ;;  %s10665_s16 = smov (!%p194_p5, %s8978_s16), 3 }
  0x46   : > { %v9010_v10 = vcombine.high %v233_v6, %v237_v7  ;;  %v241_v13 = vld [vmem:[#allocation2 + $0x80] sm:$0xff]  ;;  %7269 = vmatprep.subr.bf16.mxu0 %v9002_v3  ;;  %v9012_v14 = vcombine.high %v234_v11, %v238_v12  ;;  %v242_v16 = vld [vmem:[#allocation2 + $0x88] sm:$0xff]  ;;  %7656 = vmatprep.subr.bf16.mxu1 %v9004_v8  ;;  %v9009_v18 = vcombine.low %v233_v6, %v237_v7  ;;  %s10316_s13 = smul.u32 72, %s10665_s16  ;;  %s10163_s22 = sshll.u32 %s10665_s16, 5 }
  0x47   : > { %v245_v15 = vld [vmem:[#allocation2 + $0xa0] sm:$0xff]  ;;  %v246_v17 = vld [vmem:[#allocation2 + $0xa8] sm:$0xff]  ;;  %7270 = vmatpush1.bf16.msra.mxu0 %v9001_v5  ;;  %7657 = vmatpush1.bf16.msra.mxu1 %v9003_v9  ;;  %v9011_v19 = vcombine.low %v234_v11, %v238_v12  ;;  %s10623_s25 = scalar_lea.vmem %s10655_s3, %s10163_s22 }
  0x48   : > { %7271 = vmatprep.subr.bf16.mxu0 %v9010_v10  ;;  %v9018_v20 = vcombine.high %v241_v13, %v245_v15  ;;  %7658 = vmatprep.subr.bf16.mxu1 %v9012_v14  ;;  %v9020_v21 = vcombine.high %v242_v16, %v246_v17  ;;  %v249_v22 = vld [vmem:[#allocation2 + $0xc0] sm:$0xff]  ;;  %v250_v24 = vld [vmem:[#allocation2 + $0xc8] sm:$0xff]  ;;  %v9017_v26 = vcombine.low %v241_v13, %v245_v15  ;;  %s10583_s20 = scalar_lea.vmem %s10652_s0, %s10316_s13 }
  0x49   : > { %v253_v23 = vld [vmem:[#allocation2 + $0xe0] sm:$0xff]  ;;  %v254_v25 = vld [vmem:[#allocation2 + $0xe8] sm:$0xff]  ;;  %v9019_v27 = vcombine.low %v242_v16, %v246_v17 }
  0x4a   : > { %v9026_v28 = vcombine.high %v249_v22, %v253_v23  ;;  %v9028_v29 = vcombine.high %v250_v24, %v254_v25  ;;  %v257_v30 = vld [vmem:[#allocation2 + $0x100] sm:$0xff]  ;;  %v258_v32 = vld [vmem:[#allocation2 + $0x108] sm:$0xff]  ;;  %v9025_v34 = vcombine.low %v249_v22, %v253_v23  ;;  %v9027_v35 = vcombine.low %v250_v24, %v254_v25 }
  0x4b   : > { %7272 = vmatpush1.bf16.msra.mxu0 %v9009_v18  ;;  %7659 = vmatpush1.bf16.msra.mxu1 %v9011_v19  ;;  %v261_v31 = vld [vmem:[#allocation2 + $0x120] sm:$0xff]  ;;  %v262_v33 = vld [vmem:[#allocation2 + $0x128] sm:$0xff] }
  0x4c   : > { %7273 = vmatprep.subr.bf16.mxu0 %v9018_v20  ;;  %7660 = vmatprep.subr.bf16.mxu1 %v9020_v21  ;;  %v9034_v36 = vcombine.high %v257_v30, %v261_v31  ;;  %v9036_v37 = vcombine.high %v258_v32, %v262_v33  ;;  %v265_v38 = vld [vmem:[#allocation2 + $0x140] sm:$0xff]  ;;  %v266_v40 = vld [vmem:[#allocation2 + $0x148] sm:$0xff]  ;;  %v9033_v42 = vcombine.low %v257_v30, %v261_v31 }
  0x4d   : > { %v269_v39 = vld [vmem:[#allocation2 + $0x160] sm:$0xff]  ;;  %v270_v41 = vld [vmem:[#allocation2 + $0x168] sm:$0xff]  ;;  %v9035_v43 = vcombine.low %v258_v32, %v262_v33 }
  0x4e   : > { %v9042_v44 = vcombine.high %v265_v38, %v269_v39  ;;  %v9044_v45 = vcombine.high %v266_v40, %v270_v41  ;;  %v273_v46 = vld [vmem:[#allocation2 + $0x180] sm:$0xff]  ;;  %v274_v48 = vld [vmem:[#allocation2 + $0x188] sm:$0xff]  ;;  %v9041_v50 = vcombine.low %v265_v38, %v269_v39  ;;  %v9043_v51 = vcombine.low %v266_v40, %v270_v41 }
  0x4f   : > { %7274 = vmatpush1.bf16.msra.mxu0 %v9017_v26  ;;  %7661 = vmatpush1.bf16.msra.mxu1 %v9019_v27  ;;  %v277_v47 = vld [vmem:[#allocation2 + $0x1a0] sm:$0xff]  ;;  %v278_v49 = vld [vmem:[#allocation2 + $0x1a8] sm:$0xff] }
  0x50   : > { %7275 = vmatprep.subr.bf16.mxu0 %v9026_v28  ;;  %7662 = vmatprep.subr.bf16.mxu1 %v9028_v29  ;;  %v9050_v52 = vcombine.high %v273_v46, %v277_v47  ;;  %v9052_v53 = vcombine.high %v274_v48, %v278_v49  ;;  %v281_v54 = vld [vmem:[#allocation2 + $0x1c0] sm:$0xff]  ;;  %v282_v57 = vld [vmem:[#allocation2 + $0x1c8] sm:$0xff]  ;;  %v9049_v59 = vcombine.low %v273_v46, %v277_v47 }
  0x51   : > { %v285_v55 = vld [vmem:[#allocation2 + $0x1e0] sm:$0xff]  ;;  %v286_v58 = vld [vmem:[#allocation2 + $0x1e8] sm:$0xff]  ;;  %v9051_v60 = vcombine.low %v274_v48, %v278_v49 }
  0x52   : > { %v10348_v56 = vld [vmem:[%s10583_s20 + $0x4] ss:$72 sps:$4 sm:$0xff]   ;;  %v9058_v61 = vcombine.high %v281_v54, %v285_v55  ;;  %v9060_v62 = vcombine.high %v282_v57, %v286_v58  ;;  %v9057_v3 = vcombine.low %v281_v54, %v285_v55  ;;  %v9059_v4 = vcombine.low %v282_v57, %v286_v58 }
  0x53   : > { %7276 = vmatpush1.bf16.msra.mxu0 %v9025_v34  ;;  %7663 = vmatpush1.bf16.msra.mxu1 %v9027_v35  ;;  %v289_v63 = vld [vmem:[#allocation2 + $0x200] sm:$0xff]  ;;  %v290_v1 = vld [vmem:[#allocation2 + $0x208] sm:$0xff] }
  0x54   : > { %7277 = vmatprep.subr.bf16.mxu0 %v9034_v36  ;;  %7664 = vmatprep.subr.bf16.mxu1 %v9036_v37  ;;  %v293_v0 = vld [vmem:[#allocation2 + $0x220] sm:$0xff]  ;;  %v294_v2 = vld [vmem:[#allocation2 + $0x228] sm:$0xff] }
  0x55   : > { %7301 = vmatprep.mubr.bf16.mxu0 %v10348_v56  ;;  %7688 = vmatprep.mubr.bf16.mxu1 %v10348_v56  ;;  %v9066_v5 = vcombine.high %v289_v63, %v293_v0  ;;  %v9068_v6 = vcombine.high %v290_v1, %v294_v2  ;;  %v297_v7 = vld [vmem:[#allocation2 + $0x240] sm:$0xff]  ;;  %v298_v9 = vld [vmem:[#allocation2 + $0x248] sm:$0xff]  ;;  %v9065_v11 = vcombine.low %v289_v63, %v293_v0 }
  0x56   : > { %v301_v8 = vld [vmem:[#allocation2 + $0x260] sm:$0xff]  ;;  %v302_v10 = vld [vmem:[#allocation2 + $0x268] sm:$0xff]  ;;  %v9067_v12 = vcombine.low %v290_v1, %v294_v2 }
  0x57   : > { %7278 = vmatpush1.bf16.msra.mxu0 %v9033_v42  ;;  %7665 = vmatpush1.bf16.msra.mxu1 %v9035_v43  ;;  %v9074_v13 = vcombine.high %v297_v7, %v301_v8  ;;  %v9076_v14 = vcombine.high %v298_v9, %v302_v10  ;;  %v305_v15 = vld [vmem:[#allocation2 + $0x280] sm:$0xff]  ;;  %v306_v17 = vld [vmem:[#allocation2 + $0x288] sm:$0xff]  ;;  %v9073_v19 = vcombine.low %v297_v7, %v301_v8 }
  0x58   : > { %7279 = vmatprep.subr.bf16.mxu0 %v9042_v44  ;;  %7666 = vmatprep.subr.bf16.mxu1 %v9044_v45  ;;  %v309_v16 = vld [vmem:[#allocation2 + $0x2a0] sm:$0xff]  ;;  %v310_v18 = vld [vmem:[#allocation2 + $0x2a8] sm:$0xff]  ;;  %v9075_v20 = vcombine.low %v298_v9, %v302_v10 }
  0x59   : > { %v9082_v21 = vcombine.high %v305_v15, %v309_v16  ;;  %v9084_v22 = vcombine.high %v306_v17, %v310_v18  ;;  %v313_v23 = vld [vmem:[#allocation2 + $0x2c0] sm:$0xff]  ;;  %v314_v25 = vld [vmem:[#allocation2 + $0x2c8] sm:$0xff]  ;;  %v9081_v27 = vcombine.low %v305_v15, %v309_v16  ;;  %v9083_v28 = vcombine.low %v306_v17, %v310_v18 }
  0x5a   : > { %v317_v24 = vld [vmem:[#allocation2 + $0x2e0] sm:$0xff]  ;;  %v318_v26 = vld [vmem:[#allocation2 + $0x2e8] sm:$0xff] }
  0x5b   : > { %7280 = vmatpush1.bf16.msra.mxu0 %v9041_v50  ;;  %7667 = vmatpush1.bf16.msra.mxu1 %v9043_v51  ;;  %v9090_v29 = vcombine.high %v313_v23, %v317_v24  ;;  %v9092_v30 = vcombine.high %v314_v25, %v318_v26  ;;  %v321_v31 = vld [vmem:[#allocation2 + $0x300] sm:$0xff]  ;;  %v322_v33 = vld [vmem:[#allocation2 + $0x308] sm:$0xff]  ;;  %v9089_v35 = vcombine.low %v313_v23, %v317_v24 }
  0x5c   : > { %7281 = vmatprep.subr.bf16.mxu0 %v9050_v52  ;;  %7668 = vmatprep.subr.bf16.mxu1 %v9052_v53  ;;  %v325_v32 = vld [vmem:[#allocation2 + $0x320] sm:$0xff]  ;;  %v326_v34 = vld [vmem:[#allocation2 + $0x328] sm:$0xff]  ;;  %v9091_v36 = vcombine.low %v314_v25, %v318_v26 }
  0x5d   : > { %v9098_v37 = vcombine.high %v321_v31, %v325_v32  ;;  %v9100_v38 = vcombine.high %v322_v33, %v326_v34  ;;  %v329_v39 = vld [vmem:[#allocation2 + $0x340] sm:$0xff]  ;;  %v330_v41 = vld [vmem:[#allocation2 + $0x348] sm:$0xff]  ;;  %v9097_v43 = vcombine.low %v321_v31, %v325_v32  ;;  %v9099_v44 = vcombine.low %v322_v33, %v326_v34 }
  0x5e   : > { %v333_v40 = vld [vmem:[#allocation2 + $0x360] sm:$0xff]  ;;  %v334_v42 = vld [vmem:[#allocation2 + $0x368] sm:$0xff] }
  0x5f   : > { %7282 = vmatpush1.bf16.msra.mxu0 %v9049_v59  ;;  %7669 = vmatpush1.bf16.msra.mxu1 %v9051_v60  ;;  %v9106_v45 = vcombine.high %v329_v39, %v333_v40  ;;  %v9108_v46 = vcombine.high %v330_v41, %v334_v42  ;;  %v337_v47 = vld [vmem:[#allocation2 + $0x380] sm:$0xff]  ;;  %v338_v49 = vld [vmem:[#allocation2 + $0x388] sm:$0xff]  ;;  %v9105_v51 = vcombine.low %v329_v39, %v333_v40 }
  0x60   : > { %7283 = vmatprep.subr.bf16.mxu0 %v9058_v61  ;;  %7670 = vmatprep.subr.bf16.mxu1 %v9060_v62  ;;  %v341_v48 = vld [vmem:[#allocation2 + $0x3a0] sm:$0xff]  ;;  %v342_v50 = vld [vmem:[#allocation2 + $0x3a8] sm:$0xff]  ;;  %v9107_v52 = vcombine.low %v330_v41, %v334_v42 }
  0x61   : > { %v9114_v53 = vcombine.high %v337_v47, %v341_v48  ;;  %v9116_v54 = vcombine.high %v338_v49, %v342_v50  ;;  %v345_v55 = vld [vmem:[#allocation2 + $0x3c0] sm:$0xff]  ;;  %v346_v57 = vld [vmem:[#allocation2 + $0x3c8] sm:$0xff]  ;;  %v9113_v59 = vcombine.low %v337_v47, %v341_v48  ;;  %v9115_v60 = vcombine.low %v338_v49, %v342_v50 }
  0x62   : > { %v349_v56 = vld [vmem:[#allocation2 + $0x3e0] sm:$0xff]  ;;  %v350_v58 = vld [vmem:[#allocation2 + $0x3e8] sm:$0xff] }
  0x63   : > { %7284 = vmatpush1.bf16.msra.mxu0 %v9057_v3  ;;  %7671 = vmatpush1.bf16.msra.mxu1 %v9059_v4  ;;  %v9122_v61 = vcombine.high %v345_v55, %v349_v56  ;;  %v9124_v62 = vcombine.high %v346_v57, %v350_v58  ;;  %v353_v63 = vld [vmem:[#allocation2 + $0x400] sm:$0xff]  ;;  %v354_v1 = vld [vmem:[#allocation2 + $0x408] sm:$0xff]  ;;  %v9121_v3 = vcombine.low %v345_v55, %v349_v56 }
  0x64   : > { %7285 = vmatprep.subr.bf16.mxu0 %v9066_v5  ;;  %7672 = vmatprep.subr.bf16.mxu1 %v9068_v6  ;;  %v357_v0 = vld [vmem:[#allocation2 + $0x420] sm:$0xff]  ;;  %v358_v2 = vld [vmem:[#allocation2 + $0x428] sm:$0xff]  ;;  %v9123_v4 = vcombine.low %v346_v57, %v350_v58 }
  0x65   : > { %v9130_v5 = vcombine.high %v353_v63, %v357_v0  ;;  %v9132_v6 = vcombine.high %v354_v1, %v358_v2  ;;  %v361_v7 = vld [vmem:[#allocation2 + $0x440] sm:$0xff]  ;;  %v362_v10 = vld [vmem:[#allocation2 + $0x448] sm:$0xff] }
  0x66   : > { %v365_v8 = vld [vmem:[#allocation2 + $0x460] sm:$0xff]  ;;  %v10351_v18 = vld [vmem:[%s10583_s20 + $0xc] ss:$72 sps:$4 sm:$0xff]  }
  0x67   : > { %7286 = vmatpush1.bf16.msra.mxu0 %v9065_v11  ;;  %7673 = vmatpush1.bf16.msra.mxu1 %v9067_v12  ;;  %v10350_v9 = vld [vmem:[%s10583_s20] ss:$72 sps:$4 sm:$0xff]   ;;  %v9129_v12 = vcombine.low %v353_v63, %v357_v0 }
  0x68   : > { %7287 = vmatprep.subr.bf16.mxu0 %v9074_v13  ;;  %7674 = vmatprep.subr.bf16.mxu1 %v9076_v14  ;;  %v366_v11 = vld [vmem:[#allocation2 + $0x468] sm:$0xff]  ;;  %v9131_v13 = vcombine.low %v354_v1, %v358_v2  ;;  %v9138_v14 = vcombine.high %v361_v7, %v365_v8  ;;  %v369_v15 = vld [vmem:[#allocation2 + $0x480] sm:$0xff] }
  0x69   : > { %v9140_v16 = vcombine.high %v362_v10, %v366_v11  ;;  %v373_v17 = vld [vmem:[#allocation2 + $0x4a0] sm:$0xff]  ;;  %v386_v34 = vld [vmem:[#allocation2 + $0x508] sm:$0xff] }
  0x6a   : > { %v9146_v23 = vcombine.high %v369_v15, %v373_v17  ;;  %v377_v24 = vld [vmem:[#allocation2 + $0x4c0] sm:$0xff] }
  0x6b   : > { %7288 = vmatpush1.bf16.msra.mxu0 %v9073_v19  ;;  %7675 = vmatpush1.bf16.msra.mxu1 %v9075_v20  ;;  %v370_v19 = vld [vmem:[#allocation2 + $0x488] sm:$0xff]  ;;  %v381_v25 = vld [vmem:[#allocation2 + $0x4e0] sm:$0xff] }
  0x6c   : > { %7289 = vmatprep.subr.bf16.mxu0 %v9082_v21  ;;  %7676 = vmatprep.subr.bf16.mxu1 %v9084_v22  ;;  %v374_v20 = vld [vmem:[#allocation2 + $0x4a8] sm:$0xff]  ;;  %v9137_v21 = vcombine.low %v361_v7, %v365_v8  ;;  %v9139_v22 = vcombine.low %v362_v10, %v366_v11  ;;  %v9154_v31 = vcombine.high %v377_v24, %v381_v25  ;;  %v385_v32 = vld [vmem:[#allocation2 + $0x500] sm:$0xff] }
  0x6d   : > { %v9148_v26 = vcombine.high %v370_v19, %v374_v20  ;;  %v389_v33 = vld [vmem:[#allocation2 + $0x520] sm:$0xff]  ;;  %v426_v11 = vld [vmem:[#allocation2 + $0x648] sm:$0xff] }
  0x6e   : > { %v9162_v39 = vcombine.high %v385_v32, %v389_v33  ;;  %v393_v41 = vld [vmem:[#allocation2 + $0x540] sm:$0xff] }
  0x6f   : > { %7290 = vmatpush1.bf16.msra.mxu0 %v9081_v27  ;;  %7677 = vmatpush1.bf16.msra.mxu1 %v9083_v28  ;;  %v378_v27 = vld [vmem:[#allocation2 + $0x4c8] sm:$0xff]  ;;  %v397_v42 = vld [vmem:[#allocation2 + $0x560] sm:$0xff] }
  0x70   : > { %7291 = vmatprep.subr.bf16.mxu0 %v9090_v29  ;;  %7678 = vmatprep.subr.bf16.mxu1 %v9092_v30  ;;  %v382_v28 = vld [vmem:[#allocation2 + $0x4e8] sm:$0xff]  ;;  %v9145_v29 = vcombine.low %v369_v15, %v373_v17  ;;  %v9147_v30 = vcombine.low %v370_v19, %v374_v20  ;;  %v9170_v47 = vcombine.high %v393_v41, %v397_v42  ;;  %v401_v49 = vld [vmem:[#allocation2 + $0x580] sm:$0xff] }
  0x71   : > { %v405_v50 = vld [vmem:[#allocation2 + $0x5a0] sm:$0xff]  ;;  %v434_v19 = vld [vmem:[#allocation2 + $0x688] sm:$0xff] }
  0x72   : > { %v9178_v55 = vcombine.high %v401_v49, %v405_v50  ;;  %v409_v57 = vld [vmem:[#allocation2 + $0x5c0] sm:$0xff]  ;;  %v438_v20 = vld [vmem:[#allocation2 + $0x6a8] sm:$0xff] }
  0x73   : > { %7292 = vmatpush1.bf16.msra.mxu0 %v9089_v35  ;;  %7679 = vmatpush1.bf16.msra.mxu1 %v9091_v36  ;;  %v9156_v35 = vcombine.high %v378_v27, %v382_v28  ;;  %v390_v36 = vld [vmem:[#allocation2 + $0x528] sm:$0xff]  ;;  %v413_v58 = vld [vmem:[#allocation2 + $0x5e0] sm:$0xff] }
  0x74   : > { %7293 = vmatprep.subr.bf16.mxu0 %v9098_v37  ;;  %7680 = vmatprep.subr.bf16.mxu1 %v9100_v38  ;;  %v9153_v37 = vcombine.low %v377_v24, %v381_v25  ;;  %v9155_v38 = vcombine.low %v378_v27, %v382_v28  ;;  %v9164_v40 = vcombine.high %v386_v34, %v390_v36  ;;  %v417_v1 = vld [vmem:[#allocation2 + $0x600] sm:$0xff]  ;;  %v442_v27 = vld [vmem:[#allocation2 + $0x6c8] sm:$0xff] }
  0x75   : > { %v9186_v63 = vcombine.high %v409_v57, %v413_v58  ;;  %v421_v2 = vld [vmem:[#allocation2 + $0x620] sm:$0xff]  ;;  %v9212_v24 = vcombine.high %v434_v19, %v438_v20  ;;  %v446_v28 = vld [vmem:[#allocation2 + $0x6e8] sm:$0xff] }
  0x76   : > { %v9194_v7 = vcombine.high %v417_v1, %v421_v2  ;;  %v429_v10 = vld [vmem:[#allocation2 + $0x660] sm:$0xff] }
  0x77   : > { %7294 = vmatpush1.bf16.msra.mxu0 %v9097_v43  ;;  %7681 = vmatpush1.bf16.msra.mxu1 %v9099_v44  ;;  %v394_v43 = vld [vmem:[#allocation2 + $0x548] sm:$0xff]  ;;  %v433_v17 = vld [vmem:[#allocation2 + $0x680] sm:$0xff] }
  0x78   : > { %7295 = vmatprep.subr.bf16.mxu0 %v9106_v45  ;;  %7682 = vmatprep.subr.bf16.mxu1 %v9108_v46  ;;  %v398_v44 = vld [vmem:[#allocation2 + $0x568] sm:$0xff]  ;;  %v9161_v45 = vcombine.low %v385_v32, %v389_v33  ;;  %v9163_v46 = vcombine.low %v386_v34, %v390_v36  ;;  %v441_v25 = vld [vmem:[#allocation2 + $0x6c0] sm:$0xff]  ;;  %v9220_v32 = vcombine.high %v442_v27, %v446_v28 }
  0x79   : > { %v9172_v48 = vcombine.high %v394_v43, %v398_v44  ;;  %v449_v33 = vld [vmem:[#allocation2 + $0x700] sm:$0xff]  ;;  %v454_v36 = vld [vmem:[#allocation2 + $0x728] sm:$0xff] }
  0x7a   : > { %v453_v34 = vld [vmem:[#allocation2 + $0x720] sm:$0xff] }
  0x7b   : > { %7296 = vmatpush1.bf16.msra.mxu0 %v9105_v51  ;;  %7683 = vmatpush1.bf16.msra.mxu1 %v9107_v52  ;;  %v402_v51 = vld [vmem:[#allocation2 + $0x588] sm:$0xff] }
  0x7c   : > { %7297 = vmatprep.subr.bf16.mxu0 %v9114_v53  ;;  %7684 = vmatprep.subr.bf16.mxu1 %v9116_v54  ;;  %v406_v52 = vld [vmem:[#allocation2 + $0x5a8] sm:$0xff]  ;;  %v9169_v53 = vcombine.low %v393_v41, %v397_v42  ;;  %v9171_v54 = vcombine.low %v394_v43, %v398_v44  ;;  %v457_v41 = vld [vmem:[#allocation2 + $0x740] sm:$0xff] }
  0x7d   : > { %v9180_v56 = vcombine.high %v402_v51, %v406_v52  ;;  %v461_v42 = vld [vmem:[#allocation2 + $0x760] sm:$0xff]  ;;  %v458_v43 = vld [vmem:[#allocation2 + $0x748] sm:$0xff] }
  0x7e   : > { %v462_v44 = vld [vmem:[#allocation2 + $0x768] sm:$0xff] }
  0x7f   : > { %7298 = vmatpush1.bf16.msra.mxu0 %v9113_v59  ;;  %7685 = vmatpush1.bf16.msra.mxu1 %v9115_v60  ;;  %v410_v59 = vld [vmem:[#allocation2 + $0x5c8] sm:$0xff] }
  0x80   : > { %7299 = vmatprep.subr.bf16.mxu0 %v9122_v61  ;;  %7686 = vmatprep.subr.bf16.mxu1 %v9124_v62  ;;  %v414_v60 = vld [vmem:[#allocation2 + $0x5e8] sm:$0xff]  ;;  %v9177_v61 = vcombine.low %v401_v49, %v405_v50  ;;  %v9179_v62 = vcombine.low %v402_v51, %v406_v52  ;;  %v465_v49 = vld [vmem:[#allocation2 + $0x780] sm:$0xff] }
  0x81   : > { %v9188_v0 = vcombine.high %v410_v59, %v414_v60  ;;  %v469_v50 = vld [vmem:[#allocation2 + $0x7a0] sm:$0xff]  ;;  %v466_v51 = vld [vmem:[#allocation2 + $0x788] sm:$0xff] }
  0x82   : > { %v470_v52 = vld [vmem:[#allocation2 + $0x7a8] sm:$0xff] }
  0x83   : > { %7300 = vmatpush1.bf16.msra.mxu0 %v9121_v3  ;;  %7687 = vmatpush1.bf16.msra.mxu1 %v9123_v4  ;;  %v418_v3 = vld [vmem:[#allocation2 + $0x608] sm:$0xff] }
  0x84   : > { %7312 = vmatprep.subr.bf16.mxu0 %v9130_v5  ;;  %7699 = vmatprep.subr.bf16.mxu1 %v9132_v6  ;;  %v422_v4 = vld [vmem:[#allocation2 + $0x628] sm:$0xff]  ;;  %v9185_v5 = vcombine.low %v409_v57, %v413_v58  ;;  %v9187_v6 = vcombine.low %v410_v59, %v414_v60  ;;  %v473_v57 = vld [vmem:[#allocation2 + $0x7c0] sm:$0xff] }
  0x85   : > { %v9196_v8 = vcombine.high %v418_v3, %v422_v4  ;;  %v477_v58 = vld [vmem:[#allocation2 + $0x7e0] sm:$0xff]  ;;  %v474_v59 = vld [vmem:[#allocation2 + $0x7c8] sm:$0xff] }
  0x86   : > { %7302 = vmatmul.mubr.bf16.vlgmr.msra.gmra.mrb[0].mxu0 %v10350_v9  ;;  %7689 = vmatmul.mubr.bf16.vlgmr.msra.gmra.mrb[0].mxu1 %v10350_v9  ;;  %v425_v9 = vld [vmem:[#allocation2 + $0x640] sm:$0xff]  ;;  %v478_v60 = vld [vmem:[#allocation2 + $0x7e8] sm:$0xff] }
  0x87   : > { %7313 = vmatpush1.bf16.msra.mxu0 %v9129_v12  ;;  %7700 = vmatpush1.bf16.msra.mxu1 %v9131_v13  ;;  %v430_v12 = vld [vmem:[#allocation2 + $0x668] sm:$0xff]  ;;  %v9193_v13 = vcombine.low %v417_v1, %v421_v2  ;;  %v9202_v15 = vcombine.high %v425_v9, %v429_v10  ;;  %v481_v1 = vld [vmem:[#allocation2 + $0x800] sm:$0xff] }
  0x88   : > { %7314 = vmatprep.subr.bf16.mxu0 %v9138_v14  ;;  %7701 = vmatprep.subr.bf16.mxu1 %v9140_v16  ;;  %v9195_v14 = vcombine.low %v418_v3, %v422_v4  ;;  %v9204_v16 = vcombine.high %v426_v11, %v430_v12  ;;  %v485_v2 = vld [vmem:[#allocation2 + $0x820] sm:$0xff]  ;;  %v482_v3 = vld [vmem:[#allocation2 + $0x808] sm:$0xff] }
  0x89   : > { %7344 = vmatprep.mubr.bf16.mxu0 %v10351_v18  ;;  %7731 = vmatprep.mubr.bf16.mxu1 %v10351_v18  ;;  %v437_v18 = vld [vmem:[#allocation2 + $0x6a0] sm:$0xff]  ;;  %v486_v4 = vld [vmem:[#allocation2 + $0x828] sm:$0xff] }
  0x8b   : > { %7315 = vmatpush1.bf16.msra.mxu0 %v9137_v21  ;;  %7702 = vmatpush1.bf16.msra.mxu1 %v9139_v22  ;;  %v9201_v21 = vcombine.low %v425_v9, %v429_v10  ;;  %v9203_v22 = vcombine.low %v426_v11, %v430_v12  ;;  %v489_v9 = vld [vmem:[#allocation2 + $0x840] sm:$0xff]  ;;  %v10353_v11 = vld [vmem:[%s10583_s20 + $0x8] ss:$72 sps:$4 sm:$0xff]  }
  0x8c   : > { %7316 = vmatprep.subr.bf16.mxu0 %v9146_v23  ;;  %7703 = vmatprep.subr.bf16.mxu1 %v9148_v26  ;;  %v9210_v23 = vcombine.high %v433_v17, %v437_v18  ;;  %v445_v26 = vld [vmem:[#allocation2 + $0x6e0] sm:$0xff]  ;;  %v490_v12 = vld [vmem:[#allocation2 + $0x848] sm:$0xff] }
  0x8d   : > { %v493_v10 = vld [vmem:[#allocation2 + $0x860] sm:$0xff] }
  0x8f   : > { %7317 = vmatpush1.bf16.msra.mxu0 %v9145_v29  ;;  %7704 = vmatpush1.bf16.msra.mxu1 %v9147_v30  ;;  %v9209_v29 = vcombine.low %v433_v17, %v437_v18  ;;  %v9211_v30 = vcombine.low %v434_v19, %v438_v20  ;;  %v497_v18 = vld [vmem:[#allocation2 + $0x880] sm:$0xff]  ;;  %v10354_v20 = vld [vmem:[%s10583_s20 + $0x14] ss:$72 sps:$4 sm:$0xff]  }
  0x90   : > { %7318 = vmatprep.subr.bf16.mxu0 %v9154_v31  ;;  %7705 = vmatprep.subr.bf16.mxu1 %v9156_v35  ;;  %v9218_v31 = vcombine.high %v441_v25, %v445_v26  ;;  %v450_v35 = vld [vmem:[#allocation2 + $0x708] sm:$0xff]  ;;  %v501_v19 = vld [vmem:[#allocation2 + $0x8a0] sm:$0xff] }
  0x93   : > { %7319 = vmatpush1.bf16.msra.mxu0 %v9153_v37  ;;  %7706 = vmatpush1.bf16.msra.mxu1 %v9155_v38  ;;  %v9217_v37 = vcombine.low %v441_v25, %v445_v26  ;;  %v9219_v38 = vcombine.low %v442_v27, %v446_v28  ;;  %v9274_v25 = vcombine.high %v497_v18, %v501_v19  ;;  %v505_v27 = vld [vmem:[#allocation2 + $0x8c0] sm:$0xff] }
  0x94   : > { %7320 = vmatprep.subr.bf16.mxu0 %v9162_v39  ;;  %7707 = vmatprep.subr.bf16.mxu1 %v9164_v40  ;;  %v9226_v39 = vcombine.high %v449_v33, %v453_v34  ;;  %v9228_v40 = vcombine.high %v450_v35, %v454_v36  ;;  %v509_v28 = vld [vmem:[#allocation2 + $0x8e0] sm:$0xff] }
  0x97   : > { %7321 = vmatpush1.bf16.msra.mxu0 %v9161_v45  ;;  %7708 = vmatpush1.bf16.msra.mxu1 %v9163_v46  ;;  %v9225_v45 = vcombine.low %v449_v33, %v453_v34  ;;  %v9227_v46 = vcombine.low %v450_v35, %v454_v36  ;;  %v9282_v33 = vcombine.high %v505_v27, %v509_v28  ;;  %v513_v35 = vld [vmem:[#allocation2 + $0x900] sm:$0xff] }
  0x98   : > { %7322 = vmatprep.subr.bf16.mxu0 %v9170_v47  ;;  %7709 = vmatprep.subr.bf16.mxu1 %v9172_v48  ;;  %v9234_v47 = vcombine.high %v457_v41, %v461_v42  ;;  %v9236_v48 = vcombine.high %v458_v43, %v462_v44  ;;  %v517_v36 = vld [vmem:[#allocation2 + $0x920] sm:$0xff] }
  0x9b   : > { %7323 = vmatpush1.bf16.msra.mxu0 %v9169_v53  ;;  %7710 = vmatpush1.bf16.msra.mxu1 %v9171_v54  ;;  %v9233_v53 = vcombine.low %v457_v41, %v461_v42  ;;  %v9235_v54 = vcombine.low %v458_v43, %v462_v44  ;;  %v9290_v41 = vcombine.high %v513_v35, %v517_v36  ;;  %v521_v43 = vld [vmem:[#allocation2 + $0x940] sm:$0xff] }
  0x9c   : > { %7324 = vmatprep.subr.bf16.mxu0 %v9178_v55  ;;  %7711 = vmatprep.subr.bf16.mxu1 %v9180_v56  ;;  %v9242_v55 = vcombine.high %v465_v49, %v469_v50  ;;  %v9244_v56 = vcombine.high %v466_v51, %v470_v52  ;;  %v525_v44 = vld [vmem:[#allocation2 + $0x960] sm:$0xff] }
  0x9f   : > { %7325 = vmatpush1.bf16.msra.mxu0 %v9177_v61  ;;  %7712 = vmatpush1.bf16.msra.mxu1 %v9179_v62  ;;  %v9241_v61 = vcombine.low %v465_v49, %v469_v50  ;;  %v9243_v62 = vcombine.low %v466_v51, %v470_v52  ;;  %v9298_v49 = vcombine.high %v521_v43, %v525_v44  ;;  %v529_v51 = vld [vmem:[#allocation2 + $0x980] sm:$0xff] }
  0xa0   : > { %7326 = vmatprep.subr.bf16.mxu0 %v9186_v63  ;;  %7713 = vmatprep.subr.bf16.mxu1 %v9188_v0  ;;  %v9250_v63 = vcombine.high %v473_v57, %v477_v58  ;;  %v9252_v0 = vcombine.high %v474_v59, %v478_v60  ;;  %v533_v52 = vld [vmem:[#allocation2 + $0x9a0] sm:$0xff] }
  0xa3   : > { %7327 = vmatpush1.bf16.msra.mxu0 %v9185_v5  ;;  %7714 = vmatpush1.bf16.msra.mxu1 %v9187_v6  ;;  %v9249_v5 = vcombine.low %v473_v57, %v477_v58  ;;  %v9251_v6 = vcombine.low %v474_v59, %v478_v60  ;;  %v9306_v57 = vcombine.high %v529_v51, %v533_v52  ;;  %v537_v59 = vld [vmem:[#allocation2 + $0x9c0] sm:$0xff] }
  0xa4   : > { %7328 = vmatprep.subr.bf16.mxu0 %v9194_v7  ;;  %7715 = vmatprep.subr.bf16.mxu1 %v9196_v8  ;;  %v9258_v7 = vcombine.high %v481_v1, %v485_v2  ;;  %v9260_v8 = vcombine.high %v482_v3, %v486_v4  ;;  %v541_v60 = vld [vmem:[#allocation2 + $0x9e0] sm:$0xff] }
  0xa7   : > { %7329 = vmatpush1.bf16.msra.mxu0 %v9193_v13  ;;  %7716 = vmatpush1.bf16.msra.mxu1 %v9195_v14  ;;  %v494_v13 = vld [vmem:[#allocation2 + $0x868] sm:$0xff]  ;;  %v9257_v14 = vcombine.low %v481_v1, %v485_v2  ;;  %v9314_v1 = vcombine.high %v537_v59, %v541_v60 }
  0xa8   : > { %7330 = vmatprep.subr.bf16.mxu0 %v9202_v15  ;;  %7717 = vmatprep.subr.bf16.mxu1 %v9204_v16  ;;  %v9259_v15 = vcombine.low %v482_v3, %v486_v4  ;;  %v9266_v16 = vcombine.high %v489_v9, %v493_v10  ;;  %v9268_v17 = vcombine.high %v490_v12, %v494_v13  ;;  %v545_v3 = vld [vmem:[#allocation2 + $0xa00] sm:$0xff] }
  0xa9   : > { %v549_v4 = vld [vmem:[#allocation2 + $0xa20] sm:$0xff] }
  0xab   : > { %7331 = vmatpush1.bf16.msra.mxu0 %v9201_v21  ;;  %7718 = vmatpush1.bf16.msra.mxu1 %v9203_v22  ;;  %v498_v21 = vld [vmem:[#allocation2 + $0x888] sm:$0xff] }
  0xac   : > { %7332 = vmatprep.subr.bf16.mxu0 %v9210_v23  ;;  %7719 = vmatprep.subr.bf16.mxu1 %v9212_v24  ;;  %v502_v22 = vld [vmem:[#allocation2 + $0x8a8] sm:$0xff]  ;;  %v9265_v23 = vcombine.low %v489_v9, %v493_v10  ;;  %v9267_v24 = vcombine.low %v490_v12, %v494_v13  ;;  %v9322_v9 = vcombine.high %v545_v3, %v549_v4  ;;  %v557_v12 = vld [vmem:[#allocation2 + $0xa60] sm:$0xff] }
  0xad   : > { %v9276_v26 = vcombine.high %v498_v21, %v502_v22  ;;  %v554_v13 = vld [vmem:[#allocation2 + $0xa48] sm:$0xff] }
  0xaf   : > { %7333 = vmatpush1.bf16.msra.mxu0 %v9209_v29  ;;  %7720 = vmatpush1.bf16.msra.mxu1 %v9211_v30  ;;  %v506_v29 = vld [vmem:[#allocation2 + $0x8c8] sm:$0xff] }
  0xb0   : > { %7334 = vmatprep.subr.bf16.mxu0 %v9218_v31  ;;  %7721 = vmatprep.subr.bf16.mxu1 %v9220_v32  ;;  %v510_v30 = vld [vmem:[#allocation2 + $0x8e8] sm:$0xff]  ;;  %v9273_v31 = vcombine.low %v497_v18, %v501_v19  ;;  %v9275_v32 = vcombine.low %v498_v21, %v502_v22  ;;  %v561_v19 = vld [vmem:[#allocation2 + $0xa80] sm:$0xff] }
  0xb1   : > { %v9284_v34 = vcombine.high %v506_v29, %v510_v30  ;;  %v562_v21 = vld [vmem:[#allocation2 + $0xa88] sm:$0xff] }
  0xb2   : > { %v566_v22 = vld [vmem:[#allocation2 + $0xaa8] sm:$0xff] }
  0xb3   : > { %7335 = vmatpush1.bf16.msra.mxu0 %v9217_v37  ;;  %7722 = vmatpush1.bf16.msra.mxu1 %v9219_v38  ;;  %v514_v37 = vld [vmem:[#allocation2 + $0x908] sm:$0xff] }
  0xb4   : > { %7336 = vmatprep.subr.bf16.mxu0 %v9226_v39  ;;  %7723 = vmatprep.subr.bf16.mxu1 %v9228_v40  ;;  %v518_v38 = vld [vmem:[#allocation2 + $0x928] sm:$0xff]  ;;  %v9281_v39 = vcombine.low %v505_v27, %v509_v28  ;;  %v9283_v40 = vcombine.low %v506_v29, %v510_v30  ;;  %v569_v27 = vld [vmem:[#allocation2 + $0xac0] sm:$0xff] }
  0xb5   : > { %v9292_v42 = vcombine.high %v514_v37, %v518_v38  ;;  %v573_v28 = vld [vmem:[#allocation2 + $0xae0] sm:$0xff]  ;;  %v570_v29 = vld [vmem:[#allocation2 + $0xac8] sm:$0xff] }
  0xb6   : > { %v574_v30 = vld [vmem:[#allocation2 + $0xae8] sm:$0xff] }
  0xb7   : > { %7337 = vmatpush1.bf16.msra.mxu0 %v9225_v45  ;;  %7724 = vmatpush1.bf16.msra.mxu1 %v9227_v46  ;;  %v522_v45 = vld [vmem:[#allocation2 + $0x948] sm:$0xff] }
  0xb8   : > { %7338 = vmatprep.subr.bf16.mxu0 %v9234_v47  ;;  %7725 = vmatprep.subr.bf16.mxu1 %v9236_v48  ;;  %v526_v46 = vld [vmem:[#allocation2 + $0x968] sm:$0xff]  ;;  %v9289_v47 = vcombine.low %v513_v35, %v517_v36  ;;  %v9291_v48 = vcombine.low %v514_v37, %v518_v38  ;;  %v577_v35 = vld [vmem:[#allocation2 + $0xb00] sm:$0xff] }
  0xb9   : > { %v9300_v50 = vcombine.high %v522_v45, %v526_v46  ;;  %v581_v36 = vld [vmem:[#allocation2 + $0xb20] sm:$0xff]  ;;  %v578_v37 = vld [vmem:[#allocation2 + $0xb08] sm:$0xff] }
  0xba   : > { %v582_v38 = vld [vmem:[#allocation2 + $0xb28] sm:$0xff] }
  0xbb   : > { %7339 = vmatpush1.bf16.msra.mxu0 %v9233_v53  ;;  %7726 = vmatpush1.bf16.msra.mxu1 %v9235_v54  ;;  %v530_v53 = vld [vmem:[#allocation2 + $0x988] sm:$0xff] }
  0xbc   : > { %7340 = vmatprep.subr.bf16.mxu0 %v9242_v55  ;;  %7727 = vmatprep.subr.bf16.mxu1 %v9244_v56  ;;  %v534_v54 = vld [vmem:[#allocation2 + $0x9a8] sm:$0xff]  ;;  %v9297_v55 = vcombine.low %v521_v43, %v525_v44  ;;  %v9299_v56 = vcombine.low %v522_v45, %v526_v46  ;;  %v585_v43 = vld [vmem:[#allocation2 + $0xb40] sm:$0xff] }
  0xbd   : > { %v9308_v58 = vcombine.high %v530_v53, %v534_v54  ;;  %v589_v44 = vld [vmem:[#allocation2 + $0xb60] sm:$0xff]  ;;  %v586_v45 = vld [vmem:[#allocation2 + $0xb48] sm:$0xff] }
  0xbe   : > { %v590_v46 = vld [vmem:[#allocation2 + $0xb68] sm:$0xff] }
  0xbf   : > { %7341 = vmatpush1.bf16.msra.mxu0 %v9241_v61  ;;  %7728 = vmatpush1.bf16.msra.mxu1 %v9243_v62  ;;  %v538_v61 = vld [vmem:[#allocation2 + $0x9c8] sm:$0xff] }
  0xc0   : > { %7342 = vmatprep.subr.bf16.mxu0 %v9250_v63  ;;  %7729 = vmatprep.subr.bf16.mxu1 %v9252_v0  ;;  %v542_v62 = vld [vmem:[#allocation2 + $0x9e8] sm:$0xff]  ;;  %v9305_v63 = vcombine.low %v529_v51, %v533_v52  ;;  %v9307_v0 = vcombine.low %v530_v53, %v534_v54  ;;  %v593_v51 = vld [vmem:[#allocation2 + $0xb80] sm:$0xff] }
  0xc1   : > { %v9316_v2 = vcombine.high %v538_v61, %v542_v62  ;;  %v597_v52 = vld [vmem:[#allocation2 + $0xba0] sm:$0xff]  ;;  %v594_v53 = vld [vmem:[#allocation2 + $0xb88] sm:$0xff] }
  0xc2   : > { %v598_v54 = vld [vmem:[#allocation2 + $0xba8] sm:$0xff] }
  0xc3   : > { %7343 = vmatpush1.bf16.msra.mxu0 %v9249_v5  ;;  %7730 = vmatpush1.bf16.msra.mxu1 %v9251_v6  ;;  %v546_v5 = vld [vmem:[#allocation2 + $0xa08] sm:$0xff] }
  0xc4   : > { %7355 = vmatprep.subr.bf16.mxu0 %v9258_v7  ;;  %7742 = vmatprep.subr.bf16.mxu1 %v9260_v8  ;;  %v550_v6 = vld [vmem:[#allocation2 + $0xa28] sm:$0xff]  ;;  %v9313_v7 = vcombine.low %v537_v59, %v541_v60  ;;  %v9315_v8 = vcombine.low %v538_v61, %v542_v62  ;;  %v601_v59 = vld [vmem:[#allocation2 + $0xbc0] sm:$0xff] }
  0xc5   : > { %v9324_v10 = vcombine.high %v546_v5, %v550_v6  ;;  %v605_v60 = vld [vmem:[#allocation2 + $0xbe0] sm:$0xff]  ;;  %v602_v61 = vld [vmem:[#allocation2 + $0xbc8] sm:$0xff] }
  0xc6   : > { %7345 = vmatmul.mubr.bf16.vlgmr.msra.gmra.mrb[0].mxu0 %v10353_v11  ;;  %7732 = vmatmul.mubr.bf16.vlgmr.msra.gmra.mrb[0].mxu1 %v10353_v11  ;;  %v553_v11 = vld [vmem:[#allocation2 + $0xa40] sm:$0xff]  ;;  %v606_v62 = vld [vmem:[#allocation2 + $0xbe8] sm:$0xff] }
  0xc7   : > { %7356 = vmatpush1.bf16.msra.mxu0 %v9257_v14  ;;  %7743 = vmatpush1.bf16.msra.mxu1 %v9259_v15  ;;  %v558_v14 = vld [vmem:[#allocation2 + $0xa68] sm:$0xff]  ;;  %v9321_v15 = vcombine.low %v545_v3, %v549_v4  ;;  %v609_v3 = vld [vmem:[#allocation2 + $0xc00] sm:$0xff] }
  0xc8   : > { %7357 = vmatprep.subr.bf16.mxu0 %v9266_v16  ;;  %7744 = vmatprep.subr.bf16.mxu1 %v9268_v17  ;;  %v9323_v16 = vcombine.low %v546_v5, %v550_v6  ;;  %v9330_v17 = vcombine.high %v553_v11, %v557_v12  ;;  %v9332_v18 = vcombine.high %v554_v13, %v558_v14  ;;  %v613_v4 = vld [vmem:[#allocation2 + $0xc20] sm:$0xff]  ;;  %v610_v5 = vld [vmem:[#allocation2 + $0xc08] sm:$0xff] }
  0xc9   : > { %7387 = vmatprep.mubr.bf16.mxu0 %v10354_v20  ;;  %7774 = vmatprep.mubr.bf16.mxu1 %v10354_v20  ;;  %v565_v20 = vld [vmem:[#allocation2 + $0xaa0] sm:$0xff]  ;;  %v614_v6 = vld [vmem:[#allocation2 + $0xc28] sm:$0xff] }
  0xcb   : > { %7358 = vmatpush1.bf16.msra.mxu0 %v9265_v23  ;;  %7745 = vmatpush1.bf16.msra.mxu1 %v9267_v24  ;;  %v9329_v23 = vcombine.low %v553_v11, %v557_v12  ;;  %v9331_v24 = vcombine.low %v554_v13, %v558_v14  ;;  %v617_v11 = vld [vmem:[#allocation2 + $0xc40] sm:$0xff]  ;;  %v10356_v13 = vld [vmem:[%s10583_s20 + $0x10] ss:$72 sps:$4 sm:$0xff]   ;;  %v618_v14 = vld [vmem:[#allocation2 + $0xc48] sm:$0xff] }
  0xcc   : > { %7359 = vmatprep.subr.bf16.mxu0 %v9274_v25  ;;  %7746 = vmatprep.subr.bf16.mxu1 %v9276_v26  ;;  %v9338_v25 = vcombine.high %v561_v19, %v565_v20  ;;  %v9340_v26 = vcombine.high %v562_v21, %v566_v22  ;;  %v621_v12 = vld [vmem:[#allocation2 + $0xc60] sm:$0xff] }
  0xcf   : > { %7360 = vmatpush1.bf16.msra.mxu0 %v9273_v31  ;;  %7747 = vmatpush1.bf16.msra.mxu1 %v9275_v32  ;;  %v9337_v31 = vcombine.low %v561_v19, %v565_v20  ;;  %v9339_v32 = vcombine.low %v562_v21, %v566_v22  ;;  %v625_v20 = vld [vmem:[#allocation2 + $0xc80] sm:$0xff] }
  0xd0   : > { %7361 = vmatprep.subr.bf16.mxu0 %v9282_v33  ;;  %7748 = vmatprep.subr.bf16.mxu1 %v9284_v34  ;;  %v9346_v33 = vcombine.high %v569_v27, %v573_v28  ;;  %v9348_v34 = vcombine.high %v570_v29, %v574_v30  ;;  %v629_v21 = vld [vmem:[#allocation2 + $0xca0] sm:$0xff] }
  0xd1   : > { %v10357_v22 = vld [vmem:[%s10583_s20 + $0x1c] ss:$72 sps:$4 sm:$0xff]  }
  0xd3   : > { %7362 = vmatpush1.bf16.msra.mxu0 %v9281_v39  ;;  %7749 = vmatpush1.bf16.msra.mxu1 %v9283_v40  ;;  %v9345_v39 = vcombine.low %v569_v27, %v573_v28  ;;  %v9347_v40 = vcombine.low %v570_v29, %v574_v30  ;;  %v9402_v27 = vcombine.high %v625_v20, %v629_v21  ;;  %v633_v29 = vld [vmem:[#allocation2 + $0xcc0] sm:$0xff] }
  0xd4   : > { %7363 = vmatprep.subr.bf16.mxu0 %v9290_v41  ;;  %7750 = vmatprep.subr.bf16.mxu1 %v9292_v42  ;;  %v9354_v41 = vcombine.high %v577_v35, %v581_v36  ;;  %v9356_v42 = vcombine.high %v578_v37, %v582_v38  ;;  %v637_v30 = vld [vmem:[#allocation2 + $0xce0] sm:$0xff] }
  0xd7   : > { %7364 = vmatpush1.bf16.msra.mxu0 %v9289_v47  ;;  %7751 = vmatpush1.bf16.msra.mxu1 %v9291_v48  ;;  %v9353_v47 = vcombine.low %v577_v35, %v581_v36  ;;  %v9355_v48 = vcombine.low %v578_v37, %v582_v38  ;;  %v9410_v35 = vcombine.high %v633_v29, %v637_v30  ;;  %v641_v37 = vld [vmem:[#allocation2 + $0xd00] sm:$0xff] }
  0xd8   : > { %7365 = vmatprep.subr.bf16.mxu0 %v9298_v49  ;;  %7752 = vmatprep.subr.bf16.mxu1 %v9300_v50  ;;  %v9362_v49 = vcombine.high %v585_v43, %v589_v44  ;;  %v9364_v50 = vcombine.high %v586_v45, %v590_v46  ;;  %v645_v38 = vld [vmem:[#allocation2 + $0xd20] sm:$0xff] }
  0xdb   : > { %7366 = vmatpush1.bf16.msra.mxu0 %v9297_v55  ;;  %7753 = vmatpush1.bf16.msra.mxu1 %v9299_v56  ;;  %v9361_v55 = vcombine.low %v585_v43, %v589_v44  ;;  %v9363_v56 = vcombine.low %v586_v45, %v590_v46  ;;  %v9418_v43 = vcombine.high %v641_v37, %v645_v38  ;;  %v649_v45 = vld [vmem:[#allocation2 + $0xd40] sm:$0xff] }
  0xdc   : > { %7367 = vmatprep.subr.bf16.mxu0 %v9306_v57  ;;  %7754 = vmatprep.subr.bf16.mxu1 %v9308_v58  ;;  %v9370_v57 = vcombine.high %v593_v51, %v597_v52  ;;  %v9372_v58 = vcombine.high %v594_v53, %v598_v54  ;;  %v653_v46 = vld [vmem:[#allocation2 + $0xd60] sm:$0xff] }
  0xdf   : > { %7368 = vmatpush1.bf16.msra.mxu0 %v9305_v63  ;;  %7755 = vmatpush1.bf16.msra.mxu1 %v9307_v0  ;;  %v9369_v63 = vcombine.low %v593_v51, %v597_v52  ;;  %v9371_v0 = vcombine.low %v594_v53, %v598_v54  ;;  %v9426_v51 = vcombine.high %v649_v45, %v653_v46  ;;  %v657_v53 = vld [vmem:[#allocation2 + $0xd80] sm:$0xff] }
  0xe0   : > { %7369 = vmatprep.subr.bf16.mxu0 %v9314_v1  ;;  %7756 = vmatprep.subr.bf16.mxu1 %v9316_v2  ;;  %v9378_v1 = vcombine.high %v601_v59, %v605_v60  ;;  %v9380_v2 = vcombine.high %v602_v61, %v606_v62  ;;  %v661_v54 = vld [vmem:[#allocation2 + $0xda0] sm:$0xff] }
  0xe3   : > { %7370 = vmatpush1.bf16.msra.mxu0 %v9313_v7  ;;  %7757 = vmatpush1.bf16.msra.mxu1 %v9315_v8  ;;  %v9377_v7 = vcombine.low %v601_v59, %v605_v60  ;;  %v9379_v8 = vcombine.low %v602_v61, %v606_v62  ;;  %v9434_v59 = vcombine.high %v657_v53, %v661_v54  ;;  %v665_v61 = vld [vmem:[#allocation2 + $0xdc0] sm:$0xff] }
  0xe4   : > { %7371 = vmatprep.subr.bf16.mxu0 %v9322_v9  ;;  %7758 = vmatprep.subr.bf16.mxu1 %v9324_v10  ;;  %v9386_v9 = vcombine.high %v609_v3, %v613_v4  ;;  %v9388_v10 = vcombine.high %v610_v5, %v614_v6  ;;  %v669_v62 = vld [vmem:[#allocation2 + $0xde0] sm:$0xff] }
  0xe7   : > { %7372 = vmatpush1.bf16.msra.mxu0 %v9321_v15  ;;  %7759 = vmatpush1.bf16.msra.mxu1 %v9323_v16  ;;  %v622_v15 = vld [vmem:[#allocation2 + $0xc68] sm:$0xff]  ;;  %v9385_v16 = vcombine.low %v609_v3, %v613_v4  ;;  %v9442_v3 = vcombine.high %v665_v61, %v669_v62 }
  0xe8   : > { %7373 = vmatprep.subr.bf16.mxu0 %v9330_v17  ;;  %7760 = vmatprep.subr.bf16.mxu1 %v9332_v18  ;;  %v9387_v17 = vcombine.low %v610_v5, %v614_v6  ;;  %v9394_v18 = vcombine.high %v617_v11, %v621_v12  ;;  %v9396_v19 = vcombine.high %v618_v14, %v622_v15  ;;  %v673_v5 = vld [vmem:[#allocation2 + $0xe00] sm:$0xff] }
  0xe9   : > { %v677_v6 = vld [vmem:[#allocation2 + $0xe20] sm:$0xff] }
  0xeb   : > { %7374 = vmatpush1.bf16.msra.mxu0 %v9329_v23  ;;  %7761 = vmatpush1.bf16.msra.mxu1 %v9331_v24  ;;  %v626_v23 = vld [vmem:[#allocation2 + $0xc88] sm:$0xff] }
  0xec   : > { %7375 = vmatprep.subr.bf16.mxu0 %v9338_v25  ;;  %7762 = vmatprep.subr.bf16.mxu1 %v9340_v26  ;;  %v630_v24 = vld [vmem:[#allocation2 + $0xca8] sm:$0xff]  ;;  %v9393_v25 = vcombine.low %v617_v11, %v621_v12  ;;  %v9395_v26 = vcombine.low %v618_v14, %v622_v15  ;;  %v9450_v11 = vcombine.high %v673_v5, %v677_v6  ;;  %v685_v14 = vld [vmem:[#allocation2 + $0xe60] sm:$0xff] }
  0xed   : > { %v9404_v28 = vcombine.high %v626_v23, %v630_v24  ;;  %v682_v15 = vld [vmem:[#allocation2 + $0xe48] sm:$0xff] }
  0xef   : > { %7376 = vmatpush1.bf16.msra.mxu0 %v9337_v31  ;;  %7763 = vmatpush1.bf16.msra.mxu1 %v9339_v32  ;;  %v634_v31 = vld [vmem:[#allocation2 + $0xcc8] sm:$0xff] }
  0xf0   : > { %7377 = vmatprep.subr.bf16.mxu0 %v9346_v33  ;;  %7764 = vmatprep.subr.bf16.mxu1 %v9348_v34  ;;  %v638_v32 = vld [vmem:[#allocation2 + $0xce8] sm:$0xff]  ;;  %v9401_v33 = vcombine.low %v625_v20, %v629_v21  ;;  %v9403_v34 = vcombine.low %v626_v23, %v630_v24  ;;  %v689_v21 = vld [vmem:[#allocation2 + $0xe80] sm:$0xff] }
  0xf1   : > { %v9412_v36 = vcombine.high %v634_v31, %v638_v32  ;;  %v690_v23 = vld [vmem:[#allocation2 + $0xe88] sm:$0xff] }
  0xf2   : > { %v694_v24 = vld [vmem:[#allocation2 + $0xea8] sm:$0xff] }
  0xf3   : > { %7378 = vmatpush1.bf16.msra.mxu0 %v9345_v39  ;;  %7765 = vmatpush1.bf16.msra.mxu1 %v9347_v40  ;;  %v642_v39 = vld [vmem:[#allocation2 + $0xd08] sm:$0xff] }
  0xf4   : > { %7379 = vmatprep.subr.bf16.mxu0 %v9354_v41  ;;  %7766 = vmatprep.subr.bf16.mxu1 %v9356_v42  ;;  %v646_v40 = vld [vmem:[#allocation2 + $0xd28] sm:$0xff]  ;;  %v9409_v41 = vcombine.low %v633_v29, %v637_v30  ;;  %v9411_v42 = vcombine.low %v634_v31, %v638_v32  ;;  %v697_v29 = vld [vmem:[#allocation2 + $0xec0] sm:$0xff] }
  0xf5   : > { %v9420_v44 = vcombine.high %v642_v39, %v646_v40  ;;  %v701_v30 = vld [vmem:[#allocation2 + $0xee0] sm:$0xff]  ;;  %v698_v31 = vld [vmem:[#allocation2 + $0xec8] sm:$0xff] }
  0xf6   : > { %v702_v32 = vld [vmem:[#allocation2 + $0xee8] sm:$0xff] }
  0xf7   : > { %7380 = vmatpush1.bf16.msra.mxu0 %v9353_v47  ;;  %7767 = vmatpush1.bf16.msra.mxu1 %v9355_v48  ;;  %v650_v47 = vld [vmem:[#allocation2 + $0xd48] sm:$0xff] }
  0xf8   : > { %7381 = vmatprep.subr.bf16.mxu0 %v9362_v49  ;;  %7768 = vmatprep.subr.bf16.mxu1 %v9364_v50  ;;  %v654_v48 = vld [vmem:[#allocation2 + $0xd68] sm:$0xff]  ;;  %v9417_v49 = vcombine.low %v641_v37, %v645_v38  ;;  %v9419_v50 = vcombine.low %v642_v39, %v646_v40  ;;  %v705_v37 = vld [vmem:[#allocation2 + $0xf00] sm:$0xff] }
  0xf9   : > { %v9428_v52 = vcombine.high %v650_v47, %v654_v48  ;;  %v709_v38 = vld [vmem:[#allocation2 + $0xf20] sm:$0xff]  ;;  %v706_v39 = vld [vmem:[#allocation2 + $0xf08] sm:$0xff] }
  0xfa   : > { %v710_v40 = vld [vmem:[#allocation2 + $0xf28] sm:$0xff] }
  0xfb   : > { %7382 = vmatpush1.bf16.msra.mxu0 %v9361_v55  ;;  %7769 = vmatpush1.bf16.msra.mxu1 %v9363_v56  ;;  %v658_v55 = vld [vmem:[#allocation2 + $0xd88] sm:$0xff] }
  0xfc   : > { %7383 = vmatprep.subr.bf16.mxu0 %v9370_v57  ;;  %7770 = vmatprep.subr.bf16.mxu1 %v9372_v58  ;;  %v662_v56 = vld [vmem:[#allocation2 + $0xda8] sm:$0xff]  ;;  %v9425_v57 = vcombine.low %v649_v45, %v653_v46  ;;  %v9427_v58 = vcombine.low %v650_v47, %v654_v48  ;;  %v713_v45 = vld [vmem:[#allocation2 + $0xf40] sm:$0xff] }
  0xfd   : > { %v9436_v60 = vcombine.high %v658_v55, %v662_v56  ;;  %v717_v46 = vld [vmem:[#allocation2 + $0xf60] sm:$0xff]  ;;  %v714_v47 = vld [vmem:[#allocation2 + $0xf48] sm:$0xff] }
  0xfe   : > { %v718_v48 = vld [vmem:[#allocation2 + $0xf68] sm:$0xff] }
  0xff   : > { %7384 = vmatpush1.bf16.msra.mxu0 %v9369_v63  ;;  %7771 = vmatpush1.bf16.msra.mxu1 %v9371_v0  ;;  %v666_v63 = vld [vmem:[#allocation2 + $0xdc8] sm:$0xff] }
 0x100   : > { %7385 = vmatprep.subr.bf16.mxu0 %v9378_v1  ;;  %7772 = vmatprep.subr.bf16.mxu1 %v9380_v2  ;;  %v670_v0 = vld [vmem:[#allocation2 + $0xde8] sm:$0xff]  ;;  %v9433_v1 = vcombine.low %v657_v53, %v661_v54  ;;  %v9435_v2 = vcombine.low %v658_v55, %v662_v56  ;;  %v721_v53 = vld [vmem:[#allocation2 + $0xf80] sm:$0xff] }
 0x101   : > { %v9444_v4 = vcombine.high %v666_v63, %v670_v0  ;;  %v725_v54 = vld [vmem:[#allocation2 + $0xfa0] sm:$0xff]  ;;  %v722_v55 = vld [vmem:[#allocation2 + $0xf88] sm:$0xff] }
 0x102   : > { %v726_v56 = vld [vmem:[#allocation2 + $0xfa8] sm:$0xff] }
 0x103   : > { %7386 = vmatpush1.bf16.msra.mxu0 %v9377_v7  ;;  %7773 = vmatpush1.bf16.msra.mxu1 %v9379_v8  ;;  %v674_v7 = vld [vmem:[#allocation2 + $0xe08] sm:$0xff] }
 0x104   : > { %7398 = vmatprep.subr.bf16.mxu0 %v9386_v9  ;;  %7785 = vmatprep.subr.bf16.mxu1 %v9388_v10  ;;  %v678_v8 = vld [vmem:[#allocation2 + $0xe28] sm:$0xff]  ;;  %v9441_v9 = vcombine.low %v665_v61, %v669_v62  ;;  %v9443_v10 = vcombine.low %v666_v63, %v670_v0  ;;  %v729_v61 = vld [vmem:[#allocation2 + $0xfc0] sm:$0xff] }
 0x105   : > { %v9452_v12 = vcombine.high %v674_v7, %v678_v8  ;;  %v733_v62 = vld [vmem:[#allocation2 + $0xfe0] sm:$0xff]  ;;  %v730_v63 = vld [vmem:[#allocation2 + $0xfc8] sm:$0xff] }
 0x106   : > { %7388 = vmatmul.mubr.bf16.vlgmr.msra.gmra.mrb[0].mxu0 %v10356_v13  ;;  %7775 = vmatmul.mubr.bf16.vlgmr.msra.gmra.mrb[0].mxu1 %v10356_v13  ;;  %v681_v13 = vld [vmem:[#allocation2 + $0xe40] sm:$0xff]  ;;  %v734_v0 = vld [vmem:[#allocation2 + $0xfe8] sm:$0xff] }
 0x107   : > { %7399 = vmatpush1.bf16.msra.mxu0 %v9385_v16  ;;  %7786 = vmatpush1.bf16.msra.mxu1 %v9387_v17  ;;  %v686_v16 = vld [vmem:[#allocation2 + $0xe68] sm:$0xff]  ;;  %v9449_v17 = vcombine.low %v673_v5, %v677_v6  ;;  %v737_v5 = vld [vmem:[#allocation2 + $0x1000] sm:$0xff] }
 0x108   : > { %7400 = vmatprep.subr.bf16.mxu0 %v9394_v18  ;;  %7787 = vmatprep.subr.bf16.mxu1 %v9396_v19  ;;  %v9451_v18 = vcombine.low %v674_v7, %v678_v8  ;;  %v9458_v19 = vcombine.high %v681_v13, %v685_v14  ;;  %v9460_v20 = vcombine.high %v682_v15, %v686_v16  ;;  %v741_v6 = vld [vmem:[#allocation2 + $0x1020] sm:$0xff]  ;;  %v738_v7 = vld [vmem:[#allocation2 + $0x1008] sm:$0xff] }
 0x109   : > { %7430 = vmatprep.mubr.bf16.mxu0 %v10357_v22  ;;  %7817 = vmatprep.mubr.bf16.mxu1 %v10357_v22  ;;  %v693_v22 = vld [vmem:[#allocation2 + $0xea0] sm:$0xff]  ;;  %v742_v8 = vld [vmem:[#allocation2 + $0x1028] sm:$0xff] }
 0x10b   : > { %7401 = vmatpush1.bf16.msra.mxu0 %v9393_v25  ;;  %7788 = vmatpush1.bf16.msra.mxu1 %v9395_v26  ;;  %v9457_v25 = vcombine.low %v681_v13, %v685_v14  ;;  %v9459_v26 = vcombine.low %v682_v15, %v686_v16  ;;  %v745_v13 = vld [vmem:[#allocation2 + $0x1040] sm:$0xff]  ;;  %v746_v16 = vld [vmem:[#allocation2 + $0x1048] sm:$0xff] }
 0x10c   : > { %7402 = vmatprep.subr.bf16.mxu0 %v9402_v27  ;;  %7789 = vmatprep.subr.bf16.mxu1 %v9404_v28  ;;  %v9466_v27 = vcombine.high %v689_v21, %v693_v22  ;;  %v9468_v28 = vcombine.high %v690_v23, %v694_v24  ;;  %v749_v14 = vld [vmem:[#allocation2 + $0x1060] sm:$0xff] }
 0x10d   : > { %v10359_v15 = vld [vmem:[%s10583_s20 + $0x18] ss:$72 sps:$4 sm:$0xff]  }
 0x10f   : > { %7403 = vmatpush1.bf16.msra.mxu0 %v9401_v33  ;;  %7790 = vmatpush1.bf16.msra.mxu1 %v9403_v34  ;;  %v9465_v33 = vcombine.low %v689_v21, %v693_v22  ;;  %v9467_v34 = vcombine.low %v690_v23, %v694_v24  ;;  %v753_v22 = vld [vmem:[#allocation2 + $0x1080] sm:$0xff] }
 0x110   : > { %7404 = vmatprep.subr.bf16.mxu0 %v9410_v35  ;;  %7791 = vmatprep.subr.bf16.mxu1 %v9412_v36  ;;  %v9474_v35 = vcombine.high %v697_v29, %v701_v30  ;;  %v9476_v36 = vcombine.high %v698_v31, %v702_v32  ;;  %v757_v23 = vld [vmem:[#allocation2 + $0x10a0] sm:$0xff] }
 0x111   : > { %v10360_v24 = vld [vmem:[%s10583_s20 + $0x24] ss:$72 sps:$4 sm:$0xff]  }
 0x113   : > { %7405 = vmatpush1.bf16.msra.mxu0 %v9409_v41  ;;  %7792 = vmatpush1.bf16.msra.mxu1 %v9411_v42  ;;  %v9473_v41 = vcombine.low %v697_v29, %v701_v30  ;;  %v9475_v42 = vcombine.low %v698_v31, %v702_v32  ;;  %v9530_v29 = vcombine.high %v753_v22, %v757_v23  ;;  %v761_v31 = vld [vmem:[#allocation2 + $0x10c0] sm:$0xff] }
 0x114   : > { %7406 = vmatprep.subr.bf16.mxu0 %v9418_v43  ;;  %7793 = vmatprep.subr.bf16.mxu1 %v9420_v44  ;;  %v9482_v43 = vcombine.high %v705_v37, %v709_v38  ;;  %v9484_v44 = vcombine.high %v706_v39, %v710_v40  ;;  %v765_v32 = vld [vmem:[#allocation2 + $0x10e0] sm:$0xff] }
 0x117   : > { %7407 = vmatpush1.bf16.msra.mxu0 %v9417_v49  ;;  %7794 = vmatpush1.bf16.msra.mxu1 %v9419_v50  ;;  %v9481_v49 = vcombine.low %v705_v37, %v709_v38  ;;  %v9483_v50 = vcombine.low %v706_v39, %v710_v40  ;;  %v9538_v37 = vcombine.high %v761_v31, %v765_v32  ;;  %v769_v39 = vld [vmem:[#allocation2 + $0x1100] sm:$0xff] }
 0x118   : > { %7408 = vmatprep.subr.bf16.mxu0 %v9426_v51  ;;  %7795 = vmatprep.subr.bf16.mxu1 %v9428_v52  ;;  %v9490_v51 = vcombine.high %v713_v45, %v717_v46  ;;  %v9492_v52 = vcombine.high %v714_v47, %v718_v48  ;;  %v773_v40 = vld [vmem:[#allocation2 + $0x1120] sm:$0xff] }
 0x11b   : > { %7409 = vmatpush1.bf16.msra.mxu0 %v9425_v57  ;;  %7796 = vmatpush1.bf16.msra.mxu1 %v9427_v58  ;;  %v9489_v57 = vcombine.low %v713_v45, %v717_v46  ;;  %v9491_v58 = vcombine.low %v714_v47, %v718_v48  ;;  %v9546_v45 = vcombine.high %v769_v39, %v773_v40  ;;  %v777_v47 = vld [vmem:[#allocation2 + $0x1140] sm:$0xff] }
 0x11c   : > { %7410 = vmatprep.subr.bf16.mxu0 %v9434_v59  ;;  %7797 = vmatprep.subr.bf16.mxu1 %v9436_v60  ;;  %v9498_v59 = vcombine.high %v721_v53, %v725_v54  ;;  %v9500_v60 = vcombine.high %v722_v55, %v726_v56  ;;  %v781_v48 = vld [vmem:[#allocation2 + $0x1160] sm:$0xff] }
 0x11f   : > { %7411 = vmatpush1.bf16.msra.mxu0 %v9433_v1  ;;  %7798 = vmatpush1.bf16.msra.mxu1 %v9435_v2  ;;  %v9497_v1 = vcombine.low %v721_v53, %v725_v54  ;;  %v9499_v2 = vcombine.low %v722_v55, %v726_v56  ;;  %v9554_v53 = vcombine.high %v777_v47, %v781_v48  ;;  %v785_v55 = vld [vmem:[#allocation2 + $0x1180] sm:$0xff] }
 0x120   : > { %7412 = vmatprep.subr.bf16.mxu0 %v9442_v3  ;;  %7799 = vmatprep.subr.bf16.mxu1 %v9444_v4  ;;  %v9506_v3 = vcombine.high %v729_v61, %v733_v62  ;;  %v9508_v4 = vcombine.high %v730_v63, %v734_v0  ;;  %v789_v56 = vld [vmem:[#allocation2 + $0x11a0] sm:$0xff] }
 0x123   : > { %7413 = vmatpush1.bf16.msra.mxu0 %v9441_v9  ;;  %7800 = vmatpush1.bf16.msra.mxu1 %v9443_v10  ;;  %v9505_v9 = vcombine.low %v729_v61, %v733_v62  ;;  %v9507_v10 = vcombine.low %v730_v63, %v734_v0  ;;  %v9562_v61 = vcombine.high %v785_v55, %v789_v56  ;;  %v793_v63 = vld [vmem:[#allocation2 + $0x11c0] sm:$0xff] }
 0x124   : > { %7414 = vmatprep.subr.bf16.mxu0 %v9450_v11  ;;  %7801 = vmatprep.subr.bf16.mxu1 %v9452_v12  ;;  %v9514_v11 = vcombine.high %v737_v5, %v741_v6  ;;  %v9516_v12 = vcombine.high %v738_v7, %v742_v8  ;;  %v797_v0 = vld [vmem:[#allocation2 + $0x11e0] sm:$0xff] }
 0x127   : > { %7415 = vmatpush1.bf16.msra.mxu0 %v9449_v17  ;;  %7802 = vmatpush1.bf16.msra.mxu1 %v9451_v18  ;;  %v750_v17 = vld [vmem:[#allocation2 + $0x1068] sm:$0xff]  ;;  %v9513_v18 = vcombine.low %v737_v5, %v741_v6  ;;  %v9570_v5 = vcombine.high %v793_v63, %v797_v0 }
 0x128   : > { %7416 = vmatprep.subr.bf16.mxu0 %v9458_v19  ;;  %7803 = vmatprep.subr.bf16.mxu1 %v9460_v20  ;;  %v9515_v19 = vcombine.low %v738_v7, %v742_v8  ;;  %v9522_v20 = vcombine.high %v745_v13, %v749_v14  ;;  %v9524_v21 = vcombine.high %v746_v16, %v750_v17  ;;  %v801_v7 = vld [vmem:[#allocation2 + $0x1200] sm:$0xff] }
 0x129   : > { %v805_v8 = vld [vmem:[#allocation2 + $0x1220] sm:$0xff] }
 0x12b   : > { %7417 = vmatpush1.bf16.msra.mxu0 %v9457_v25  ;;  %7804 = vmatpush1.bf16.msra.mxu1 %v9459_v26  ;;  %v754_v25 = vld [vmem:[#allocation2 + $0x1088] sm:$0xff] }
 0x12c   : > { %7418 = vmatprep.subr.bf16.mxu0 %v9466_v27  ;;  %7805 = vmatprep.subr.bf16.mxu1 %v9468_v28  ;;  %v758_v26 = vld [vmem:[#allocation2 + $0x10a8] sm:$0xff]  ;;  %v9521_v27 = vcombine.low %v745_v13, %v749_v14  ;;  %v9523_v28 = vcombine.low %v746_v16, %v750_v17  ;;  %v9578_v13 = vcombine.high %v801_v7, %v805_v8  ;;  %v813_v16 = vld [vmem:[#allocation2 + $0x1260] sm:$0xff] }
 0x12d   : > { %v9532_v30 = vcombine.high %v754_v25, %v758_v26  ;;  %v810_v17 = vld [vmem:[#allocation2 + $0x1248] sm:$0xff] }
 0x12f   : > { %7419 = vmatpush1.bf16.msra.mxu0 %v9465_v33  ;;  %7806 = vmatpush1.bf16.msra.mxu1 %v9467_v34  ;;  %v762_v33 = vld [vmem:[#allocation2 + $0x10c8] sm:$0xff] }
 0x130   : > { %7420 = vmatprep.subr.bf16.mxu0 %v9474_v35  ;;  %7807 = vmatprep.subr.bf16.mxu1 %v9476_v36  ;;  %v766_v34 = vld [vmem:[#allocation2 + $0x10e8] sm:$0xff]  ;;  %v9529_v35 = vcombine.low %v753_v22, %v757_v23  ;;  %v9531_v36 = vcombine.low %v754_v25, %v758_v26  ;;  %v817_v23 = vld [vmem:[#allocation2 + $0x1280] sm:$0xff] }
 0x131   : > { %v9540_v38 = vcombine.high %v762_v33, %v766_v34  ;;  %v818_v25 = vld [vmem:[#allocation2 + $0x1288] sm:$0xff] }
 0x132   : > { %v822_v26 = vld [vmem:[#allocation2 + $0x12a8] sm:$0xff] }
 0x133   : > { %7421 = vmatpush1.bf16.msra.mxu0 %v9473_v41  ;;  %7808 = vmatpush1.bf16.msra.mxu1 %v9475_v42  ;;  %v770_v41 = vld [vmem:[#allocation2 + $0x1108] sm:$0xff] }
 0x134   : > { %7422 = vmatprep.subr.bf16.mxu0 %v9482_v43  ;;  %7809 = vmatprep.subr.bf16.mxu1 %v9484_v44  ;;  %v774_v42 = vld [vmem:[#allocation2 + $0x1128] sm:$0xff]  ;;  %v9537_v43 = vcombine.low %v761_v31, %v765_v32  ;;  %v9539_v44 = vcombine.low %v762_v33, %v766_v34  ;;  %v825_v31 = vld [vmem:[#allocation2 + $0x12c0] sm:$0xff] }
 0x135   : > { %v9548_v46 = vcombine.high %v770_v41, %v774_v42  ;;  %v829_v32 = vld [vmem:[#allocation2 + $0x12e0] sm:$0xff]  ;;  %v826_v33 = vld [vmem:[#allocation2 + $0x12c8] sm:$0xff] }
 0x136   : > { %v830_v34 = vld [vmem:[#allocation2 + $0x12e8] sm:$0xff] }
 0x137   : > { %7423 = vmatpush1.bf16.msra.mxu0 %v9481_v49  ;;  %7810 = vmatpush1.bf16.msra.mxu1 %v9483_v50  ;;  %v778_v49 = vld [vmem:[#allocation2 + $0x1148] sm:$0xff] }
 0x138   : > { %7424 = vmatprep.subr.bf16.mxu0 %v9490_v51  ;;  %7811 = vmatprep.subr.bf16.mxu1 %v9492_v52  ;;  %v782_v50 = vld [vmem:[#allocation2 + $0x1168] sm:$0xff]  ;;  %v9545_v51 = vcombine.low %v769_v39, %v773_v40  ;;  %v9547_v52 = vcombine.low %v770_v41, %v774_v42  ;;  %v833_v39 = vld [vmem:[#allocation2 + $0x1300] sm:$0xff] }
 0x139   : > { %v9556_v54 = vcombine.high %v778_v49, %v782_v50  ;;  %v837_v40 = vld [vmem:[#allocation2 + $0x1320] sm:$0xff]  ;;  %v834_v41 = vld [vmem:[#allocation2 + $0x1308] sm:$0xff] }
 0x13a   : > { %v838_v42 = vld [vmem:[#allocation2 + $0x1328] sm:$0xff] }
 0x13b   : > { %7425 = vmatpush1.bf16.msra.mxu0 %v9489_v57  ;;  %7812 = vmatpush1.bf16.msra.mxu1 %v9491_v58  ;;  %v786_v57 = vld [vmem:[#allocation2 + $0x1188] sm:$0xff] }
 0x13c   : > { %7426 = vmatprep.subr.bf16.mxu0 %v9498_v59  ;;  %7813 = vmatprep.subr.bf16.mxu1 %v9500_v60  ;;  %v790_v58 = vld [vmem:[#allocation2 + $0x11a8] sm:$0xff]  ;;  %v9553_v59 = vcombine.low %v777_v47, %v781_v48  ;;  %v9555_v60 = vcombine.low %v778_v49, %v782_v50  ;;  %v841_v47 = vld [vmem:[#allocation2 + $0x1340] sm:$0xff] }
 0x13d   : > { %v9564_v62 = vcombine.high %v786_v57, %v790_v58  ;;  %v845_v48 = vld [vmem:[#allocation2 + $0x1360] sm:$0xff]  ;;  %v842_v49 = vld [vmem:[#allocation2 + $0x1348] sm:$0xff] }
 0x13e   : > { %v846_v50 = vld [vmem:[#allocation2 + $0x1368] sm:$0xff] }
 0x13f   : > { %7427 = vmatpush1.bf16.msra.mxu0 %v9497_v1  ;;  %7814 = vmatpush1.bf16.msra.mxu1 %v9499_v2  ;;  %v794_v1 = vld [vmem:[#allocation2 + $0x11c8] sm:$0xff] }
 0x140   : > { %7428 = vmatprep.subr.bf16.mxu0 %v9506_v3  ;;  %7815 = vmatprep.subr.bf16.mxu1 %v9508_v4  ;;  %v798_v2 = vld [vmem:[#allocation2 + $0x11e8] sm:$0xff]  ;;  %v9561_v3 = vcombine.low %v785_v55, %v789_v56  ;;  %v9563_v4 = vcombine.low %v786_v57, %v790_v58  ;;  %v849_v55 = vld [vmem:[#allocation2 + $0x1380] sm:$0xff] }
 0x141   : > { %v9572_v6 = vcombine.high %v794_v1, %v798_v2  ;;  %v853_v56 = vld [vmem:[#allocation2 + $0x13a0] sm:$0xff]  ;;  %v850_v57 = vld [vmem:[#allocation2 + $0x1388] sm:$0xff] }
 0x142   : > { %v854_v58 = vld [vmem:[#allocation2 + $0x13a8] sm:$0xff] }
 0x143   : > { %7429 = vmatpush1.bf16.msra.mxu0 %v9505_v9  ;;  %7816 = vmatpush1.bf16.msra.mxu1 %v9507_v10  ;;  %v802_v9 = vld [vmem:[#allocation2 + $0x1208] sm:$0xff] }
 0x144   : > { %7441 = vmatprep.subr.bf16.mxu0 %v9514_v11  ;;  %7828 = vmatprep.subr.bf16.mxu1 %v9516_v12  ;;  %v806_v10 = vld [vmem:[#allocation2 + $0x1228] sm:$0xff]  ;;  %v9569_v11 = vcombine.low %v793_v63, %v797_v0  ;;  %v9571_v12 = vcombine.low %v794_v1, %v798_v2  ;;  %v857_v63 = vld [vmem:[#allocation2 + $0x13c0] sm:$0xff] }
 0x145   : > { %v9580_v14 = vcombine.high %v802_v9, %v806_v10  ;;  %v861_v0 = vld [vmem:[#allocation2 + $0x13e0] sm:$0xff]  ;;  %v858_v1 = vld [vmem:[#allocation2 + $0x13c8] sm:$0xff] }
 0x146   : > { %7431 = vmatmul.mubr.bf16.vlgmr.msra.gmra.mrb[0].mxu0 %v10359_v15  ;;  %7818 = vmatmul.mubr.bf16.vlgmr.msra.gmra.mrb[0].mxu1 %v10359_v15  ;;  %v809_v15 = vld [vmem:[#allocation2 + $0x1240] sm:$0xff]  ;;  %v862_v2 = vld [vmem:[#allocation2 + $0x13e8] sm:$0xff] }
 0x147   : > { %7442 = vmatpush1.bf16.msra.mxu0 %v9513_v18  ;;  %7829 = vmatpush1.bf16.msra.mxu1 %v9515_v19  ;;  %v814_v18 = vld [vmem:[#allocation2 + $0x1268] sm:$0xff]  ;;  %v9577_v19 = vcombine.low %v801_v7, %v805_v8  ;;  %v865_v7 = vld [vmem:[#allocation2 + $0x1400] sm:$0xff] }
 0x148   : > { %7443 = vmatprep.subr.bf16.mxu0 %v9522_v20  ;;  %7830 = vmatprep.subr.bf16.mxu1 %v9524_v21  ;;  %v9579_v20 = vcombine.low %v802_v9, %v806_v10  ;;  %v9586_v21 = vcombine.high %v809_v15, %v813_v16  ;;  %v9588_v22 = vcombine.high %v810_v17, %v814_v18  ;;  %v869_v8 = vld [vmem:[#allocation2 + $0x1420] sm:$0xff]  ;;  %v866_v9 = vld [vmem:[#allocation2 + $0x1408] sm:$0xff] }
 0x149   : > { %7473 = vmatprep.mubr.bf16.mxu0 %v10360_v24  ;;  %7860 = vmatprep.mubr.bf16.mxu1 %v10360_v24  ;;  %v821_v24 = vld [vmem:[#allocation2 + $0x12a0] sm:$0xff]  ;;  %v870_v10 = vld [vmem:[#allocation2 + $0x1428] sm:$0xff] }
 0x14b   : > { %7444 = vmatpush1.bf16.msra.mxu0 %v9521_v27  ;;  %7831 = vmatpush1.bf16.msra.mxu1 %v9523_v28  ;;  %v9585_v27 = vcombine.low %v809_v15, %v813_v16  ;;  %v9587_v28 = vcombine.low %v810_v17, %v814_v18  ;;  %v873_v15 = vld [vmem:[#allocation2 + $0x1440] sm:$0xff]  ;;  %v874_v18 = vld [vmem:[#allocation2 + $0x1448] sm:$0xff] }
 0x14c   : > { %7445 = vmatprep.subr.bf16.mxu0 %v9530_v29  ;;  %7832 = vmatprep.subr.bf16.mxu1 %v9532_v30  ;;  %v9594_v29 = vcombine.high %v817_v23, %v821_v24  ;;  %v9596_v30 = vcombine.high %v818_v25, %v822_v26  ;;  %v877_v16 = vld [vmem:[#allocation2 + $0x1460] sm:$0xff] }
 0x14d   : > { %v10362_v17 = vld [vmem:[%s10583_s20 + $0x20] ss:$72 sps:$4 sm:$0xff]  }
 0x14f   : > { %7446 = vmatpush1.bf16.msra.mxu0 %v9529_v35  ;;  %7833 = vmatpush1.bf16.msra.mxu1 %v9531_v36  ;;  %v9593_v35 = vcombine.low %v817_v23, %v821_v24  ;;  %v9595_v36 = vcombine.low %v818_v25, %v822_v26  ;;  %v881_v24 = vld [vmem:[#allocation2 + $0x1480] sm:$0xff]  ;;  %v10363_v26 = vld [vmem:[%s10583_s20 + $0x2c] ss:$72 sps:$4 sm:$0xff]  }
 0x150   : > { %7447 = vmatprep.subr.bf16.mxu0 %v9538_v37  ;;  %7834 = vmatprep.subr.bf16.mxu1 %v9540_v38  ;;  %v9602_v37 = vcombine.high %v825_v31, %v829_v32  ;;  %v9604_v38 = vcombine.high %v826_v33, %v830_v34  ;;  %v885_v25 = vld [vmem:[#allocation2 + $0x14a0] sm:$0xff] }
 0x153   : > { %7448 = vmatpush1.bf16.msra.mxu0 %v9537_v43  ;;  %7835 = vmatpush1.bf16.msra.mxu1 %v9539_v44  ;;  %v9601_v43 = vcombine.low %v825_v31, %v829_v32  ;;  %v9603_v44 = vcombine.low %v826_v33, %v830_v34  ;;  %v9658_v31 = vcombine.high %v881_v24, %v885_v25  ;;  %v889_v33 = vld [vmem:[#allocation2 + $0x14c0] sm:$0xff] }
 0x154   : > { %7449 = vmatprep.subr.bf16.mxu0 %v9546_v45  ;;  %7836 = vmatprep.subr.bf16.mxu1 %v9548_v46  ;;  %v9610_v45 = vcombine.high %v833_v39, %v837_v40  ;;  %v9612_v46 = vcombine.high %v834_v41, %v838_v42  ;;  %v893_v34 = vld [vmem:[#allocation2 + $0x14e0] sm:$0xff] }
 0x157   : > { %7450 = vmatpush1.bf16.msra.mxu0 %v9545_v51  ;;  %7837 = vmatpush1.bf16.msra.mxu1 %v9547_v52  ;;  %v9609_v51 = vcombine.low %v833_v39, %v837_v40  ;;  %v9611_v52 = vcombine.low %v834_v41, %v838_v42  ;;  %v9666_v39 = vcombine.high %v889_v33, %v893_v34  ;;  %v897_v41 = vld [vmem:[#allocation2 + $0x1500] sm:$0xff] }
 0x158   : > { %7451 = vmatprep.subr.bf16.mxu0 %v9554_v53  ;;  %7838 = vmatprep.subr.bf16.mxu1 %v9556_v54  ;;  %v9618_v53 = vcombine.high %v841_v47, %v845_v48  ;;  %v9620_v54 = vcombine.high %v842_v49, %v846_v50  ;;  %v901_v42 = vld [vmem:[#allocation2 + $0x1520] sm:$0xff] }
 0x15b   : > { %7452 = vmatpush1.bf16.msra.mxu0 %v9553_v59  ;;  %7839 = vmatpush1.bf16.msra.mxu1 %v9555_v60  ;;  %v9617_v59 = vcombine.low %v841_v47, %v845_v48  ;;  %v9619_v60 = vcombine.low %v842_v49, %v846_v50  ;;  %v9674_v47 = vcombine.high %v897_v41, %v901_v42  ;;  %v905_v49 = vld [vmem:[#allocation2 + $0x1540] sm:$0xff] }
 0x15c   : > { %7453 = vmatprep.subr.bf16.mxu0 %v9562_v61  ;;  %7840 = vmatprep.subr.bf16.mxu1 %v9564_v62  ;;  %v9626_v61 = vcombine.high %v849_v55, %v853_v56  ;;  %v9628_v62 = vcombine.high %v850_v57, %v854_v58  ;;  %v909_v50 = vld [vmem:[#allocation2 + $0x1560] sm:$0xff] }
 0x15f   : > { %7454 = vmatpush1.bf16.msra.mxu0 %v9561_v3  ;;  %7841 = vmatpush1.bf16.msra.mxu1 %v9563_v4  ;;  %v9625_v3 = vcombine.low %v849_v55, %v853_v56  ;;  %v9627_v4 = vcombine.low %v850_v57, %v854_v58  ;;  %v9682_v55 = vcombine.high %v905_v49, %v909_v50  ;;  %v913_v57 = vld [vmem:[#allocation2 + $0x1580] sm:$0xff] }
 0x160   : > { %7455 = vmatprep.subr.bf16.mxu0 %v9570_v5  ;;  %7842 = vmatprep.subr.bf16.mxu1 %v9572_v6  ;;  %v9634_v5 = vcombine.high %v857_v63, %v861_v0  ;;  %v9636_v6 = vcombine.high %v858_v1, %v862_v2  ;;  %v917_v58 = vld [vmem:[#allocation2 + $0x15a0] sm:$0xff] }
 0x163   : > { %7456 = vmatpush1.bf16.msra.mxu0 %v9569_v11  ;;  %7843 = vmatpush1.bf16.msra.mxu1 %v9571_v12  ;;  %v9633_v11 = vcombine.low %v857_v63, %v861_v0  ;;  %v9635_v12 = vcombine.low %v858_v1, %v862_v2  ;;  %v9690_v63 = vcombine.high %v913_v57, %v917_v58  ;;  %v921_v1 = vld [vmem:[#allocation2 + $0x15c0] sm:$0xff] }
 0x164   : > { %7457 = vmatprep.subr.bf16.mxu0 %v9578_v13  ;;  %7844 = vmatprep.subr.bf16.mxu1 %v9580_v14  ;;  %v9642_v13 = vcombine.high %v865_v7, %v869_v8  ;;  %v9644_v14 = vcombine.high %v866_v9, %v870_v10  ;;  %v925_v2 = vld [vmem:[#allocation2 + $0x15e0] sm:$0xff] }
 0x167   : > { %7458 = vmatpush1.bf16.msra.mxu0 %v9577_v19  ;;  %7845 = vmatpush1.bf16.msra.mxu1 %v9579_v20  ;;  %v878_v19 = vld [vmem:[#allocation2 + $0x1468] sm:$0xff]  ;;  %v9641_v20 = vcombine.low %v865_v7, %v869_v8  ;;  %v9698_v7 = vcombine.high %v921_v1, %v925_v2 }
 0x168   : > { %7459 = vmatprep.subr.bf16.mxu0 %v9586_v21  ;;  %7846 = vmatprep.subr.bf16.mxu1 %v9588_v22  ;;  %v9643_v21 = vcombine.low %v866_v9, %v870_v10  ;;  %v9650_v22 = vcombine.high %v873_v15, %v877_v16  ;;  %v9652_v23 = vcombine.high %v874_v18, %v878_v19  ;;  %v929_v9 = vld [vmem:[#allocation2 + $0x1600] sm:$0xff] }
 0x169   : > { %v933_v10 = vld [vmem:[#allocation2 + $0x1620] sm:$0xff] }
 0x16b   : > { %7460 = vmatpush1.bf16.msra.mxu0 %v9585_v27  ;;  %7847 = vmatpush1.bf16.msra.mxu1 %v9587_v28  ;;  %v882_v27 = vld [vmem:[#allocation2 + $0x1488] sm:$0xff] }
 0x16c   : > { %7461 = vmatprep.subr.bf16.mxu0 %v9594_v29  ;;  %7848 = vmatprep.subr.bf16.mxu1 %v9596_v30  ;;  %v886_v28 = vld [vmem:[#allocation2 + $0x14a8] sm:$0xff]  ;;  %v9649_v29 = vcombine.low %v873_v15, %v877_v16  ;;  %v9651_v30 = vcombine.low %v874_v18, %v878_v19  ;;  %v9706_v15 = vcombine.high %v929_v9, %v933_v10  ;;  %v941_v18 = vld [vmem:[#allocation2 + $0x1660] sm:$0xff] }
 0x16d   : > { %v9660_v32 = vcombine.high %v882_v27, %v886_v28  ;;  %v938_v19 = vld [vmem:[#allocation2 + $0x1648] sm:$0xff] }
 0x16f   : > { %7462 = vmatpush1.bf16.msra.mxu0 %v9593_v35  ;;  %7849 = vmatpush1.bf16.msra.mxu1 %v9595_v36  ;;  %v890_v35 = vld [vmem:[#allocation2 + $0x14c8] sm:$0xff] }
 0x170   : > { %7463 = vmatprep.subr.bf16.mxu0 %v9602_v37  ;;  %7850 = vmatprep.subr.bf16.mxu1 %v9604_v38  ;;  %v894_v36 = vld [vmem:[#allocation2 + $0x14e8] sm:$0xff]  ;;  %v9657_v37 = vcombine.low %v881_v24, %v885_v25  ;;  %v9659_v38 = vcombine.low %v882_v27, %v886_v28  ;;  %v945_v25 = vld [vmem:[#allocation2 + $0x1680] sm:$0xff] }
 0x171   : > { %v9668_v40 = vcombine.high %v890_v35, %v894_v36  ;;  %v946_v27 = vld [vmem:[#allocation2 + $0x1688] sm:$0xff] }
 0x172   : > { %v950_v28 = vld [vmem:[#allocation2 + $0x16a8] sm:$0xff] }
 0x173   : > { %7464 = vmatpush1.bf16.msra.mxu0 %v9601_v43  ;;  %7851 = vmatpush1.bf16.msra.mxu1 %v9603_v44  ;;  %v898_v43 = vld [vmem:[#allocation2 + $0x1508] sm:$0xff] }
 0x174   : > { %7465 = vmatprep.subr.bf16.mxu0 %v9610_v45  ;;  %7852 = vmatprep.subr.bf16.mxu1 %v9612_v46  ;;  %v902_v44 = vld [vmem:[#allocation2 + $0x1528] sm:$0xff]  ;;  %v9665_v45 = vcombine.low %v889_v33, %v893_v34  ;;  %v9667_v46 = vcombine.low %v890_v35, %v894_v36  ;;  %v953_v33 = vld [vmem:[#allocation2 + $0x16c0] sm:$0xff] }
 0x175   : > { %v9676_v48 = vcombine.high %v898_v43, %v902_v44  ;;  %v957_v34 = vld [vmem:[#allocation2 + $0x16e0] sm:$0xff]  ;;  %v954_v35 = vld [vmem:[#allocation2 + $0x16c8] sm:$0xff] }
 0x176   : > { %v958_v36 = vld [vmem:[#allocation2 + $0x16e8] sm:$0xff] }
 0x177   : > { %7466 = vmatpush1.bf16.msra.mxu0 %v9609_v51  ;;  %7853 = vmatpush1.bf16.msra.mxu1 %v9611_v52  ;;  %v906_v51 = vld [vmem:[#allocation2 + $0x1548] sm:$0xff] }
 0x178   : > { %7467 = vmatprep.subr.bf16.mxu0 %v9618_v53  ;;  %7854 = vmatprep.subr.bf16.mxu1 %v9620_v54  ;;  %v910_v52 = vld [vmem:[#allocation2 + $0x1568] sm:$0xff]  ;;  %v9673_v53 = vcombine.low %v897_v41, %v901_v42  ;;  %v9675_v54 = vcombine.low %v898_v43, %v902_v44  ;;  %v961_v41 = vld [vmem:[#allocation2 + $0x1700] sm:$0xff] }
 0x179   : > { %v9684_v56 = vcombine.high %v906_v51, %v910_v52  ;;  %v965_v42 = vld [vmem:[#allocation2 + $0x1720] sm:$0xff]  ;;  %v962_v43 = vld [vmem:[#allocation2 + $0x1708] sm:$0xff] }
 0x17a   : > { %v966_v44 = vld [vmem:[#allocation2 + $0x1728] sm:$0xff] }
 0x17b   : > { %7468 = vmatpush1.bf16.msra.mxu0 %v9617_v59  ;;  %7855 = vmatpush1.bf16.msra.mxu1 %v9619_v60  ;;  %v914_v59 = vld [vmem:[#allocation2 + $0x1588] sm:$0xff] }
 0x17c   : > { %7469 = vmatprep.subr.bf16.mxu0 %v9626_v61  ;;  %7856 = vmatprep.subr.bf16.mxu1 %v9628_v62  ;;  %v918_v60 = vld [vmem:[#allocation2 + $0x15a8] sm:$0xff]  ;;  %v9681_v61 = vcombine.low %v905_v49, %v909_v50  ;;  %v9683_v62 = vcombine.low %v906_v51, %v910_v52  ;;  %v969_v49 = vld [vmem:[#allocation2 + $0x1740] sm:$0xff] }
 0x17d   : > { %v9692_v0 = vcombine.high %v914_v59, %v918_v60  ;;  %v973_v50 = vld [vmem:[#allocation2 + $0x1760] sm:$0xff]  ;;  %v970_v51 = vld [vmem:[#allocation2 + $0x1748] sm:$0xff] }
 0x17e   : > { %v974_v52 = vld [vmem:[#allocation2 + $0x1768] sm:$0xff] }
 0x17f   : > { %7470 = vmatpush1.bf16.msra.mxu0 %v9625_v3  ;;  %7857 = vmatpush1.bf16.msra.mxu1 %v9627_v4  ;;  %v922_v3 = vld [vmem:[#allocation2 + $0x15c8] sm:$0xff] }
 0x180   : > { %7471 = vmatprep.subr.bf16.mxu0 %v9634_v5  ;;  %7858 = vmatprep.subr.bf16.mxu1 %v9636_v6  ;;  %v926_v4 = vld [vmem:[#allocation2 + $0x15e8] sm:$0xff]  ;;  %v9689_v5 = vcombine.low %v913_v57, %v917_v58  ;;  %v9691_v6 = vcombine.low %v914_v59, %v918_v60  ;;  %v977_v57 = vld [vmem:[#allocation2 + $0x1780] sm:$0xff] }
 0x181   : > { %v9700_v8 = vcombine.high %v922_v3, %v926_v4  ;;  %v981_v58 = vld [vmem:[#allocation2 + $0x17a0] sm:$0xff]  ;;  %v978_v59 = vld [vmem:[#allocation2 + $0x1788] sm:$0xff] }
 0x182   : > { %v982_v60 = vld [vmem:[#allocation2 + $0x17a8] sm:$0xff] }
 0x183   : > { %7472 = vmatpush1.bf16.msra.mxu0 %v9633_v11  ;;  %7859 = vmatpush1.bf16.msra.mxu1 %v9635_v12  ;;  %v930_v11 = vld [vmem:[#allocation2 + $0x1608] sm:$0xff] }
 0x184   : > { %7484 = vmatprep.subr.bf16.mxu0 %v9642_v13  ;;  %7871 = vmatprep.subr.bf16.mxu1 %v9644_v14  ;;  %v934_v12 = vld [vmem:[#allocation2 + $0x1628] sm:$0xff]  ;;  %v9697_v13 = vcombine.low %v921_v1, %v925_v2  ;;  %v9699_v14 = vcombine.low %v922_v3, %v926_v4  ;;  %v985_v1 = vld [vmem:[#allocation2 + $0x17c0] sm:$0xff] }
 0x185   : > { %v9708_v16 = vcombine.high %v930_v11, %v934_v12  ;;  %v989_v2 = vld [vmem:[#allocation2 + $0x17e0] sm:$0xff]  ;;  %v986_v3 = vld [vmem:[#allocation2 + $0x17c8] sm:$0xff] }
 0x186   : > { %7474 = vmatmul.mubr.bf16.vlgmr.msra.gmra.mrb[0].mxu0 %v10362_v17  ;;  %7861 = vmatmul.mubr.bf16.vlgmr.msra.gmra.mrb[0].mxu1 %v10362_v17  ;;  %v937_v17 = vld [vmem:[#allocation2 + $0x1640] sm:$0xff]  ;;  %v990_v4 = vld [vmem:[#allocation2 + $0x17e8] sm:$0xff] }
 0x187   : > { %7485 = vmatpush1.bf16.msra.mxu0 %v9641_v20  ;;  %7872 = vmatpush1.bf16.msra.mxu1 %v9643_v21  ;;  %v942_v20 = vld [vmem:[#allocation2 + $0x1668] sm:$0xff]  ;;  %v9705_v21 = vcombine.low %v929_v9, %v933_v10  ;;  %v993_v9 = vld [vmem:[#allocation2 + $0x1800] sm:$0xff] }
 0x188   : > { %7486 = vmatprep.subr.bf16.mxu0 %v9650_v22  ;;  %7873 = vmatprep.subr.bf16.mxu1 %v9652_v23  ;;  %v9707_v22 = vcombine.low %v930_v11, %v934_v12  ;;  %v9714_v23 = vcombine.high %v937_v17, %v941_v18  ;;  %v9716_v24 = vcombine.high %v938_v19, %v942_v20  ;;  %v997_v10 = vld [vmem:[#allocation2 + $0x1820] sm:$0xff]  ;;  %v994_v11 = vld [vmem:[#allocation2 + $0x1808] sm:$0xff] }
 0x189   : > { %7516 = vmatprep.mubr.bf16.mxu0 %v10363_v26  ;;  %7903 = vmatprep.mubr.bf16.mxu1 %v10363_v26  ;;  %v949_v26 = vld [vmem:[#allocation2 + $0x16a0] sm:$0xff]  ;;  %v998_v12 = vld [vmem:[#allocation2 + $0x1828] sm:$0xff] }
 0x18b   : > { %7487 = vmatpush1.bf16.msra.mxu0 %v9649_v29  ;;  %7874 = vmatpush1.bf16.msra.mxu1 %v9651_v30  ;;  %v9713_v29 = vcombine.low %v937_v17, %v941_v18  ;;  %v9715_v30 = vcombine.low %v938_v19, %v942_v20  ;;  %v1001_v17 = vld [vmem:[#allocation2 + $0x1840] sm:$0xff]  ;;  %v10365_v19 = vld [vmem:[%s10583_s20 + $0x28] ss:$72 sps:$4 sm:$0xff]  }
 0x18c   : > { %7488 = vmatprep.subr.bf16.mxu0 %v9658_v31  ;;  %7875 = vmatprep.subr.bf16.mxu1 %v9660_v32  ;;  %v9722_v31 = vcombine.high %v945_v25, %v949_v26  ;;  %v9724_v32 = vcombine.high %v946_v27, %v950_v28  ;;  %v1005_v18 = vld [vmem:[#allocation2 + $0x1860] sm:$0xff]  ;;  %v1002_v20 = vld [vmem:[#allocation2 + $0x1848] sm:$0xff] }
 0x18f   : > { %7489 = vmatpush1.bf16.msra.mxu0 %v9657_v37  ;;  %7876 = vmatpush1.bf16.msra.mxu1 %v9659_v38  ;;  %v9721_v37 = vcombine.low %v945_v25, %v949_v26  ;;  %v9723_v38 = vcombine.low %v946_v27, %v950_v28  ;;  %v1009_v26 = vld [vmem:[#allocation2 + $0x1880] sm:$0xff]  ;;  %v10366_v28 = vld [vmem:[%s10583_s20 + $0x34] ss:$72 sps:$4 sm:$0xff]  }
 0x190   : > { %7490 = vmatprep.subr.bf16.mxu0 %v9666_v39  ;;  %7877 = vmatprep.subr.bf16.mxu1 %v9668_v40  ;;  %v9730_v39 = vcombine.high %v953_v33, %v957_v34  ;;  %v9732_v40 = vcombine.high %v954_v35, %v958_v36  ;;  %v1013_v27 = vld [vmem:[#allocation2 + $0x18a0] sm:$0xff] }
 0x193   : > { %7491 = vmatpush1.bf16.msra.mxu0 %v9665_v45  ;;  %7878 = vmatpush1.bf16.msra.mxu1 %v9667_v46  ;;  %v9729_v45 = vcombine.low %v953_v33, %v957_v34  ;;  %v9731_v46 = vcombine.low %v954_v35, %v958_v36  ;;  %v9786_v33 = vcombine.high %v1009_v26, %v1013_v27  ;;  %v1017_v35 = vld [vmem:[#allocation2 + $0x18c0] sm:$0xff] }
 0x194   : > { %7492 = vmatprep.subr.bf16.mxu0 %v9674_v47  ;;  %7879 = vmatprep.subr.bf16.mxu1 %v9676_v48  ;;  %v9738_v47 = vcombine.high %v961_v41, %v965_v42  ;;  %v9740_v48 = vcombine.high %v962_v43, %v966_v44  ;;  %v1021_v36 = vld [vmem:[#allocation2 + $0x18e0] sm:$0xff] }
 0x197   : > { %7493 = vmatpush1.bf16.msra.mxu0 %v9673_v53  ;;  %7880 = vmatpush1.bf16.msra.mxu1 %v9675_v54  ;;  %v9737_v53 = vcombine.low %v961_v41, %v965_v42  ;;  %v9739_v54 = vcombine.low %v962_v43, %v966_v44  ;;  %v9794_v41 = vcombine.high %v1017_v35, %v1021_v36  ;;  %v1025_v43 = vld [vmem:[#allocation2 + $0x1900] sm:$0xff] }
 0x198   : > { %7494 = vmatprep.subr.bf16.mxu0 %v9682_v55  ;;  %7881 = vmatprep.subr.bf16.mxu1 %v9684_v56  ;;  %v9746_v55 = vcombine.high %v969_v49, %v973_v50  ;;  %v9748_v56 = vcombine.high %v970_v51, %v974_v52  ;;  %v1029_v44 = vld [vmem:[#allocation2 + $0x1920] sm:$0xff] }
 0x19b   : > { %7495 = vmatpush1.bf16.msra.mxu0 %v9681_v61  ;;  %7882 = vmatpush1.bf16.msra.mxu1 %v9683_v62  ;;  %v9745_v61 = vcombine.low %v969_v49, %v973_v50  ;;  %v9747_v62 = vcombine.low %v970_v51, %v974_v52  ;;  %v9802_v49 = vcombine.high %v1025_v43, %v1029_v44  ;;  %v1033_v51 = vld [vmem:[#allocation2 + $0x1940] sm:$0xff] }
 0x19c   : > { %7496 = vmatprep.subr.bf16.mxu0 %v9690_v63  ;;  %7883 = vmatprep.subr.bf16.mxu1 %v9692_v0  ;;  %v9754_v63 = vcombine.high %v977_v57, %v981_v58  ;;  %v9756_v0 = vcombine.high %v978_v59, %v982_v60  ;;  %v1037_v52 = vld [vmem:[#allocation2 + $0x1960] sm:$0xff] }
 0x19f   : > { %7497 = vmatpush1.bf16.msra.mxu0 %v9689_v5  ;;  %7884 = vmatpush1.bf16.msra.mxu1 %v9691_v6  ;;  %v9753_v5 = vcombine.low %v977_v57, %v981_v58  ;;  %v9755_v6 = vcombine.low %v978_v59, %v982_v60  ;;  %v9810_v57 = vcombine.high %v1033_v51, %v1037_v52  ;;  %v1041_v59 = vld [vmem:[#allocation2 + $0x1980] sm:$0xff] }
 0x1a0   : > { %7498 = vmatprep.subr.bf16.mxu0 %v9698_v7  ;;  %7885 = vmatprep.subr.bf16.mxu1 %v9700_v8  ;;  %v9762_v7 = vcombine.high %v985_v1, %v989_v2  ;;  %v9764_v8 = vcombine.high %v986_v3, %v990_v4  ;;  %v1045_v60 = vld [vmem:[#allocation2 + $0x19a0] sm:$0xff] }
 0x1a3   : > { %7499 = vmatpush1.bf16.msra.mxu0 %v9697_v13  ;;  %7886 = vmatpush1.bf16.msra.mxu1 %v9699_v14  ;;  %v9761_v13 = vcombine.low %v985_v1, %v989_v2  ;;  %v9763_v14 = vcombine.low %v986_v3, %v990_v4  ;;  %v9818_v1 = vcombine.high %v1041_v59, %v1045_v60  ;;  %v1049_v3 = vld [vmem:[#allocation2 + $0x19c0] sm:$0xff] }
 0x1a4   : > { %7500 = vmatprep.subr.bf16.mxu0 %v9706_v15  ;;  %7887 = vmatprep.subr.bf16.mxu1 %v9708_v16  ;;  %v9770_v15 = vcombine.high %v993_v9, %v997_v10  ;;  %v9772_v16 = vcombine.high %v994_v11, %v998_v12  ;;  %v1053_v4 = vld [vmem:[#allocation2 + $0x19e0] sm:$0xff] }
 0x1a7   : > { %7501 = vmatpush1.bf16.msra.mxu0 %v9705_v21  ;;  %7888 = vmatpush1.bf16.msra.mxu1 %v9707_v22  ;;  %v1006_v21 = vld [vmem:[#allocation2 + $0x1868] sm:$0xff]  ;;  %v9769_v22 = vcombine.low %v993_v9, %v997_v10  ;;  %v9826_v9 = vcombine.high %v1049_v3, %v1053_v4 }
 0x1a8   : > { %7502 = vmatprep.subr.bf16.mxu0 %v9714_v23  ;;  %7889 = vmatprep.subr.bf16.mxu1 %v9716_v24  ;;  %v9771_v23 = vcombine.low %v994_v11, %v998_v12  ;;  %v9778_v24 = vcombine.high %v1001_v17, %v1005_v18  ;;  %v9780_v25 = vcombine.high %v1002_v20, %v1006_v21  ;;  %v1057_v11 = vld [vmem:[#allocation2 + $0x1a00] sm:$0xff] }
 0x1a9   : > { %v1061_v12 = vld [vmem:[#allocation2 + $0x1a20] sm:$0xff] }
 0x1ab   : > { %7503 = vmatpush1.bf16.msra.mxu0 %v9713_v29  ;;  %7890 = vmatpush1.bf16.msra.mxu1 %v9715_v30  ;;  %v1010_v29 = vld [vmem:[#allocation2 + $0x1888] sm:$0xff] }
 0x1ac   : > { %7504 = vmatprep.subr.bf16.mxu0 %v9722_v31  ;;  %7891 = vmatprep.subr.bf16.mxu1 %v9724_v32  ;;  %v1014_v30 = vld [vmem:[#allocation2 + $0x18a8] sm:$0xff]  ;;  %v9777_v31 = vcombine.low %v1001_v17, %v1005_v18  ;;  %v9779_v32 = vcombine.low %v1002_v20, %v1006_v21  ;;  %v9834_v17 = vcombine.high %v1057_v11, %v1061_v12  ;;  %v1069_v20 = vld [vmem:[#allocation2 + $0x1a60] sm:$0xff] }
 0x1ad   : > { %v9788_v34 = vcombine.high %v1010_v29, %v1014_v30  ;;  %v1066_v21 = vld [vmem:[#allocation2 + $0x1a48] sm:$0xff] }
 0x1af   : > { %7505 = vmatpush1.bf16.msra.mxu0 %v9721_v37  ;;  %7892 = vmatpush1.bf16.msra.mxu1 %v9723_v38  ;;  %v1018_v37 = vld [vmem:[#allocation2 + $0x18c8] sm:$0xff] }
 0x1b0   : > { %7506 = vmatprep.subr.bf16.mxu0 %v9730_v39  ;;  %7893 = vmatprep.subr.bf16.mxu1 %v9732_v40  ;;  %v1022_v38 = vld [vmem:[#allocation2 + $0x18e8] sm:$0xff]  ;;  %v9785_v39 = vcombine.low %v1009_v26, %v1013_v27  ;;  %v9787_v40 = vcombine.low %v1010_v29, %v1014_v30  ;;  %v1073_v27 = vld [vmem:[#allocation2 + $0x1a80] sm:$0xff] }
 0x1b1   : > { %v9796_v42 = vcombine.high %v1018_v37, %v1022_v38  ;;  %v1074_v29 = vld [vmem:[#allocation2 + $0x1a88] sm:$0xff] }
 0x1b2   : > { %v1078_v30 = vld [vmem:[#allocation2 + $0x1aa8] sm:$0xff] }
 0x1b3   : > { %7507 = vmatpush1.bf16.msra.mxu0 %v9729_v45  ;;  %7894 = vmatpush1.bf16.msra.mxu1 %v9731_v46  ;;  %v1026_v45 = vld [vmem:[#allocation2 + $0x1908] sm:$0xff] }
 0x1b4   : > { %7508 = vmatprep.subr.bf16.mxu0 %v9738_v47  ;;  %7895 = vmatprep.subr.bf16.mxu1 %v9740_v48  ;;  %v1030_v46 = vld [vmem:[#allocation2 + $0x1928] sm:$0xff]  ;;  %v9793_v47 = vcombine.low %v1017_v35, %v1021_v36  ;;  %v9795_v48 = vcombine.low %v1018_v37, %v1022_v38  ;;  %v1081_v35 = vld [vmem:[#allocation2 + $0x1ac0] sm:$0xff] }
 0x1b5   : > { %v9804_v50 = vcombine.high %v1026_v45, %v1030_v46  ;;  %v1085_v36 = vld [vmem:[#allocation2 + $0x1ae0] sm:$0xff]  ;;  %v1082_v37 = vld [vmem:[#allocation2 + $0x1ac8] sm:$0xff] }
 0x1b6   : > { %v1086_v38 = vld [vmem:[#allocation2 + $0x1ae8] sm:$0xff] }
 0x1b7   : > { %7509 = vmatpush1.bf16.msra.mxu0 %v9737_v53  ;;  %7896 = vmatpush1.bf16.msra.mxu1 %v9739_v54  ;;  %v1034_v53 = vld [vmem:[#allocation2 + $0x1948] sm:$0xff] }
 0x1b8   : > { %7510 = vmatprep.subr.bf16.mxu0 %v9746_v55  ;;  %7897 = vmatprep.subr.bf16.mxu1 %v9748_v56  ;;  %v1038_v54 = vld [vmem:[#allocation2 + $0x1968] sm:$0xff]  ;;  %v9801_v55 = vcombine.low %v1025_v43, %v1029_v44  ;;  %v9803_v56 = vcombine.low %v1026_v45, %v1030_v46  ;;  %v1089_v43 = vld [vmem:[#allocation2 + $0x1b00] sm:$0xff] }
 0x1b9   : > { %v9812_v58 = vcombine.high %v1034_v53, %v1038_v54  ;;  %v1093_v44 = vld [vmem:[#allocation2 + $0x1b20] sm:$0xff]  ;;  %v1090_v45 = vld [vmem:[#allocation2 + $0x1b08] sm:$0xff] }
 0x1ba   : > { %v1094_v46 = vld [vmem:[#allocation2 + $0x1b28] sm:$0xff] }
 0x1bb   : > { %7511 = vmatpush1.bf16.msra.mxu0 %v9745_v61  ;;  %7898 = vmatpush1.bf16.msra.mxu1 %v9747_v62  ;;  %v1042_v61 = vld [vmem:[#allocation2 + $0x1988] sm:$0xff] }
 0x1bc   : > { %7512 = vmatprep.subr.bf16.mxu0 %v9754_v63  ;;  %7899 = vmatprep.subr.bf16.mxu1 %v9756_v0  ;;  %v1046_v62 = vld [vmem:[#allocation2 + $0x19a8] sm:$0xff]  ;;  %v9809_v63 = vcombine.low %v1033_v51, %v1037_v52  ;;  %v9811_v0 = vcombine.low %v1034_v53, %v1038_v54  ;;  %v1097_v51 = vld [vmem:[#allocation2 + $0x1b40] sm:$0xff] }
 0x1bd   : > { %v9820_v2 = vcombine.high %v1042_v61, %v1046_v62  ;;  %v1101_v52 = vld [vmem:[#allocation2 + $0x1b60] sm:$0xff]  ;;  %v1098_v53 = vld [vmem:[#allocation2 + $0x1b48] sm:$0xff] }
 0x1be   : > { %v1102_v54 = vld [vmem:[#allocation2 + $0x1b68] sm:$0xff] }
 0x1bf   : > { %7513 = vmatpush1.bf16.msra.mxu0 %v9753_v5  ;;  %7900 = vmatpush1.bf16.msra.mxu1 %v9755_v6  ;;  %v1050_v5 = vld [vmem:[#allocation2 + $0x19c8] sm:$0xff] }
 0x1c0   : > { %7514 = vmatprep.subr.bf16.mxu0 %v9762_v7  ;;  %7901 = vmatprep.subr.bf16.mxu1 %v9764_v8  ;;  %v1054_v6 = vld [vmem:[#allocation2 + $0x19e8] sm:$0xff]  ;;  %v9817_v7 = vcombine.low %v1041_v59, %v1045_v60  ;;  %v9819_v8 = vcombine.low %v1042_v61, %v1046_v62  ;;  %v1105_v59 = vld [vmem:[#allocation2 + $0x1b80] sm:$0xff] }
 0x1c1   : > { %v9828_v10 = vcombine.high %v1050_v5, %v1054_v6  ;;  %v1109_v60 = vld [vmem:[#allocation2 + $0x1ba0] sm:$0xff]  ;;  %v1106_v61 = vld [vmem:[#allocation2 + $0x1b88] sm:$0xff] }
 0x1c2   : > { %v1110_v62 = vld [vmem:[#allocation2 + $0x1ba8] sm:$0xff] }
 0x1c3   : > { %7515 = vmatpush1.bf16.msra.mxu0 %v9761_v13  ;;  %7902 = vmatpush1.bf16.msra.mxu1 %v9763_v14  ;;  %v1058_v13 = vld [vmem:[#allocation2 + $0x1a08] sm:$0xff] }
 0x1c4   : > { %7527 = vmatprep.subr.bf16.mxu0 %v9770_v15  ;;  %7914 = vmatprep.subr.bf16.mxu1 %v9772_v16  ;;  %v1062_v14 = vld [vmem:[#allocation2 + $0x1a28] sm:$0xff]  ;;  %v9825_v15 = vcombine.low %v1049_v3, %v1053_v4  ;;  %v9827_v16 = vcombine.low %v1050_v5, %v1054_v6  ;;  %v1113_v3 = vld [vmem:[#allocation2 + $0x1bc0] sm:$0xff] }
 0x1c5   : > { %v9836_v18 = vcombine.high %v1058_v13, %v1062_v14  ;;  %v1117_v4 = vld [vmem:[#allocation2 + $0x1be0] sm:$0xff]  ;;  %v1114_v5 = vld [vmem:[#allocation2 + $0x1bc8] sm:$0xff] }
 0x1c6   : > { %7517 = vmatmul.mubr.bf16.vlgmr.msra.gmra.mrb[0].mxu0 %v10365_v19  ;;  %7904 = vmatmul.mubr.bf16.vlgmr.msra.gmra.mrb[0].mxu1 %v10365_v19  ;;  %v1065_v19 = vld [vmem:[#allocation2 + $0x1a40] sm:$0xff]  ;;  %v1118_v6 = vld [vmem:[#allocation2 + $0x1be8] sm:$0xff] }
 0x1c7   : > { %7528 = vmatpush1.bf16.msra.mxu0 %v9769_v22  ;;  %7915 = vmatpush1.bf16.msra.mxu1 %v9771_v23  ;;  %v1070_v22 = vld [vmem:[#allocation2 + $0x1a68] sm:$0xff]  ;;  %v9833_v23 = vcombine.low %v1057_v11, %v1061_v12  ;;  %v1121_v11 = vld [vmem:[#allocation2 + $0x1c00] sm:$0xff] }
 0x1c8   : > { %7529 = vmatprep.subr.bf16.mxu0 %v9778_v24  ;;  %7916 = vmatprep.subr.bf16.mxu1 %v9780_v25  ;;  %v9835_v24 = vcombine.low %v1058_v13, %v1062_v14  ;;  %v9842_v25 = vcombine.high %v1065_v19, %v1069_v20  ;;  %v9844_v26 = vcombine.high %v1066_v21, %v1070_v22  ;;  %v1125_v12 = vld [vmem:[#allocation2 + $0x1c20] sm:$0xff]  ;;  %v1122_v13 = vld [vmem:[#allocation2 + $0x1c08] sm:$0xff] }
 0x1c9   : > { %7559 = vmatprep.mubr.bf16.mxu0 %v10366_v28  ;;  %7946 = vmatprep.mubr.bf16.mxu1 %v10366_v28  ;;  %v1077_v28 = vld [vmem:[#allocation2 + $0x1aa0] sm:$0xff]  ;;  %v1126_v14 = vld [vmem:[#allocation2 + $0x1c28] sm:$0xff] }
 0x1cb   : > { %7530 = vmatpush1.bf16.msra.mxu0 %v9777_v31  ;;  %7917 = vmatpush1.bf16.msra.mxu1 %v9779_v32  ;;  %v9841_v31 = vcombine.low %v1065_v19, %v1069_v20  ;;  %v9843_v32 = vcombine.low %v1066_v21, %v1070_v22  ;;  %v1129_v19 = vld [vmem:[#allocation2 + $0x1c40] sm:$0xff]  ;;  %v10368_v21 = vld [vmem:[%s10583_s20 + $0x30] ss:$72 sps:$4 sm:$0xff]   ;;  %v1130_v22 = vld [vmem:[#allocation2 + $0x1c48] sm:$0xff] }
 0x1cc   : > { %7531 = vmatprep.subr.bf16.mxu0 %v9786_v33  ;;  %7918 = vmatprep.subr.bf16.mxu1 %v9788_v34  ;;  %v9850_v33 = vcombine.high %v1073_v27, %v1077_v28  ;;  %v9852_v34 = vcombine.high %v1074_v29, %v1078_v30  ;;  %v1133_v20 = vld [vmem:[#allocation2 + $0x1c60] sm:$0xff] }
 0x1cf   : > { %7532 = vmatpush1.bf16.msra.mxu0 %v9785_v39  ;;  %7919 = vmatpush1.bf16.msra.mxu1 %v9787_v40  ;;  %v9849_v39 = vcombine.low %v1073_v27, %v1077_v28  ;;  %v9851_v40 = vcombine.low %v1074_v29, %v1078_v30  ;;  %v1137_v28 = vld [vmem:[#allocation2 + $0x1c80] sm:$0xff] }
 0x1d0   : > { %7533 = vmatprep.subr.bf16.mxu0 %v9794_v41  ;;  %7920 = vmatprep.subr.bf16.mxu1 %v9796_v42  ;;  %v9858_v41 = vcombine.high %v1081_v35, %v1085_v36  ;;  %v9860_v42 = vcombine.high %v1082_v37, %v1086_v38  ;;  %v1141_v29 = vld [vmem:[#allocation2 + $0x1ca0] sm:$0xff] }
 0x1d1   : > { %v10369_v30 = vld [vmem:[%s10583_s20 + $0x3c] ss:$72 sps:$4 sm:$0xff]  }
 0x1d3   : > { %7534 = vmatpush1.bf16.msra.mxu0 %v9793_v47  ;;  %7921 = vmatpush1.bf16.msra.mxu1 %v9795_v48  ;;  %v9857_v47 = vcombine.low %v1081_v35, %v1085_v36  ;;  %v9859_v48 = vcombine.low %v1082_v37, %v1086_v38  ;;  %v9914_v35 = vcombine.high %v1137_v28, %v1141_v29  ;;  %v1145_v37 = vld [vmem:[#allocation2 + $0x1cc0] sm:$0xff] }
 0x1d4   : > { %7535 = vmatprep.subr.bf16.mxu0 %v9802_v49  ;;  %7922 = vmatprep.subr.bf16.mxu1 %v9804_v50  ;;  %v9866_v49 = vcombine.high %v1089_v43, %v1093_v44  ;;  %v9868_v50 = vcombine.high %v1090_v45, %v1094_v46  ;;  %v1149_v38 = vld [vmem:[#allocation2 + $0x1ce0] sm:$0xff] }
 0x1d7   : > { %7536 = vmatpush1.bf16.msra.mxu0 %v9801_v55  ;;  %7923 = vmatpush1.bf16.msra.mxu1 %v9803_v56  ;;  %v9865_v55 = vcombine.low %v1089_v43, %v1093_v44  ;;  %v9867_v56 = vcombine.low %v1090_v45, %v1094_v46  ;;  %v9922_v43 = vcombine.high %v1145_v37, %v1149_v38  ;;  %v1153_v45 = vld [vmem:[#allocation2 + $0x1d00] sm:$0xff] }
 0x1d8   : > { %7537 = vmatprep.subr.bf16.mxu0 %v9810_v57  ;;  %7924 = vmatprep.subr.bf16.mxu1 %v9812_v58  ;;  %v9874_v57 = vcombine.high %v1097_v51, %v1101_v52  ;;  %v9876_v58 = vcombine.high %v1098_v53, %v1102_v54  ;;  %v1157_v46 = vld [vmem:[#allocation2 + $0x1d20] sm:$0xff] }
 0x1db   : > { %7538 = vmatpush1.bf16.msra.mxu0 %v9809_v63  ;;  %7925 = vmatpush1.bf16.msra.mxu1 %v9811_v0  ;;  %v9873_v63 = vcombine.low %v1097_v51, %v1101_v52  ;;  %v9875_v0 = vcombine.low %v1098_v53, %v1102_v54  ;;  %v9930_v51 = vcombine.high %v1153_v45, %v1157_v46  ;;  %v1161_v53 = vld [vmem:[#allocation2 + $0x1d40] sm:$0xff] }
 0x1dc   : > { %7539 = vmatprep.subr.bf16.mxu0 %v9818_v1  ;;  %7926 = vmatprep.subr.bf16.mxu1 %v9820_v2  ;;  %v9882_v1 = vcombine.high %v1105_v59, %v1109_v60  ;;  %v9884_v2 = vcombine.high %v1106_v61, %v1110_v62  ;;  %v1165_v54 = vld [vmem:[#allocation2 + $0x1d60] sm:$0xff] }
 0x1df   : > { %7540 = vmatpush1.bf16.msra.mxu0 %v9817_v7  ;;  %7927 = vmatpush1.bf16.msra.mxu1 %v9819_v8  ;;  %v9881_v7 = vcombine.low %v1105_v59, %v1109_v60  ;;  %v9883_v8 = vcombine.low %v1106_v61, %v1110_v62  ;;  %v9938_v59 = vcombine.high %v1161_v53, %v1165_v54  ;;  %v1169_v61 = vld [vmem:[#allocation2 + $0x1d80] sm:$0xff] }
 0x1e0   : > { %7541 = vmatprep.subr.bf16.mxu0 %v9826_v9  ;;  %7928 = vmatprep.subr.bf16.mxu1 %v9828_v10  ;;  %v9890_v9 = vcombine.high %v1113_v3, %v1117_v4  ;;  %v9892_v10 = vcombine.high %v1114_v5, %v1118_v6  ;;  %v1173_v62 = vld [vmem:[#allocation2 + $0x1da0] sm:$0xff] }
 0x1e3   : > { %7542 = vmatpush1.bf16.msra.mxu0 %v9825_v15  ;;  %7929 = vmatpush1.bf16.msra.mxu1 %v9827_v16  ;;  %v9889_v15 = vcombine.low %v1113_v3, %v1117_v4  ;;  %v9891_v16 = vcombine.low %v1114_v5, %v1118_v6  ;;  %v9946_v3 = vcombine.high %v1169_v61, %v1173_v62  ;;  %v1177_v5 = vld [vmem:[#allocation2 + $0x1dc0] sm:$0xff] }
 0x1e4   : > { %7543 = vmatprep.subr.bf16.mxu0 %v9834_v17  ;;  %7930 = vmatprep.subr.bf16.mxu1 %v9836_v18  ;;  %v9898_v17 = vcombine.high %v1121_v11, %v1125_v12  ;;  %v9900_v18 = vcombine.high %v1122_v13, %v1126_v14  ;;  %v1181_v6 = vld [vmem:[#allocation2 + $0x1de0] sm:$0xff] }
 0x1e7   : > { %7544 = vmatpush1.bf16.msra.mxu0 %v9833_v23  ;;  %7931 = vmatpush1.bf16.msra.mxu1 %v9835_v24  ;;  %v1134_v23 = vld [vmem:[#allocation2 + $0x1c68] sm:$0xff]  ;;  %v9897_v24 = vcombine.low %v1121_v11, %v1125_v12  ;;  %v9954_v11 = vcombine.high %v1177_v5, %v1181_v6 }
 0x1e8   : > { %7545 = vmatprep.subr.bf16.mxu0 %v9842_v25  ;;  %7932 = vmatprep.subr.bf16.mxu1 %v9844_v26  ;;  %v9899_v25 = vcombine.low %v1122_v13, %v1126_v14  ;;  %v9906_v26 = vcombine.high %v1129_v19, %v1133_v20  ;;  %v9908_v27 = vcombine.high %v1130_v22, %v1134_v23  ;;  %v1185_v13 = vld [vmem:[#allocation2 + $0x1e00] sm:$0xff] }
 0x1e9   : > { %v1189_v14 = vld [vmem:[#allocation2 + $0x1e20] sm:$0xff] }
 0x1eb   : > { %7546 = vmatpush1.bf16.msra.mxu0 %v9841_v31  ;;  %7933 = vmatpush1.bf16.msra.mxu1 %v9843_v32  ;;  %v1138_v31 = vld [vmem:[#allocation2 + $0x1c88] sm:$0xff] }
 0x1ec   : > { %7547 = vmatprep.subr.bf16.mxu0 %v9850_v33  ;;  %7934 = vmatprep.subr.bf16.mxu1 %v9852_v34  ;;  %v1142_v32 = vld [vmem:[#allocation2 + $0x1ca8] sm:$0xff]  ;;  %v9905_v33 = vcombine.low %v1129_v19, %v1133_v20  ;;  %v9907_v34 = vcombine.low %v1130_v22, %v1134_v23  ;;  %v9962_v19 = vcombine.high %v1185_v13, %v1189_v14  ;;  %v1197_v22 = vld [vmem:[#allocation2 + $0x1e60] sm:$0xff] }
 0x1ed   : > { %v9916_v36 = vcombine.high %v1138_v31, %v1142_v32  ;;  %v1194_v23 = vld [vmem:[#allocation2 + $0x1e48] sm:$0xff] }
 0x1ef   : > { %7548 = vmatpush1.bf16.msra.mxu0 %v9849_v39  ;;  %7935 = vmatpush1.bf16.msra.mxu1 %v9851_v40  ;;  %v1146_v39 = vld [vmem:[#allocation2 + $0x1cc8] sm:$0xff] }
 0x1f0   : > { %7549 = vmatprep.subr.bf16.mxu0 %v9858_v41  ;;  %7936 = vmatprep.subr.bf16.mxu1 %v9860_v42  ;;  %v1150_v40 = vld [vmem:[#allocation2 + $0x1ce8] sm:$0xff]  ;;  %v9913_v41 = vcombine.low %v1137_v28, %v1141_v29  ;;  %v9915_v42 = vcombine.low %v1138_v31, %v1142_v32  ;;  %v1201_v29 = vld [vmem:[#allocation2 + $0x1e80] sm:$0xff] }
 0x1f1   : > { %v9924_v44 = vcombine.high %v1146_v39, %v1150_v40  ;;  %v1202_v31 = vld [vmem:[#allocation2 + $0x1e88] sm:$0xff] }
 0x1f2   : > { %v1206_v32 = vld [vmem:[#allocation2 + $0x1ea8] sm:$0xff] }
 0x1f3   : > { %7550 = vmatpush1.bf16.msra.mxu0 %v9857_v47  ;;  %7937 = vmatpush1.bf16.msra.mxu1 %v9859_v48  ;;  %v1154_v47 = vld [vmem:[#allocation2 + $0x1d08] sm:$0xff] }
 0x1f4   : > { %7551 = vmatprep.subr.bf16.mxu0 %v9866_v49  ;;  %7938 = vmatprep.subr.bf16.mxu1 %v9868_v50  ;;  %v1158_v48 = vld [vmem:[#allocation2 + $0x1d28] sm:$0xff]  ;;  %v9921_v49 = vcombine.low %v1145_v37, %v1149_v38  ;;  %v9923_v50 = vcombine.low %v1146_v39, %v1150_v40  ;;  %v1209_v37 = vld [vmem:[#allocation2 + $0x1ec0] sm:$0xff] }
 0x1f5   : > { %v9932_v52 = vcombine.high %v1154_v47, %v1158_v48  ;;  %v1213_v38 = vld [vmem:[#allocation2 + $0x1ee0] sm:$0xff]  ;;  %v1210_v39 = vld [vmem:[#allocation2 + $0x1ec8] sm:$0xff] }
 0x1f6   : > { %v1214_v40 = vld [vmem:[#allocation2 + $0x1ee8] sm:$0xff] }
 0x1f7   : > { %7552 = vmatpush1.bf16.msra.mxu0 %v9865_v55  ;;  %7939 = vmatpush1.bf16.msra.mxu1 %v9867_v56  ;;  %v1162_v55 = vld [vmem:[#allocation2 + $0x1d48] sm:$0xff] }
 0x1f8   : > { %7553 = vmatprep.subr.bf16.mxu0 %v9874_v57  ;;  %7940 = vmatprep.subr.bf16.mxu1 %v9876_v58  ;;  %v1166_v56 = vld [vmem:[#allocation2 + $0x1d68] sm:$0xff]  ;;  %v9929_v57 = vcombine.low %v1153_v45, %v1157_v46  ;;  %v9931_v58 = vcombine.low %v1154_v47, %v1158_v48  ;;  %v1217_v45 = vld [vmem:[#allocation2 + $0x1f00] sm:$0xff] }
 0x1f9   : > { %v9940_v60 = vcombine.high %v1162_v55, %v1166_v56  ;;  %v1221_v46 = vld [vmem:[#allocation2 + $0x1f20] sm:$0xff]  ;;  %v1218_v47 = vld [vmem:[#allocation2 + $0x1f08] sm:$0xff] }
 0x1fa   : > { %v1222_v48 = vld [vmem:[#allocation2 + $0x1f28] sm:$0xff] }
 0x1fb   : > { %7554 = vmatpush1.bf16.msra.mxu0 %v9873_v63  ;;  %7941 = vmatpush1.bf16.msra.mxu1 %v9875_v0  ;;  %v1170_v63 = vld [vmem:[#allocation2 + $0x1d88] sm:$0xff] }
 0x1fc   : > { %7555 = vmatprep.subr.bf16.mxu0 %v9882_v1  ;;  %7942 = vmatprep.subr.bf16.mxu1 %v9884_v2  ;;  %v1174_v0 = vld [vmem:[#allocation2 + $0x1da8] sm:$0xff]  ;;  %v9937_v1 = vcombine.low %v1161_v53, %v1165_v54  ;;  %v9939_v2 = vcombine.low %v1162_v55, %v1166_v56  ;;  %v1225_v53 = vld [vmem:[#allocation2 + $0x1f40] sm:$0xff] }
 0x1fd   : > { %v9948_v4 = vcombine.high %v1170_v63, %v1174_v0  ;;  %v1229_v54 = vld [vmem:[#allocation2 + $0x1f60] sm:$0xff]  ;;  %v1226_v55 = vld [vmem:[#allocation2 + $0x1f48] sm:$0xff] }
 0x1fe   : > { %v1230_v56 = vld [vmem:[#allocation2 + $0x1f68] sm:$0xff] }
 0x1ff   : > { %7556 = vmatpush1.bf16.msra.mxu0 %v9881_v7  ;;  %7943 = vmatpush1.bf16.msra.mxu1 %v9883_v8  ;;  %v1178_v7 = vld [vmem:[#allocation2 + $0x1dc8] sm:$0xff] }
 0x200   : > { %7557 = vmatprep.subr.bf16.mxu0 %v9890_v9  ;;  %7944 = vmatprep.subr.bf16.mxu1 %v9892_v10  ;;  %v1182_v8 = vld [vmem:[#allocation2 + $0x1de8] sm:$0xff]  ;;  %v9945_v9 = vcombine.low %v1169_v61, %v1173_v62  ;;  %v9947_v10 = vcombine.low %v1170_v63, %v1174_v0  ;;  %v1233_v61 = vld [vmem:[#allocation2 + $0x1f80] sm:$0xff] }
 0x201   : > { %v9956_v12 = vcombine.high %v1178_v7, %v1182_v8  ;;  %v1237_v62 = vld [vmem:[#allocation2 + $0x1fa0] sm:$0xff]  ;;  %v1234_v63 = vld [vmem:[#allocation2 + $0x1f88] sm:$0xff] }
 0x202   : > { %v1238_v0 = vld [vmem:[#allocation2 + $0x1fa8] sm:$0xff] }
 0x203   : > { %7558 = vmatpush1.bf16.msra.mxu0 %v9889_v15  ;;  %7945 = vmatpush1.bf16.msra.mxu1 %v9891_v16  ;;  %v1186_v15 = vld [vmem:[#allocation2 + $0x1e08] sm:$0xff] }
 0x204   : > { %7570 = vmatprep.subr.bf16.mxu0 %v9898_v17  ;;  %7957 = vmatprep.subr.bf16.mxu1 %v9900_v18  ;;  %v1190_v16 = vld [vmem:[#allocation2 + $0x1e28] sm:$0xff]  ;;  %v9953_v17 = vcombine.low %v1177_v5, %v1181_v6  ;;  %v9955_v18 = vcombine.low %v1178_v7, %v1182_v8  ;;  %v1241_v5 = vld [vmem:[#allocation2 + $0x1fc0] sm:$0xff] }
 0x205   : > { %v9964_v20 = vcombine.high %v1186_v15, %v1190_v16  ;;  %v1245_v6 = vld [vmem:[#allocation2 + $0x1fe0] sm:$0xff]  ;;  %v1242_v7 = vld [vmem:[#allocation2 + $0x1fc8] sm:$0xff] }
 0x206   : > { %7560 = vmatmul.mubr.bf16.vlgmr.msra.gmra.mrb[0].mxu0 %v10368_v21  ;;  %7947 = vmatmul.mubr.bf16.vlgmr.msra.gmra.mrb[0].mxu1 %v10368_v21  ;;  %v1193_v21 = vld [vmem:[#allocation2 + $0x1e40] sm:$0xff]  ;;  %v1246_v8 = vld [vmem:[#allocation2 + $0x1fe8] sm:$0xff] }
 0x207   : > { %7571 = vmatpush1.bf16.msra.mxu0 %v9897_v24  ;;  %7958 = vmatpush1.bf16.msra.mxu1 %v9899_v25  ;;  %v1198_v24 = vld [vmem:[#allocation2 + $0x1e68] sm:$0xff]  ;;  %v9961_v25 = vcombine.low %v1185_v13, %v1189_v14  ;;  %v1249_v13 = vld [vmem:[#allocation2 + $0x2000] sm:$0xff] }
 0x208   : > { %7572 = vmatprep.subr.bf16.mxu0 %v9906_v26  ;;  %7959 = vmatprep.subr.bf16.mxu1 %v9908_v27  ;;  %v9963_v26 = vcombine.low %v1186_v15, %v1190_v16  ;;  %v9970_v27 = vcombine.high %v1193_v21, %v1197_v22  ;;  %v9972_v28 = vcombine.high %v1194_v23, %v1198_v24  ;;  %v1253_v14 = vld [vmem:[#allocation2 + $0x2020] sm:$0xff]  ;;  %v1250_v15 = vld [vmem:[#allocation2 + $0x2008] sm:$0xff] }
 0x209   : > { %7602 = vmatprep.mubr.bf16.mxu0 %v10369_v30  ;;  %7989 = vmatprep.mubr.bf16.mxu1 %v10369_v30  ;;  %v1205_v30 = vld [vmem:[#allocation2 + $0x1ea0] sm:$0xff]  ;;  %v1254_v16 = vld [vmem:[#allocation2 + $0x2028] sm:$0xff] }
 0x20b   : > { %7573 = vmatpush1.bf16.msra.mxu0 %v9905_v33  ;;  %7960 = vmatpush1.bf16.msra.mxu1 %v9907_v34  ;;  %v9969_v33 = vcombine.low %v1193_v21, %v1197_v22  ;;  %v9971_v34 = vcombine.low %v1194_v23, %v1198_v24  ;;  %v1257_v21 = vld [vmem:[#allocation2 + $0x2040] sm:$0xff]  ;;  %v1258_v24 = vld [vmem:[#allocation2 + $0x2048] sm:$0xff] }
 0x20c   : > { %7574 = vmatprep.subr.bf16.mxu0 %v9914_v35  ;;  %7961 = vmatprep.subr.bf16.mxu1 %v9916_v36  ;;  %v9978_v35 = vcombine.high %v1201_v29, %v1205_v30  ;;  %v9980_v36 = vcombine.high %v1202_v31, %v1206_v32  ;;  %v1261_v22 = vld [vmem:[#allocation2 + $0x2060] sm:$0xff] }
 0x20d   : > { %v10371_v23 = vld [vmem:[%s10583_s20 + $0x38] ss:$72 sps:$4 sm:$0xff]  }
 0x20f   : > { %7575 = vmatpush1.bf16.msra.mxu0 %v9913_v41  ;;  %7962 = vmatpush1.bf16.msra.mxu1 %v9915_v42  ;;  %v9977_v41 = vcombine.low %v1201_v29, %v1205_v30  ;;  %v9979_v42 = vcombine.low %v1202_v31, %v1206_v32  ;;  %v1265_v30 = vld [vmem:[#allocation2 + $0x2080] sm:$0xff] }
 0x210   : > { %7576 = vmatprep.subr.bf16.mxu0 %v9922_v43  ;;  %7963 = vmatprep.subr.bf16.mxu1 %v9924_v44  ;;  %v9986_v43 = vcombine.high %v1209_v37, %v1213_v38  ;;  %v9988_v44 = vcombine.high %v1210_v39, %v1214_v40  ;;  %v1269_v31 = vld [vmem:[#allocation2 + $0x20a0] sm:$0xff] }
 0x211   : > { %v10372_v32 = vld [vmem:[%s10583_s20 + $0x44] ss:$72 sps:$4 sm:$0xff]  }
 0x213   : > { %7577 = vmatpush1.bf16.msra.mxu0 %v9921_v49  ;;  %7964 = vmatpush1.bf16.msra.mxu1 %v9923_v50  ;;  %v9985_v49 = vcombine.low %v1209_v37, %v1213_v38  ;;  %v9987_v50 = vcombine.low %v1210_v39, %v1214_v40  ;;  %v10042_v37 = vcombine.high %v1265_v30, %v1269_v31  ;;  %v1273_v39 = vld [vmem:[#allocation2 + $0x20c0] sm:$0xff] }
 0x214   : > { %7578 = vmatprep.subr.bf16.mxu0 %v9930_v51  ;;  %7965 = vmatprep.subr.bf16.mxu1 %v9932_v52  ;;  %v9994_v51 = vcombine.high %v1217_v45, %v1221_v46  ;;  %v9996_v52 = vcombine.high %v1218_v47, %v1222_v48  ;;  %v1277_v40 = vld [vmem:[#allocation2 + $0x20e0] sm:$0xff] }
 0x217   : > { %7579 = vmatpush1.bf16.msra.mxu0 %v9929_v57  ;;  %7966 = vmatpush1.bf16.msra.mxu1 %v9931_v58  ;;  %v9993_v57 = vcombine.low %v1217_v45, %v1221_v46  ;;  %v9995_v58 = vcombine.low %v1218_v47, %v1222_v48  ;;  %v10050_v45 = vcombine.high %v1273_v39, %v1277_v40  ;;  %v1281_v47 = vld [vmem:[#allocation2 + $0x2100] sm:$0xff] }
 0x218   : > { %7580 = vmatprep.subr.bf16.mxu0 %v9938_v59  ;;  %7967 = vmatprep.subr.bf16.mxu1 %v9940_v60  ;;  %v10002_v59 = vcombine.high %v1225_v53, %v1229_v54  ;;  %v10004_v60 = vcombine.high %v1226_v55, %v1230_v56  ;;  %v1285_v48 = vld [vmem:[#allocation2 + $0x2120] sm:$0xff] }
 0x21b   : > { %7581 = vmatpush1.bf16.msra.mxu0 %v9937_v1  ;;  %7968 = vmatpush1.bf16.msra.mxu1 %v9939_v2  ;;  %v10001_v1 = vcombine.low %v1225_v53, %v1229_v54  ;;  %v10003_v2 = vcombine.low %v1226_v55, %v1230_v56  ;;  %v10058_v53 = vcombine.high %v1281_v47, %v1285_v48  ;;  %v1289_v55 = vld [vmem:[#allocation2 + $0x2140] sm:$0xff] }
 0x21c   : > { %7582 = vmatprep.subr.bf16.mxu0 %v9946_v3  ;;  %7969 = vmatprep.subr.bf16.mxu1 %v9948_v4  ;;  %v10010_v3 = vcombine.high %v1233_v61, %v1237_v62  ;;  %v10012_v4 = vcombine.high %v1234_v63, %v1238_v0  ;;  %v1293_v56 = vld [vmem:[#allocation2 + $0x2160] sm:$0xff] }
 0x21f   : > { %7583 = vmatpush1.bf16.msra.mxu0 %v9945_v9  ;;  %7970 = vmatpush1.bf16.msra.mxu1 %v9947_v10  ;;  %v10009_v9 = vcombine.low %v1233_v61, %v1237_v62  ;;  %v10011_v10 = vcombine.low %v1234_v63, %v1238_v0  ;;  %v10066_v61 = vcombine.high %v1289_v55, %v1293_v56  ;;  %v1297_v63 = vld [vmem:[#allocation2 + $0x2180] sm:$0xff] }
 0x220   : > { %7584 = vmatprep.subr.bf16.mxu0 %v9954_v11  ;;  %7971 = vmatprep.subr.bf16.mxu1 %v9956_v12  ;;  %v10018_v11 = vcombine.high %v1241_v5, %v1245_v6  ;;  %v10020_v12 = vcombine.high %v1242_v7, %v1246_v8  ;;  %v1301_v0 = vld [vmem:[#allocation2 + $0x21a0] sm:$0xff] }
 0x223   : > { %7585 = vmatpush1.bf16.msra.mxu0 %v9953_v17  ;;  %7972 = vmatpush1.bf16.msra.mxu1 %v9955_v18  ;;  %v10017_v17 = vcombine.low %v1241_v5, %v1245_v6  ;;  %v10019_v18 = vcombine.low %v1242_v7, %v1246_v8  ;;  %v10074_v5 = vcombine.high %v1297_v63, %v1301_v0  ;;  %v1305_v7 = vld [vmem:[#allocation2 + $0x21c0] sm:$0xff] }
 0x224   : > { %7586 = vmatprep.subr.bf16.mxu0 %v9962_v19  ;;  %7973 = vmatprep.subr.bf16.mxu1 %v9964_v20  ;;  %v10026_v19 = vcombine.high %v1249_v13, %v1253_v14  ;;  %v10028_v20 = vcombine.high %v1250_v15, %v1254_v16  ;;  %v1309_v8 = vld [vmem:[#allocation2 + $0x21e0] sm:$0xff] }
 0x227   : > { %7587 = vmatpush1.bf16.msra.mxu0 %v9961_v25  ;;  %7974 = vmatpush1.bf16.msra.mxu1 %v9963_v26  ;;  %v1262_v25 = vld [vmem:[#allocation2 + $0x2068] sm:$0xff]  ;;  %v10025_v26 = vcombine.low %v1249_v13, %v1253_v14  ;;  %v10082_v13 = vcombine.high %v1305_v7, %v1309_v8 }
 0x228   : > { %7588 = vmatprep.subr.bf16.mxu0 %v9970_v27  ;;  %7975 = vmatprep.subr.bf16.mxu1 %v9972_v28  ;;  %v10027_v27 = vcombine.low %v1250_v15, %v1254_v16  ;;  %v10034_v28 = vcombine.high %v1257_v21, %v1261_v22  ;;  %v10036_v29 = vcombine.high %v1258_v24, %v1262_v25  ;;  %v1313_v15 = vld [vmem:[#allocation2 + $0x2200] sm:$0xff] }
 0x229   : > { %v1317_v16 = vld [vmem:[#allocation2 + $0x2220] sm:$0xff] }
 0x22b   : > { %7589 = vmatpush1.bf16.msra.mxu0 %v9969_v33  ;;  %7976 = vmatpush1.bf16.msra.mxu1 %v9971_v34  ;;  %v1266_v33 = vld [vmem:[#allocation2 + $0x2088] sm:$0xff] }
 0x22c   : > { %7590 = vmatprep.subr.bf16.mxu0 %v9978_v35  ;;  %7977 = vmatprep.subr.bf16.mxu1 %v9980_v36  ;;  %v1270_v34 = vld [vmem:[#allocation2 + $0x20a8] sm:$0xff]  ;;  %v10033_v35 = vcombine.low %v1257_v21, %v1261_v22  ;;  %v10035_v36 = vcombine.low %v1258_v24, %v1262_v25  ;;  %v10090_v21 = vcombine.high %v1313_v15, %v1317_v16  ;;  %v1325_v24 = vld [vmem:[#allocation2 + $0x2260] sm:$0xff] }
 0x22d   : > { %v10044_v38 = vcombine.high %v1266_v33, %v1270_v34  ;;  %v1322_v25 = vld [vmem:[#allocation2 + $0x2248] sm:$0xff] }
 0x22f   : > { %7591 = vmatpush1.bf16.msra.mxu0 %v9977_v41  ;;  %7978 = vmatpush1.bf16.msra.mxu1 %v9979_v42  ;;  %v1274_v41 = vld [vmem:[#allocation2 + $0x20c8] sm:$0xff] }
 0x230   : > { %7592 = vmatprep.subr.bf16.mxu0 %v9986_v43  ;;  %7979 = vmatprep.subr.bf16.mxu1 %v9988_v44  ;;  %v1278_v42 = vld [vmem:[#allocation2 + $0x20e8] sm:$0xff]  ;;  %v10041_v43 = vcombine.low %v1265_v30, %v1269_v31  ;;  %v10043_v44 = vcombine.low %v1266_v33, %v1270_v34  ;;  %v1329_v31 = vld [vmem:[#allocation2 + $0x2280] sm:$0xff] }
 0x231   : > { %v10052_v46 = vcombine.high %v1274_v41, %v1278_v42  ;;  %v1330_v33 = vld [vmem:[#allocation2 + $0x2288] sm:$0xff] }
 0x232   : > { %v1334_v34 = vld [vmem:[#allocation2 + $0x22a8] sm:$0xff] }
 0x233   : > { %7593 = vmatpush1.bf16.msra.mxu0 %v9985_v49  ;;  %7980 = vmatpush1.bf16.msra.mxu1 %v9987_v50  ;;  %v1282_v49 = vld [vmem:[#allocation2 + $0x2108] sm:$0xff] }
 0x234   : > { %7594 = vmatprep.subr.bf16.mxu0 %v9994_v51  ;;  %7981 = vmatprep.subr.bf16.mxu1 %v9996_v52  ;;  %v1286_v50 = vld [vmem:[#allocation2 + $0x2128] sm:$0xff]  ;;  %v10049_v51 = vcombine.low %v1273_v39, %v1277_v40  ;;  %v10051_v52 = vcombine.low %v1274_v41, %v1278_v42  ;;  %v1337_v39 = vld [vmem:[#allocation2 + $0x22c0] sm:$0xff] }
 0x235   : > { %v10060_v54 = vcombine.high %v1282_v49, %v1286_v50  ;;  %v1341_v40 = vld [vmem:[#allocation2 + $0x22e0] sm:$0xff]  ;;  %v1338_v41 = vld [vmem:[#allocation2 + $0x22c8] sm:$0xff] }
 0x236   : > { %v1342_v42 = vld [vmem:[#allocation2 + $0x22e8] sm:$0xff] }
 0x237   : > { %7595 = vmatpush1.bf16.msra.mxu0 %v9993_v57  ;;  %7982 = vmatpush1.bf16.msra.mxu1 %v9995_v58  ;;  %v1290_v57 = vld [vmem:[#allocation2 + $0x2148] sm:$0xff] }
 0x238   : > { %7596 = vmatprep.subr.bf16.mxu0 %v10002_v59  ;;  %7983 = vmatprep.subr.bf16.mxu1 %v10004_v60  ;;  %v1294_v58 = vld [vmem:[#allocation2 + $0x2168] sm:$0xff]  ;;  %v10057_v59 = vcombine.low %v1281_v47, %v1285_v48  ;;  %v10059_v60 = vcombine.low %v1282_v49, %v1286_v50  ;;  %v1345_v47 = vld [vmem:[#allocation2 + $0x2300] sm:$0xff] }
 0x239   : > { %v10068_v62 = vcombine.high %v1290_v57, %v1294_v58  ;;  %v1349_v48 = vld [vmem:[#allocation2 + $0x2320] sm:$0xff]  ;;  %v1346_v49 = vld [vmem:[#allocation2 + $0x2308] sm:$0xff] }
 0x23a   : > { %v1350_v50 = vld [vmem:[#allocation2 + $0x2328] sm:$0xff] }
 0x23b   : > { %7597 = vmatpush1.bf16.msra.mxu0 %v10001_v1  ;;  %7984 = vmatpush1.bf16.msra.mxu1 %v10003_v2  ;;  %v1298_v1 = vld [vmem:[#allocation2 + $0x2188] sm:$0xff] }
 0x23c   : > { %7598 = vmatprep.subr.bf16.mxu0 %v10010_v3  ;;  %7985 = vmatprep.subr.bf16.mxu1 %v10012_v4  ;;  %v1302_v2 = vld [vmem:[#allocation2 + $0x21a8] sm:$0xff]  ;;  %v10065_v3 = vcombine.low %v1289_v55, %v1293_v56  ;;  %v10067_v4 = vcombine.low %v1290_v57, %v1294_v58  ;;  %v1353_v55 = vld [vmem:[#allocation2 + $0x2340] sm:$0xff] }
 0x23d   : > { %v10076_v6 = vcombine.high %v1298_v1, %v1302_v2  ;;  %v1357_v56 = vld [vmem:[#allocation2 + $0x2360] sm:$0xff]  ;;  %v1354_v57 = vld [vmem:[#allocation2 + $0x2348] sm:$0xff] }
 0x23e   : > { %v1358_v58 = vld [vmem:[#allocation2 + $0x2368] sm:$0xff] }
 0x23f   : > { %7599 = vmatpush1.bf16.msra.mxu0 %v10009_v9  ;;  %7986 = vmatpush1.bf16.msra.mxu1 %v10011_v10  ;;  %v1306_v9 = vld [vmem:[#allocation2 + $0x21c8] sm:$0xff] }
 0x240   : > { %7600 = vmatprep.subr.bf16.mxu0 %v10018_v11  ;;  %7987 = vmatprep.subr.bf16.mxu1 %v10020_v12  ;;  %v1310_v10 = vld [vmem:[#allocation2 + $0x21e8] sm:$0xff]  ;;  %v10073_v11 = vcombine.low %v1297_v63, %v1301_v0  ;;  %v10075_v12 = vcombine.low %v1298_v1, %v1302_v2  ;;  %v1361_v63 = vld [vmem:[#allocation2 + $0x2380] sm:$0xff] }
 0x241   : > { %v10084_v14 = vcombine.high %v1306_v9, %v1310_v10  ;;  %v1365_v0 = vld [vmem:[#allocation2 + $0x23a0] sm:$0xff]  ;;  %v1362_v1 = vld [vmem:[#allocation2 + $0x2388] sm:$0xff] }
 0x242   : > { %v1366_v2 = vld [vmem:[#allocation2 + $0x23a8] sm:$0xff] }
 0x243   : > { %7601 = vmatpush1.bf16.msra.mxu0 %v10017_v17  ;;  %7988 = vmatpush1.bf16.msra.mxu1 %v10019_v18  ;;  %v1314_v17 = vld [vmem:[#allocation2 + $0x2208] sm:$0xff] }
 0x244   : > { %7613 = vmatprep.subr.bf16.mxu0 %v10026_v19  ;;  %8000 = vmatprep.subr.bf16.mxu1 %v10028_v20  ;;  %v1318_v18 = vld [vmem:[#allocation2 + $0x2228] sm:$0xff]  ;;  %v10081_v19 = vcombine.low %v1305_v7, %v1309_v8  ;;  %v10083_v20 = vcombine.low %v1306_v9, %v1310_v10  ;;  %v1369_v7 = vld [vmem:[#allocation2 + $0x23c0] sm:$0xff] }
 0x245   : > { %v10092_v22 = vcombine.high %v1314_v17, %v1318_v18  ;;  %v1373_v8 = vld [vmem:[#allocation2 + $0x23e0] sm:$0xff]  ;;  %v1370_v9 = vld [vmem:[#allocation2 + $0x23c8] sm:$0xff] }
 0x246   : > { %7603 = vmatmul.mubr.bf16.vlgmr.msra.gmra.mrb[0].mxu0 %v10371_v23  ;;  %7990 = vmatmul.mubr.bf16.vlgmr.msra.gmra.mrb[0].mxu1 %v10371_v23  ;;  %v1321_v23 = vld [vmem:[#allocation2 + $0x2240] sm:$0xff]  ;;  %v1374_v10 = vld [vmem:[#allocation2 + $0x23e8] sm:$0xff] }
 0x247   : > { %7614 = vmatpush1.bf16.msra.mxu0 %v10025_v26  ;;  %8001 = vmatpush1.bf16.msra.mxu1 %v10027_v27  ;;  %v1326_v26 = vld [vmem:[#allocation2 + $0x2268] sm:$0xff]  ;;  %v10089_v27 = vcombine.low %v1313_v15, %v1317_v16  ;;  %v227_v15 = vld [vmem:[#allocation2 + $0x10] sm:$0xff] }
 0x248   : > { %7615 = vmatprep.subr.bf16.mxu0 %v10034_v28  ;;  %8002 = vmatprep.subr.bf16.mxu1 %v10036_v29  ;;  %v10091_v28 = vcombine.low %v1314_v17, %v1318_v18  ;;  %v10098_v29 = vcombine.high %v1321_v23, %v1325_v24  ;;  %v10100_v30 = vcombine.high %v1322_v25, %v1326_v26  ;;  %v231_v16 = vld [vmem:[#allocation2 + $0x30] sm:$0xff]  ;;  %v228_v17 = vld [vmem:[#allocation2 + $0x18] sm:$0xff] }
 0x249   : > { %7645 = vmatprep.mubr.bf16.mxu0 %v10372_v32  ;;  %8032 = vmatprep.mubr.bf16.mxu1 %v10372_v32  ;;  %v1333_v32 = vld [vmem:[#allocation2 + $0x22a0] sm:$0xff]  ;;  %v232_v18 = vld [vmem:[#allocation2 + $0x38] sm:$0xff] }
 0x24b   : > { %7616 = vmatpush1.bf16.msra.mxu0 %v10033_v35  ;;  %8003 = vmatpush1.bf16.msra.mxu1 %v10035_v36  ;;  %v10097_v35 = vcombine.low %v1321_v23, %v1325_v24  ;;  %v10099_v36 = vcombine.low %v1322_v25, %v1326_v26  ;;  %v235_v23 = vld [vmem:[#allocation2 + $0x50] sm:$0xff]  ;;  %v10374_v25 = vld [vmem:[%s10583_s20 + $0x40] ss:$72 sps:$4 sm:$0xff]   ;;  %v236_v26 = vld [vmem:[#allocation2 + $0x58] sm:$0xff] }
 0x24c   : > { %7617 = vmatprep.subr.bf16.mxu0 %v10042_v37  ;;  %8004 = vmatprep.subr.bf16.mxu1 %v10044_v38  ;;  %v10106_v37 = vcombine.high %v1329_v31, %v1333_v32  ;;  %v10108_v38 = vcombine.high %v1330_v33, %v1334_v34  ;;  %v239_v24 = vld [vmem:[#allocation2 + $0x70] sm:$0xff] }
 0x24f   : > { %7618 = vmatpush1.bf16.msra.mxu0 %v10041_v43  ;;  %8005 = vmatpush1.bf16.msra.mxu1 %v10043_v44  ;;  %v10105_v43 = vcombine.low %v1329_v31, %v1333_v32  ;;  %v10107_v44 = vcombine.low %v1330_v33, %v1334_v34  ;;  %v243_v32 = vld [vmem:[#allocation2 + $0x90] sm:$0xff]  ;;  %v244_v34 = vld [vmem:[#allocation2 + $0x98] sm:$0xff] }
 0x250   : > { %7619 = vmatprep.subr.bf16.mxu0 %v10050_v45  ;;  %8006 = vmatprep.subr.bf16.mxu1 %v10052_v46  ;;  %v10114_v45 = vcombine.high %v1337_v39, %v1341_v40  ;;  %v10116_v46 = vcombine.high %v1338_v41, %v1342_v42  ;;  %v247_v33 = vld [vmem:[#allocation2 + $0xb0] sm:$0xff] }
 0x253   : > { %7620 = vmatpush1.bf16.msra.mxu0 %v10049_v51  ;;  %8007 = vmatpush1.bf16.msra.mxu1 %v10051_v52  ;;  %v10113_v51 = vcombine.low %v1337_v39, %v1341_v40  ;;  %v10115_v52 = vcombine.low %v1338_v41, %v1342_v42  ;;  %v251_v40 = vld [vmem:[#allocation2 + $0xd0] sm:$0xff]  ;;  %v10375_v42 = vld [vmem:[%s10583_s20 + $0x4] ss:$72 sps:$4 sm:$0xff]  }
 0x254   : > { %7621 = vmatprep.subr.bf16.mxu0 %v10058_v53  ;;  %8008 = vmatprep.subr.bf16.mxu1 %v10060_v54  ;;  %v10122_v53 = vcombine.high %v1345_v47, %v1349_v48  ;;  %v10124_v54 = vcombine.high %v1346_v49, %v1350_v50  ;;  %v255_v41 = vld [vmem:[#allocation2 + $0xf0] sm:$0xff] }
 0x257   : > { %7622 = vmatpush1.bf16.msra.mxu0 %v10057_v59  ;;  %8009 = vmatpush1.bf16.msra.mxu1 %v10059_v60  ;;  %v10121_v59 = vcombine.low %v1345_v47, %v1349_v48  ;;  %v10123_v60 = vcombine.low %v1346_v49, %v1350_v50  ;;  %v9030_v47 = vcombine.high %v251_v40, %v255_v41  ;;  %v259_v49 = vld [vmem:[#allocation2 + $0x110] sm:$0xff] }
 0x258   : > { %7623 = vmatprep.subr.bf16.mxu0 %v10066_v61  ;;  %8010 = vmatprep.subr.bf16.mxu1 %v10068_v62  ;;  %v10130_v61 = vcombine.high %v1353_v55, %v1357_v56  ;;  %v10132_v62 = vcombine.high %v1354_v57, %v1358_v58  ;;  %v263_v50 = vld [vmem:[#allocation2 + $0x130] sm:$0xff] }
 0x25b   : > { %7624 = vmatpush1.bf16.msra.mxu0 %v10065_v3  ;;  %8011 = vmatpush1.bf16.msra.mxu1 %v10067_v4  ;;  %v10129_v3 = vcombine.low %v1353_v55, %v1357_v56  ;;  %v10131_v4 = vcombine.low %v1354_v57, %v1358_v58  ;;  %v9038_v55 = vcombine.high %v259_v49, %v263_v50  ;;  %v267_v57 = vld [vmem:[#allocation2 + $0x150] sm:$0xff] }
 0x25c   : > { %7625 = vmatprep.subr.bf16.mxu0 %v10074_v5  ;;  %8012 = vmatprep.subr.bf16.mxu1 %v10076_v6  ;;  %v10138_v5 = vcombine.high %v1361_v63, %v1365_v0  ;;  %v10140_v6 = vcombine.high %v1362_v1, %v1366_v2  ;;  %v271_v58 = vld [vmem:[#allocation2 + $0x170] sm:$0xff] }
 0x25f   : > { %7626 = vmatpush1.bf16.msra.mxu0 %v10073_v11  ;;  %8013 = vmatpush1.bf16.msra.mxu1 %v10075_v12  ;;  %v10137_v11 = vcombine.low %v1361_v63, %v1365_v0  ;;  %v10139_v12 = vcombine.low %v1362_v1, %v1366_v2  ;;  %v9046_v63 = vcombine.high %v267_v57, %v271_v58  ;;  %v275_v1 = vld [vmem:[#allocation2 + $0x190] sm:$0xff] }
 0x260   : > { %7627 = vmatprep.subr.bf16.mxu0 %v10082_v13  ;;  %8014 = vmatprep.subr.bf16.mxu1 %v10084_v14  ;;  %v10146_v13 = vcombine.high %v1369_v7, %v1373_v8  ;;  %v10148_v14 = vcombine.high %v1370_v9, %v1374_v10  ;;  %v279_v2 = vld [vmem:[#allocation2 + $0x1b0] sm:$0xff] }
 0x263   : > { %7628 = vmatpush1.bf16.msra.mxu0 %v10081_v19  ;;  %8015 = vmatpush1.bf16.msra.mxu1 %v10083_v20  ;;  %v10145_v19 = vcombine.low %v1369_v7, %v1373_v8  ;;  %v10147_v20 = vcombine.low %v1370_v9, %v1374_v10  ;;  %v9054_v7 = vcombine.high %v275_v1, %v279_v2  ;;  %v283_v9 = vld [vmem:[#allocation2 + $0x1d0] sm:$0xff] }
 0x264   : > { %7629 = vmatprep.subr.bf16.mxu0 %v10090_v21  ;;  %8016 = vmatprep.subr.bf16.mxu1 %v10092_v22  ;;  %v9006_v21 = vcombine.high %v227_v15, %v231_v16  ;;  %v9008_v22 = vcombine.high %v228_v17, %v232_v18  ;;  %v287_v10 = vld [vmem:[#allocation2 + $0x1f0] sm:$0xff] }
 0x267   : > { %7630 = vmatpush1.bf16.msra.mxu0 %v10089_v27  ;;  %8017 = vmatpush1.bf16.msra.mxu1 %v10091_v28  ;;  %v240_v27 = vld [vmem:[#allocation2 + $0x78] sm:$0xff]  ;;  %v9005_v28 = vcombine.low %v227_v15, %v231_v16  ;;  %v9062_v15 = vcombine.high %v283_v9, %v287_v10 }
 0x268   : > { %7631 = vmatprep.subr.bf16.mxu0 %v10098_v29  ;;  %8018 = vmatprep.subr.bf16.mxu1 %v10100_v30  ;;  %v9007_v29 = vcombine.low %v228_v17, %v232_v18  ;;  %v9014_v30 = vcombine.high %v235_v23, %v239_v24  ;;  %v9016_v31 = vcombine.high %v236_v26, %v240_v27  ;;  %v291_v17 = vld [vmem:[#allocation2 + $0x210] sm:$0xff] }
 0x269   : > { %v295_v18 = vld [vmem:[#allocation2 + $0x230] sm:$0xff] }
 0x26b   : > { %7632 = vmatpush1.bf16.msra.mxu0 %v10097_v35  ;;  %8019 = vmatpush1.bf16.msra.mxu1 %v10099_v36  ;;  %v248_v35 = vld [vmem:[#allocation2 + $0xb8] sm:$0xff]  ;;  %v9013_v36 = vcombine.low %v235_v23, %v239_v24  ;;  %v9070_v23 = vcombine.high %v291_v17, %v295_v18 }
 0x26c   : > { %7633 = vmatprep.subr.bf16.mxu0 %v10106_v37  ;;  %8020 = vmatprep.subr.bf16.mxu1 %v10108_v38  ;;  %v9015_v37 = vcombine.low %v236_v26, %v240_v27  ;;  %v9022_v38 = vcombine.high %v243_v32, %v247_v33  ;;  %v9024_v39 = vcombine.high %v244_v34, %v248_v35  ;;  %v303_v26 = vld [vmem:[#allocation2 + $0x270] sm:$0xff]  ;;  %v300_v27 = vld [vmem:[#allocation2 + $0x258] sm:$0xff] }
 0x26f   : > { %7634 = vmatpush1.bf16.msra.mxu0 %v10105_v43  ;;  %8021 = vmatpush1.bf16.msra.mxu1 %v10107_v44  ;;  %v252_v43 = vld [vmem:[#allocation2 + $0xd8] sm:$0xff] }
 0x270   : > { %7635 = vmatprep.subr.bf16.mxu0 %v10114_v45  ;;  %8022 = vmatprep.subr.bf16.mxu1 %v10116_v46  ;;  %v256_v44 = vld [vmem:[#allocation2 + $0xf8] sm:$0xff]  ;;  %v9021_v45 = vcombine.low %v243_v32, %v247_v33  ;;  %v9023_v46 = vcombine.low %v244_v34, %v248_v35  ;;  %v307_v33 = vld [vmem:[#allocation2 + $0x290] sm:$0xff] }
 0x271   : > { %v9032_v48 = vcombine.high %v252_v43, %v256_v44  ;;  %v311_v34 = vld [vmem:[#allocation2 + $0x2b0] sm:$0xff]  ;;  %v308_v35 = vld [vmem:[#allocation2 + $0x298] sm:$0xff] }
 0x273   : > { %7636 = vmatpush1.bf16.msra.mxu0 %v10113_v51  ;;  %8023 = vmatpush1.bf16.msra.mxu1 %v10115_v52  ;;  %v260_v51 = vld [vmem:[#allocation2 + $0x118] sm:$0xff] }
 0x274   : > { %7637 = vmatprep.subr.bf16.mxu0 %v10122_v53  ;;  %8024 = vmatprep.subr.bf16.mxu1 %v10124_v54  ;;  %v264_v52 = vld [vmem:[#allocation2 + $0x138] sm:$0xff]  ;;  %v9029_v53 = vcombine.low %v251_v40, %v255_v41  ;;  %v9031_v54 = vcombine.low %v252_v43, %v256_v44  ;;  %v315_v41 = vld [vmem:[#allocation2 + $0x2d0] sm:$0xff] }
 0x275   : > { %v9040_v56 = vcombine.high %v260_v51, %v264_v52  ;;  %v316_v43 = vld [vmem:[#allocation2 + $0x2d8] sm:$0xff] }
 0x276   : > { %v320_v44 = vld [vmem:[#allocation2 + $0x2f8] sm:$0xff] }
 0x277   : > { %7638 = vmatpush1.bf16.msra.mxu0 %v10121_v59  ;;  %8025 = vmatpush1.bf16.msra.mxu1 %v10123_v60  ;;  %v268_v59 = vld [vmem:[#allocation2 + $0x158] sm:$0xff] }
 0x278   : > { %7639 = vmatprep.subr.bf16.mxu0 %v10130_v61  ;;  %8026 = vmatprep.subr.bf16.mxu1 %v10132_v62  ;;  %v272_v60 = vld [vmem:[#allocation2 + $0x178] sm:$0xff]  ;;  %v9037_v61 = vcombine.low %v259_v49, %v263_v50  ;;  %v9039_v62 = vcombine.low %v260_v51, %v264_v52  ;;  %v323_v49 = vld [vmem:[#allocation2 + $0x310] sm:$0xff] }
 0x279   : > { %v9048_v0 = vcombine.high %v268_v59, %v272_v60  ;;  %v327_v50 = vld [vmem:[#allocation2 + $0x330] sm:$0xff]  ;;  %v324_v51 = vld [vmem:[#allocation2 + $0x318] sm:$0xff] }
 0x27a   : > { %v328_v52 = vld [vmem:[#allocation2 + $0x338] sm:$0xff] }
 0x27b   : > { %7640 = vmatpush1.bf16.msra.mxu0 %v10129_v3  ;;  %8027 = vmatpush1.bf16.msra.mxu1 %v10131_v4  ;;  %v276_v3 = vld [vmem:[#allocation2 + $0x198] sm:$0xff] }
 0x27c   : > { %7641 = vmatprep.subr.bf16.mxu0 %v10138_v5  ;;  %8028 = vmatprep.subr.bf16.mxu1 %v10140_v6  ;;  %v280_v4 = vld [vmem:[#allocation2 + $0x1b8] sm:$0xff]  ;;  %v9045_v5 = vcombine.low %v267_v57, %v271_v58  ;;  %v9047_v6 = vcombine.low %v268_v59, %v272_v60  ;;  %v331_v57 = vld [vmem:[#allocation2 + $0x350] sm:$0xff] }
 0x27d   : > { %v9056_v8 = vcombine.high %v276_v3, %v280_v4  ;;  %v335_v58 = vld [vmem:[#allocation2 + $0x370] sm:$0xff]  ;;  %v332_v59 = vld [vmem:[#allocation2 + $0x358] sm:$0xff] }
 0x27e   : > { %v336_v60 = vld [vmem:[#allocation2 + $0x378] sm:$0xff] }
 0x27f   : > { %7642 = vmatpush1.bf16.msra.mxu0 %v10137_v11  ;;  %8029 = vmatpush1.bf16.msra.mxu1 %v10139_v12  ;;  %v284_v11 = vld [vmem:[#allocation2 + $0x1d8] sm:$0xff] }
 0x280   : > { %7643 = vmatprep.subr.bf16.mxu0 %v10146_v13  ;;  %8030 = vmatprep.subr.bf16.mxu1 %v10148_v14  ;;  %v288_v12 = vld [vmem:[#allocation2 + $0x1f8] sm:$0xff]  ;;  %v9053_v13 = vcombine.low %v275_v1, %v279_v2  ;;  %v9055_v14 = vcombine.low %v276_v3, %v280_v4  ;;  %v339_v1 = vld [vmem:[#allocation2 + $0x390] sm:$0xff] }
 0x281   : > { %v9064_v16 = vcombine.high %v284_v11, %v288_v12  ;;  %v343_v2 = vld [vmem:[#allocation2 + $0x3b0] sm:$0xff]  ;;  %v340_v3 = vld [vmem:[#allocation2 + $0x398] sm:$0xff] }
 0x282   : > { %v344_v4 = vld [vmem:[#allocation2 + $0x3b8] sm:$0xff] }
 0x283   : > { %7644 = vmatpush1.bf16.msra.mxu0 %v10145_v19  ;;  %8031 = vmatpush1.bf16.msra.mxu1 %v10147_v20  ;;  %v292_v19 = vld [vmem:[#allocation2 + $0x218] sm:$0xff] }
 0x284   : > { %8043 = vmatprep.subr.bf16.mxu0 %v9006_v21  ;;  %8430 = vmatprep.subr.bf16.mxu1 %v9008_v22  ;;  %v296_v20 = vld [vmem:[#allocation2 + $0x238] sm:$0xff]  ;;  %v9061_v21 = vcombine.low %v283_v9, %v287_v10  ;;  %v9063_v22 = vcombine.low %v284_v11, %v288_v12  ;;  %v347_v9 = vld [vmem:[#allocation2 + $0x3d0] sm:$0xff] }
 0x285   : > { %v9072_v24 = vcombine.high %v292_v19, %v296_v20  ;;  %v351_v10 = vld [vmem:[#allocation2 + $0x3f0] sm:$0xff]  ;;  %v348_v11 = vld [vmem:[#allocation2 + $0x3d8] sm:$0xff] }
 0x286   : > { %7646 = vmatmul.mubr.bf16.vlgmr.msra.gmra.mrb[0].mxu0 %v10374_v25  ;;  %8033 = vmatmul.mubr.bf16.vlgmr.msra.gmra.mrb[0].mxu1 %v10374_v25  ;;  %v299_v25 = vld [vmem:[#allocation2 + $0x250] sm:$0xff]  ;;  %v352_v12 = vld [vmem:[#allocation2 + $0x3f8] sm:$0xff] }
 0x287   : > { %8044 = vmatpush1.bf16.msra.mxu0 %v9005_v28  ;;  %8431 = vmatpush1.bf16.msra.mxu1 %v9007_v29  ;;  %v304_v28 = vld [vmem:[#allocation2 + $0x278] sm:$0xff]  ;;  %v9069_v29 = vcombine.low %v291_v17, %v295_v18  ;;  %v355_v17 = vld [vmem:[#allocation2 + $0x410] sm:$0xff] }
 0x288   : > { %8045 = vmatprep.subr.bf16.mxu0 %v9014_v30  ;;  %8432 = vmatprep.subr.bf16.mxu1 %v9016_v31  ;;  %v9071_v30 = vcombine.low %v292_v19, %v296_v20  ;;  %v9078_v31 = vcombine.high %v299_v25, %v303_v26  ;;  %v9080_v32 = vcombine.high %v300_v27, %v304_v28  ;;  %v359_v18 = vld [vmem:[#allocation2 + $0x430] sm:$0xff]  ;;  %v356_v19 = vld [vmem:[#allocation2 + $0x418] sm:$0xff] }
 0x289   : > { %8075 = vmatprep.mubr.bf16.mxu0 %v10375_v42  ;;  %8462 = vmatprep.mubr.bf16.mxu1 %v10375_v42  ;;  %v319_v42 = vld [vmem:[#allocation2 + $0x2f0] sm:$0xff]  ;;  %v360_v20 = vld [vmem:[#allocation2 + $0x438] sm:$0xff] }
 0x28b   : > { %8046 = vmatpush1.bf16.msra.mxu0 %v9013_v36  ;;  %8433 = vmatpush1.bf16.msra.mxu1 %v9015_v37  ;;  %v312_v36 = vld [vmem:[#allocation2 + $0x2b8] sm:$0xff]  ;;  %v9077_v37 = vcombine.low %v299_v25, %v303_v26  ;;  %v363_v25 = vld [vmem:[#allocation2 + $0x450] sm:$0xff] }
 0x28c   : > { %8047 = vmatprep.subr.bf16.mxu0 %v9022_v38  ;;  %8434 = vmatprep.subr.bf16.mxu1 %v9024_v39  ;;  %v9079_v38 = vcombine.low %v300_v27, %v304_v28  ;;  %v9086_v39 = vcombine.high %v307_v33, %v311_v34  ;;  %v9088_v40 = vcombine.high %v308_v35, %v312_v36  ;;  %v367_v26 = vld [vmem:[#allocation2 + $0x470] sm:$0xff]  ;;  %v364_v27 = vld [vmem:[#allocation2 + $0x458] sm:$0xff] }
 0x28d   : > { %v368_v28 = vld [vmem:[#allocation2 + $0x478] sm:$0xff] }
 0x28f   : > { %8048 = vmatpush1.bf16.msra.mxu0 %v9021_v45  ;;  %8435 = vmatpush1.bf16.msra.mxu1 %v9023_v46  ;;  %v9085_v45 = vcombine.low %v307_v33, %v311_v34  ;;  %v9087_v46 = vcombine.low %v308_v35, %v312_v36  ;;  %v371_v33 = vld [vmem:[#allocation2 + $0x490] sm:$0xff]  ;;  %v10376_v35 = vld [vmem:[%s10583_s20] ss:$72 sps:$4 sm:$0xff]   ;;  %v372_v36 = vld [vmem:[#allocation2 + $0x498] sm:$0xff] }
 0x290   : > { %8049 = vmatprep.subr.bf16.mxu0 %v9030_v47  ;;  %8436 = vmatprep.subr.bf16.mxu1 %v9032_v48  ;;  %v9094_v47 = vcombine.high %v315_v41, %v319_v42  ;;  %v9096_v48 = vcombine.high %v316_v43, %v320_v44  ;;  %v375_v34 = vld [vmem:[#allocation2 + $0x4b0] sm:$0xff] }
 0x293   : > { %8050 = vmatpush1.bf16.msra.mxu0 %v9029_v53  ;;  %8437 = vmatpush1.bf16.msra.mxu1 %v9031_v54  ;;  %v9093_v53 = vcombine.low %v315_v41, %v319_v42  ;;  %v9095_v54 = vcombine.low %v316_v43, %v320_v44  ;;  %v379_v42 = vld [vmem:[#allocation2 + $0x4d0] sm:$0xff] }
 0x294   : > { %8051 = vmatprep.subr.bf16.mxu0 %v9038_v55  ;;  %8438 = vmatprep.subr.bf16.mxu1 %v9040_v56  ;;  %v9102_v55 = vcombine.high %v323_v49, %v327_v50  ;;  %v9104_v56 = vcombine.high %v324_v51, %v328_v52  ;;  %v383_v43 = vld [vmem:[#allocation2 + $0x4f0] sm:$0xff] }
 0x295   : > { %v10377_v44 = vld [vmem:[%s10583_s20 + $0xc] ss:$72 sps:$4 sm:$0xff]  }
 0x297   : > { %8052 = vmatpush1.bf16.msra.mxu0 %v9037_v61  ;;  %8439 = vmatpush1.bf16.msra.mxu1 %v9039_v62  ;;  %v9101_v61 = vcombine.low %v323_v49, %v327_v50  ;;  %v9103_v62 = vcombine.low %v324_v51, %v328_v52  ;;  %v9158_v49 = vcombine.high %v379_v42, %v383_v43  ;;  %v387_v51 = vld [vmem:[#allocation2 + $0x510] sm:$0xff] }
 0x298   : > { %8053 = vmatprep.subr.bf16.mxu0 %v9046_v63  ;;  %8440 = vmatprep.subr.bf16.mxu1 %v9048_v0  ;;  %v9110_v63 = vcombine.high %v331_v57, %v335_v58  ;;  %v9112_v0 = vcombine.high %v332_v59, %v336_v60  ;;  %v391_v52 = vld [vmem:[#allocation2 + $0x530] sm:$0xff] }
 0x29b   : > { %8054 = vmatpush1.bf16.msra.mxu0 %v9045_v5  ;;  %8441 = vmatpush1.bf16.msra.mxu1 %v9047_v6  ;;  %v9109_v5 = vcombine.low %v331_v57, %v335_v58  ;;  %v9111_v6 = vcombine.low %v332_v59, %v336_v60  ;;  %v9166_v57 = vcombine.high %v387_v51, %v391_v52  ;;  %v395_v59 = vld [vmem:[#allocation2 + $0x550] sm:$0xff] }
 0x29c   : > { %8055 = vmatprep.subr.bf16.mxu0 %v9054_v7  ;;  %8442 = vmatprep.subr.bf16.mxu1 %v9056_v8  ;;  %v9118_v7 = vcombine.high %v339_v1, %v343_v2  ;;  %v9120_v8 = vcombine.high %v340_v3, %v344_v4  ;;  %v399_v60 = vld [vmem:[#allocation2 + $0x570] sm:$0xff] }
 0x29f   : > { %8056 = vmatpush1.bf16.msra.mxu0 %v9053_v13  ;;  %8443 = vmatpush1.bf16.msra.mxu1 %v9055_v14  ;;  %v9117_v13 = vcombine.low %v339_v1, %v343_v2  ;;  %v9119_v14 = vcombine.low %v340_v3, %v344_v4  ;;  %v9174_v1 = vcombine.high %v395_v59, %v399_v60  ;;  %v403_v3 = vld [vmem:[#allocation2 + $0x590] sm:$0xff] }
 0x2a0   : > { %8057 = vmatprep.subr.bf16.mxu0 %v9062_v15  ;;  %8444 = vmatprep.subr.bf16.mxu1 %v9064_v16  ;;  %v9126_v15 = vcombine.high %v347_v9, %v351_v10  ;;  %v9128_v16 = vcombine.high %v348_v11, %v352_v12  ;;  %v407_v4 = vld [vmem:[#allocation2 + $0x5b0] sm:$0xff] }
 0x2a3   : > { %8058 = vmatpush1.bf16.msra.mxu0 %v9061_v21  ;;  %8445 = vmatpush1.bf16.msra.mxu1 %v9063_v22  ;;  %v9125_v21 = vcombine.low %v347_v9, %v351_v10  ;;  %v9127_v22 = vcombine.low %v348_v11, %v352_v12  ;;  %v9182_v9 = vcombine.high %v403_v3, %v407_v4  ;;  %v411_v11 = vld [vmem:[#allocation2 + $0x5d0] sm:$0xff] }
 0x2a4   : > { %8059 = vmatprep.subr.bf16.mxu0 %v9070_v23  ;;  %8446 = vmatprep.subr.bf16.mxu1 %v9072_v24  ;;  %v9134_v23 = vcombine.high %v355_v17, %v359_v18  ;;  %v9136_v24 = vcombine.high %v356_v19, %v360_v20  ;;  %v415_v12 = vld [vmem:[#allocation2 + $0x5f0] sm:$0xff] }
 0x2a7   : > { %8060 = vmatpush1.bf16.msra.mxu0 %v9069_v29  ;;  %8447 = vmatpush1.bf16.msra.mxu1 %v9071_v30  ;;  %v9133_v29 = vcombine.low %v355_v17, %v359_v18  ;;  %v9135_v30 = vcombine.low %v356_v19, %v360_v20  ;;  %v9190_v17 = vcombine.high %v411_v11, %v415_v12  ;;  %v419_v19 = vld [vmem:[#allocation2 + $0x610] sm:$0xff] }
 0x2a8   : > { %8061 = vmatprep.subr.bf16.mxu0 %v9078_v31  ;;  %8448 = vmatprep.subr.bf16.mxu1 %v9080_v32  ;;  %v9142_v31 = vcombine.high %v363_v25, %v367_v26  ;;  %v9144_v32 = vcombine.high %v364_v27, %v368_v28  ;;  %v423_v20 = vld [vmem:[#allocation2 + $0x630] sm:$0xff] }
 0x2ab   : > { %8062 = vmatpush1.bf16.msra.mxu0 %v9077_v37  ;;  %8449 = vmatpush1.bf16.msra.mxu1 %v9079_v38  ;;  %v376_v37 = vld [vmem:[#allocation2 + $0x4b8] sm:$0xff]  ;;  %v9141_v38 = vcombine.low %v363_v25, %v367_v26  ;;  %v9198_v25 = vcombine.high %v419_v19, %v423_v20 }
 0x2ac   : > { %8063 = vmatprep.subr.bf16.mxu0 %v9086_v39  ;;  %8450 = vmatprep.subr.bf16.mxu1 %v9088_v40  ;;  %v9143_v39 = vcombine.low %v364_v27, %v368_v28  ;;  %v9150_v40 = vcombine.high %v371_v33, %v375_v34  ;;  %v9152_v41 = vcombine.high %v372_v36, %v376_v37  ;;  %v427_v27 = vld [vmem:[#allocation2 + $0x650] sm:$0xff] }
 0x2ad   : > { %v431_v28 = vld [vmem:[#allocation2 + $0x670] sm:$0xff] }
 0x2af   : > { %8064 = vmatpush1.bf16.msra.mxu0 %v9085_v45  ;;  %8451 = vmatpush1.bf16.msra.mxu1 %v9087_v46  ;;  %v380_v45 = vld [vmem:[#allocation2 + $0x4d8] sm:$0xff] }
 0x2b0   : > { %8065 = vmatprep.subr.bf16.mxu0 %v9094_v47  ;;  %8452 = vmatprep.subr.bf16.mxu1 %v9096_v48  ;;  %v384_v46 = vld [vmem:[#allocation2 + $0x4f8] sm:$0xff]  ;;  %v9149_v47 = vcombine.low %v371_v33, %v375_v34  ;;  %v9151_v48 = vcombine.low %v372_v36, %v376_v37  ;;  %v9206_v33 = vcombine.high %v427_v27, %v431_v28  ;;  %v439_v36 = vld [vmem:[#allocation2 + $0x6b0] sm:$0xff] }
 0x2b1   : > { %v9160_v50 = vcombine.high %v380_v45, %v384_v46  ;;  %v436_v37 = vld [vmem:[#allocation2 + $0x698] sm:$0xff] }
 0x2b3   : > { %8066 = vmatpush1.bf16.msra.mxu0 %v9093_v53  ;;  %8453 = vmatpush1.bf16.msra.mxu1 %v9095_v54  ;;  %v388_v53 = vld [vmem:[#allocation2 + $0x518] sm:$0xff] }
 0x2b4   : > { %8067 = vmatprep.subr.bf16.mxu0 %v9102_v55  ;;  %8454 = vmatprep.subr.bf16.mxu1 %v9104_v56  ;;  %v392_v54 = vld [vmem:[#allocation2 + $0x538] sm:$0xff]  ;;  %v9157_v55 = vcombine.low %v379_v42, %v383_v43  ;;  %v9159_v56 = vcombine.low %v380_v45, %v384_v46  ;;  %v443_v43 = vld [vmem:[#allocation2 + $0x6d0] sm:$0xff] }
 0x2b5   : > { %v9168_v58 = vcombine.high %v388_v53, %v392_v54  ;;  %v444_v45 = vld [vmem:[#allocation2 + $0x6d8] sm:$0xff] }
 0x2b6   : > { %v448_v46 = vld [vmem:[#allocation2 + $0x6f8] sm:$0xff] }
 0x2b7   : > { %8068 = vmatpush1.bf16.msra.mxu0 %v9101_v61  ;;  %8455 = vmatpush1.bf16.msra.mxu1 %v9103_v62  ;;  %v396_v61 = vld [vmem:[#allocation2 + $0x558] sm:$0xff] }
 0x2b8   : > { %8069 = vmatprep.subr.bf16.mxu0 %v9110_v63  ;;  %8456 = vmatprep.subr.bf16.mxu1 %v9112_v0  ;;  %v400_v62 = vld [vmem:[#allocation2 + $0x578] sm:$0xff]  ;;  %v9165_v63 = vcombine.low %v387_v51, %v391_v52  ;;  %v9167_v0 = vcombine.low %v388_v53, %v392_v54  ;;  %v451_v51 = vld [vmem:[#allocation2 + $0x710] sm:$0xff] }
 0x2b9   : > { %v9176_v2 = vcombine.high %v396_v61, %v400_v62  ;;  %v455_v52 = vld [vmem:[#allocation2 + $0x730] sm:$0xff]  ;;  %v452_v53 = vld [vmem:[#allocation2 + $0x718] sm:$0xff] }
 0x2ba   : > { %v456_v54 = vld [vmem:[#allocation2 + $0x738] sm:$0xff] }
 0x2bb   : > { %8070 = vmatpush1.bf16.msra.mxu0 %v9109_v5  ;;  %8457 = vmatpush1.bf16.msra.mxu1 %v9111_v6  ;;  %v404_v5 = vld [vmem:[#allocation2 + $0x598] sm:$0xff] }
 0x2bc   : > { %8071 = vmatprep.subr.bf16.mxu0 %v9118_v7  ;;  %8458 = vmatprep.subr.bf16.mxu1 %v9120_v8  ;;  %v408_v6 = vld [vmem:[#allocation2 + $0x5b8] sm:$0xff]  ;;  %v9173_v7 = vcombine.low %v395_v59, %v399_v60  ;;  %v9175_v8 = vcombine.low %v396_v61, %v400_v62  ;;  %v459_v59 = vld [vmem:[#allocation2 + $0x750] sm:$0xff] }
 0x2bd   : > { %v9184_v10 = vcombine.high %v404_v5, %v408_v6  ;;  %v463_v60 = vld [vmem:[#allocation2 + $0x770] sm:$0xff]  ;;  %v460_v61 = vld [vmem:[#allocation2 + $0x758] sm:$0xff] }
 0x2be   : > { %v464_v62 = vld [vmem:[#allocation2 + $0x778] sm:$0xff] }
 0x2bf   : > { %8072 = vmatpush1.bf16.msra.mxu0 %v9117_v13  ;;  %8459 = vmatpush1.bf16.msra.mxu1 %v9119_v14  ;;  %v412_v13 = vld [vmem:[#allocation2 + $0x5d8] sm:$0xff] }
 0x2c0   : > { %8073 = vmatprep.subr.bf16.mxu0 %v9126_v15  ;;  %8460 = vmatprep.subr.bf16.mxu1 %v9128_v16  ;;  %v416_v14 = vld [vmem:[#allocation2 + $0x5f8] sm:$0xff]  ;;  %v9181_v15 = vcombine.low %v403_v3, %v407_v4  ;;  %v9183_v16 = vcombine.low %v404_v5, %v408_v6  ;;  %v467_v3 = vld [vmem:[#allocation2 + $0x790] sm:$0xff] }
 0x2c1   : > { %v9192_v18 = vcombine.high %v412_v13, %v416_v14  ;;  %v471_v4 = vld [vmem:[#allocation2 + $0x7b0] sm:$0xff]  ;;  %v468_v5 = vld [vmem:[#allocation2 + $0x798] sm:$0xff] }
 0x2c2   : > { %v472_v6 = vld [vmem:[#allocation2 + $0x7b8] sm:$0xff] }
 0x2c3   : > { %8074 = vmatpush1.bf16.msra.mxu0 %v9125_v21  ;;  %8461 = vmatpush1.bf16.msra.mxu1 %v9127_v22  ;;  %v420_v21 = vld [vmem:[#allocation2 + $0x618] sm:$0xff] }
 0x2c4   : > { %8086 = vmatprep.subr.bf16.mxu0 %v9134_v23  ;;  %8473 = vmatprep.subr.bf16.mxu1 %v9136_v24  ;;  %v424_v22 = vld [vmem:[#allocation2 + $0x638] sm:$0xff]  ;;  %v9189_v23 = vcombine.low %v411_v11, %v415_v12  ;;  %v9191_v24 = vcombine.low %v412_v13, %v416_v14  ;;  %v475_v11 = vld [vmem:[#allocation2 + $0x7d0] sm:$0xff] }
 0x2c5   : > { %v9200_v26 = vcombine.high %v420_v21, %v424_v22  ;;  %v479_v12 = vld [vmem:[#allocation2 + $0x7f0] sm:$0xff]  ;;  %v476_v13 = vld [vmem:[#allocation2 + $0x7d8] sm:$0xff] }
 0x2c6   : > { %8076 = vmatmul.mubr.bf16.vlgmr.msra.gmra.mrb[4].mxu0 %v10376_v35  ;;  %8463 = vmatmul.mubr.bf16.vlgmr.msra.gmra.mrb[4].mxu1 %v10376_v35  ;;  %v435_v35 = vld [vmem:[#allocation2 + $0x690] sm:$0xff]  ;;  %v480_v14 = vld [vmem:[#allocation2 + $0x7f8] sm:$0xff] }
 0x2c7   : > { %8087 = vmatpush1.bf16.msra.mxu0 %v9133_v29  ;;  %8474 = vmatpush1.bf16.msra.mxu1 %v9135_v30  ;;  %v428_v29 = vld [vmem:[#allocation2 + $0x658] sm:$0xff] }
 0x2c8   : > { %8088 = vmatprep.subr.bf16.mxu0 %v9142_v31  ;;  %8475 = vmatprep.subr.bf16.mxu1 %v9144_v32  ;;  %v432_v30 = vld [vmem:[#allocation2 + $0x678] sm:$0xff]  ;;  %v9197_v31 = vcombine.low %v419_v19, %v423_v20  ;;  %v9199_v32 = vcombine.low %v420_v21, %v424_v22  ;;  %v483_v19 = vld [vmem:[#allocation2 + $0x810] sm:$0xff] }
 0x2c9   : > { %8118 = vmatprep.mubr.bf16.mxu0 %v10377_v44  ;;  %8505 = vmatprep.mubr.bf16.mxu1 %v10377_v44  ;;  %v9208_v34 = vcombine.high %v428_v29, %v432_v30  ;;  %v447_v44 = vld [vmem:[#allocation2 + $0x6f0] sm:$0xff]  ;;  %v484_v21 = vld [vmem:[#allocation2 + $0x818] sm:$0xff] }
 0x2ca   : > { %v487_v20 = vld [vmem:[#allocation2 + $0x830] sm:$0xff]  ;;  %v488_v22 = vld [vmem:[#allocation2 + $0x838] sm:$0xff] }
 0x2cb   : > { %8089 = vmatpush1.bf16.msra.mxu0 %v9141_v38  ;;  %8476 = vmatpush1.bf16.msra.mxu1 %v9143_v39  ;;  %v440_v38 = vld [vmem:[#allocation2 + $0x6b8] sm:$0xff]  ;;  %v9205_v39 = vcombine.low %v427_v27, %v431_v28  ;;  %v491_v27 = vld [vmem:[#allocation2 + $0x850] sm:$0xff] }
 0x2cc   : > { %8090 = vmatprep.subr.bf16.mxu0 %v9150_v40  ;;  %8477 = vmatprep.subr.bf16.mxu1 %v9152_v41  ;;  %v9207_v40 = vcombine.low %v428_v29, %v432_v30  ;;  %v9214_v41 = vcombine.high %v435_v35, %v439_v36  ;;  %v9216_v42 = vcombine.high %v436_v37, %v440_v38  ;;  %v495_v28 = vld [vmem:[#allocation2 + $0x870] sm:$0xff]  ;;  %v492_v29 = vld [vmem:[#allocation2 + $0x858] sm:$0xff] }
 0x2cd   : > { %v496_v30 = vld [vmem:[#allocation2 + $0x878] sm:$0xff] }
 0x2cf   : > { %8091 = vmatpush1.bf16.msra.mxu0 %v9149_v47  ;;  %8478 = vmatpush1.bf16.msra.mxu1 %v9151_v48  ;;  %v9213_v47 = vcombine.low %v435_v35, %v439_v36  ;;  %v9215_v48 = vcombine.low %v436_v37, %v440_v38  ;;  %v499_v35 = vld [vmem:[#allocation2 + $0x890] sm:$0xff]  ;;  %v500_v38 = vld [vmem:[#allocation2 + $0x898] sm:$0xff] }
 0x2d0   : > { %8092 = vmatprep.subr.bf16.mxu0 %v9158_v49  ;;  %8479 = vmatprep.subr.bf16.mxu1 %v9160_v50  ;;  %v9222_v49 = vcombine.high %v443_v43, %v447_v44  ;;  %v9224_v50 = vcombine.high %v444_v45, %v448_v46  ;;  %v503_v36 = vld [vmem:[#allocation2 + $0x8b0] sm:$0xff] }
 0x2d1   : > { %v10378_v37 = vld [vmem:[%s10583_s20 + $0x8] ss:$72 sps:$4 sm:$0xff]  }
 0x2d3   : > { %8093 = vmatpush1.bf16.msra.mxu0 %v9157_v55  ;;  %8480 = vmatpush1.bf16.msra.mxu1 %v9159_v56  ;;  %v9221_v55 = vcombine.low %v443_v43, %v447_v44  ;;  %v9223_v56 = vcombine.low %v444_v45, %v448_v46  ;;  %v507_v44 = vld [vmem:[#allocation2 + $0x8d0] sm:$0xff] }
 0x2d4   : > { %8094 = vmatprep.subr.bf16.mxu0 %v9166_v57  ;;  %8481 = vmatprep.subr.bf16.mxu1 %v9168_v58  ;;  %v9230_v57 = vcombine.high %v451_v51, %v455_v52  ;;  %v9232_v58 = vcombine.high %v452_v53, %v456_v54  ;;  %v511_v45 = vld [vmem:[#allocation2 + $0x8f0] sm:$0xff] }
 0x2d5   : > { %v10379_v46 = vld [vmem:[%s10583_s20 + $0x14] ss:$72 sps:$4 sm:$0xff]  }
 0x2d7   : > { %8095 = vmatpush1.bf16.msra.mxu0 %v9165_v63  ;;  %8482 = vmatpush1.bf16.msra.mxu1 %v9167_v0  ;;  %v9229_v63 = vcombine.low %v451_v51, %v455_v52  ;;  %v9231_v0 = vcombine.low %v452_v53, %v456_v54  ;;  %v9286_v51 = vcombine.high %v507_v44, %v511_v45  ;;  %v515_v53 = vld [vmem:[#allocation2 + $0x910] sm:$0xff] }
 0x2d8   : > { %8096 = vmatprep.subr.bf16.mxu0 %v9174_v1  ;;  %8483 = vmatprep.subr.bf16.mxu1 %v9176_v2  ;;  %v9238_v1 = vcombine.high %v459_v59, %v463_v60  ;;  %v9240_v2 = vcombine.high %v460_v61, %v464_v62  ;;  %v519_v54 = vld [vmem:[#allocation2 + $0x930] sm:$0xff] }
 0x2db   : > { %8097 = vmatpush1.bf16.msra.mxu0 %v9173_v7  ;;  %8484 = vmatpush1.bf16.msra.mxu1 %v9175_v8  ;;  %v9237_v7 = vcombine.low %v459_v59, %v463_v60  ;;  %v9239_v8 = vcombine.low %v460_v61, %v464_v62  ;;  %v9294_v59 = vcombine.high %v515_v53, %v519_v54  ;;  %v523_v61 = vld [vmem:[#allocation2 + $0x950] sm:$0xff] }
 0x2dc   : > { %8098 = vmatprep.subr.bf16.mxu0 %v9182_v9  ;;  %8485 = vmatprep.subr.bf16.mxu1 %v9184_v10  ;;  %v9246_v9 = vcombine.high %v467_v3, %v471_v4  ;;  %v9248_v10 = vcombine.high %v468_v5, %v472_v6  ;;  %v527_v62 = vld [vmem:[#allocation2 + $0x970] sm:$0xff] }
 0x2df   : > { %8099 = vmatpush1.bf16.msra.mxu0 %v9181_v15  ;;  %8486 = vmatpush1.bf16.msra.mxu1 %v9183_v16  ;;  %v9245_v15 = vcombine.low %v467_v3, %v471_v4  ;;  %v9247_v16 = vcombine.low %v468_v5, %v472_v6  ;;  %v9302_v3 = vcombine.high %v523_v61, %v527_v62  ;;  %v531_v5 = vld [vmem:[#allocation2 + $0x990] sm:$0xff] }
 0x2e0   : > { %8100 = vmatprep.subr.bf16.mxu0 %v9190_v17  ;;  %8487 = vmatprep.subr.bf16.mxu1 %v9192_v18  ;;  %v9254_v17 = vcombine.high %v475_v11, %v479_v12  ;;  %v9256_v18 = vcombine.high %v476_v13, %v480_v14  ;;  %v535_v6 = vld [vmem:[#allocation2 + $0x9b0] sm:$0xff] }
 0x2e3   : > { %8101 = vmatpush1.bf16.msra.mxu0 %v9189_v23  ;;  %8488 = vmatpush1.bf16.msra.mxu1 %v9191_v24  ;;  %v9253_v23 = vcombine.low %v475_v11, %v479_v12  ;;  %v9255_v24 = vcombine.low %v476_v13, %v480_v14  ;;  %v9310_v11 = vcombine.high %v531_v5, %v535_v6  ;;  %v539_v13 = vld [vmem:[#allocation2 + $0x9d0] sm:$0xff] }
 0x2e4   : > { %8102 = vmatprep.subr.bf16.mxu0 %v9198_v25  ;;  %8489 = vmatprep.subr.bf16.mxu1 %v9200_v26  ;;  %v9262_v25 = vcombine.high %v483_v19, %v487_v20  ;;  %v9264_v26 = vcombine.high %v484_v21, %v488_v22  ;;  %v543_v14 = vld [vmem:[#allocation2 + $0x9f0] sm:$0xff] }
 0x2e7   : > { %8103 = vmatpush1.bf16.msra.mxu0 %v9197_v31  ;;  %8490 = vmatpush1.bf16.msra.mxu1 %v9199_v32  ;;  %v9261_v31 = vcombine.low %v483_v19, %v487_v20  ;;  %v9263_v32 = vcombine.low %v484_v21, %v488_v22  ;;  %v9318_v19 = vcombine.high %v539_v13, %v543_v14  ;;  %v547_v21 = vld [vmem:[#allocation2 + $0xa10] sm:$0xff] }
 0x2e8   : > { %8104 = vmatprep.subr.bf16.mxu0 %v9206_v33  ;;  %8491 = vmatprep.subr.bf16.mxu1 %v9208_v34  ;;  %v9270_v33 = vcombine.high %v491_v27, %v495_v28  ;;  %v9272_v34 = vcombine.high %v492_v29, %v496_v30  ;;  %v551_v22 = vld [vmem:[#allocation2 + $0xa30] sm:$0xff] }
 0x2eb   : > { %8105 = vmatpush1.bf16.msra.mxu0 %v9205_v39  ;;  %8492 = vmatpush1.bf16.msra.mxu1 %v9207_v40  ;;  %v504_v39 = vld [vmem:[#allocation2 + $0x8b8] sm:$0xff]  ;;  %v9269_v40 = vcombine.low %v491_v27, %v495_v28  ;;  %v9326_v27 = vcombine.high %v547_v21, %v551_v22 }
 0x2ec   : > { %8106 = vmatprep.subr.bf16.mxu0 %v9214_v41  ;;  %8493 = vmatprep.subr.bf16.mxu1 %v9216_v42  ;;  %v9271_v41 = vcombine.low %v492_v29, %v496_v30  ;;  %v9278_v42 = vcombine.high %v499_v35, %v503_v36  ;;  %v9280_v43 = vcombine.high %v500_v38, %v504_v39  ;;  %v555_v29 = vld [vmem:[#allocation2 + $0xa50] sm:$0xff] }
 0x2ed   : > { %v559_v30 = vld [vmem:[#allocation2 + $0xa70] sm:$0xff] }
 0x2ef   : > { %8107 = vmatpush1.bf16.msra.mxu0 %v9213_v47  ;;  %8494 = vmatpush1.bf16.msra.mxu1 %v9215_v48  ;;  %v508_v47 = vld [vmem:[#allocation2 + $0x8d8] sm:$0xff] }
 0x2f0   : > { %8108 = vmatprep.subr.bf16.mxu0 %v9222_v49  ;;  %8495 = vmatprep.subr.bf16.mxu1 %v9224_v50  ;;  %v512_v48 = vld [vmem:[#allocation2 + $0x8f8] sm:$0xff]  ;;  %v9277_v49 = vcombine.low %v499_v35, %v503_v36  ;;  %v9279_v50 = vcombine.low %v500_v38, %v504_v39  ;;  %v9334_v35 = vcombine.high %v555_v29, %v559_v30  ;;  %v567_v38 = vld [vmem:[#allocation2 + $0xab0] sm:$0xff] }
 0x2f1   : > { %v9288_v52 = vcombine.high %v508_v47, %v512_v48  ;;  %v564_v39 = vld [vmem:[#allocation2 + $0xa98] sm:$0xff] }
 0x2f3   : > { %8109 = vmatpush1.bf16.msra.mxu0 %v9221_v55  ;;  %8496 = vmatpush1.bf16.msra.mxu1 %v9223_v56  ;;  %v516_v55 = vld [vmem:[#allocation2 + $0x918] sm:$0xff] }
 0x2f4   : > { %8110 = vmatprep.subr.bf16.mxu0 %v9230_v57  ;;  %8497 = vmatprep.subr.bf16.mxu1 %v9232_v58  ;;  %v520_v56 = vld [vmem:[#allocation2 + $0x938] sm:$0xff]  ;;  %v9285_v57 = vcombine.low %v507_v44, %v511_v45  ;;  %v9287_v58 = vcombine.low %v508_v47, %v512_v48  ;;  %v571_v45 = vld [vmem:[#allocation2 + $0xad0] sm:$0xff] }
 0x2f5   : > { %v9296_v60 = vcombine.high %v516_v55, %v520_v56  ;;  %v572_v47 = vld [vmem:[#allocation2 + $0xad8] sm:$0xff] }
 0x2f6   : > { %v576_v48 = vld [vmem:[#allocation2 + $0xaf8] sm:$0xff] }
 0x2f7   : > { %8111 = vmatpush1.bf16.msra.mxu0 %v9229_v63  ;;  %8498 = vmatpush1.bf16.msra.mxu1 %v9231_v0  ;;  %v524_v63 = vld [vmem:[#allocation2 + $0x958] sm:$0xff] }
 0x2f8   : > { %8112 = vmatprep.subr.bf16.mxu0 %v9238_v1  ;;  %8499 = vmatprep.subr.bf16.mxu1 %v9240_v2  ;;  %v528_v0 = vld [vmem:[#allocation2 + $0x978] sm:$0xff]  ;;  %v9293_v1 = vcombine.low %v515_v53, %v519_v54  ;;  %v9295_v2 = vcombine.low %v516_v55, %v520_v56  ;;  %v579_v53 = vld [vmem:[#allocation2 + $0xb10] sm:$0xff] }
 0x2f9   : > { %v9304_v4 = vcombine.high %v524_v63, %v528_v0  ;;  %v583_v54 = vld [vmem:[#allocation2 + $0xb30] sm:$0xff]  ;;  %v580_v55 = vld [vmem:[#allocation2 + $0xb18] sm:$0xff] }
 0x2fa   : > { %v584_v56 = vld [vmem:[#allocation2 + $0xb38] sm:$0xff] }
 0x2fb   : > { %8113 = vmatpush1.bf16.msra.mxu0 %v9237_v7  ;;  %8500 = vmatpush1.bf16.msra.mxu1 %v9239_v8  ;;  %v532_v7 = vld [vmem:[#allocation2 + $0x998] sm:$0xff] }
 0x2fc   : > { %8114 = vmatprep.subr.bf16.mxu0 %v9246_v9  ;;  %8501 = vmatprep.subr.bf16.mxu1 %v9248_v10  ;;  %v536_v8 = vld [vmem:[#allocation2 + $0x9b8] sm:$0xff]  ;;  %v9301_v9 = vcombine.low %v523_v61, %v527_v62  ;;  %v9303_v10 = vcombine.low %v524_v63, %v528_v0  ;;  %v587_v61 = vld [vmem:[#allocation2 + $0xb50] sm:$0xff] }
 0x2fd   : > { %v9312_v12 = vcombine.high %v532_v7, %v536_v8  ;;  %v591_v62 = vld [vmem:[#allocation2 + $0xb70] sm:$0xff]  ;;  %v588_v63 = vld [vmem:[#allocation2 + $0xb58] sm:$0xff] }
 0x2fe   : > { %v592_v0 = vld [vmem:[#allocation2 + $0xb78] sm:$0xff] }
 0x2ff   : > { %8115 = vmatpush1.bf16.msra.mxu0 %v9245_v15  ;;  %8502 = vmatpush1.bf16.msra.mxu1 %v9247_v16  ;;  %v540_v15 = vld [vmem:[#allocation2 + $0x9d8] sm:$0xff] }
 0x300   : > { %8116 = vmatprep.subr.bf16.mxu0 %v9254_v17  ;;  %8503 = vmatprep.subr.bf16.mxu1 %v9256_v18  ;;  %v544_v16 = vld [vmem:[#allocation2 + $0x9f8] sm:$0xff]  ;;  %v9309_v17 = vcombine.low %v531_v5, %v535_v6  ;;  %v9311_v18 = vcombine.low %v532_v7, %v536_v8  ;;  %v595_v5 = vld [vmem:[#allocation2 + $0xb90] sm:$0xff] }
 0x301   : > { %v9320_v20 = vcombine.high %v540_v15, %v544_v16  ;;  %v599_v6 = vld [vmem:[#allocation2 + $0xbb0] sm:$0xff]  ;;  %v596_v7 = vld [vmem:[#allocation2 + $0xb98] sm:$0xff] }
 0x302   : > { %v600_v8 = vld [vmem:[#allocation2 + $0xbb8] sm:$0xff] }
 0x303   : > { %8117 = vmatpush1.bf16.msra.mxu0 %v9253_v23  ;;  %8504 = vmatpush1.bf16.msra.mxu1 %v9255_v24  ;;  %v548_v23 = vld [vmem:[#allocation2 + $0xa18] sm:$0xff] }
 0x304   : > { %8129 = vmatprep.subr.bf16.mxu0 %v9262_v25  ;;  %8516 = vmatprep.subr.bf16.mxu1 %v9264_v26  ;;  %v552_v24 = vld [vmem:[#allocation2 + $0xa38] sm:$0xff]  ;;  %v9317_v25 = vcombine.low %v539_v13, %v543_v14  ;;  %v9319_v26 = vcombine.low %v540_v15, %v544_v16  ;;  %v603_v13 = vld [vmem:[#allocation2 + $0xbd0] sm:$0xff] }
 0x305   : > { %v9328_v28 = vcombine.high %v548_v23, %v552_v24  ;;  %v607_v14 = vld [vmem:[#allocation2 + $0xbf0] sm:$0xff]  ;;  %v604_v15 = vld [vmem:[#allocation2 + $0xbd8] sm:$0xff] }
 0x306   : > { %8119 = vmatmul.mubr.bf16.vlgmr.msra.gmra.mrb[4].mxu0 %v10378_v37  ;;  %8506 = vmatmul.mubr.bf16.vlgmr.msra.gmra.mrb[4].mxu1 %v10378_v37  ;;  %v563_v37 = vld [vmem:[#allocation2 + $0xa90] sm:$0xff]  ;;  %v608_v16 = vld [vmem:[#allocation2 + $0xbf8] sm:$0xff] }
 0x307   : > { %8130 = vmatpush1.bf16.msra.mxu0 %v9261_v31  ;;  %8517 = vmatpush1.bf16.msra.mxu1 %v9263_v32  ;;  %v556_v31 = vld [vmem:[#allocation2 + $0xa58] sm:$0xff] }
 0x308   : > { %8131 = vmatprep.subr.bf16.mxu0 %v9270_v33  ;;  %8518 = vmatprep.subr.bf16.mxu1 %v9272_v34  ;;  %v560_v32 = vld [vmem:[#allocation2 + $0xa78] sm:$0xff]  ;;  %v9325_v33 = vcombine.low %v547_v21, %v551_v22  ;;  %v9327_v34 = vcombine.low %v548_v23, %v552_v24  ;;  %v611_v21 = vld [vmem:[#allocation2 + $0xc10] sm:$0xff] }
 0x309   : > { %8161 = vmatprep.mubr.bf16.mxu0 %v10379_v46  ;;  %8548 = vmatprep.mubr.bf16.mxu1 %v10379_v46  ;;  %v9336_v36 = vcombine.high %v556_v31, %v560_v32  ;;  %v575_v46 = vld [vmem:[#allocation2 + $0xaf0] sm:$0xff]  ;;  %v612_v23 = vld [vmem:[#allocation2 + $0xc18] sm:$0xff] }
 0x30a   : > { %v615_v22 = vld [vmem:[#allocation2 + $0xc30] sm:$0xff]  ;;  %v616_v24 = vld [vmem:[#allocation2 + $0xc38] sm:$0xff] }
 0x30b   : > { %8132 = vmatpush1.bf16.msra.mxu0 %v9269_v40  ;;  %8519 = vmatpush1.bf16.msra.mxu1 %v9271_v41  ;;  %v568_v40 = vld [vmem:[#allocation2 + $0xab8] sm:$0xff]  ;;  %v9333_v41 = vcombine.low %v555_v29, %v559_v30  ;;  %v619_v29 = vld [vmem:[#allocation2 + $0xc50] sm:$0xff] }
 0x30c   : > { %8133 = vmatprep.subr.bf16.mxu0 %v9278_v42  ;;  %8520 = vmatprep.subr.bf16.mxu1 %v9280_v43  ;;  %v9335_v42 = vcombine.low %v556_v31, %v560_v32  ;;  %v9342_v43 = vcombine.high %v563_v37, %v567_v38  ;;  %v9344_v44 = vcombine.high %v564_v39, %v568_v40  ;;  %v623_v30 = vld [vmem:[#allocation2 + $0xc70] sm:$0xff]  ;;  %v620_v31 = vld [vmem:[#allocation2 + $0xc58] sm:$0xff] }
 0x30d   : > { %v624_v32 = vld [vmem:[#allocation2 + $0xc78] sm:$0xff] }
 0x30f   : > { %8134 = vmatpush1.bf16.msra.mxu0 %v9277_v49  ;;  %8521 = vmatpush1.bf16.msra.mxu1 %v9279_v50  ;;  %v9341_v49 = vcombine.low %v563_v37, %v567_v38  ;;  %v9343_v50 = vcombine.low %v564_v39, %v568_v40  ;;  %v627_v37 = vld [vmem:[#allocation2 + $0xc90] sm:$0xff]  ;;  %v628_v40 = vld [vmem:[#allocation2 + $0xc98] sm:$0xff] }
 0x310   : > { %8135 = vmatprep.subr.bf16.mxu0 %v9286_v51  ;;  %8522 = vmatprep.subr.bf16.mxu1 %v9288_v52  ;;  %v9350_v51 = vcombine.high %v571_v45, %v575_v46  ;;  %v9352_v52 = vcombine.high %v572_v47, %v576_v48  ;;  %v631_v38 = vld [vmem:[#allocation2 + $0xcb0] sm:$0xff] }
 0x311   : > { %v10380_v39 = vld [vmem:[%s10583_s20 + $0x10] ss:$72 sps:$4 sm:$0xff]  }
 0x313   : > { %8136 = vmatpush1.bf16.msra.mxu0 %v9285_v57  ;;  %8523 = vmatpush1.bf16.msra.mxu1 %v9287_v58  ;;  %v9349_v57 = vcombine.low %v571_v45, %v575_v46  ;;  %v9351_v58 = vcombine.low %v572_v47, %v576_v48  ;;  %v635_v46 = vld [vmem:[#allocation2 + $0xcd0] sm:$0xff]  ;;  %v10381_v48 = vld [vmem:[%s10583_s20 + $0x1c] ss:$72 sps:$4 sm:$0xff]  }
 0x314   : > { %8137 = vmatprep.subr.bf16.mxu0 %v9294_v59  ;;  %8524 = vmatprep.subr.bf16.mxu1 %v9296_v60  ;;  %v9358_v59 = vcombine.high %v579_v53, %v583_v54  ;;  %v9360_v60 = vcombine.high %v580_v55, %v584_v56  ;;  %v639_v47 = vld [vmem:[#allocation2 + $0xcf0] sm:$0xff] }
 0x317   : > { %8138 = vmatpush1.bf16.msra.mxu0 %v9293_v1  ;;  %8525 = vmatpush1.bf16.msra.mxu1 %v9295_v2  ;;  %v9357_v1 = vcombine.low %v579_v53, %v583_v54  ;;  %v9359_v2 = vcombine.low %v580_v55, %v584_v56  ;;  %v9414_v54 = vcombine.high %v635_v46, %v639_v47  ;;  %v643_v56 = vld [vmem:[#allocation2 + $0xd10] sm:$0xff] }
 0x318   : > { %8139 = vmatprep.subr.bf16.mxu0 %v9302_v3  ;;  %8526 = vmatprep.subr.bf16.mxu1 %v9304_v4  ;;  %v9366_v3 = vcombine.high %v587_v61, %v591_v62  ;;  %v9368_v4 = vcombine.high %v588_v63, %v592_v0 }
 0x31b   : > { %8140 = vmatpush1.bf16.msra.mxu0 %v9301_v9  ;;  %8527 = vmatpush1.bf16.msra.mxu1 %v9303_v10  ;;  %v9365_v9 = vcombine.low %v587_v61, %v591_v62  ;;  %v9367_v10 = vcombine.low %v588_v63, %v592_v0  ;;  %v9413_v61 = vcombine.low %v635_v46, %v639_v47 }
 0x31c   : > { %8141 = vmatprep.subr.bf16.mxu0 %v9310_v11  ;;  %8528 = vmatprep.subr.bf16.mxu1 %v9312_v12  ;;  %v9374_v11 = vcombine.high %v595_v5, %v599_v6  ;;  %v9376_v12 = vcombine.high %v596_v7, %v600_v8 }
 0x31f   : > { %8142 = vmatpush1.bf16.msra.mxu0 %v9309_v17  ;;  %8529 = vmatpush1.bf16.msra.mxu1 %v9311_v18  ;;  %v9373_v17 = vcombine.low %v595_v5, %v599_v6  ;;  %v9375_v18 = vcombine.low %v596_v7, %v600_v8  ;;  %v656_v5 = vld [vmem:[#allocation2 + $0xd78] sm:$0xff]  ;;  %v1377_v7 = vld [vmem:[#allocation4] sm:$0xff] }
 0x320   : > { %8143 = vmatprep.subr.bf16.mxu0 %v9318_v19  ;;  %8530 = vmatprep.subr.bf16.mxu1 %v9320_v20  ;;  %v9382_v19 = vcombine.high %v603_v13, %v607_v14  ;;  %v9384_v20 = vcombine.high %v604_v15, %v608_v16 }
 0x323   : > { %8144 = vmatpush1.bf16.msra.mxu0 %v9317_v25  ;;  %8531 = vmatpush1.bf16.msra.mxu1 %v9319_v26  ;;  %v9381_v25 = vcombine.low %v603_v13, %v607_v14  ;;  %v9383_v26 = vcombine.low %v604_v15, %v608_v16  ;;  %v659_v14 = vld [vmem:[#allocation2 + $0xd90] sm:$0xff] }
 0x324   : > { %8145 = vmatprep.subr.bf16.mxu0 %v9326_v27  ;;  %8532 = vmatprep.subr.bf16.mxu1 %v9328_v28  ;;  %v9390_v27 = vcombine.high %v611_v21, %v615_v22  ;;  %v9392_v28 = vcombine.high %v612_v23, %v616_v24  ;;  %v663_v15 = vld [vmem:[#allocation2 + $0xdb0] sm:$0xff] }
 0x327   : > { %8146 = vmatpush1.bf16.msra.mxu0 %v9325_v33  ;;  %8533 = vmatpush1.bf16.msra.mxu1 %v9327_v34  ;;  %v9389_v33 = vcombine.low %v611_v21, %v615_v22  ;;  %v9391_v34 = vcombine.low %v612_v23, %v616_v24  ;;  %v9438_v24 = vcombine.high %v659_v14, %v663_v15 }
 0x328   : > { %8147 = vmatprep.subr.bf16.mxu0 %v9334_v35  ;;  %8534 = vmatprep.subr.bf16.mxu1 %v9336_v36  ;;  %v9398_v35 = vcombine.high %v619_v29, %v623_v30  ;;  %v9400_v36 = vcombine.high %v620_v31, %v624_v32 }
 0x32b   : > { %8148 = vmatpush1.bf16.msra.mxu0 %v9333_v41  ;;  %8535 = vmatpush1.bf16.msra.mxu1 %v9335_v42  ;;  %v632_v41 = vld [vmem:[#allocation2 + $0xcb8] sm:$0xff]  ;;  %v9397_v42 = vcombine.low %v619_v29, %v623_v30 }
 0x32c   : > { %8149 = vmatprep.subr.bf16.mxu0 %v9342_v43  ;;  %8536 = vmatprep.subr.bf16.mxu1 %v9344_v44  ;;  %v9399_v43 = vcombine.low %v620_v31, %v624_v32  ;;  %v9406_v44 = vcombine.high %v627_v37, %v631_v38  ;;  %v9408_v45 = vcombine.high %v628_v40, %v632_v41  ;;  %v668_v29 = vld [vmem:[#allocation2 + $0xdd8] sm:$0xff] }
 0x32d   : > { %v9407_v53 = vcombine.low %v628_v40, %v632_v41  ;;  %v672_v30 = vld [vmem:[#allocation2 + $0xdf8] sm:$0xff] }
 0x32e   : > { %v9448_v46 = vcombine.high %v668_v29, %v672_v30 }
 0x32f   : > { %8150 = vmatpush1.bf16.msra.mxu0 %v9341_v49  ;;  %8537 = vmatpush1.bf16.msra.mxu1 %v9343_v50  ;;  %v636_v49 = vld [vmem:[#allocation2 + $0xcd8] sm:$0xff] }
 0x330   : > { %8151 = vmatprep.subr.bf16.mxu0 %v9350_v51  ;;  %8538 = vmatprep.subr.bf16.mxu1 %v9352_v52  ;;  %v640_v50 = vld [vmem:[#allocation2 + $0xcf8] sm:$0xff]  ;;  %v1379_v51 = vlaneseq  ;;  %v9405_v52 = vcombine.low %v627_v37, %v631_v38 }
 0x331   : > { %v9416_v55 = vcombine.high %v636_v49, %v640_v50  ;;  %v9415_v62 = vcombine.low %v636_v49, %v640_v50 }
 0x333   : > { %8152 = vmatpush1.bf16.msra.mxu0 %v9349_v57  ;;  %8539 = vmatpush1.bf16.msra.mxu1 %v9351_v58  ;;  %v647_v57 = vld [vmem:[#allocation2 + $0xd30] sm:$0xff]  ;;  %v644_v58 = vld [vmem:[#allocation2 + $0xd18] sm:$0xff] }
 0x334   : > { %8153 = vmatprep.subr.bf16.mxu0 %v9358_v59  ;;  %8540 = vmatprep.subr.bf16.mxu1 %v9360_v60  ;;  %v648_v59 = vld [vmem:[#allocation2 + $0xd38] sm:$0xff]  ;;  %v10610_v60 = vshrl.u32 %v1379_v51, 7  ;;  %v9422_v63 = vcombine.high %v643_v56, %v647_v57  ;;  %v9421_v6 = vcombine.low %v643_v56, %v647_v57 }
 0x335   : > { %v9424_v0 = vcombine.high %v644_v58, %v648_v59  ;;  %v676_v57 = vld [vmem:[#allocation2 + $0xe18] sm:$0xff] }
 0x336   : > { %v1389_v8 = vsub.s32 2, %v10610_v60 }
 0x337   : > { %8154 = vmatpush1.bf16.msra.mxu0 %v9357_v1  ;;  %8541 = vmatpush1.bf16.msra.mxu1 %v9359_v2  ;;  %v651_v1 = vld [vmem:[#allocation2 + $0xd50] sm:$0xff] }
 0x338   : > { %8155 = vmatprep.subr.bf16.mxu0 %v9366_v3  ;;  %8542 = vmatprep.subr.bf16.mxu1 %v9368_v4  ;;  %v655_v2 = vld [vmem:[#allocation2 + $0xd70] sm:$0xff]  ;;  %v1381_v3 = vsub.s32 0, %v10610_v60  ;;  %v652_v4 = vld [vmem:[#allocation2 + $0xd58] sm:$0xff] }
 0x339   : > { %v9432_v13 = vcombine.high %v652_v4, %v656_v5  ;;  %v9429_v21 = vcombine.low %v651_v1, %v655_v2  ;;  %v9431_v23 = vcombine.low %v652_v4, %v656_v5 }
 0x33a   : > { %v1382_v16 = vrot.slane %v1377_v7, %v1381_v3 }
 0x33b   : > { %8156 = vmatpush1.bf16.msra.mxu0 %v9365_v9  ;;  %8543 = vmatpush1.bf16.msra.mxu1 %v9367_v10  ;;  %v1385_v9 = vsub.s32 1, %v10610_v60  ;;  %v9423_v10 = vcombine.low %v644_v58, %v648_v59  ;;  %v680_v58 = vld [vmem:[#allocation2 + $0xe38] sm:$0xff] }
 0x33c   : > { %8157 = vmatprep.subr.bf16.mxu0 %v9374_v11  ;;  %8544 = vmatprep.subr.bf16.mxu1 %v9376_v12  ;;  %v1393_v11 = vsub.s32 3, %v10610_v60  ;;  %v9430_v12 = vcombine.high %v651_v1, %v655_v2  ;;  %v9447_v2 = vcombine.low %v668_v29, %v672_v30  ;;  %v9456_v5 = vcombine.high %v676_v57, %v680_v58 }
 0x33e   : > { %v1394_v22 = vrot.slane %v1377_v7, %v1393_v11 }
 0x33f   : > { %8158 = vmatpush1.bf16.msra.mxu0 %v9373_v17  ;;  %8545 = vmatpush1.bf16.msra.mxu1 %v9375_v18  ;;  %v660_v17 = vld [vmem:[#allocation2 + $0xd98] sm:$0xff] }
 0x340   : > { %8159 = vmatprep.subr.bf16.mxu0 %v9382_v19  ;;  %8546 = vmatprep.subr.bf16.mxu1 %v9384_v20  ;;  %v664_v18 = vld [vmem:[#allocation2 + $0xdb8] sm:$0xff]  ;;  %v1390_v19 = vrot.slane %v1377_v7, %v1389_v8  ;;  %v1386_v20 = vrot.slane %v1377_v7, %v1385_v9  ;;  %v687_v7 = vld [vmem:[#allocation2 + $0xe70] sm:$0xff] }
 0x341   : > { %v684_v9 = vld [vmem:[#allocation2 + $0xe58] sm:$0xff] }
 0x343   : > { %8160 = vmatpush1.bf16.msra.mxu0 %v9381_v25  ;;  %8547 = vmatpush1.bf16.msra.mxu1 %v9383_v26  ;;  %v10616_v25 = vld [vmem:[#allocation2 + $0xdd0] sm:$0xff] }
 0x344   : > { %8172 = vmatprep.subr.bf16.mxu0 %v9390_v27  ;;  %8559 = vmatprep.subr.bf16.mxu1 %v9392_v28  ;;  %v671_v26 = vld [vmem:[#allocation2 + $0xdf0] sm:$0xff]  ;;  %v9440_v28 = vcombine.high %v660_v17, %v664_v18 }
 0x345   : > { %v9446_v40 = vcombine.high %v10616_v25, %v671_v26 }
 0x346   : > { %8162 = vmatmul.mubr.bf16.vlgmr.msra.gmra.mrb[4].mxu0 %v10380_v39  ;;  %8549 = vmatmul.mubr.bf16.vlgmr.msra.gmra.mrb[4].mxu1 %v10380_v39  ;;  %v9439_v39 = vcombine.low %v660_v17, %v664_v18  ;;  %v692_v17 = vld [vmem:[#allocation2 + $0xe98] sm:$0xff] }
 0x347   : > { %8173 = vmatpush1.bf16.msra.mxu0 %v9389_v33  ;;  %8560 = vmatpush1.bf16.msra.mxu1 %v9391_v34  ;;  %v9437_v34 = vcombine.low %v659_v14, %v663_v15  ;;  %v691_v15 = vld [vmem:[#allocation2 + $0xe90] sm:$0xff]  ;;  %v696_v18 = vld [vmem:[#allocation2 + $0xeb8] sm:$0xff] }
 0x348   : > { %8174 = vmatprep.subr.bf16.mxu0 %v9398_v35  ;;  %8561 = vmatprep.subr.bf16.mxu1 %v9400_v36 }
 0x349   : > { %8204 = vmatprep.mubr.bf16.mxu0 %v10381_v48  ;;  %8591 = vmatprep.mubr.bf16.mxu1 %v10381_v48 }
 0x34b   : > { %8175 = vmatpush1.bf16.msra.mxu0 %v9397_v42  ;;  %8562 = vmatpush1.bf16.msra.mxu1 %v9399_v43 }
 0x34c   : > { %8176 = vmatprep.subr.bf16.mxu0 %v9406_v44  ;;  %8563 = vmatprep.subr.bf16.mxu1 %v9408_v45 }
 0x34f   : > { %8177 = vmatpush1.bf16.msra.mxu0 %v9405_v52  ;;  %8564 = vmatpush1.bf16.msra.mxu1 %v9407_v53  ;;  %v675_v52 = vld [vmem:[#allocation2 + $0xe10] sm:$0xff] }
 0x350   : > { %8178 = vmatprep.subr.bf16.mxu0 %v9414_v54  ;;  %8565 = vmatprep.subr.bf16.mxu1 %v9416_v55  ;;  %v679_v53 = vld [vmem:[#allocation2 + $0xe30] sm:$0xff] }
 0x351   : > { %v9454_v3 = vcombine.high %v675_v52, %v679_v53  ;;  %v9453_v11 = vcombine.low %v675_v52, %v679_v53 }
 0x353   : > { %8179 = vmatpush1.bf16.msra.mxu0 %v9413_v61  ;;  %8566 = vmatpush1.bf16.msra.mxu1 %v9415_v62 }
 0x354   : > { %8180 = vmatprep.subr.bf16.mxu0 %v9422_v63  ;;  %8567 = vmatprep.subr.bf16.mxu1 %v9424_v0  ;;  %v9445_v63 = vcombine.low %v10616_v25, %v671_v26  ;;  %v700_v25 = vld [vmem:[#allocation2 + $0xed8] sm:$0xff] }
 0x355   : > { %v704_v26 = vld [vmem:[#allocation2 + $0xef8] sm:$0xff] }
 0x356   : > { %v9480_v30 = vcombine.high %v700_v25, %v704_v26 }
 0x357   : > { %8181 = vmatpush1.bf16.msra.mxu0 %v9421_v6  ;;  %8568 = vmatpush1.bf16.msra.mxu1 %v9423_v10  ;;  %v683_v6 = vld [vmem:[#allocation2 + $0xe50] sm:$0xff]  ;;  %v688_v10 = vld [vmem:[#allocation2 + $0xe78] sm:$0xff] }
 0x358   : > { %8182 = vmatprep.subr.bf16.mxu0 %v9430_v12  ;;  %8569 = vmatprep.subr.bf16.mxu1 %v9432_v13  ;;  %v9455_v12 = vcombine.low %v676_v57, %v680_v58  ;;  %v9462_v13 = vcombine.high %v683_v6, %v687_v7  ;;  %v9464_v14 = vcombine.high %v684_v9, %v688_v10  ;;  %v732_v57 = vld [vmem:[#allocation2 + $0xfd8] sm:$0xff] }
 0x359   : > { %v7647_v27 = vpop.f32.mrb[0].mxu0  ;;  %v8034_v32 = vpop.f32.mrb[0].mxu1  ;;  %v736_v58 = vld [vmem:[#allocation2 + $0xff8] sm:$0xff] }
 0x35a   : > { %v10172_v31 = vadd.f32 %v7647_v27, %v1382_v16  ;;  %v7649_v33 = vpop.f32.mrb[1].mxu0  ;;  %v10176_v35 = vadd.f32 %v8034_v32, %v1390_v19  ;;  %v8036_v37 = vpop.f32.mrb[1].mxu1  ;;  %v711_v32 = vld [vmem:[#allocation2 + $0xf30] sm:$0xff] }
 0x35b   : > { %v10173_v36 = vadd.f32 %v7649_v33, %v1386_v20  ;;  %v7651_v38 = vpop.f32.mrb[2].mxu0  ;;  %8183 = vmatpush1.bf16.msra.mxu0 %v9429_v21  ;;  %v10177_v42 = vadd.f32 %v8036_v37, %v1394_v22  ;;  %v8038_v44 = vpop.f32.mrb[2].mxu1  ;;  %8570 = vmatpush1.bf16.msra.mxu1 %v9431_v23  ;;  %v699_v23 = vld [vmem:[#allocation2 + $0xed0] sm:$0xff]  ;;  %v708_v33 = vld [vmem:[#allocation2 + $0xf18] sm:$0xff] }
 0x35c   : > { %v8817_v41 = vmax.f32 %v10172_v31, 0.0  ;;  %v10174_v43 = vadd.f32 %v7651_v38, %v1382_v16  ;;  %v7653_v45 = vpop.f32.mrb[3].mxu0  ;;  %8184 = vmatprep.subr.bf16.mxu0 %v9438_v24  ;;  %v8819_v47 = vmax.f32 %v10176_v35, 0.0  ;;  %v10178_v49 = vadd.f32 %v8038_v44, %v1390_v19  ;;  %v8040_v51 = vpop.f32.mrb[3].mxu1  ;;  %8571 = vmatprep.subr.bf16.mxu1 %v9440_v28  ;;  %v695_v16 = vld [vmem:[#allocation2 + $0xeb0] sm:$0xff] }
 0x35d   : > { %v8818_v48 = vmax.f32 %v10173_v36, 0.0  ;;  %v10175_v50 = vadd.f32 %v7653_v45, %v1386_v20  ;;  %v8820_v54 = vmax.f32 %v10177_v42, 0.0  ;;  %v10179_v56 = vadd.f32 %v8040_v51, %v1394_v22  ;;  %v703_v24 = vld [vmem:[#allocation2 + $0xef0] sm:$0xff]  ;;  %v720_v42 = vld [vmem:[#allocation2 + $0xf78] sm:$0xff] }
 0x35e   : > { %v8825_v55 = vmax.f32 %v10174_v43, 0.0  ;;  %v8827_v61 = vmax.f32 %v10178_v49, 0.0  ;;  %v9461_v19 = vcombine.low %v683_v6, %v687_v7  ;;  %v9463_v20 = vcombine.low %v684_v9, %v688_v10  ;;  %v707_v31 = vld [vmem:[#allocation2 + $0xf10] sm:$0xff]  ;;  %v724_v49 = vld [vmem:[#allocation2 + $0xf98] sm:$0xff] }
 0x35f   : > { %v10164_v59 = vpack.c.bf16 %v8818_v48, %v8817_v41  ;;  %v8826_v62 = vmax.f32 %v10175_v50, 0.0  ;;  %8185 = vmatpush1.bf16.msra.mxu0 %v9437_v34  ;;  %v10165_v0 = vpack.c.bf16 %v8820_v54, %v8819_v47  ;;  %v8828_v1 = vmax.f32 %v10179_v56, 0.0  ;;  %8572 = vmatpush1.bf16.msra.mxu1 %v9439_v39  ;;  %v712_v34 = vld [vmem:[#allocation2 + $0xf38] sm:$0xff]  ;;  %v715_v39 = vld [vmem:[#allocation2 + $0xf50] sm:$0xff] }
 0x360   : > { %8186 = vmatprep.subr.bf16.mxu0 %v9446_v40  ;;  %8573 = vmatprep.subr.bf16.mxu1 %v9448_v46  ;;  %v9470_v21 = vcombine.high %v691_v15, %v695_v16  ;;  %v9472_v22 = vcombine.high %v692_v17, %v696_v18  ;;  %v9469_v27 = vcombine.low %v691_v15, %v695_v16  ;;  %v719_v40 = vld [vmem:[#allocation2 + $0xf70] sm:$0xff]  ;;  %v716_v41 = vld [vmem:[#allocation2 + $0xf58] sm:$0xff] }
 0x361   : > { %8881 = vst [vmem:[%s10623_s25] sm:$0xff] %v10164_v59  ;;  %v10168_v4 = vpack.c.bf16 %v8826_v62, %v8825_v55  ;;  %8882 = vst [vmem:[%s10623_s25 + $0x8] sm:$0xff] %v10165_v0  ;;  %v10169_v8 = vpack.c.bf16 %v8828_v1, %v8827_v61  ;;  %v9471_v28 = vcombine.low %v692_v17, %v696_v18  ;;  %v723_v47 = vld [vmem:[#allocation2 + $0xf90] sm:$0xff]  ;;  %v728_v50 = vld [vmem:[#allocation2 + $0xfb8] sm:$0xff] }
 0x362   : > { %v9478_v29 = vcombine.high %v699_v23, %v703_v24  ;;  %v9477_v35 = vcombine.low %v699_v23, %v703_v24  ;;  %v9479_v36 = vcombine.low %v700_v25, %v704_v26  ;;  %v9486_v37 = vcombine.high %v707_v31, %v711_v32  ;;  %v727_v48 = vld [vmem:[#allocation2 + $0xfb0] sm:$0xff]  ;;  %v748_v10 = vld [vmem:[#allocation2 + $0x1058] sm:$0xff] }
 0x363   : > { %8885 = vst [vmem:[%s10623_s25 + $0x20] sm:$0xff] %v10168_v4  ;;  %8187 = vmatpush1.bf16.msra.mxu0 %v9445_v63  ;;  %8886 = vst [vmem:[%s10623_s25 + $0x28] sm:$0xff] %v10169_v8  ;;  %8574 = vmatpush1.bf16.msra.mxu1 %v9447_v2  ;;  %v9488_v38 = vcombine.high %v708_v33, %v712_v34  ;;  %v9485_v43 = vcombine.low %v707_v31, %v711_v32  ;;  %v731_v55 = vld [vmem:[#allocation2 + $0xfd0] sm:$0xff]  ;;  %v740_v2 = vld [vmem:[#allocation2 + $0x1018] sm:$0xff] }
 0x364   : > { %8188 = vmatprep.subr.bf16.mxu0 %v9454_v3  ;;  %8575 = vmatprep.subr.bf16.mxu1 %v9456_v5  ;;  %v9487_v44 = vcombine.low %v708_v33, %v712_v34  ;;  %v9494_v45 = vcombine.high %v715_v39, %v719_v40  ;;  %v9496_v46 = vcombine.high %v716_v41, %v720_v42  ;;  %v735_v56 = vld [vmem:[#allocation2 + $0xff0] sm:$0xff]  ;;  %v744_v3 = vld [vmem:[#allocation2 + $0x1038] sm:$0xff] }
 0x365   : > { %v9493_v51 = vcombine.low %v715_v39, %v719_v40  ;;  %v9495_v52 = vcombine.low %v716_v41, %v720_v42  ;;  %v9502_v53 = vcombine.high %v723_v47, %v727_v48  ;;  %v9504_v54 = vcombine.high %v724_v49, %v728_v50  ;;  %v739_v0 = vld [vmem:[#allocation2 + $0x1010] sm:$0xff]  ;;  %v10382_v18 = vld [vmem:[%s10583_s20 + $0x18] ss:$72 sps:$4 sm:$0xff]  }
 0x366   : > { %v9501_v59 = vcombine.low %v723_v47, %v727_v48  ;;  %v9503_v61 = vcombine.low %v724_v49, %v728_v50  ;;  %v9510_v62 = vcombine.high %v731_v55, %v735_v56  ;;  %v9512_v63 = vcombine.high %v732_v57, %v736_v58  ;;  %v743_v1 = vld [vmem:[#allocation2 + $0x1030] sm:$0xff] }
 0x367   : > { %8189 = vmatpush1.bf16.msra.mxu0 %v9453_v11  ;;  %8576 = vmatpush1.bf16.msra.mxu1 %v9455_v12  ;;  %v9509_v4 = vcombine.low %v731_v55, %v735_v56  ;;  %v9511_v5 = vcombine.low %v732_v57, %v736_v58  ;;  %v9518_v6 = vcombine.high %v739_v0, %v743_v1  ;;  %v747_v8 = vld [vmem:[#allocation2 + $0x1050] sm:$0xff]  ;;  %v752_v11 = vld [vmem:[#allocation2 + $0x1078] sm:$0xff] }
 0x368   : > { %8190 = vmatprep.subr.bf16.mxu0 %v9462_v13  ;;  %8577 = vmatprep.subr.bf16.mxu1 %v9464_v14  ;;  %v9520_v7 = vcombine.high %v740_v2, %v744_v3  ;;  %v751_v9 = vld [vmem:[#allocation2 + $0x1070] sm:$0xff]  ;;  %v9517_v12 = vcombine.low %v739_v0, %v743_v1  ;;  %v9519_v13 = vcombine.low %v740_v2, %v744_v3 }
 0x369   : > { %v9526_v14 = vcombine.high %v747_v8, %v751_v9  ;;  %v9528_v15 = vcombine.high %v748_v10, %v752_v11  ;;  %v755_v16 = vld [vmem:[#allocation2 + $0x1090] sm:$0xff] }
 0x36a   : > { %v759_v17 = vld [vmem:[#allocation2 + $0x10b0] sm:$0xff] }
 0x36b   : > { %8191 = vmatpush1.bf16.msra.mxu0 %v9461_v19  ;;  %8578 = vmatpush1.bf16.msra.mxu1 %v9463_v20  ;;  %v756_v19 = vld [vmem:[#allocation2 + $0x1098] sm:$0xff]  ;;  %v9534_v23 = vcombine.high %v755_v16, %v759_v17  ;;  %v763_v25 = vld [vmem:[#allocation2 + $0x10d0] sm:$0xff] }
 0x36c   : > { %8192 = vmatprep.subr.bf16.mxu0 %v9470_v21  ;;  %8579 = vmatprep.subr.bf16.mxu1 %v9472_v22  ;;  %v760_v20 = vld [vmem:[#allocation2 + $0x10b8] sm:$0xff]  ;;  %v9525_v21 = vcombine.low %v747_v8, %v751_v9  ;;  %v9527_v22 = vcombine.low %v748_v10, %v752_v11  ;;  %v767_v26 = vld [vmem:[#allocation2 + $0x10f0] sm:$0xff] }
 0x36d   : > { %v9536_v24 = vcombine.high %v756_v19, %v760_v20  ;;  %v9535_v31 = vcombine.low %v756_v19, %v760_v20  ;;  %v9542_v32 = vcombine.high %v763_v25, %v767_v26  ;;  %v771_v34 = vld [vmem:[#allocation2 + $0x1110] sm:$0xff] }
 0x36e   : > { %v779_v42 = vld [vmem:[#allocation2 + $0x1150] sm:$0xff] }
 0x36f   : > { %8193 = vmatpush1.bf16.msra.mxu0 %v9469_v27  ;;  %8580 = vmatpush1.bf16.msra.mxu1 %v9471_v28  ;;  %v10383_v27 = vld [vmem:[%s10583_s20 + $0x24] ss:$72 sps:$4 sm:$0xff]   ;;  %v764_v28 = vld [vmem:[#allocation2 + $0x10d8] sm:$0xff]  ;;  %v787_v50 = vld [vmem:[#allocation2 + $0x1190] sm:$0xff] }
 0x370   : > { %8194 = vmatprep.subr.bf16.mxu0 %v9478_v29  ;;  %8581 = vmatprep.subr.bf16.mxu1 %v9480_v30  ;;  %v768_v29 = vld [vmem:[#allocation2 + $0x10f8] sm:$0xff]  ;;  %v9533_v30 = vcombine.low %v755_v16, %v759_v17  ;;  %v795_v58 = vld [vmem:[#allocation2 + $0x11d0] sm:$0xff] }
 0x371   : > { %v9544_v33 = vcombine.high %v764_v28, %v768_v29  ;;  %v9543_v39 = vcombine.low %v764_v28, %v768_v29  ;;  %v803_v3 = vld [vmem:[#allocation2 + $0x1210] sm:$0xff]  ;;  %v828_v29 = vld [vmem:[#allocation2 + $0x12d8] sm:$0xff] }
 0x372   : > { %v811_v11 = vld [vmem:[#allocation2 + $0x1250] sm:$0xff] }
 0x373   : > { %8195 = vmatpush1.bf16.msra.mxu0 %v9477_v35  ;;  %8582 = vmatpush1.bf16.msra.mxu1 %v9479_v36  ;;  %v775_v35 = vld [vmem:[#allocation2 + $0x1130] sm:$0xff]  ;;  %v772_v36 = vld [vmem:[#allocation2 + $0x1118] sm:$0xff] }
 0x374   : > { %8196 = vmatprep.subr.bf16.mxu0 %v9486_v37  ;;  %8583 = vmatprep.subr.bf16.mxu1 %v9488_v38  ;;  %v776_v37 = vld [vmem:[#allocation2 + $0x1138] sm:$0xff]  ;;  %v9541_v38 = vcombine.low %v763_v25, %v767_v26  ;;  %v9550_v40 = vcombine.high %v771_v34, %v775_v35  ;;  %v819_v19 = vld [vmem:[#allocation2 + $0x1290] sm:$0xff] }
 0x375   : > { %v9552_v41 = vcombine.high %v772_v36, %v776_v37  ;;  %v9551_v47 = vcombine.low %v772_v36, %v776_v37  ;;  %v823_v20 = vld [vmem:[#allocation2 + $0x12b0] sm:$0xff]  ;;  %v836_v37 = vld [vmem:[#allocation2 + $0x1318] sm:$0xff] }
 0x376   : > { %v9598_v25 = vcombine.high %v819_v19, %v823_v20  ;;  %v831_v28 = vld [vmem:[#allocation2 + $0x12f0] sm:$0xff] }
 0x377   : > { %8197 = vmatpush1.bf16.msra.mxu0 %v9485_v43  ;;  %8584 = vmatpush1.bf16.msra.mxu1 %v9487_v44  ;;  %v783_v43 = vld [vmem:[#allocation2 + $0x1170] sm:$0xff]  ;;  %v780_v44 = vld [vmem:[#allocation2 + $0x1158] sm:$0xff] }
 0x378   : > { %8198 = vmatprep.subr.bf16.mxu0 %v9494_v45  ;;  %8585 = vmatprep.subr.bf16.mxu1 %v9496_v46  ;;  %v784_v45 = vld [vmem:[#allocation2 + $0x1178] sm:$0xff]  ;;  %v9549_v46 = vcombine.low %v771_v34, %v775_v35  ;;  %v9558_v48 = vcombine.high %v779_v42, %v783_v43  ;;  %v835_v35 = vld [vmem:[#allocation2 + $0x1310] sm:$0xff] }
 0x379   : > { %v9560_v49 = vcombine.high %v780_v44, %v784_v45  ;;  %v9559_v55 = vcombine.low %v780_v44, %v784_v45  ;;  %v839_v36 = vld [vmem:[#allocation2 + $0x1330] sm:$0xff]  ;;  %v844_v45 = vld [vmem:[#allocation2 + $0x1358] sm:$0xff] }
 0x37a   : > { %v847_v44 = vld [vmem:[#allocation2 + $0x1370] sm:$0xff] }
 0x37b   : > { %8199 = vmatpush1.bf16.msra.mxu0 %v9493_v51  ;;  %8586 = vmatpush1.bf16.msra.mxu1 %v9495_v52  ;;  %v791_v51 = vld [vmem:[#allocation2 + $0x11b0] sm:$0xff]  ;;  %v788_v52 = vld [vmem:[#allocation2 + $0x1198] sm:$0xff] }
 0x37c   : > { %8200 = vmatprep.subr.bf16.mxu0 %v9502_v53  ;;  %8587 = vmatprep.subr.bf16.mxu1 %v9504_v54  ;;  %v792_v53 = vld [vmem:[#allocation2 + $0x11b8] sm:$0xff]  ;;  %v9557_v54 = vcombine.low %v779_v42, %v783_v43  ;;  %v9566_v56 = vcombine.high %v787_v50, %v791_v51  ;;  %v843_v43 = vld [vmem:[#allocation2 + $0x1350] sm:$0xff] }
 0x37d   : > { %v9568_v57 = vcombine.high %v788_v52, %v792_v53  ;;  %v9567_v0 = vcombine.low %v788_v52, %v792_v53  ;;  %v855_v52 = vld [vmem:[#allocation2 + $0x13b0] sm:$0xff]  ;;  %v852_v53 = vld [vmem:[#allocation2 + $0x1398] sm:$0xff] }
 0x37f   : > { %8201 = vmatpush1.bf16.msra.mxu0 %v9501_v59  ;;  %8588 = vmatpush1.bf16.msra.mxu1 %v9503_v61  ;;  %v799_v59 = vld [vmem:[#allocation2 + $0x11f0] sm:$0xff]  ;;  %v796_v61 = vld [vmem:[#allocation2 + $0x11d8] sm:$0xff] }
 0x380   : > { %8202 = vmatprep.subr.bf16.mxu0 %v9510_v62  ;;  %8589 = vmatprep.subr.bf16.mxu1 %v9512_v63  ;;  %v800_v62 = vld [vmem:[#allocation2 + $0x11f8] sm:$0xff]  ;;  %v9565_v63 = vcombine.low %v787_v50, %v791_v51  ;;  %v9574_v1 = vcombine.high %v795_v58, %v799_v59  ;;  %v851_v51 = vld [vmem:[#allocation2 + $0x1390] sm:$0xff] }
 0x381   : > { %v9576_v2 = vcombine.high %v796_v61, %v800_v62  ;;  %v9575_v8 = vcombine.low %v796_v61, %v800_v62  ;;  %v863_v61 = vld [vmem:[#allocation2 + $0x13f0] sm:$0xff]  ;;  %v860_v62 = vld [vmem:[#allocation2 + $0x13d8] sm:$0xff] }
 0x383   : > { %8203 = vmatpush1.bf16.msra.mxu0 %v9509_v4  ;;  %8590 = vmatpush1.bf16.msra.mxu1 %v9511_v5  ;;  %v807_v4 = vld [vmem:[#allocation2 + $0x1230] sm:$0xff]  ;;  %v804_v5 = vld [vmem:[#allocation2 + $0x1218] sm:$0xff] }
 0x384   : > { %8215 = vmatprep.subr.bf16.mxu0 %v9518_v6  ;;  %8602 = vmatprep.subr.bf16.mxu1 %v9520_v7  ;;  %v808_v6 = vld [vmem:[#allocation2 + $0x1238] sm:$0xff]  ;;  %v9573_v7 = vcombine.low %v795_v58, %v799_v59  ;;  %v9582_v9 = vcombine.high %v803_v3, %v807_v4  ;;  %v859_v59 = vld [vmem:[#allocation2 + $0x13d0] sm:$0xff] }
 0x385   : > { %v9584_v10 = vcombine.high %v804_v5, %v808_v6  ;;  %v9583_v16 = vcombine.low %v804_v5, %v808_v6  ;;  %v871_v5 = vld [vmem:[#allocation2 + $0x1430] sm:$0xff]  ;;  %v868_v6 = vld [vmem:[#allocation2 + $0x1418] sm:$0xff] }
 0x386   : > { %8205 = vmatmul.mubr.bf16.vlgmr.msra.gmra.mrb[4].mxu0 %v10382_v18  ;;  %8592 = vmatmul.mubr.bf16.vlgmr.msra.gmra.mrb[4].mxu1 %v10382_v18 }
 0x387   : > { %8216 = vmatpush1.bf16.msra.mxu0 %v9517_v12  ;;  %8603 = vmatpush1.bf16.msra.mxu1 %v9519_v13  ;;  %v815_v12 = vld [vmem:[#allocation2 + $0x1270] sm:$0xff]  ;;  %v812_v13 = vld [vmem:[#allocation2 + $0x1258] sm:$0xff] }
 0x388   : > { %8217 = vmatprep.subr.bf16.mxu0 %v9526_v14  ;;  %8604 = vmatprep.subr.bf16.mxu1 %v9528_v15  ;;  %v816_v14 = vld [vmem:[#allocation2 + $0x1278] sm:$0xff]  ;;  %v9581_v15 = vcombine.low %v803_v3, %v807_v4  ;;  %v9590_v17 = vcombine.high %v811_v11, %v815_v12  ;;  %v867_v4 = vld [vmem:[#allocation2 + $0x1410] sm:$0xff] }
 0x389   : > { %8247 = vmatprep.mubr.bf16.mxu0 %v10383_v27  ;;  %8634 = vmatprep.mubr.bf16.mxu1 %v10383_v27  ;;  %v9592_v18 = vcombine.high %v812_v13, %v816_v14  ;;  %v827_v27 = vld [vmem:[#allocation2 + $0x12d0] sm:$0xff] }
 0x38b   : > { %8218 = vmatpush1.bf16.msra.mxu0 %v9525_v21  ;;  %8605 = vmatpush1.bf16.msra.mxu1 %v9527_v22  ;;  %v820_v21 = vld [vmem:[#allocation2 + $0x1298] sm:$0xff] }
 0x38c   : > { %8219 = vmatprep.subr.bf16.mxu0 %v9534_v23  ;;  %8606 = vmatprep.subr.bf16.mxu1 %v9536_v24  ;;  %v824_v22 = vld [vmem:[#allocation2 + $0x12b8] sm:$0xff]  ;;  %v9589_v23 = vcombine.low %v811_v11, %v815_v12  ;;  %v9591_v24 = vcombine.low %v812_v13, %v816_v14  ;;  %v875_v12 = vld [vmem:[#allocation2 + $0x1450] sm:$0xff] }
 0x38d   : > { %v9600_v26 = vcombine.high %v820_v21, %v824_v22  ;;  %v879_v13 = vld [vmem:[#allocation2 + $0x1470] sm:$0xff]  ;;  %v876_v14 = vld [vmem:[#allocation2 + $0x1458] sm:$0xff] }
 0x38f   : > { %8220 = vmatpush1.bf16.msra.mxu0 %v9533_v30  ;;  %8607 = vmatpush1.bf16.msra.mxu1 %v9535_v31  ;;  %v832_v30 = vld [vmem:[#allocation2 + $0x12f8] sm:$0xff]  ;;  %v9597_v31 = vcombine.low %v819_v19, %v823_v20  ;;  %v883_v20 = vld [vmem:[#allocation2 + $0x1490] sm:$0xff] }
 0x390   : > { %8221 = vmatprep.subr.bf16.mxu0 %v9542_v32  ;;  %8608 = vmatprep.subr.bf16.mxu1 %v9544_v33  ;;  %v9599_v32 = vcombine.low %v820_v21, %v824_v22  ;;  %v9606_v33 = vcombine.high %v827_v27, %v831_v28  ;;  %v9608_v34 = vcombine.high %v828_v29, %v832_v30  ;;  %v887_v21 = vld [vmem:[#allocation2 + $0x14b0] sm:$0xff]  ;;  %v10384_v22 = vld [vmem:[%s10583_s20 + $0x20] ss:$72 sps:$4 sm:$0xff]  }
 0x393   : > { %8222 = vmatpush1.bf16.msra.mxu0 %v9541_v38  ;;  %8609 = vmatpush1.bf16.msra.mxu1 %v9543_v39  ;;  %v840_v38 = vld [vmem:[#allocation2 + $0x1338] sm:$0xff]  ;;  %v9605_v39 = vcombine.low %v827_v27, %v831_v28  ;;  %v9662_v27 = vcombine.high %v883_v20, %v887_v21 }
 0x394   : > { %8223 = vmatprep.subr.bf16.mxu0 %v9550_v40  ;;  %8610 = vmatprep.subr.bf16.mxu1 %v9552_v41  ;;  %v9607_v40 = vcombine.low %v828_v29, %v832_v30  ;;  %v9614_v41 = vcombine.high %v835_v35, %v839_v36  ;;  %v9616_v42 = vcombine.high %v836_v37, %v840_v38  ;;  %v891_v29 = vld [vmem:[#allocation2 + $0x14d0] sm:$0xff] }
 0x395   : > { %v895_v30 = vld [vmem:[#allocation2 + $0x14f0] sm:$0xff] }
 0x397   : > { %8224 = vmatpush1.bf16.msra.mxu0 %v9549_v46  ;;  %8611 = vmatpush1.bf16.msra.mxu1 %v9551_v47  ;;  %v848_v46 = vld [vmem:[#allocation2 + $0x1378] sm:$0xff]  ;;  %v9613_v47 = vcombine.low %v835_v35, %v839_v36  ;;  %v9670_v36 = vcombine.high %v891_v29, %v895_v30 }
 0x398   : > { %8225 = vmatprep.subr.bf16.mxu0 %v9558_v48  ;;  %8612 = vmatprep.subr.bf16.mxu1 %v9560_v49  ;;  %v9615_v48 = vcombine.low %v836_v37, %v840_v38  ;;  %v9622_v49 = vcombine.high %v843_v43, %v847_v44  ;;  %v9624_v50 = vcombine.high %v844_v45, %v848_v46  ;;  %v899_v38 = vld [vmem:[#allocation2 + $0x1510] sm:$0xff] }
 0x39b   : > { %8226 = vmatpush1.bf16.msra.mxu0 %v9557_v54  ;;  %8613 = vmatpush1.bf16.msra.mxu1 %v9559_v55  ;;  %v856_v54 = vld [vmem:[#allocation2 + $0x13b8] sm:$0xff]  ;;  %v9621_v55 = vcombine.low %v843_v43, %v847_v44 }
 0x39c   : > { %8227 = vmatprep.subr.bf16.mxu0 %v9566_v56  ;;  %8614 = vmatprep.subr.bf16.mxu1 %v9568_v57  ;;  %v9623_v56 = vcombine.low %v844_v45, %v848_v46  ;;  %v9630_v57 = vcombine.high %v851_v51, %v855_v52  ;;  %v9632_v58 = vcombine.high %v852_v53, %v856_v54  ;;  %v907_v46 = vld [vmem:[#allocation2 + $0x1550] sm:$0xff] }
 0x39f   : > { %8228 = vmatpush1.bf16.msra.mxu0 %v9565_v63  ;;  %8615 = vmatpush1.bf16.msra.mxu1 %v9567_v0  ;;  %v864_v63 = vld [vmem:[#allocation2 + $0x13f8] sm:$0xff]  ;;  %v9629_v0 = vcombine.low %v851_v51, %v855_v52 }
 0x3a0   : > { %8229 = vmatprep.subr.bf16.mxu0 %v9574_v1  ;;  %8616 = vmatprep.subr.bf16.mxu1 %v9576_v2  ;;  %v9631_v1 = vcombine.low %v852_v53, %v856_v54  ;;  %v9638_v2 = vcombine.high %v859_v59, %v863_v61  ;;  %v9640_v3 = vcombine.high %v860_v62, %v864_v63  ;;  %v915_v54 = vld [vmem:[#allocation2 + $0x1590] sm:$0xff] }
 0x3a3   : > { %8230 = vmatpush1.bf16.msra.mxu0 %v9573_v7  ;;  %8617 = vmatpush1.bf16.msra.mxu1 %v9575_v8  ;;  %v872_v7 = vld [vmem:[#allocation2 + $0x1438] sm:$0xff]  ;;  %v9637_v8 = vcombine.low %v859_v59, %v863_v61 }
 0x3a4   : > { %8231 = vmatprep.subr.bf16.mxu0 %v9582_v9  ;;  %8618 = vmatprep.subr.bf16.mxu1 %v9584_v10  ;;  %v9639_v9 = vcombine.low %v860_v62, %v864_v63  ;;  %v9646_v10 = vcombine.high %v867_v4, %v871_v5  ;;  %v9648_v11 = vcombine.high %v868_v6, %v872_v7  ;;  %v923_v63 = vld [vmem:[#allocation2 + $0x15d0] sm:$0xff] }
 0x3a7   : > { %8232 = vmatpush1.bf16.msra.mxu0 %v9581_v15  ;;  %8619 = vmatpush1.bf16.msra.mxu1 %v9583_v16  ;;  %v880_v15 = vld [vmem:[#allocation2 + $0x1478] sm:$0xff]  ;;  %v9645_v16 = vcombine.low %v867_v4, %v871_v5 }
 0x3a8   : > { %8233 = vmatprep.subr.bf16.mxu0 %v9590_v17  ;;  %8620 = vmatprep.subr.bf16.mxu1 %v9592_v18  ;;  %v9647_v17 = vcombine.low %v868_v6, %v872_v7  ;;  %v9654_v18 = vcombine.high %v875_v12, %v879_v13  ;;  %v9656_v19 = vcombine.high %v876_v14, %v880_v15  ;;  %v931_v7 = vld [vmem:[#allocation2 + $0x1610] sm:$0xff] }
 0x3ab   : > { %8234 = vmatpush1.bf16.msra.mxu0 %v9589_v23  ;;  %8621 = vmatpush1.bf16.msra.mxu1 %v9591_v24  ;;  %v884_v23 = vld [vmem:[#allocation2 + $0x1498] sm:$0xff] }
 0x3ac   : > { %8235 = vmatprep.subr.bf16.mxu0 %v9598_v25  ;;  %8622 = vmatprep.subr.bf16.mxu1 %v9600_v26  ;;  %v888_v24 = vld [vmem:[#allocation2 + $0x14b8] sm:$0xff]  ;;  %v9653_v25 = vcombine.low %v875_v12, %v879_v13  ;;  %v9655_v26 = vcombine.low %v876_v14, %v880_v15  ;;  %v939_v15 = vld [vmem:[#allocation2 + $0x1650] sm:$0xff] }
 0x3ad   : > { %v9664_v28 = vcombine.high %v884_v23, %v888_v24  ;;  %v9663_v35 = vcombine.low %v884_v23, %v888_v24  ;;  %v947_v23 = vld [vmem:[#allocation2 + $0x1690] sm:$0xff] }
 0x3ae   : > { %v951_v24 = vld [vmem:[#allocation2 + $0x16b0] sm:$0xff] }
 0x3af   : > { %8236 = vmatpush1.bf16.msra.mxu0 %v9597_v31  ;;  %8623 = vmatpush1.bf16.msra.mxu1 %v9599_v32  ;;  %v10385_v31 = vld [vmem:[%s10583_s20 + $0x2c] ss:$72 sps:$4 sm:$0xff]   ;;  %v892_v32 = vld [vmem:[#allocation2 + $0x14d8] sm:$0xff] }
 0x3b0   : > { %8237 = vmatprep.subr.bf16.mxu0 %v9606_v33  ;;  %8624 = vmatprep.subr.bf16.mxu1 %v9608_v34  ;;  %v896_v33 = vld [vmem:[#allocation2 + $0x14f8] sm:$0xff]  ;;  %v9661_v34 = vcombine.low %v883_v20, %v887_v21 }
 0x3b1   : > { %v9672_v37 = vcombine.high %v892_v32, %v896_v33  ;;  %v9671_v43 = vcombine.low %v892_v32, %v896_v33  ;;  %v959_v32 = vld [vmem:[#allocation2 + $0x16f0] sm:$0xff]  ;;  %v956_v33 = vld [vmem:[#allocation2 + $0x16d8] sm:$0xff] }
 0x3b3   : > { %8238 = vmatpush1.bf16.msra.mxu0 %v9605_v39  ;;  %8625 = vmatpush1.bf16.msra.mxu1 %v9607_v40  ;;  %v903_v39 = vld [vmem:[#allocation2 + $0x1530] sm:$0xff]  ;;  %v900_v40 = vld [vmem:[#allocation2 + $0x1518] sm:$0xff] }
 0x3b4   : > { %8239 = vmatprep.subr.bf16.mxu0 %v9614_v41  ;;  %8626 = vmatprep.subr.bf16.mxu1 %v9616_v42  ;;  %v904_v41 = vld [vmem:[#allocation2 + $0x1538] sm:$0xff]  ;;  %v9669_v42 = vcombine.low %v891_v29, %v895_v30  ;;  %v9678_v44 = vcombine.high %v899_v38, %v903_v39  ;;  %v9726_v29 = vcombine.high %v947_v23, %v951_v24 }
 0x3b5   : > { %v9680_v45 = vcombine.high %v900_v40, %v904_v41  ;;  %v9679_v51 = vcombine.low %v900_v40, %v904_v41  ;;  %v967_v40 = vld [vmem:[#allocation2 + $0x1730] sm:$0xff]  ;;  %v964_v41 = vld [vmem:[#allocation2 + $0x1718] sm:$0xff] }
 0x3b7   : > { %8240 = vmatpush1.bf16.msra.mxu0 %v9613_v47  ;;  %8627 = vmatpush1.bf16.msra.mxu1 %v9615_v48  ;;  %v911_v47 = vld [vmem:[#allocation2 + $0x1570] sm:$0xff]  ;;  %v908_v48 = vld [vmem:[#allocation2 + $0x1558] sm:$0xff] }
 0x3b8   : > { %8241 = vmatprep.subr.bf16.mxu0 %v9622_v49  ;;  %8628 = vmatprep.subr.bf16.mxu1 %v9624_v50  ;;  %v912_v49 = vld [vmem:[#allocation2 + $0x1578] sm:$0xff]  ;;  %v9677_v50 = vcombine.low %v899_v38, %v903_v39  ;;  %v9686_v52 = vcombine.high %v907_v46, %v911_v47  ;;  %v963_v39 = vld [vmem:[#allocation2 + $0x1710] sm:$0xff] }
 0x3b9   : > { %v9688_v53 = vcombine.high %v908_v48, %v912_v49  ;;  %v9687_v59 = vcombine.low %v908_v48, %v912_v49  ;;  %v975_v48 = vld [vmem:[#allocation2 + $0x1770] sm:$0xff]  ;;  %v972_v49 = vld [vmem:[#allocation2 + $0x1758] sm:$0xff] }
 0x3bb   : > { %8242 = vmatpush1.bf16.msra.mxu0 %v9621_v55  ;;  %8629 = vmatpush1.bf16.msra.mxu1 %v9623_v56  ;;  %v919_v55 = vld [vmem:[#allocation2 + $0x15b0] sm:$0xff]  ;;  %v916_v56 = vld [vmem:[#allocation2 + $0x1598] sm:$0xff] }
 0x3bc   : > { %8243 = vmatprep.subr.bf16.mxu0 %v9630_v57  ;;  %8630 = vmatprep.subr.bf16.mxu1 %v9632_v58  ;;  %v920_v57 = vld [vmem:[#allocation2 + $0x15b8] sm:$0xff]  ;;  %v9685_v58 = vcombine.low %v907_v46, %v911_v47  ;;  %v9694_v61 = vcombine.high %v915_v54, %v919_v55  ;;  %v971_v47 = vld [vmem:[#allocation2 + $0x1750] sm:$0xff] }
 0x3bd   : > { %v9696_v62 = vcombine.high %v916_v56, %v920_v57  ;;  %v9695_v4 = vcombine.low %v916_v56, %v920_v57  ;;  %v983_v56 = vld [vmem:[#allocation2 + $0x17b0] sm:$0xff]  ;;  %v980_v57 = vld [vmem:[#allocation2 + $0x1798] sm:$0xff] }
 0x3bf   : > { %8244 = vmatpush1.bf16.msra.mxu0 %v9629_v0  ;;  %8631 = vmatpush1.bf16.msra.mxu1 %v9631_v1  ;;  %v927_v0 = vld [vmem:[#allocation2 + $0x15f0] sm:$0xff]  ;;  %v924_v1 = vld [vmem:[#allocation2 + $0x15d8] sm:$0xff] }
 0x3c0   : > { %8245 = vmatprep.subr.bf16.mxu0 %v9638_v2  ;;  %8632 = vmatprep.subr.bf16.mxu1 %v9640_v3  ;;  %v928_v2 = vld [vmem:[#allocation2 + $0x15f8] sm:$0xff]  ;;  %v9693_v3 = vcombine.low %v915_v54, %v919_v55  ;;  %v9702_v5 = vcombine.high %v923_v63, %v927_v0  ;;  %v979_v55 = vld [vmem:[#allocation2 + $0x1790] sm:$0xff] }
 0x3c1   : > { %v9704_v6 = vcombine.high %v924_v1, %v928_v2  ;;  %v9703_v12 = vcombine.low %v924_v1, %v928_v2  ;;  %v991_v1 = vld [vmem:[#allocation2 + $0x17f0] sm:$0xff]  ;;  %v988_v2 = vld [vmem:[#allocation2 + $0x17d8] sm:$0xff] }
 0x3c3   : > { %8246 = vmatpush1.bf16.msra.mxu0 %v9637_v8  ;;  %8633 = vmatpush1.bf16.msra.mxu1 %v9639_v9  ;;  %v935_v8 = vld [vmem:[#allocation2 + $0x1630] sm:$0xff]  ;;  %v932_v9 = vld [vmem:[#allocation2 + $0x1618] sm:$0xff] }
 0x3c4   : > { %8258 = vmatprep.subr.bf16.mxu0 %v9646_v10  ;;  %8645 = vmatprep.subr.bf16.mxu1 %v9648_v11  ;;  %v936_v10 = vld [vmem:[#allocation2 + $0x1638] sm:$0xff]  ;;  %v9701_v11 = vcombine.low %v923_v63, %v927_v0  ;;  %v9710_v13 = vcombine.high %v931_v7, %v935_v8  ;;  %v987_v0 = vld [vmem:[#allocation2 + $0x17d0] sm:$0xff] }
 0x3c5   : > { %v9712_v14 = vcombine.high %v932_v9, %v936_v10  ;;  %v9711_v20 = vcombine.low %v932_v9, %v936_v10  ;;  %v999_v9 = vld [vmem:[#allocation2 + $0x1830] sm:$0xff]  ;;  %v996_v10 = vld [vmem:[#allocation2 + $0x1818] sm:$0xff] }
 0x3c6   : > { %8248 = vmatmul.mubr.bf16.vlgmr.msra.gmra.mrb[4].mxu0 %v10384_v22  ;;  %8635 = vmatmul.mubr.bf16.vlgmr.msra.gmra.mrb[4].mxu1 %v10384_v22 }
 0x3c7   : > { %8259 = vmatpush1.bf16.msra.mxu0 %v9645_v16  ;;  %8646 = vmatpush1.bf16.msra.mxu1 %v9647_v17  ;;  %v943_v16 = vld [vmem:[#allocation2 + $0x1670] sm:$0xff]  ;;  %v940_v17 = vld [vmem:[#allocation2 + $0x1658] sm:$0xff] }
 0x3c8   : > { %8260 = vmatprep.subr.bf16.mxu0 %v9654_v18  ;;  %8647 = vmatprep.subr.bf16.mxu1 %v9656_v19  ;;  %v944_v18 = vld [vmem:[#allocation2 + $0x1678] sm:$0xff]  ;;  %v9709_v19 = vcombine.low %v931_v7, %v935_v8  ;;  %v9718_v21 = vcombine.high %v939_v15, %v943_v16  ;;  %v995_v8 = vld [vmem:[#allocation2 + $0x1810] sm:$0xff] }
 0x3c9   : > { %8290 = vmatprep.mubr.bf16.mxu0 %v10385_v31  ;;  %8677 = vmatprep.mubr.bf16.mxu1 %v10385_v31  ;;  %v9720_v22 = vcombine.high %v940_v17, %v944_v18  ;;  %v955_v31 = vld [vmem:[#allocation2 + $0x16d0] sm:$0xff] }
 0x3cb   : > { %8261 = vmatpush1.bf16.msra.mxu0 %v9653_v25  ;;  %8648 = vmatpush1.bf16.msra.mxu1 %v9655_v26  ;;  %v948_v25 = vld [vmem:[#allocation2 + $0x1698] sm:$0xff] }
 0x3cc   : > { %8262 = vmatprep.subr.bf16.mxu0 %v9662_v27  ;;  %8649 = vmatprep.subr.bf16.mxu1 %v9664_v28  ;;  %v952_v26 = vld [vmem:[#allocation2 + $0x16b8] sm:$0xff]  ;;  %v9717_v27 = vcombine.low %v939_v15, %v943_v16  ;;  %v9719_v28 = vcombine.low %v940_v17, %v944_v18  ;;  %v1003_v16 = vld [vmem:[#allocation2 + $0x1850] sm:$0xff] }
 0x3cd   : > { %v9728_v30 = vcombine.high %v948_v25, %v952_v26  ;;  %v1007_v17 = vld [vmem:[#allocation2 + $0x1870] sm:$0xff]  ;;  %v1004_v18 = vld [vmem:[#allocation2 + $0x1858] sm:$0xff] }
 0x3cf   : > { %8263 = vmatpush1.bf16.msra.mxu0 %v9661_v34  ;;  %8650 = vmatpush1.bf16.msra.mxu1 %v9663_v35  ;;  %v960_v34 = vld [vmem:[#allocation2 + $0x16f8] sm:$0xff]  ;;  %v9725_v35 = vcombine.low %v947_v23, %v951_v24  ;;  %v1011_v24 = vld [vmem:[#allocation2 + $0x1890] sm:$0xff] }
 0x3d0   : > { %8264 = vmatprep.subr.bf16.mxu0 %v9670_v36  ;;  %8651 = vmatprep.subr.bf16.mxu1 %v9672_v37  ;;  %v9727_v36 = vcombine.low %v948_v25, %v952_v26  ;;  %v9734_v37 = vcombine.high %v955_v31, %v959_v32  ;;  %v9736_v38 = vcombine.high %v956_v33, %v960_v34  ;;  %v1015_v25 = vld [vmem:[#allocation2 + $0x18b0] sm:$0xff] }
 0x3d1   : > { %v10386_v26 = vld [vmem:[%s10583_s20 + $0x28] ss:$72 sps:$4 sm:$0xff]  }
 0x3d3   : > { %8265 = vmatpush1.bf16.msra.mxu0 %v9669_v42  ;;  %8652 = vmatpush1.bf16.msra.mxu1 %v9671_v43  ;;  %v968_v42 = vld [vmem:[#allocation2 + $0x1738] sm:$0xff]  ;;  %v9733_v43 = vcombine.low %v955_v31, %v959_v32  ;;  %v9790_v31 = vcombine.high %v1011_v24, %v1015_v25 }
 0x3d4   : > { %8266 = vmatprep.subr.bf16.mxu0 %v9678_v44  ;;  %8653 = vmatprep.subr.bf16.mxu1 %v9680_v45  ;;  %v9735_v44 = vcombine.low %v956_v33, %v960_v34  ;;  %v9742_v45 = vcombine.high %v963_v39, %v967_v40  ;;  %v9744_v46 = vcombine.high %v964_v41, %v968_v42  ;;  %v1019_v33 = vld [vmem:[#allocation2 + $0x18d0] sm:$0xff] }
 0x3d5   : > { %v1023_v34 = vld [vmem:[#allocation2 + $0x18f0] sm:$0xff] }
 0x3d7   : > { %8267 = vmatpush1.bf16.msra.mxu0 %v9677_v50  ;;  %8654 = vmatpush1.bf16.msra.mxu1 %v9679_v51  ;;  %v976_v50 = vld [vmem:[#allocation2 + $0x1778] sm:$0xff]  ;;  %v9741_v51 = vcombine.low %v963_v39, %v967_v40  ;;  %v9798_v40 = vcombine.high %v1019_v33, %v1023_v34 }
 0x3d8   : > { %8268 = vmatprep.subr.bf16.mxu0 %v9686_v52  ;;  %8655 = vmatprep.subr.bf16.mxu1 %v9688_v53  ;;  %v9743_v52 = vcombine.low %v964_v41, %v968_v42  ;;  %v9750_v53 = vcombine.high %v971_v47, %v975_v48  ;;  %v9752_v54 = vcombine.high %v972_v49, %v976_v50  ;;  %v1027_v42 = vld [vmem:[#allocation2 + $0x1910] sm:$0xff] }
 0x3db   : > { %8269 = vmatpush1.bf16.msra.mxu0 %v9685_v58  ;;  %8656 = vmatpush1.bf16.msra.mxu1 %v9687_v59  ;;  %v984_v58 = vld [vmem:[#allocation2 + $0x17b8] sm:$0xff]  ;;  %v9749_v59 = vcombine.low %v971_v47, %v975_v48 }
 0x3dc   : > { %8270 = vmatprep.subr.bf16.mxu0 %v9694_v61  ;;  %8657 = vmatprep.subr.bf16.mxu1 %v9696_v62  ;;  %v9751_v61 = vcombine.low %v972_v49, %v976_v50  ;;  %v9758_v62 = vcombine.high %v979_v55, %v983_v56  ;;  %v9760_v63 = vcombine.high %v980_v57, %v984_v58  ;;  %v1035_v50 = vld [vmem:[#allocation2 + $0x1950] sm:$0xff] }
 0x3df   : > { %8271 = vmatpush1.bf16.msra.mxu0 %v9693_v3  ;;  %8658 = vmatpush1.bf16.msra.mxu1 %v9695_v4  ;;  %v992_v3 = vld [vmem:[#allocation2 + $0x17f8] sm:$0xff]  ;;  %v9757_v4 = vcombine.low %v979_v55, %v983_v56 }
 0x3e0   : > { %8272 = vmatprep.subr.bf16.mxu0 %v9702_v5  ;;  %8659 = vmatprep.subr.bf16.mxu1 %v9704_v6  ;;  %v9759_v5 = vcombine.low %v980_v57, %v984_v58  ;;  %v9766_v6 = vcombine.high %v987_v0, %v991_v1  ;;  %v9768_v7 = vcombine.high %v988_v2, %v992_v3  ;;  %v1043_v58 = vld [vmem:[#allocation2 + $0x1990] sm:$0xff] }
 0x3e3   : > { %8273 = vmatpush1.bf16.msra.mxu0 %v9701_v11  ;;  %8660 = vmatpush1.bf16.msra.mxu1 %v9703_v12  ;;  %v1000_v11 = vld [vmem:[#allocation2 + $0x1838] sm:$0xff]  ;;  %v9765_v12 = vcombine.low %v987_v0, %v991_v1 }
 0x3e4   : > { %8274 = vmatprep.subr.bf16.mxu0 %v9710_v13  ;;  %8661 = vmatprep.subr.bf16.mxu1 %v9712_v14  ;;  %v9767_v13 = vcombine.low %v988_v2, %v992_v3  ;;  %v9774_v14 = vcombine.high %v995_v8, %v999_v9  ;;  %v9776_v15 = vcombine.high %v996_v10, %v1000_v11  ;;  %v1051_v3 = vld [vmem:[#allocation2 + $0x19d0] sm:$0xff] }
 0x3e7   : > { %8275 = vmatpush1.bf16.msra.mxu0 %v9709_v19  ;;  %8662 = vmatpush1.bf16.msra.mxu1 %v9711_v20  ;;  %v1008_v19 = vld [vmem:[#allocation2 + $0x1878] sm:$0xff]  ;;  %v9773_v20 = vcombine.low %v995_v8, %v999_v9 }
 0x3e8   : > { %8276 = vmatprep.subr.bf16.mxu0 %v9718_v21  ;;  %8663 = vmatprep.subr.bf16.mxu1 %v9720_v22  ;;  %v9775_v21 = vcombine.low %v996_v10, %v1000_v11  ;;  %v9782_v22 = vcombine.high %v1003_v16, %v1007_v17  ;;  %v9784_v23 = vcombine.high %v1004_v18, %v1008_v19  ;;  %v1059_v11 = vld [vmem:[#allocation2 + $0x1a10] sm:$0xff] }
 0x3eb   : > { %8277 = vmatpush1.bf16.msra.mxu0 %v9717_v27  ;;  %8664 = vmatpush1.bf16.msra.mxu1 %v9719_v28  ;;  %v1012_v27 = vld [vmem:[#allocation2 + $0x1898] sm:$0xff] }
 0x3ec   : > { %8278 = vmatprep.subr.bf16.mxu0 %v9726_v29  ;;  %8665 = vmatprep.subr.bf16.mxu1 %v9728_v30  ;;  %v1016_v28 = vld [vmem:[#allocation2 + $0x18b8] sm:$0xff]  ;;  %v9781_v29 = vcombine.low %v1003_v16, %v1007_v17  ;;  %v9783_v30 = vcombine.low %v1004_v18, %v1008_v19  ;;  %v1067_v19 = vld [vmem:[#allocation2 + $0x1a50] sm:$0xff] }
 0x3ed   : > { %v9792_v32 = vcombine.high %v1012_v27, %v1016_v28  ;;  %v9791_v39 = vcombine.low %v1012_v27, %v1016_v28  ;;  %v1075_v27 = vld [vmem:[#allocation2 + $0x1a90] sm:$0xff] }
 0x3ee   : > { %v1079_v28 = vld [vmem:[#allocation2 + $0x1ab0] sm:$0xff] }
 0x3ef   : > { %8279 = vmatpush1.bf16.msra.mxu0 %v9725_v35  ;;  %8666 = vmatpush1.bf16.msra.mxu1 %v9727_v36  ;;  %v10387_v35 = vld [vmem:[%s10583_s20 + $0x34] ss:$72 sps:$4 sm:$0xff]  }
 0x3f0   : > { %8280 = vmatprep.subr.bf16.mxu0 %v9734_v37  ;;  %8667 = vmatprep.subr.bf16.mxu1 %v9736_v38  ;;  %v1020_v36 = vld [vmem:[#allocation2 + $0x18d8] sm:$0xff]  ;;  %v9789_v38 = vcombine.low %v1011_v24, %v1015_v25 }
 0x3f1   : > { %v1024_v37 = vld [vmem:[#allocation2 + $0x18f8] sm:$0xff] }
 0x3f2   : > { %v9800_v41 = vcombine.high %v1020_v36, %v1024_v37  ;;  %v9799_v47 = vcombine.low %v1020_v36, %v1024_v37  ;;  %v1087_v36 = vld [vmem:[#allocation2 + $0x1af0] sm:$0xff]  ;;  %v1084_v37 = vld [vmem:[#allocation2 + $0x1ad8] sm:$0xff] }
 0x3f3   : > { %8281 = vmatpush1.bf16.msra.mxu0 %v9733_v43  ;;  %8668 = vmatpush1.bf16.msra.mxu1 %v9735_v44  ;;  %v1031_v43 = vld [vmem:[#allocation2 + $0x1930] sm:$0xff]  ;;  %v1028_v44 = vld [vmem:[#allocation2 + $0x1918] sm:$0xff] }
 0x3f4   : > { %8282 = vmatprep.subr.bf16.mxu0 %v9742_v45  ;;  %8669 = vmatprep.subr.bf16.mxu1 %v9744_v46  ;;  %v1032_v45 = vld [vmem:[#allocation2 + $0x1938] sm:$0xff]  ;;  %v9797_v46 = vcombine.low %v1019_v33, %v1023_v34  ;;  %v9806_v48 = vcombine.high %v1027_v42, %v1031_v43  ;;  %v9854_v33 = vcombine.high %v1075_v27, %v1079_v28 }
 0x3f5   : > { %v9808_v49 = vcombine.high %v1028_v44, %v1032_v45  ;;  %v9807_v55 = vcombine.low %v1028_v44, %v1032_v45  ;;  %v1095_v44 = vld [vmem:[#allocation2 + $0x1b30] sm:$0xff]  ;;  %v1092_v45 = vld [vmem:[#allocation2 + $0x1b18] sm:$0xff] }
 0x3f7   : > { %8283 = vmatpush1.bf16.msra.mxu0 %v9741_v51  ;;  %8670 = vmatpush1.bf16.msra.mxu1 %v9743_v52  ;;  %v1039_v51 = vld [vmem:[#allocation2 + $0x1970] sm:$0xff]  ;;  %v1036_v52 = vld [vmem:[#allocation2 + $0x1958] sm:$0xff] }
 0x3f8   : > { %8284 = vmatprep.subr.bf16.mxu0 %v9750_v53  ;;  %8671 = vmatprep.subr.bf16.mxu1 %v9752_v54  ;;  %v1040_v53 = vld [vmem:[#allocation2 + $0x1978] sm:$0xff]  ;;  %v9805_v54 = vcombine.low %v1027_v42, %v1031_v43  ;;  %v9814_v56 = vcombine.high %v1035_v50, %v1039_v51  ;;  %v1091_v43 = vld [vmem:[#allocation2 + $0x1b10] sm:$0xff] }
 0x3f9   : > { %v9816_v57 = vcombine.high %v1036_v52, %v1040_v53  ;;  %v9815_v0 = vcombine.low %v1036_v52, %v1040_v53  ;;  %v1103_v52 = vld [vmem:[#allocation2 + $0x1b70] sm:$0xff]  ;;  %v1100_v53 = vld [vmem:[#allocation2 + $0x1b58] sm:$0xff] }
 0x3fb   : > { %8285 = vmatpush1.bf16.msra.mxu0 %v9749_v59  ;;  %8672 = vmatpush1.bf16.msra.mxu1 %v9751_v61  ;;  %v1047_v59 = vld [vmem:[#allocation2 + $0x19b0] sm:$0xff]  ;;  %v1044_v61 = vld [vmem:[#allocation2 + $0x1998] sm:$0xff] }
 0x3fc   : > { %8286 = vmatprep.subr.bf16.mxu0 %v9758_v62  ;;  %8673 = vmatprep.subr.bf16.mxu1 %v9760_v63  ;;  %v1048_v62 = vld [vmem:[#allocation2 + $0x19b8] sm:$0xff]  ;;  %v9813_v63 = vcombine.low %v1035_v50, %v1039_v51  ;;  %v9822_v1 = vcombine.high %v1043_v58, %v1047_v59  ;;  %v1099_v51 = vld [vmem:[#allocation2 + $0x1b50] sm:$0xff] }
 0x3fd   : > { %v9824_v2 = vcombine.high %v1044_v61, %v1048_v62  ;;  %v9823_v8 = vcombine.low %v1044_v61, %v1048_v62  ;;  %v1111_v61 = vld [vmem:[#allocation2 + $0x1bb0] sm:$0xff]  ;;  %v1108_v62 = vld [vmem:[#allocation2 + $0x1b98] sm:$0xff] }
 0x3ff   : > { %8287 = vmatpush1.bf16.msra.mxu0 %v9757_v4  ;;  %8674 = vmatpush1.bf16.msra.mxu1 %v9759_v5  ;;  %v1055_v4 = vld [vmem:[#allocation2 + $0x19f0] sm:$0xff]  ;;  %v1052_v5 = vld [vmem:[#allocation2 + $0x19d8] sm:$0xff] }
 0x400   : > { %8288 = vmatprep.subr.bf16.mxu0 %v9766_v6  ;;  %8675 = vmatprep.subr.bf16.mxu1 %v9768_v7  ;;  %v1056_v6 = vld [vmem:[#allocation2 + $0x19f8] sm:$0xff]  ;;  %v9821_v7 = vcombine.low %v1043_v58, %v1047_v59  ;;  %v9830_v9 = vcombine.high %v1051_v3, %v1055_v4  ;;  %v1107_v59 = vld [vmem:[#allocation2 + $0x1b90] sm:$0xff] }
 0x401   : > { %v9832_v10 = vcombine.high %v1052_v5, %v1056_v6  ;;  %v9831_v16 = vcombine.low %v1052_v5, %v1056_v6  ;;  %v1119_v5 = vld [vmem:[#allocation2 + $0x1bf0] sm:$0xff]  ;;  %v1116_v6 = vld [vmem:[#allocation2 + $0x1bd8] sm:$0xff] }
 0x403   : > { %8289 = vmatpush1.bf16.msra.mxu0 %v9765_v12  ;;  %8676 = vmatpush1.bf16.msra.mxu1 %v9767_v13  ;;  %v1063_v12 = vld [vmem:[#allocation2 + $0x1a30] sm:$0xff]  ;;  %v1060_v13 = vld [vmem:[#allocation2 + $0x1a18] sm:$0xff] }
 0x404   : > { %8301 = vmatprep.subr.bf16.mxu0 %v9774_v14  ;;  %8688 = vmatprep.subr.bf16.mxu1 %v9776_v15  ;;  %v1064_v14 = vld [vmem:[#allocation2 + $0x1a38] sm:$0xff]  ;;  %v9829_v15 = vcombine.low %v1051_v3, %v1055_v4  ;;  %v9838_v17 = vcombine.high %v1059_v11, %v1063_v12  ;;  %v1115_v4 = vld [vmem:[#allocation2 + $0x1bd0] sm:$0xff] }
 0x405   : > { %v9840_v18 = vcombine.high %v1060_v13, %v1064_v14  ;;  %v9839_v24 = vcombine.low %v1060_v13, %v1064_v14  ;;  %v1127_v13 = vld [vmem:[#allocation2 + $0x1c30] sm:$0xff]  ;;  %v1124_v14 = vld [vmem:[#allocation2 + $0x1c18] sm:$0xff] }
 0x406   : > { %8291 = vmatmul.mubr.bf16.vlgmr.msra.gmra.mrb[4].mxu0 %v10386_v26  ;;  %8678 = vmatmul.mubr.bf16.vlgmr.msra.gmra.mrb[4].mxu1 %v10386_v26 }
 0x407   : > { %8302 = vmatpush1.bf16.msra.mxu0 %v9773_v20  ;;  %8689 = vmatpush1.bf16.msra.mxu1 %v9775_v21  ;;  %v1071_v20 = vld [vmem:[#allocation2 + $0x1a70] sm:$0xff]  ;;  %v1068_v21 = vld [vmem:[#allocation2 + $0x1a58] sm:$0xff] }
 0x408   : > { %8303 = vmatprep.subr.bf16.mxu0 %v9782_v22  ;;  %8690 = vmatprep.subr.bf16.mxu1 %v9784_v23  ;;  %v1072_v22 = vld [vmem:[#allocation2 + $0x1a78] sm:$0xff]  ;;  %v9837_v23 = vcombine.low %v1059_v11, %v1063_v12  ;;  %v9846_v25 = vcombine.high %v1067_v19, %v1071_v20  ;;  %v1123_v12 = vld [vmem:[#allocation2 + $0x1c10] sm:$0xff] }
 0x409   : > { %8333 = vmatprep.mubr.bf16.mxu0 %v10387_v35  ;;  %8720 = vmatprep.mubr.bf16.mxu1 %v10387_v35  ;;  %v9848_v26 = vcombine.high %v1068_v21, %v1072_v22  ;;  %v1083_v35 = vld [vmem:[#allocation2 + $0x1ad0] sm:$0xff] }
 0x40b   : > { %8304 = vmatpush1.bf16.msra.mxu0 %v9781_v29  ;;  %8691 = vmatpush1.bf16.msra.mxu1 %v9783_v30  ;;  %v1076_v29 = vld [vmem:[#allocation2 + $0x1a98] sm:$0xff] }
 0x40c   : > { %8305 = vmatprep.subr.bf16.mxu0 %v9790_v31  ;;  %8692 = vmatprep.subr.bf16.mxu1 %v9792_v32  ;;  %v1080_v30 = vld [vmem:[#allocation2 + $0x1ab8] sm:$0xff]  ;;  %v9845_v31 = vcombine.low %v1067_v19, %v1071_v20  ;;  %v9847_v32 = vcombine.low %v1068_v21, %v1072_v22  ;;  %v1131_v20 = vld [vmem:[#allocation2 + $0x1c50] sm:$0xff] }
 0x40d   : > { %v9856_v34 = vcombine.high %v1076_v29, %v1080_v30  ;;  %v1135_v21 = vld [vmem:[#allocation2 + $0x1c70] sm:$0xff]  ;;  %v1132_v22 = vld [vmem:[#allocation2 + $0x1c58] sm:$0xff] }
 0x40f   : > { %8306 = vmatpush1.bf16.msra.mxu0 %v9789_v38  ;;  %8693 = vmatpush1.bf16.msra.mxu1 %v9791_v39  ;;  %v1088_v38 = vld [vmem:[#allocation2 + $0x1af8] sm:$0xff]  ;;  %v9853_v39 = vcombine.low %v1075_v27, %v1079_v28  ;;  %v1139_v28 = vld [vmem:[#allocation2 + $0x1c90] sm:$0xff] }
 0x410   : > { %8307 = vmatprep.subr.bf16.mxu0 %v9798_v40  ;;  %8694 = vmatprep.subr.bf16.mxu1 %v9800_v41  ;;  %v9855_v40 = vcombine.low %v1076_v29, %v1080_v30  ;;  %v9862_v41 = vcombine.high %v1083_v35, %v1087_v36  ;;  %v9864_v42 = vcombine.high %v1084_v37, %v1088_v38  ;;  %v1143_v29 = vld [vmem:[#allocation2 + $0x1cb0] sm:$0xff] }
 0x411   : > { %v10388_v30 = vld [vmem:[%s10583_s20 + $0x30] ss:$72 sps:$4 sm:$0xff]  }
 0x413   : > { %8308 = vmatpush1.bf16.msra.mxu0 %v9797_v46  ;;  %8695 = vmatpush1.bf16.msra.mxu1 %v9799_v47  ;;  %v1096_v46 = vld [vmem:[#allocation2 + $0x1b38] sm:$0xff]  ;;  %v9861_v47 = vcombine.low %v1083_v35, %v1087_v36  ;;  %v9918_v35 = vcombine.high %v1139_v28, %v1143_v29 }
 0x414   : > { %8309 = vmatprep.subr.bf16.mxu0 %v9806_v48  ;;  %8696 = vmatprep.subr.bf16.mxu1 %v9808_v49  ;;  %v9863_v48 = vcombine.low %v1084_v37, %v1088_v38  ;;  %v9870_v49 = vcombine.high %v1091_v43, %v1095_v44  ;;  %v9872_v50 = vcombine.high %v1092_v45, %v1096_v46  ;;  %v1147_v37 = vld [vmem:[#allocation2 + $0x1cd0] sm:$0xff] }
 0x415   : > { %v1151_v38 = vld [vmem:[#allocation2 + $0x1cf0] sm:$0xff] }
 0x417   : > { %8310 = vmatpush1.bf16.msra.mxu0 %v9805_v54  ;;  %8697 = vmatpush1.bf16.msra.mxu1 %v9807_v55  ;;  %v1104_v54 = vld [vmem:[#allocation2 + $0x1b78] sm:$0xff]  ;;  %v9869_v55 = vcombine.low %v1091_v43, %v1095_v44  ;;  %v9926_v44 = vcombine.high %v1147_v37, %v1151_v38 }
 0x418   : > { %8311 = vmatprep.subr.bf16.mxu0 %v9814_v56  ;;  %8698 = vmatprep.subr.bf16.mxu1 %v9816_v57  ;;  %v9871_v56 = vcombine.low %v1092_v45, %v1096_v46  ;;  %v9878_v57 = vcombine.high %v1099_v51, %v1103_v52  ;;  %v9880_v58 = vcombine.high %v1100_v53, %v1104_v54  ;;  %v1155_v46 = vld [vmem:[#allocation2 + $0x1d10] sm:$0xff] }
 0x41b   : > { %8312 = vmatpush1.bf16.msra.mxu0 %v9813_v63  ;;  %8699 = vmatpush1.bf16.msra.mxu1 %v9815_v0  ;;  %v1112_v63 = vld [vmem:[#allocation2 + $0x1bb8] sm:$0xff]  ;;  %v9877_v0 = vcombine.low %v1099_v51, %v1103_v52 }
 0x41c   : > { %8313 = vmatprep.subr.bf16.mxu0 %v9822_v1  ;;  %8700 = vmatprep.subr.bf16.mxu1 %v9824_v2  ;;  %v9879_v1 = vcombine.low %v1100_v53, %v1104_v54  ;;  %v9886_v2 = vcombine.high %v1107_v59, %v1111_v61  ;;  %v9888_v3 = vcombine.high %v1108_v62, %v1112_v63  ;;  %v1163_v54 = vld [vmem:[#allocation2 + $0x1d50] sm:$0xff] }
 0x41f   : > { %8314 = vmatpush1.bf16.msra.mxu0 %v9821_v7  ;;  %8701 = vmatpush1.bf16.msra.mxu1 %v9823_v8  ;;  %v1120_v7 = vld [vmem:[#allocation2 + $0x1bf8] sm:$0xff]  ;;  %v9885_v8 = vcombine.low %v1107_v59, %v1111_v61 }
 0x420   : > { %8315 = vmatprep.subr.bf16.mxu0 %v9830_v9  ;;  %8702 = vmatprep.subr.bf16.mxu1 %v9832_v10  ;;  %v9887_v9 = vcombine.low %v1108_v62, %v1112_v63  ;;  %v9894_v10 = vcombine.high %v1115_v4, %v1119_v5  ;;  %v9896_v11 = vcombine.high %v1116_v6, %v1120_v7  ;;  %v1171_v63 = vld [vmem:[#allocation2 + $0x1d90] sm:$0xff] }
 0x423   : > { %8316 = vmatpush1.bf16.msra.mxu0 %v9829_v15  ;;  %8703 = vmatpush1.bf16.msra.mxu1 %v9831_v16  ;;  %v1128_v15 = vld [vmem:[#allocation2 + $0x1c38] sm:$0xff]  ;;  %v9893_v16 = vcombine.low %v1115_v4, %v1119_v5 }
 0x424   : > { %8317 = vmatprep.subr.bf16.mxu0 %v9838_v17  ;;  %8704 = vmatprep.subr.bf16.mxu1 %v9840_v18  ;;  %v9895_v17 = vcombine.low %v1116_v6, %v1120_v7  ;;  %v9902_v18 = vcombine.high %v1123_v12, %v1127_v13  ;;  %v9904_v19 = vcombine.high %v1124_v14, %v1128_v15  ;;  %v1179_v7 = vld [vmem:[#allocation2 + $0x1dd0] sm:$0xff] }
 0x427   : > { %8318 = vmatpush1.bf16.msra.mxu0 %v9837_v23  ;;  %8705 = vmatpush1.bf16.msra.mxu1 %v9839_v24  ;;  %v1136_v23 = vld [vmem:[#allocation2 + $0x1c78] sm:$0xff]  ;;  %v9901_v24 = vcombine.low %v1123_v12, %v1127_v13 }
 0x428   : > { %8319 = vmatprep.subr.bf16.mxu0 %v9846_v25  ;;  %8706 = vmatprep.subr.bf16.mxu1 %v9848_v26  ;;  %v9903_v25 = vcombine.low %v1124_v14, %v1128_v15  ;;  %v9910_v26 = vcombine.high %v1131_v20, %v1135_v21  ;;  %v9912_v27 = vcombine.high %v1132_v22, %v1136_v23  ;;  %v1187_v15 = vld [vmem:[#allocation2 + $0x1e10] sm:$0xff] }
 0x42b   : > { %8320 = vmatpush1.bf16.msra.mxu0 %v9845_v31  ;;  %8707 = vmatpush1.bf16.msra.mxu1 %v9847_v32  ;;  %v1140_v31 = vld [vmem:[#allocation2 + $0x1c98] sm:$0xff] }
 0x42c   : > { %8321 = vmatprep.subr.bf16.mxu0 %v9854_v33  ;;  %8708 = vmatprep.subr.bf16.mxu1 %v9856_v34  ;;  %v1144_v32 = vld [vmem:[#allocation2 + $0x1cb8] sm:$0xff]  ;;  %v9909_v33 = vcombine.low %v1131_v20, %v1135_v21  ;;  %v9911_v34 = vcombine.low %v1132_v22, %v1136_v23  ;;  %v1195_v23 = vld [vmem:[#allocation2 + $0x1e50] sm:$0xff] }
 0x42d   : > { %v9920_v36 = vcombine.high %v1140_v31, %v1144_v32  ;;  %v9919_v43 = vcombine.low %v1140_v31, %v1144_v32  ;;  %v1203_v31 = vld [vmem:[#allocation2 + $0x1e90] sm:$0xff] }
 0x42e   : > { %v1207_v32 = vld [vmem:[#allocation2 + $0x1eb0] sm:$0xff] }
 0x42f   : > { %8322 = vmatpush1.bf16.msra.mxu0 %v9853_v39  ;;  %8709 = vmatpush1.bf16.msra.mxu1 %v9855_v40  ;;  %v10389_v39 = vld [vmem:[%s10583_s20 + $0x3c] ss:$72 sps:$4 sm:$0xff]  }
 0x430   : > { %8323 = vmatprep.subr.bf16.mxu0 %v9862_v41  ;;  %8710 = vmatprep.subr.bf16.mxu1 %v9864_v42  ;;  %v1148_v40 = vld [vmem:[#allocation2 + $0x1cd8] sm:$0xff]  ;;  %v9917_v42 = vcombine.low %v1139_v28, %v1143_v29 }
 0x431   : > { %v1152_v41 = vld [vmem:[#allocation2 + $0x1cf8] sm:$0xff] }
 0x432   : > { %v9928_v45 = vcombine.high %v1148_v40, %v1152_v41  ;;  %v9927_v51 = vcombine.low %v1148_v40, %v1152_v41  ;;  %v1215_v40 = vld [vmem:[#allocation2 + $0x1ef0] sm:$0xff]  ;;  %v1212_v41 = vld [vmem:[#allocation2 + $0x1ed8] sm:$0xff] }
 0x433   : > { %8324 = vmatpush1.bf16.msra.mxu0 %v9861_v47  ;;  %8711 = vmatpush1.bf16.msra.mxu1 %v9863_v48  ;;  %v1159_v47 = vld [vmem:[#allocation2 + $0x1d30] sm:$0xff]  ;;  %v1156_v48 = vld [vmem:[#allocation2 + $0x1d18] sm:$0xff] }
 0x434   : > { %8325 = vmatprep.subr.bf16.mxu0 %v9870_v49  ;;  %8712 = vmatprep.subr.bf16.mxu1 %v9872_v50  ;;  %v1160_v49 = vld [vmem:[#allocation2 + $0x1d38] sm:$0xff]  ;;  %v9925_v50 = vcombine.low %v1147_v37, %v1151_v38  ;;  %v9934_v52 = vcombine.high %v1155_v46, %v1159_v47  ;;  %v9982_v37 = vcombine.high %v1203_v31, %v1207_v32 }
 0x435   : > { %v9936_v53 = vcombine.high %v1156_v48, %v1160_v49  ;;  %v9935_v59 = vcombine.low %v1156_v48, %v1160_v49  ;;  %v1223_v48 = vld [vmem:[#allocation2 + $0x1f30] sm:$0xff]  ;;  %v1220_v49 = vld [vmem:[#allocation2 + $0x1f18] sm:$0xff] }
 0x437   : > { %8326 = vmatpush1.bf16.msra.mxu0 %v9869_v55  ;;  %8713 = vmatpush1.bf16.msra.mxu1 %v9871_v56  ;;  %v1167_v55 = vld [vmem:[#allocation2 + $0x1d70] sm:$0xff]  ;;  %v1164_v56 = vld [vmem:[#allocation2 + $0x1d58] sm:$0xff] }
 0x438   : > { %8327 = vmatprep.subr.bf16.mxu0 %v9878_v57  ;;  %8714 = vmatprep.subr.bf16.mxu1 %v9880_v58  ;;  %v1168_v57 = vld [vmem:[#allocation2 + $0x1d78] sm:$0xff]  ;;  %v9933_v58 = vcombine.low %v1155_v46, %v1159_v47  ;;  %v9942_v61 = vcombine.high %v1163_v54, %v1167_v55  ;;  %v1219_v47 = vld [vmem:[#allocation2 + $0x1f10] sm:$0xff] }
 0x439   : > { %v9944_v62 = vcombine.high %v1164_v56, %v1168_v57  ;;  %v9943_v4 = vcombine.low %v1164_v56, %v1168_v57  ;;  %v1231_v56 = vld [vmem:[#allocation2 + $0x1f70] sm:$0xff]  ;;  %v1228_v57 = vld [vmem:[#allocation2 + $0x1f58] sm:$0xff] }
 0x43b   : > { %8328 = vmatpush1.bf16.msra.mxu0 %v9877_v0  ;;  %8715 = vmatpush1.bf16.msra.mxu1 %v9879_v1  ;;  %v1175_v0 = vld [vmem:[#allocation2 + $0x1db0] sm:$0xff]  ;;  %v1172_v1 = vld [vmem:[#allocation2 + $0x1d98] sm:$0xff] }
 0x43c   : > { %8329 = vmatprep.subr.bf16.mxu0 %v9886_v2  ;;  %8716 = vmatprep.subr.bf16.mxu1 %v9888_v3  ;;  %v1176_v2 = vld [vmem:[#allocation2 + $0x1db8] sm:$0xff]  ;;  %v9941_v3 = vcombine.low %v1163_v54, %v1167_v55  ;;  %v9950_v5 = vcombine.high %v1171_v63, %v1175_v0  ;;  %v1227_v55 = vld [vmem:[#allocation2 + $0x1f50] sm:$0xff] }
 0x43d   : > { %v9952_v6 = vcombine.high %v1172_v1, %v1176_v2  ;;  %v9951_v12 = vcombine.low %v1172_v1, %v1176_v2  ;;  %v1239_v1 = vld [vmem:[#allocation2 + $0x1fb0] sm:$0xff]  ;;  %v1236_v2 = vld [vmem:[#allocation2 + $0x1f98] sm:$0xff] }
 0x43f   : > { %8330 = vmatpush1.bf16.msra.mxu0 %v9885_v8  ;;  %8717 = vmatpush1.bf16.msra.mxu1 %v9887_v9  ;;  %v1183_v8 = vld [vmem:[#allocation2 + $0x1df0] sm:$0xff]  ;;  %v1180_v9 = vld [vmem:[#allocation2 + $0x1dd8] sm:$0xff] }
 0x440   : > { %8331 = vmatprep.subr.bf16.mxu0 %v9894_v10  ;;  %8718 = vmatprep.subr.bf16.mxu1 %v9896_v11  ;;  %v1184_v10 = vld [vmem:[#allocation2 + $0x1df8] sm:$0xff]  ;;  %v9949_v11 = vcombine.low %v1171_v63, %v1175_v0  ;;  %v9958_v13 = vcombine.high %v1179_v7, %v1183_v8  ;;  %v1235_v0 = vld [vmem:[#allocation2 + $0x1f90] sm:$0xff] }
 0x441   : > { %v9960_v14 = vcombine.high %v1180_v9, %v1184_v10  ;;  %v9959_v20 = vcombine.low %v1180_v9, %v1184_v10  ;;  %v1247_v9 = vld [vmem:[#allocation2 + $0x1ff0] sm:$0xff]  ;;  %v1244_v10 = vld [vmem:[#allocation2 + $0x1fd8] sm:$0xff] }
 0x443   : > { %8332 = vmatpush1.bf16.msra.mxu0 %v9893_v16  ;;  %8719 = vmatpush1.bf16.msra.mxu1 %v9895_v17  ;;  %v1191_v16 = vld [vmem:[#allocation2 + $0x1e30] sm:$0xff]  ;;  %v1188_v17 = vld [vmem:[#allocation2 + $0x1e18] sm:$0xff] }
 0x444   : > { %8344 = vmatprep.subr.bf16.mxu0 %v9902_v18  ;;  %8731 = vmatprep.subr.bf16.mxu1 %v9904_v19  ;;  %v1192_v18 = vld [vmem:[#allocation2 + $0x1e38] sm:$0xff]  ;;  %v9957_v19 = vcombine.low %v1179_v7, %v1183_v8  ;;  %v9966_v21 = vcombine.high %v1187_v15, %v1191_v16  ;;  %v1243_v8 = vld [vmem:[#allocation2 + $0x1fd0] sm:$0xff] }
 0x445   : > { %v9968_v22 = vcombine.high %v1188_v17, %v1192_v18  ;;  %v9967_v28 = vcombine.low %v1188_v17, %v1192_v18  ;;  %v1255_v17 = vld [vmem:[#allocation2 + $0x2030] sm:$0xff]  ;;  %v1252_v18 = vld [vmem:[#allocation2 + $0x2018] sm:$0xff] }
 0x446   : > { %8334 = vmatmul.mubr.bf16.vlgmr.msra.gmra.mrb[4].mxu0 %v10388_v30  ;;  %8721 = vmatmul.mubr.bf16.vlgmr.msra.gmra.mrb[4].mxu1 %v10388_v30 }
 0x447   : > { %8345 = vmatpush1.bf16.msra.mxu0 %v9901_v24  ;;  %8732 = vmatpush1.bf16.msra.mxu1 %v9903_v25  ;;  %v1199_v24 = vld [vmem:[#allocation2 + $0x1e70] sm:$0xff]  ;;  %v1196_v25 = vld [vmem:[#allocation2 + $0x1e58] sm:$0xff] }
 0x448   : > { %8346 = vmatprep.subr.bf16.mxu0 %v9910_v26  ;;  %8733 = vmatprep.subr.bf16.mxu1 %v9912_v27  ;;  %v1200_v26 = vld [vmem:[#allocation2 + $0x1e78] sm:$0xff]  ;;  %v9965_v27 = vcombine.low %v1187_v15, %v1191_v16  ;;  %v9974_v29 = vcombine.high %v1195_v23, %v1199_v24  ;;  %v1251_v16 = vld [vmem:[#allocation2 + $0x2010] sm:$0xff] }
 0x449   : > { %8376 = vmatprep.mubr.bf16.mxu0 %v10389_v39  ;;  %8763 = vmatprep.mubr.bf16.mxu1 %v10389_v39  ;;  %v9976_v30 = vcombine.high %v1196_v25, %v1200_v26  ;;  %v1211_v39 = vld [vmem:[#allocation2 + $0x1ed0] sm:$0xff] }
 0x44b   : > { %8347 = vmatpush1.bf16.msra.mxu0 %v9909_v33  ;;  %8734 = vmatpush1.bf16.msra.mxu1 %v9911_v34  ;;  %v1204_v33 = vld [vmem:[#allocation2 + $0x1e98] sm:$0xff] }
 0x44c   : > { %8348 = vmatprep.subr.bf16.mxu0 %v9918_v35  ;;  %8735 = vmatprep.subr.bf16.mxu1 %v9920_v36  ;;  %v1208_v34 = vld [vmem:[#allocation2 + $0x1eb8] sm:$0xff]  ;;  %v9973_v35 = vcombine.low %v1195_v23, %v1199_v24  ;;  %v9975_v36 = vcombine.low %v1196_v25, %v1200_v26  ;;  %v1259_v24 = vld [vmem:[#allocation2 + $0x2050] sm:$0xff] }
 0x44d   : > { %v9984_v38 = vcombine.high %v1204_v33, %v1208_v34  ;;  %v1263_v25 = vld [vmem:[#allocation2 + $0x2070] sm:$0xff]  ;;  %v1260_v26 = vld [vmem:[#allocation2 + $0x2058] sm:$0xff] }
 0x44f   : > { %8349 = vmatpush1.bf16.msra.mxu0 %v9917_v42  ;;  %8736 = vmatpush1.bf16.msra.mxu1 %v9919_v43  ;;  %v1216_v42 = vld [vmem:[#allocation2 + $0x1ef8] sm:$0xff]  ;;  %v9981_v43 = vcombine.low %v1203_v31, %v1207_v32  ;;  %v1267_v32 = vld [vmem:[#allocation2 + $0x2090] sm:$0xff] }
 0x450   : > { %8350 = vmatprep.subr.bf16.mxu0 %v9926_v44  ;;  %8737 = vmatprep.subr.bf16.mxu1 %v9928_v45  ;;  %v9983_v44 = vcombine.low %v1204_v33, %v1208_v34  ;;  %v9990_v45 = vcombine.high %v1211_v39, %v1215_v40  ;;  %v9992_v46 = vcombine.high %v1212_v41, %v1216_v42  ;;  %v1271_v33 = vld [vmem:[#allocation2 + $0x20b0] sm:$0xff]  ;;  %v10390_v34 = vld [vmem:[%s10583_s20 + $0x38] ss:$72 sps:$4 sm:$0xff]  }
 0x453   : > { %8351 = vmatpush1.bf16.msra.mxu0 %v9925_v50  ;;  %8738 = vmatpush1.bf16.msra.mxu1 %v9927_v51  ;;  %v1224_v50 = vld [vmem:[#allocation2 + $0x1f38] sm:$0xff]  ;;  %v9989_v51 = vcombine.low %v1211_v39, %v1215_v40  ;;  %v10046_v39 = vcombine.high %v1267_v32, %v1271_v33 }
 0x454   : > { %8352 = vmatprep.subr.bf16.mxu0 %v9934_v52  ;;  %8739 = vmatprep.subr.bf16.mxu1 %v9936_v53  ;;  %v9991_v52 = vcombine.low %v1212_v41, %v1216_v42  ;;  %v9998_v53 = vcombine.high %v1219_v47, %v1223_v48  ;;  %v10000_v54 = vcombine.high %v1220_v49, %v1224_v50  ;;  %v1275_v41 = vld [vmem:[#allocation2 + $0x20d0] sm:$0xff] }
 0x455   : > { %v1279_v42 = vld [vmem:[#allocation2 + $0x20f0] sm:$0xff] }
 0x457   : > { %8353 = vmatpush1.bf16.msra.mxu0 %v9933_v58  ;;  %8740 = vmatpush1.bf16.msra.mxu1 %v9935_v59  ;;  %v1232_v58 = vld [vmem:[#allocation2 + $0x1f78] sm:$0xff]  ;;  %v9997_v59 = vcombine.low %v1219_v47, %v1223_v48  ;;  %v10054_v48 = vcombine.high %v1275_v41, %v1279_v42 }
 0x458   : > { %8354 = vmatprep.subr.bf16.mxu0 %v9942_v61  ;;  %8741 = vmatprep.subr.bf16.mxu1 %v9944_v62  ;;  %v9999_v61 = vcombine.low %v1220_v49, %v1224_v50  ;;  %v10006_v62 = vcombine.high %v1227_v55, %v1231_v56  ;;  %v10008_v63 = vcombine.high %v1228_v57, %v1232_v58  ;;  %v1283_v50 = vld [vmem:[#allocation2 + $0x2110] sm:$0xff] }
 0x45b   : > { %8355 = vmatpush1.bf16.msra.mxu0 %v9941_v3  ;;  %8742 = vmatpush1.bf16.msra.mxu1 %v9943_v4  ;;  %v1240_v3 = vld [vmem:[#allocation2 + $0x1fb8] sm:$0xff]  ;;  %v10005_v4 = vcombine.low %v1227_v55, %v1231_v56 }
 0x45c   : > { %8356 = vmatprep.subr.bf16.mxu0 %v9950_v5  ;;  %8743 = vmatprep.subr.bf16.mxu1 %v9952_v6  ;;  %v10007_v5 = vcombine.low %v1228_v57, %v1232_v58  ;;  %v10014_v6 = vcombine.high %v1235_v0, %v1239_v1  ;;  %v10016_v7 = vcombine.high %v1236_v2, %v1240_v3  ;;  %v1291_v58 = vld [vmem:[#allocation2 + $0x2150] sm:$0xff] }
 0x45f   : > { %8357 = vmatpush1.bf16.msra.mxu0 %v9949_v11  ;;  %8744 = vmatpush1.bf16.msra.mxu1 %v9951_v12  ;;  %v1248_v11 = vld [vmem:[#allocation2 + $0x1ff8] sm:$0xff]  ;;  %v10013_v12 = vcombine.low %v1235_v0, %v1239_v1 }
 0x460   : > { %8358 = vmatprep.subr.bf16.mxu0 %v9958_v13  ;;  %8745 = vmatprep.subr.bf16.mxu1 %v9960_v14  ;;  %v10015_v13 = vcombine.low %v1236_v2, %v1240_v3  ;;  %v10022_v14 = vcombine.high %v1243_v8, %v1247_v9  ;;  %v10024_v15 = vcombine.high %v1244_v10, %v1248_v11  ;;  %v1299_v3 = vld [vmem:[#allocation2 + $0x2190] sm:$0xff] }
 0x463   : > { %8359 = vmatpush1.bf16.msra.mxu0 %v9957_v19  ;;  %8746 = vmatpush1.bf16.msra.mxu1 %v9959_v20  ;;  %v1256_v19 = vld [vmem:[#allocation2 + $0x2038] sm:$0xff]  ;;  %v10021_v20 = vcombine.low %v1243_v8, %v1247_v9 }
 0x464   : > { %8360 = vmatprep.subr.bf16.mxu0 %v9966_v21  ;;  %8747 = vmatprep.subr.bf16.mxu1 %v9968_v22  ;;  %v10023_v21 = vcombine.low %v1244_v10, %v1248_v11  ;;  %v10030_v22 = vcombine.high %v1251_v16, %v1255_v17  ;;  %v10032_v23 = vcombine.high %v1252_v18, %v1256_v19  ;;  %v1307_v11 = vld [vmem:[#allocation2 + $0x21d0] sm:$0xff] }
 0x467   : > { %8361 = vmatpush1.bf16.msra.mxu0 %v9965_v27  ;;  %8748 = vmatpush1.bf16.msra.mxu1 %v9967_v28  ;;  %v1264_v27 = vld [vmem:[#allocation2 + $0x2078] sm:$0xff]  ;;  %v10029_v28 = vcombine.low %v1251_v16, %v1255_v17 }
 0x468   : > { %8362 = vmatprep.subr.bf16.mxu0 %v9974_v29  ;;  %8749 = vmatprep.subr.bf16.mxu1 %v9976_v30  ;;  %v10031_v29 = vcombine.low %v1252_v18, %v1256_v19  ;;  %v10038_v30 = vcombine.high %v1259_v24, %v1263_v25  ;;  %v10040_v31 = vcombine.high %v1260_v26, %v1264_v27  ;;  %v1315_v19 = vld [vmem:[#allocation2 + $0x2210] sm:$0xff] }
 0x46b   : > { %8363 = vmatpush1.bf16.msra.mxu0 %v9973_v35  ;;  %8750 = vmatpush1.bf16.msra.mxu1 %v9975_v36  ;;  %v1268_v35 = vld [vmem:[#allocation2 + $0x2098] sm:$0xff] }
 0x46c   : > { %8364 = vmatprep.subr.bf16.mxu0 %v9982_v37  ;;  %8751 = vmatprep.subr.bf16.mxu1 %v9984_v38  ;;  %v1272_v36 = vld [vmem:[#allocation2 + $0x20b8] sm:$0xff]  ;;  %v10037_v37 = vcombine.low %v1259_v24, %v1263_v25  ;;  %v10039_v38 = vcombine.low %v1260_v26, %v1264_v27  ;;  %v1323_v27 = vld [vmem:[#allocation2 + $0x2250] sm:$0xff] }
 0x46d   : > { %v10048_v40 = vcombine.high %v1268_v35, %v1272_v36  ;;  %v10047_v47 = vcombine.low %v1268_v35, %v1272_v36  ;;  %v1331_v35 = vld [vmem:[#allocation2 + $0x2290] sm:$0xff] }
 0x46e   : > { %v1335_v36 = vld [vmem:[#allocation2 + $0x22b0] sm:$0xff] }
 0x46f   : > { %8365 = vmatpush1.bf16.msra.mxu0 %v9981_v43  ;;  %8752 = vmatpush1.bf16.msra.mxu1 %v9983_v44  ;;  %v10391_v43 = vld [vmem:[%s10583_s20 + $0x44] ss:$72 sps:$4 sm:$0xff]   ;;  %v1276_v44 = vld [vmem:[#allocation2 + $0x20d8] sm:$0xff] }
 0x470   : > { %8366 = vmatprep.subr.bf16.mxu0 %v9990_v45  ;;  %8753 = vmatprep.subr.bf16.mxu1 %v9992_v46  ;;  %v1280_v45 = vld [vmem:[#allocation2 + $0x20f8] sm:$0xff]  ;;  %v10045_v46 = vcombine.low %v1267_v32, %v1271_v33 }
 0x471   : > { %v10056_v49 = vcombine.high %v1276_v44, %v1280_v45  ;;  %v10055_v55 = vcombine.low %v1276_v44, %v1280_v45  ;;  %v1343_v44 = vld [vmem:[#allocation2 + $0x22f0] sm:$0xff]  ;;  %v1340_v45 = vld [vmem:[#allocation2 + $0x22d8] sm:$0xff] }
 0x473   : > { %8367 = vmatpush1.bf16.msra.mxu0 %v9989_v51  ;;  %8754 = vmatpush1.bf16.msra.mxu1 %v9991_v52  ;;  %v1287_v51 = vld [vmem:[#allocation2 + $0x2130] sm:$0xff]  ;;  %v1284_v52 = vld [vmem:[#allocation2 + $0x2118] sm:$0xff] }
 0x474   : > { %8368 = vmatprep.subr.bf16.mxu0 %v9998_v53  ;;  %8755 = vmatprep.subr.bf16.mxu1 %v10000_v54  ;;  %v1288_v53 = vld [vmem:[#allocation2 + $0x2138] sm:$0xff]  ;;  %v10053_v54 = vcombine.low %v1275_v41, %v1279_v42  ;;  %v10062_v56 = vcombine.high %v1283_v50, %v1287_v51  ;;  %v10110_v41 = vcombine.high %v1331_v35, %v1335_v36 }
 0x475   : > { %v10064_v57 = vcombine.high %v1284_v52, %v1288_v53  ;;  %v10063_v0 = vcombine.low %v1284_v52, %v1288_v53  ;;  %v1351_v52 = vld [vmem:[#allocation2 + $0x2330] sm:$0xff]  ;;  %v1348_v53 = vld [vmem:[#allocation2 + $0x2318] sm:$0xff] }
 0x477   : > { %8369 = vmatpush1.bf16.msra.mxu0 %v9997_v59  ;;  %8756 = vmatpush1.bf16.msra.mxu1 %v9999_v61  ;;  %v1295_v59 = vld [vmem:[#allocation2 + $0x2170] sm:$0xff]  ;;  %v1292_v61 = vld [vmem:[#allocation2 + $0x2158] sm:$0xff] }
 0x478   : > { %8370 = vmatprep.subr.bf16.mxu0 %v10006_v62  ;;  %8757 = vmatprep.subr.bf16.mxu1 %v10008_v63  ;;  %v1296_v62 = vld [vmem:[#allocation2 + $0x2178] sm:$0xff]  ;;  %v10061_v63 = vcombine.low %v1283_v50, %v1287_v51  ;;  %v10070_v1 = vcombine.high %v1291_v58, %v1295_v59  ;;  %v1347_v51 = vld [vmem:[#allocation2 + $0x2310] sm:$0xff] }
 0x479   : > { %v10072_v2 = vcombine.high %v1292_v61, %v1296_v62  ;;  %v10071_v8 = vcombine.low %v1292_v61, %v1296_v62  ;;  %v1359_v61 = vld [vmem:[#allocation2 + $0x2370] sm:$0xff]  ;;  %v1356_v62 = vld [vmem:[#allocation2 + $0x2358] sm:$0xff] }
 0x47b   : > { %8371 = vmatpush1.bf16.msra.mxu0 %v10005_v4  ;;  %8758 = vmatpush1.bf16.msra.mxu1 %v10007_v5  ;;  %v1303_v4 = vld [vmem:[#allocation2 + $0x21b0] sm:$0xff]  ;;  %v1300_v5 = vld [vmem:[#allocation2 + $0x2198] sm:$0xff] }
 0x47c   : > { %8372 = vmatprep.subr.bf16.mxu0 %v10014_v6  ;;  %8759 = vmatprep.subr.bf16.mxu1 %v10016_v7  ;;  %v1304_v6 = vld [vmem:[#allocation2 + $0x21b8] sm:$0xff]  ;;  %v10069_v7 = vcombine.low %v1291_v58, %v1295_v59  ;;  %v10078_v9 = vcombine.high %v1299_v3, %v1303_v4  ;;  %v1355_v59 = vld [vmem:[#allocation2 + $0x2350] sm:$0xff] }
 0x47d   : > { %v10080_v10 = vcombine.high %v1300_v5, %v1304_v6  ;;  %v10079_v16 = vcombine.low %v1300_v5, %v1304_v6  ;;  %v1367_v5 = vld [vmem:[#allocation2 + $0x23b0] sm:$0xff]  ;;  %v1364_v6 = vld [vmem:[#allocation2 + $0x2398] sm:$0xff] }
 0x47f   : > { %8373 = vmatpush1.bf16.msra.mxu0 %v10013_v12  ;;  %8760 = vmatpush1.bf16.msra.mxu1 %v10015_v13  ;;  %v1311_v12 = vld [vmem:[#allocation2 + $0x21f0] sm:$0xff]  ;;  %v1308_v13 = vld [vmem:[#allocation2 + $0x21d8] sm:$0xff] }
 0x480   : > { %8374 = vmatprep.subr.bf16.mxu0 %v10022_v14  ;;  %8761 = vmatprep.subr.bf16.mxu1 %v10024_v15  ;;  %v1312_v14 = vld [vmem:[#allocation2 + $0x21f8] sm:$0xff]  ;;  %v10077_v15 = vcombine.low %v1299_v3, %v1303_v4  ;;  %v10086_v17 = vcombine.high %v1307_v11, %v1311_v12  ;;  %v1363_v4 = vld [vmem:[#allocation2 + $0x2390] sm:$0xff] }
 0x481   : > { %v10088_v18 = vcombine.high %v1308_v13, %v1312_v14  ;;  %v10087_v24 = vcombine.low %v1308_v13, %v1312_v14  ;;  %v1375_v13 = vld [vmem:[#allocation2 + $0x23f0] sm:$0xff]  ;;  %v1372_v14 = vld [vmem:[#allocation2 + $0x23d8] sm:$0xff] }
 0x483   : > { %8375 = vmatpush1.bf16.msra.mxu0 %v10021_v20  ;;  %8762 = vmatpush1.bf16.msra.mxu1 %v10023_v21  ;;  %v1319_v20 = vld [vmem:[#allocation2 + $0x2230] sm:$0xff]  ;;  %v1316_v21 = vld [vmem:[#allocation2 + $0x2218] sm:$0xff] }
 0x484   : > { %8387 = vmatprep.subr.bf16.mxu0 %v10030_v22  ;;  %8774 = vmatprep.subr.bf16.mxu1 %v10032_v23  ;;  %v1320_v22 = vld [vmem:[#allocation2 + $0x2238] sm:$0xff]  ;;  %v10085_v23 = vcombine.low %v1307_v11, %v1311_v12  ;;  %v10094_v25 = vcombine.high %v1315_v19, %v1319_v20  ;;  %v1371_v12 = vld [vmem:[#allocation2 + $0x23d0] sm:$0xff] }
 0x485   : > { %v10096_v26 = vcombine.high %v1316_v21, %v1320_v22  ;;  %v10095_v32 = vcombine.low %v1316_v21, %v1320_v22  ;;  %v10392_v22 = vld [vmem:[%s10583_s20 + $0x40] ss:$72 sps:$4 sm:$0xff]  }
 0x486   : > { %8377 = vmatmul.mubr.bf16.vlgmr.msra.gmra.mrb[4].mxu0 %v10390_v34  ;;  %8764 = vmatmul.mubr.bf16.vlgmr.msra.gmra.mrb[4].mxu1 %v10390_v34 }
 0x487   : > { %8388 = vmatpush1.bf16.msra.mxu0 %v10029_v28  ;;  %8775 = vmatpush1.bf16.msra.mxu1 %v10031_v29  ;;  %v1327_v28 = vld [vmem:[#allocation2 + $0x2270] sm:$0xff]  ;;  %v1324_v29 = vld [vmem:[#allocation2 + $0x2258] sm:$0xff] }
 0x488   : > { %8389 = vmatprep.subr.bf16.mxu0 %v10038_v30  ;;  %8776 = vmatprep.subr.bf16.mxu1 %v10040_v31  ;;  %v1328_v30 = vld [vmem:[#allocation2 + $0x2278] sm:$0xff]  ;;  %v10093_v31 = vcombine.low %v1315_v19, %v1319_v20  ;;  %v10102_v33 = vcombine.high %v1323_v27, %v1327_v28  ;;  %v10149_v20 = vcombine.low %v1371_v12, %v1375_v13 }
 0x489   : > { %8419 = vmatprep.mubr.bf16.mxu0 %v10391_v43  ;;  %8806 = vmatprep.mubr.bf16.mxu1 %v10391_v43  ;;  %v10104_v34 = vcombine.high %v1324_v29, %v1328_v30  ;;  %v1339_v43 = vld [vmem:[#allocation2 + $0x22d0] sm:$0xff] }
 0x48b   : > { %8390 = vmatpush1.bf16.msra.mxu0 %v10037_v37  ;;  %8777 = vmatpush1.bf16.msra.mxu1 %v10039_v38  ;;  %v1332_v37 = vld [vmem:[#allocation2 + $0x2298] sm:$0xff] }
 0x48c   : > { %8391 = vmatprep.subr.bf16.mxu0 %v10046_v39  ;;  %8778 = vmatprep.subr.bf16.mxu1 %v10048_v40  ;;  %v1336_v38 = vld [vmem:[#allocation2 + $0x22b8] sm:$0xff]  ;;  %v10101_v39 = vcombine.low %v1323_v27, %v1327_v28  ;;  %v10103_v40 = vcombine.low %v1324_v29, %v1328_v30  ;;  %v10393_v27 = vld [vmem:[#allocation4] sm:$0xff] }
 0x48d   : > { %v10112_v42 = vcombine.high %v1332_v37, %v1336_v38 }
 0x48f   : > { %8392 = vmatpush1.bf16.msra.mxu0 %v10045_v46  ;;  %8779 = vmatpush1.bf16.msra.mxu1 %v10047_v47  ;;  %v1344_v46 = vld [vmem:[#allocation2 + $0x22f8] sm:$0xff]  ;;  %v10109_v47 = vcombine.low %v1331_v35, %v1335_v36 }
 0x490   : > { %8393 = vmatprep.subr.bf16.mxu0 %v10054_v48  ;;  %8780 = vmatprep.subr.bf16.mxu1 %v10056_v49  ;;  %v10111_v48 = vcombine.low %v1332_v37, %v1336_v38  ;;  %v10118_v49 = vcombine.high %v1339_v43, %v1343_v44  ;;  %v10120_v50 = vcombine.high %v1340_v45, %v1344_v46 }
 0x493   : > { %8394 = vmatpush1.bf16.msra.mxu0 %v10053_v54  ;;  %8781 = vmatpush1.bf16.msra.mxu1 %v10055_v55  ;;  %v1352_v54 = vld [vmem:[#allocation2 + $0x2338] sm:$0xff]  ;;  %v10117_v55 = vcombine.low %v1339_v43, %v1343_v44 }
 0x494   : > { %8395 = vmatprep.subr.bf16.mxu0 %v10062_v56  ;;  %8782 = vmatprep.subr.bf16.mxu1 %v10064_v57  ;;  %v10119_v56 = vcombine.low %v1340_v45, %v1344_v46  ;;  %v10126_v57 = vcombine.high %v1347_v51, %v1351_v52  ;;  %v10128_v58 = vcombine.high %v1348_v53, %v1352_v54 }
 0x497   : > { %8396 = vmatpush1.bf16.msra.mxu0 %v10061_v63  ;;  %8783 = vmatpush1.bf16.msra.mxu1 %v10063_v0  ;;  %v1360_v63 = vld [vmem:[#allocation2 + $0x2378] sm:$0xff]  ;;  %v10125_v0 = vcombine.low %v1347_v51, %v1351_v52 }
 0x498   : > { %8397 = vmatprep.subr.bf16.mxu0 %v10070_v1  ;;  %8784 = vmatprep.subr.bf16.mxu1 %v10072_v2  ;;  %v10127_v1 = vcombine.low %v1348_v53, %v1352_v54  ;;  %v10134_v2 = vcombine.high %v1355_v59, %v1359_v61  ;;  %v10136_v3 = vcombine.high %v1356_v62, %v1360_v63 }
 0x49b   : > { %8398 = vmatpush1.bf16.msra.mxu0 %v10069_v7  ;;  %8785 = vmatpush1.bf16.msra.mxu1 %v10071_v8  ;;  %v1368_v7 = vld [vmem:[#allocation2 + $0x23b8] sm:$0xff]  ;;  %v10133_v8 = vcombine.low %v1355_v59, %v1359_v61 }
 0x49c   : > { %8399 = vmatprep.subr.bf16.mxu0 %v10078_v9  ;;  %8786 = vmatprep.subr.bf16.mxu1 %v10080_v10  ;;  %v10135_v9 = vcombine.low %v1356_v62, %v1360_v63  ;;  %v10142_v10 = vcombine.high %v1363_v4, %v1367_v5  ;;  %v10144_v11 = vcombine.high %v1364_v6, %v1368_v7 }
 0x49f   : > { %8400 = vmatpush1.bf16.msra.mxu0 %v10077_v15  ;;  %8787 = vmatpush1.bf16.msra.mxu1 %v10079_v16  ;;  %v1376_v15 = vld [vmem:[#allocation2 + $0x23f8] sm:$0xff]  ;;  %v10141_v16 = vcombine.low %v1363_v4, %v1367_v5 }
 0x4a0   : > { %8401 = vmatprep.subr.bf16.mxu0 %v10086_v17  ;;  %8788 = vmatprep.subr.bf16.mxu1 %v10088_v18  ;;  %v10143_v17 = vcombine.low %v1364_v6, %v1368_v7  ;;  %v10150_v18 = vcombine.high %v1371_v12, %v1375_v13  ;;  %v10152_v19 = vcombine.high %v1372_v14, %v1376_v15 }
 0x4a1   : > { %v10151_v21 = vcombine.low %v1372_v14, %v1376_v15 }
 0x4a3   : > { %8402 = vmatpush1.bf16.msra.mxu0 %v10085_v23  ;;  %8789 = vmatpush1.bf16.msra.mxu1 %v10087_v24  ;;  %v1397_v23 = vsub.s32 4, %v10610_v60  ;;  %v1405_v24 = vsub.s32 6, %v10610_v60 }
 0x4a4   : > { %8403 = vmatprep.subr.bf16.mxu0 %v10094_v25  ;;  %8790 = vmatprep.subr.bf16.mxu1 %v10096_v26  ;;  %v1401_v25 = vsub.s32 5, %v10610_v60  ;;  %v1409_v26 = vsub.s32 7, %v10610_v60 }
 0x4a5   : > { %v1398_v28 = vrot.slane %v10393_v27, %v1397_v23  ;;  %v1406_v29 = vrot.slane %v10393_v27, %v1405_v24 }
 0x4a6   : > { %v1402_v30 = vrot.slane %v10393_v27, %v1401_v25 }
 0x4a7   : > { %8404 = vmatpush1.bf16.msra.mxu0 %v10093_v31  ;;  %8791 = vmatpush1.bf16.msra.mxu1 %v10095_v32  ;;  %v1410_v31 = vrot.slane %v10393_v27, %v1409_v26 }
 0x4a8   : > { %8405 = vmatprep.subr.bf16.mxu0 %v10102_v33  ;;  %8792 = vmatprep.subr.bf16.mxu1 %v10104_v34 }
 0x4ab   : > { %8406 = vmatpush1.bf16.msra.mxu0 %v10101_v39  ;;  %8793 = vmatpush1.bf16.msra.mxu1 %v10103_v40 }
 0x4ac   : > { %8407 = vmatprep.subr.bf16.mxu0 %v10110_v41  ;;  %8794 = vmatprep.subr.bf16.mxu1 %v10112_v42 }
 0x4af   : > { %8408 = vmatpush1.bf16.msra.mxu0 %v10109_v47  ;;  %8795 = vmatpush1.bf16.msra.mxu1 %v10111_v48 }
 0x4b0   : > { %8409 = vmatprep.subr.bf16.mxu0 %v10118_v49  ;;  %8796 = vmatprep.subr.bf16.mxu1 %v10120_v50 }
 0x4b3   : > { %8410 = vmatpush1.bf16.msra.mxu0 %v10117_v55  ;;  %8797 = vmatpush1.bf16.msra.mxu1 %v10119_v56 }
 0x4b4   : > { %8411 = vmatprep.subr.bf16.mxu0 %v10126_v57  ;;  %8798 = vmatprep.subr.bf16.mxu1 %v10128_v58 }
 0x4b7   : > { %8412 = vmatpush1.bf16.msra.mxu0 %v10125_v0  ;;  %8799 = vmatpush1.bf16.msra.mxu1 %v10127_v1 }
 0x4b8   : > { %8413 = vmatprep.subr.bf16.mxu0 %v10134_v2  ;;  %8800 = vmatprep.subr.bf16.mxu1 %v10136_v3 }
 0x4bb   : > { %8414 = vmatpush1.bf16.msra.mxu0 %v10133_v8  ;;  %8801 = vmatpush1.bf16.msra.mxu1 %v10135_v9 }
 0x4bc   : > { %8415 = vmatprep.subr.bf16.mxu0 %v10142_v10  ;;  %8802 = vmatprep.subr.bf16.mxu1 %v10144_v11 }
 0x4bf   : > { %8416 = vmatpush1.bf16.msra.mxu0 %v10141_v16  ;;  %8803 = vmatpush1.bf16.msra.mxu1 %v10143_v17 }
 0x4c0   : > { %8417 = vmatprep.subr.bf16.mxu0 %v10150_v18  ;;  %8804 = vmatprep.subr.bf16.mxu1 %v10152_v19 }
 0x4c3   : > { %8418 = vmatpush1.bf16.msra.mxu0 %v10149_v20  ;;  %8805 = vmatpush1.bf16.msra.mxu1 %v10151_v21 }
 0x4c6   : > { %8420 = vmatmul.mubr.bf16.vlgmr.msra.gmra.mrb[4].mxu0 %v10392_v22  ;;  %8807 = vmatmul.mubr.bf16.vlgmr.msra.gmra.mrb[4].mxu1 %v10392_v22 }
 0x599   : > { %v8421_v32 = vpop.f32.mrb[4].mxu0  ;;  %v8808_v34 = vpop.f32.mrb[4].mxu1 }
 0x59a   : > { %v10180_v33 = vadd.f32 %v8421_v32, %v1398_v28  ;;  %v8423_v35 = vpop.f32.mrb[5].mxu0  ;;  %v10184_v36 = vadd.f32 %v8808_v34, %v1406_v29  ;;  %v8810_v38 = vpop.f32.mrb[5].mxu1 }
 0x59b   : > { %v10181_v37 = vadd.f32 %v8423_v35, %v1402_v30  ;;  %v8425_v39 = vpop.f32.mrb[6].mxu0  ;;  %v10185_v41 = vadd.f32 %v8810_v38, %v1410_v31  ;;  %v8812_v43 = vpop.f32.mrb[6].mxu1 }
 0x59c   : > { %v8821_v40 = vmax.f32 %v10180_v33, 0.0  ;;  %v10182_v42 = vadd.f32 %v8425_v39, %v1398_v28  ;;  %v8427_v44 = vpop.f32.mrb[7].mxu0  ;;  %v8823_v60 = vmax.f32 %v10184_v36, 0.0  ;;  %v10186_v46 = vadd.f32 %v8812_v43, %v1406_v29  ;;  %v8814_v48 = vpop.f32.mrb[7].mxu1 }
 0x59d   : > { %v8822_v45 = vmax.f32 %v10181_v37, 0.0  ;;  %v10183_v47 = vadd.f32 %v8427_v44, %v1402_v30  ;;  %v8824_v49 = vmax.f32 %v10185_v41, 0.0  ;;  %v10187_v51 = vadd.f32 %v8814_v48, %v1410_v31 }
 0x59e   : > { %v8829_v50 = vmax.f32 %v10182_v42, 0.0  ;;  %v8831_v53 = vmax.f32 %v10186_v46, 0.0 }
 0x59f   : > { %v10166_v52 = vpack.c.bf16 %v8822_v45, %v8821_v40  ;;  %v8830_v54 = vmax.f32 %v10183_v47, 0.0  ;;  %v10167_v55 = vpack.c.bf16 %v8824_v49, %v8823_v60  ;;  %v8832_v56 = vmax.f32 %v10187_v51, 0.0 }
 0x5a1   : > { %8883 = vst [vmem:[%s10623_s25 + $0x10] sm:$0xff] %v10166_v52  ;;  %v10170_v57 = vpack.c.bf16 %v8830_v54, %v8829_v50  ;;  %8884 = vst [vmem:[%s10623_s25 + $0x18] sm:$0xff] %v10167_v55  ;;  %v10171_v58 = vpack.c.bf16 %v8832_v56, %v8831_v53 }
 0x5a3   : > { %8887 = vst [vmem:[%s10623_s25 + $0x30] sm:$0xff] %v10170_v57  ;;  %8888 = vst [vmem:[%s10623_s25 + $0x38] sm:$0xff] %v10171_v58 }
 0x5a4 PF: > { %s15_s12 = sadd.s32 1, %s10464_s12  }
 0x5a5   : > { %p12_p7 = scmp.ge.s32.totalorder %s15_s12, 4  }
 0x5a7   :  { %14 = sbr.rel (!%p12_p7) target bundleno = 2 (0x2), region = 71 }
 0x5ae   :  { %8913 = vsyncpa [#allocation3], 1 }
 0x5af   :  { %8915 = vsyncpa [#allocation3 + $0x1], 1 }
 0x5b0   :  { %8916 = vsyncpa [#allocation5], 1 }

// kernel: fwd.7
= control target key start
LH: loop header
LB: loop body
LE: loop exit
PB: predicated region body
PF: predicated region fallthrough
CT: control target
= control target key end

     0   :  { %s1412_s12 = smov 0   ;;  %s1698_s0 = inlined_call_operand.vmem [shape: bf16[192,512], index: 0, kind: input, shape index: {}]   ;;  %s1699_s1 = inlined_call_operand.vmem [shape: bf16[512,256], index: 1, kind: input, shape index: {}]   ;;  %s1700_s2 = inlined_call_operand.vmem [shape: f32[1,256], index: 2, kind: input, shape index: {}]   ;;  %s1701_s3 = inlined_call_operand.vmem [shape: bf16[192,256], index: 3, kind: output, shape index: {}]  }
   0x1 LB: > { %s1071_s13 = sadd.s32 4294967295, %s1390_s12   ;;  %p1075_p0 = scmp.ge.s32.totalorder %s1390_s12, 1  ;;  %s1390_s12 = sphi %s1412_s12, %s13_s12  }
   0x2   : > { %p139_p1 = scmp.lt.s32.totalorder %s1390_s12, 3 }
   0x4   : > { %p140_p2 = pnand %p1075_p0, %p139_p1 }
   0x5   : > { %v1252_v0 = vld [vmem:[%s1699_s1 + $0x4] ss:$8 sps:$4 sm:$0xff] (!%p140_p2)   ;;  %v1256_v2 = vld [vmem:[%s1699_s1] ss:$8 sps:$4 sm:$0xff] (!%p140_p2)   ;;  %v1258_v4 = vld [vmem:[%s1699_s1 + $0x14] ss:$8 sps:$4 sm:$0xff] (!%p140_p2)  }
   0x6   : > { %143 = sbr.rel (%p140_p2) target bundleno = 334 (0x14e), region = 32  ;;  %v1254_v1 = vld [vmem:[%s1699_s1 + $0x104] ss:$8 sps:$4 sm:$0xff] (!%p140_p2)   ;;  %719 = vmatprep.subr.bf16.mxu1 (!%p140_p2), %v1252_v0  ;;  %v1257_v3 = vld [vmem:[%s1699_s1 + $0x100] ss:$8 sps:$4 sm:$0xff] (!%p140_p2)  }
   0x7   : > { %812 = vmatprep.subr.bf16.mxu0 (!%p140_p2), %v1254_v1  ;;  %720 = vmatpush1.bf16.msra.mxu1 (!%p140_p2), %v1256_v2  ;;  %v1260_v5 = vld [vmem:[%s1699_s1 + $0x114] ss:$8 sps:$4 sm:$0xff] (!%p140_p2)   ;;  %v1262_v6 = vld [vmem:[%s1699_s1 + $0x10] ss:$8 sps:$4 sm:$0xff] (!%p140_p2)   ;;  %v1264_v8 = vld [vmem:[%s1699_s1 + $0x24] ss:$8 sps:$4 sm:$0xff] (!%p140_p2)  }
   0x8   : > { %813 = vmatpush1.bf16.msra.mxu0 (!%p140_p2), %v1257_v3  ;;  %721 = vmatprep.subr.bf16.mxu1 (!%p140_p2), %v1258_v4  ;;  %v1263_v7 = vld [vmem:[%s1699_s1 + $0x110] ss:$8 sps:$4 sm:$0xff] (!%p140_p2)   ;;  %v1266_v9 = vld [vmem:[%s1699_s1 + $0x124] ss:$8 sps:$4 sm:$0xff] (!%p140_p2)   ;;  %v1268_v10 = vld [vmem:[%s1699_s1 + $0x20] ss:$8 sps:$4 sm:$0xff] (!%p140_p2)  }
   0x9   : > { %814 = vmatprep.subr.bf16.mxu0 (!%p140_p2), %v1260_v5  ;;  %v1269_v11 = vld [vmem:[%s1699_s1 + $0x120] ss:$8 sps:$4 sm:$0xff] (!%p140_p2)   ;;  %v1270_v12 = vld [vmem:[%s1699_s1 + $0x34] ss:$8 sps:$4 sm:$0xff] (!%p140_p2)   ;;  %v1274_v14 = vld [vmem:[%s1699_s1 + $0x30] ss:$8 sps:$4 sm:$0xff] (!%p140_p2)  }
   0xa   : > { %v1272_v13 = vld [vmem:[%s1699_s1 + $0x134] ss:$8 sps:$4 sm:$0xff] (!%p140_p2)   ;;  %v1275_v15 = vld [vmem:[%s1699_s1 + $0x130] ss:$8 sps:$4 sm:$0xff] (!%p140_p2)   ;;  %v1276_v16 = vld [vmem:[%s1699_s1 + $0x44] ss:$8 sps:$4 sm:$0xff] (!%p140_p2)  }
   0xb   : > { %722 = vmatpush1.bf16.msra.mxu1 (!%p140_p2), %v1262_v6  ;;  %v1278_v17 = vld [vmem:[%s1699_s1 + $0x144] ss:$8 sps:$4 sm:$0xff] (!%p140_p2)   ;;  %v1280_v18 = vld [vmem:[%s1699_s1 + $0x40] ss:$8 sps:$4 sm:$0xff] (!%p140_p2)   ;;  %v1282_v20 = vld [vmem:[%s1699_s1 + $0x54] ss:$8 sps:$4 sm:$0xff] (!%p140_p2)  }
   0xc   : > { %815 = vmatpush1.bf16.msra.mxu0 (!%p140_p2), %v1263_v7  ;;  %723 = vmatprep.subr.bf16.mxu1 (!%p140_p2), %v1264_v8  ;;  %v1281_v19 = vld [vmem:[%s1699_s1 + $0x140] ss:$8 sps:$4 sm:$0xff] (!%p140_p2)   ;;  %v1284_v21 = vld [vmem:[%s1699_s1 + $0x154] ss:$8 sps:$4 sm:$0xff] (!%p140_p2)   ;;  %v1286_v22 = vld [vmem:[%s1699_s1 + $0x50] ss:$8 sps:$4 sm:$0xff] (!%p140_p2)  }
   0xd   : > { %816 = vmatprep.subr.bf16.mxu0 %v1266_v9  ;;  %v1287_v23 = vld [vmem:[%s1699_s1 + $0x150] ss:$8 sps:$4 sm:$0xff]   ;;  %v1288_v24 = vld [vmem:[%s1699_s1 + $0x64] ss:$8 sps:$4 sm:$0xff]   ;;  %v1292_v26 = vld [vmem:[%s1699_s1 + $0x60] ss:$8 sps:$4 sm:$0xff]  }
   0xe   : > { %v1290_v25 = vld [vmem:[%s1699_s1 + $0x164] ss:$8 sps:$4 sm:$0xff]   ;;  %v1293_v27 = vld [vmem:[%s1699_s1 + $0x160] ss:$8 sps:$4 sm:$0xff]   ;;  %v1294_v28 = vld [vmem:[%s1699_s1 + $0x74] ss:$8 sps:$4 sm:$0xff]  }
   0xf   : > { %724 = vmatpush1.bf16.msra.mxu1 %v1268_v10  ;;  %v1296_v29 = vld [vmem:[%s1699_s1 + $0x174] ss:$8 sps:$4 sm:$0xff]   ;;  %s165_s24 = smul.u32 12, %s1071_s13  ;;  %v1298_v30 = vld [vmem:[%s1699_s1 + $0x70] ss:$8 sps:$4 sm:$0xff]  }
  0x10   : > { %817 = vmatpush1.bf16.msra.mxu0 %v1269_v11  ;;  %725 = vmatprep.subr.bf16.mxu1 %v1270_v12  ;;  %v1299_v31 = vld [vmem:[%s1699_s1 + $0x170] ss:$8 sps:$4 sm:$0xff]   ;;  %v1300_v32 = vld [vmem:[%s1699_s1 + $0x84] ss:$8 sps:$4 sm:$0xff]   ;;  %v1304_v34 = vld [vmem:[%s1699_s1 + $0x80] ss:$8 sps:$4 sm:$0xff]  }
  0x11   : > { %818 = vmatprep.subr.bf16.mxu0 %v1272_v13  ;;  %v1302_v33 = vld [vmem:[%s1699_s1 + $0x184] ss:$8 sps:$4 sm:$0xff]   ;;  %p166_p3 = scmp.lt.s32.totalorder %s165_s24, 23  ;;  %v1305_v35 = vld [vmem:[%s1699_s1 + $0x180] ss:$8 sps:$4 sm:$0xff]  }
  0x12   : > { %v1306_v36 = vld [vmem:[%s1699_s1 + $0x94] ss:$8 sps:$4 sm:$0xff]   ;;  %v1310_v38 = vld [vmem:[%s1699_s1 + $0x90] ss:$8 sps:$4 sm:$0xff]   ;;  %v1312_v40 = vld [vmem:[%s1699_s1 + $0xa4] ss:$8 sps:$4 sm:$0xff]  }
  0x13   : > { %726 = vmatpush1.bf16.msra.mxu1 %v1274_v14  ;;  %v1308_v37 = vld [vmem:[%s1699_s1 + $0x194] ss:$8 sps:$4 sm:$0xff]   ;;  %s1703_s24 = smov (!%p166_p3, %s165_s24), 23  ;;  %v1311_v39 = vld [vmem:[%s1699_s1 + $0x190] ss:$8 sps:$4 sm:$0xff]  }
  0x14   : > { %819 = vmatpush1.bf16.msra.mxu0 %v1275_v15  ;;  %727 = vmatprep.subr.bf16.mxu1 %v1276_v16  ;;  %v1314_v41 = vld [vmem:[%s1699_s1 + $0x1a4] ss:$8 sps:$4 sm:$0xff]   ;;  %s1182_s23 = sshll.u32 %s1703_s24, 4  ;;  %v1316_v42 = vld [vmem:[%s1699_s1 + $0xa0] ss:$8 sps:$4 sm:$0xff]  }
  0x15   : > { %820 = vmatprep.subr.bf16.mxu0 %v1278_v17  ;;  %v1317_v43 = vld [vmem:[%s1699_s1 + $0x1a0] ss:$8 sps:$4 sm:$0xff]   ;;  %v1318_v44 = vld [vmem:[%s1699_s1 + $0xb4] ss:$8 sps:$4 sm:$0xff]   ;;  %s1563_s13 = scalar_lea.vmem %s1698_s0, %s1182_s23  ;;  %v1322_v46 = vld [vmem:[%s1699_s1 + $0xb0] ss:$8 sps:$4 sm:$0xff]  }
  0x16   : > { %v1320_v45 = vld [vmem:[%s1699_s1 + $0x1b4] ss:$8 sps:$4 sm:$0xff]   ;;  %v1323_v47 = vld [vmem:[%s1699_s1 + $0x1b0] ss:$8 sps:$4 sm:$0xff]   ;;  %v1324_v48 = vld [vmem:[%s1699_s1 + $0xc4] ss:$8 sps:$4 sm:$0xff]  }
  0x17   : > { %728 = vmatpush1.bf16.msra.mxu1 %v1280_v18  ;;  %v1350_v49 = vld [vmem:[%s1563_s13 + $0x4] ss:$16 sps:$4 sm:$0xff]   ;;  %v1353_v51 = vld [vmem:[%s1563_s13 + $0xc] ss:$16 sps:$4 sm:$0xff]   ;;  %v1328_v52 = vld [vmem:[%s1699_s1 + $0xc0] ss:$8 sps:$4 sm:$0xff]  }
  0x18   : > { %821 = vmatpush1.bf16.msra.mxu0 %v1281_v19  ;;  %729 = vmatprep.subr.bf16.mxu1 %v1282_v20  ;;  %v1326_v50 = vld [vmem:[%s1699_s1 + $0x1c4] ss:$8 sps:$4 sm:$0xff]   ;;  %v1329_v53 = vld [vmem:[%s1699_s1 + $0x1c0] ss:$8 sps:$4 sm:$0xff]   ;;  %v1330_v54 = vld [vmem:[%s1699_s1 + $0xd4] ss:$8 sps:$4 sm:$0xff]  }
  0x19   : > { %822 = vmatprep.subr.bf16.mxu0 %v1284_v21  ;;  %751 = vmatprep.mubr.bf16.mxu1 %v1350_v49  ;;  %v1332_v55 = vld [vmem:[%s1699_s1 + $0x1d4] ss:$8 sps:$4 sm:$0xff]   ;;  %v1334_v56 = vld [vmem:[%s1699_s1 + $0xd0] ss:$8 sps:$4 sm:$0xff]   ;;  %v1336_v58 = vld [vmem:[%s1699_s1 + $0xe4] ss:$8 sps:$4 sm:$0xff]  }
  0x1a   : > { %844 = vmatprep.mubr.bf16.mxu0 %v1353_v51  ;;  %v1335_v57 = vld [vmem:[%s1699_s1 + $0x1d0] ss:$8 sps:$4 sm:$0xff]   ;;  %v1338_v59 = vld [vmem:[%s1699_s1 + $0x1e4] ss:$8 sps:$4 sm:$0xff]   ;;  %v1340_v60 = vld [vmem:[%s1699_s1 + $0xe0] ss:$8 sps:$4 sm:$0xff]  }
  0x1b   : > { %730 = vmatpush1.bf16.msra.mxu1 %v1286_v22  ;;  %v1341_v61 = vld [vmem:[%s1699_s1 + $0x1e0] ss:$8 sps:$4 sm:$0xff]   ;;  %v1342_v62 = vld [vmem:[%s1699_s1 + $0xf4] ss:$8 sps:$4 sm:$0xff]   ;;  %v1346_v0 = vld [vmem:[%s1699_s1 + $0xf0] ss:$8 sps:$4 sm:$0xff]  }
  0x1c   : > { %823 = vmatpush1.bf16.msra.mxu0 %v1287_v23  ;;  %731 = vmatprep.subr.bf16.mxu1 %v1288_v24  ;;  %v1344_v63 = vld [vmem:[%s1699_s1 + $0x1f4] ss:$8 sps:$4 sm:$0xff]   ;;  %v1347_v1 = vld [vmem:[%s1699_s1 + $0x1f0] ss:$8 sps:$4 sm:$0xff]   ;;  %v269_v24 = vlaneseq }
  0x1d   : > { %824 = vmatprep.subr.bf16.mxu0 %v1290_v25  ;;  %v1348_v2 = vld [vmem:[%s1563_s13] ss:$16 sps:$4 sm:$0xff]   ;;  %v1351_v3 = vld [vmem:[%s1563_s13 + $0x8] ss:$16 sps:$4 sm:$0xff]   ;;  %v1354_v4 = vld [vmem:[%s1563_s13 + $0x24] ss:$16 sps:$4 sm:$0xff]  }
  0x1e   : > { %v1356_v5 = vld [vmem:[%s1563_s13 + $0x2c] ss:$16 sps:$4 sm:$0xff]   ;;  %v1358_v6 = vld [vmem:[%s1563_s13 + $0x20] ss:$16 sps:$4 sm:$0xff]   ;;  %v1359_v7 = vld [vmem:[%s1563_s13 + $0x28] ss:$16 sps:$4 sm:$0xff]  }
  0x1f   : > { %732 = vmatpush1.bf16.msra.mxu1 %v1292_v26  ;;  %v1360_v8 = vld [vmem:[%s1563_s13 + $0x44] ss:$16 sps:$4 sm:$0xff]   ;;  %v1362_v9 = vld [vmem:[%s1563_s13 + $0x4c] ss:$16 sps:$4 sm:$0xff]   ;;  %v1364_v10 = vld [vmem:[%s1563_s13 + $0x40] ss:$16 sps:$4 sm:$0xff]  }
  0x20   : > { %825 = vmatpush1.bf16.msra.mxu0 %v1293_v27  ;;  %733 = vmatprep.subr.bf16.mxu1 %v1294_v28  ;;  %v1365_v11 = vld [vmem:[%s1563_s13 + $0x48] ss:$16 sps:$4 sm:$0xff]   ;;  %v1366_v12 = vld [vmem:[%s1563_s13 + $0x64] ss:$16 sps:$4 sm:$0xff]   ;;  %v1368_v13 = vld [vmem:[%s1563_s13 + $0x6c] ss:$16 sps:$4 sm:$0xff]  }
  0x21   : > { %826 = vmatprep.subr.bf16.mxu0 %v1296_v29  ;;  %v1370_v14 = vld [vmem:[%s1563_s13 + $0x60] ss:$16 sps:$4 sm:$0xff]   ;;  %v1371_v15 = vld [vmem:[%s1563_s13 + $0x68] ss:$16 sps:$4 sm:$0xff]   ;;  %v1372_v16 = vld [vmem:[%s1563_s13 + $0x84] ss:$16 sps:$4 sm:$0xff]  }
  0x22   : > { %v1374_v17 = vld [vmem:[%s1563_s13 + $0x8c] ss:$16 sps:$4 sm:$0xff]   ;;  %v1376_v18 = vld [vmem:[%s1563_s13 + $0x80] ss:$16 sps:$4 sm:$0xff]   ;;  %v1377_v19 = vld [vmem:[%s1563_s13 + $0x88] ss:$16 sps:$4 sm:$0xff]  }
  0x23   : > { %734 = vmatpush1.bf16.msra.mxu1 %v1298_v30  ;;  %v1378_v20 = vld [vmem:[%s1563_s13 + $0xa4] ss:$16 sps:$4 sm:$0xff]   ;;  %v1380_v21 = vld [vmem:[%s1563_s13 + $0xac] ss:$16 sps:$4 sm:$0xff]   ;;  %v1382_v22 = vld [vmem:[%s1563_s13 + $0xa0] ss:$16 sps:$4 sm:$0xff]  }
  0x24   : > { %827 = vmatpush1.bf16.msra.mxu0 %v1299_v31  ;;  %735 = vmatprep.subr.bf16.mxu1 %v1300_v32  ;;  %v1383_v23 = vld [vmem:[%s1563_s13 + $0xa8] ss:$16 sps:$4 sm:$0xff]   ;;  %v270_v25 = vshrl.u32 %v269_v24, 7  ;;  %v267_v27 = vld [vmem:[%s1700_s2] sm:$0x3]  ;;  %s1183_s13 = sshll.u32 %s1703_s24, 3 }
  0x25   : > { %828 = vmatprep.subr.bf16.mxu0 %v1302_v33  ;;  %s1661_s27 = scalar_lea.vmem %s1701_s3, %s1183_s13 }
  0x26   : > { %v271_v26 = vsub.s32 0, %v270_v25  ;;  %v275_v28 = vsub.s32 1, %v270_v25 }
  0x27   : > { %736 = vmatpush1.bf16.msra.mxu1 %v1304_v34 }
  0x28   : > { %829 = vmatpush1.bf16.msra.mxu0 %v1305_v35  ;;  %737 = vmatprep.subr.bf16.mxu1 %v1306_v36  ;;  %v1649_v29 = vrot.slane %v267_v27, %v271_v26  ;;  %v1651_v30 = vrot.slane %v267_v27, %v275_v28 }
  0x29   : > { %830 = vmatprep.subr.bf16.mxu0 %v1308_v37 }
  0x2b   : > { %738 = vmatpush1.bf16.msra.mxu1 %v1310_v38 }
  0x2c   : > { %831 = vmatpush1.bf16.msra.mxu0 %v1311_v39  ;;  %739 = vmatprep.subr.bf16.mxu1 %v1312_v40 }
  0x2d   : > { %832 = vmatprep.subr.bf16.mxu0 %v1314_v41 }
  0x2f   : > { %740 = vmatpush1.bf16.msra.mxu1 %v1316_v42 }
  0x30   : > { %833 = vmatpush1.bf16.msra.mxu0 %v1317_v43  ;;  %741 = vmatprep.subr.bf16.mxu1 %v1318_v44 }
  0x31   : > { %834 = vmatprep.subr.bf16.mxu0 %v1320_v45 }
  0x33   : > { %742 = vmatpush1.bf16.msra.mxu1 %v1322_v46 }
  0x34   : > { %835 = vmatpush1.bf16.msra.mxu0 %v1323_v47  ;;  %743 = vmatprep.subr.bf16.mxu1 %v1324_v48 }
  0x35   : > { %836 = vmatprep.subr.bf16.mxu0 %v1326_v50 }
  0x37   : > { %744 = vmatpush1.bf16.msra.mxu1 %v1328_v52 }
  0x38   : > { %837 = vmatpush1.bf16.msra.mxu0 %v1329_v53  ;;  %745 = vmatprep.subr.bf16.mxu1 %v1330_v54 }
  0x39   : > { %838 = vmatprep.subr.bf16.mxu0 %v1332_v55 }
  0x3b   : > { %746 = vmatpush1.bf16.msra.mxu1 %v1334_v56 }
  0x3c   : > { %839 = vmatpush1.bf16.msra.mxu0 %v1335_v57  ;;  %747 = vmatprep.subr.bf16.mxu1 %v1336_v58 }
  0x3d   : > { %840 = vmatprep.subr.bf16.mxu0 %v1338_v59 }
  0x3f   : > { %748 = vmatpush1.bf16.msra.mxu1 %v1340_v60 }
  0x40   : > { %841 = vmatpush1.bf16.msra.mxu0 %v1341_v61  ;;  %749 = vmatprep.subr.bf16.mxu1 %v1342_v62 }
  0x41   : > { %842 = vmatprep.subr.bf16.mxu0 %v1344_v63 }
  0x43   : > { %750 = vmatpush1.bf16.msra.mxu1 %v1346_v0 }
  0x44   : > { %843 = vmatpush1.bf16.msra.mxu0 %v1347_v1 }
  0x46   : > { %752 = vmatmul.mubr.bf16.vlgmr.msra.gmra.mrb[0].mxu1 %v1348_v2 }
  0x47   : > { %845 = vmatmul.mubr.bf16.vlgmr.msra.gmra.mrb[0].mxu0 %v1351_v3  ;;  %761 = vmatprep.mubr.bf16.mxu1 %v1354_v4 }
  0x48   : > { %854 = vmatprep.mubr.bf16.mxu0 %v1356_v5 }
  0x4e   : > { %762 = vmatmul.mubr.bf16.gmra.mrb[4].mxu1 %v1358_v6 }
  0x4f   : > { %855 = vmatmul.mubr.bf16.gmra.mrb[4].mxu0 %v1359_v7  ;;  %771 = vmatprep.mubr.bf16.mxu1 %v1360_v8 }
  0x50   : > { %864 = vmatprep.mubr.bf16.mxu0 %v1362_v9 }
  0x56   : > { %772 = vmatmul.mubr.bf16.gmra.mrb[8].mxu1 %v1364_v10 }
  0x57   : > { %865 = vmatmul.mubr.bf16.gmra.mrb[8].mxu0 %v1365_v11  ;;  %781 = vmatprep.mubr.bf16.mxu1 %v1366_v12 }
  0x58   : > { %874 = vmatprep.mubr.bf16.mxu0 %v1368_v13 }
  0x5e   : > { %782 = vmatmul.mubr.bf16.gmra.mrb[12].mxu1 %v1370_v14 }
  0x5f   : > { %875 = vmatmul.mubr.bf16.gmra.mrb[12].mxu0 %v1371_v15  ;;  %791 = vmatprep.mubr.bf16.mxu1 %v1372_v16 }
  0x60   : > { %884 = vmatprep.mubr.bf16.mxu0 %v1374_v17 }
  0x66   : > { %792 = vmatmul.mubr.bf16.gmra.mrb[16].mxu1 %v1376_v18 }
  0x67   : > { %885 = vmatmul.mubr.bf16.gmra.mrb[16].mxu0 %v1377_v19  ;;  %801 = vmatprep.mubr.bf16.mxu1 %v1378_v20 }
  0x68   : > { %894 = vmatprep.mubr.bf16.mxu0 %v1380_v21 }
  0x6e   : > { %802 = vmatmul.mubr.bf16.gmra.mrb[20].mxu1 %v1382_v22 }
  0x6f   : > { %895 = vmatmul.mubr.bf16.gmra.mrb[20].mxu0 %v1383_v23 }
 0x119   : > { %v753_v31 = vpop.f32.mrb[0].mxu1 }
 0x11a   : > { %v846_v32 = vpop.f32.mrb[0].mxu0  ;;  %v754_v33 = vadd.f32 %v753_v31, %v1649_v29  ;;  %v755_v34 = vpop.f32.mrb[1].mxu1 }
 0x11b   : > { %v848_v35 = vpop.f32.mrb[1].mxu0  ;;  %v756_v36 = vadd.f32 %v755_v34, %v1651_v30  ;;  %v757_v37 = vpop.f32.mrb[2].mxu1 }
 0x11c   : > { %v850_v38 = vpop.f32.mrb[2].mxu0  ;;  %v847_v39 = vadd.f32 %v846_v32, %v754_v33  ;;  %v758_v40 = vadd.f32 %v757_v37, %v1649_v29  ;;  %v759_v41 = vpop.f32.mrb[3].mxu1 }
 0x11d   : > { %v852_v42 = vpop.f32.mrb[3].mxu0  ;;  %v849_v43 = vadd.f32 %v848_v35, %v756_v36  ;;  %v760_v44 = vadd.f32 %v759_v41, %v1651_v30 }
 0x11e   : > { %v905_v45 = vmax.f32 %v847_v39, 0.0  ;;  %v851_v46 = vadd.f32 %v850_v38, %v758_v40 }
 0x11f   : > { %v906_v47 = vmax.f32 %v849_v43, 0.0  ;;  %v853_v48 = vadd.f32 %v852_v42, %v760_v44 }
 0x120   : > { %v907_v49 = vmax.f32 %v851_v46, 0.0 }
 0x121   : > { %v1184_v50 = vpack.c.bf16 %v906_v47, %v905_v45  ;;  %v908_v51 = vmax.f32 %v853_v48, 0.0  ;;  %v763_v52 = vpop.f32.mrb[4].mxu1 }
 0x122   : > { %v856_v53 = vpop.f32.mrb[4].mxu0  ;;  %v764_v54 = vadd.f32 %v763_v52, %v1649_v29  ;;  %v765_v55 = vpop.f32.mrb[5].mxu1 }
 0x123   : > { %v858_v56 = vpop.f32.mrb[5].mxu0  ;;  %1001 = vst [vmem:[%s1661_s27] sm:$0xff] %v1184_v50  ;;  %v1185_v57 = vpack.c.bf16 %v908_v51, %v907_v49  ;;  %v766_v58 = vadd.f32 %v765_v55, %v1651_v30  ;;  %v767_v59 = vpop.f32.mrb[6].mxu1 }
 0x124   : > { %v860_v60 = vpop.f32.mrb[6].mxu0  ;;  %v857_v61 = vadd.f32 %v856_v53, %v764_v54  ;;  %v768_v62 = vadd.f32 %v767_v59, %v1649_v29  ;;  %v769_v63 = vpop.f32.mrb[7].mxu1 }
 0x125   : > { %v862_v0 = vpop.f32.mrb[7].mxu0  ;;  %1002 = vst [vmem:[%s1661_s27 + $0x8] sm:$0xff] %v1185_v57  ;;  %v859_v1 = vadd.f32 %v858_v56, %v766_v58  ;;  %v770_v2 = vadd.f32 %v769_v63, %v1651_v30 }
 0x126   : > { %v909_v3 = vmax.f32 %v857_v61, 0.0  ;;  %v861_v4 = vadd.f32 %v860_v60, %v768_v62 }
 0x127   : > { %v910_v5 = vmax.f32 %v859_v1, 0.0  ;;  %v863_v6 = vadd.f32 %v862_v0, %v770_v2 }
 0x128   : > { %v911_v7 = vmax.f32 %v861_v4, 0.0 }
 0x129   : > { %v1186_v8 = vpack.c.bf16 %v910_v5, %v909_v3  ;;  %v912_v9 = vmax.f32 %v863_v6, 0.0  ;;  %v773_v10 = vpop.f32.mrb[8].mxu1 }
 0x12a   : > { %v866_v11 = vpop.f32.mrb[8].mxu0  ;;  %v774_v12 = vadd.f32 %v773_v10, %v1649_v29  ;;  %v775_v13 = vpop.f32.mrb[9].mxu1 }
 0x12b   : > { %v868_v14 = vpop.f32.mrb[9].mxu0  ;;  %1003 = vst [vmem:[%s1661_s27 + $0x10] sm:$0xff] %v1186_v8  ;;  %v1187_v15 = vpack.c.bf16 %v912_v9, %v911_v7  ;;  %v776_v16 = vadd.f32 %v775_v13, %v1651_v30  ;;  %v777_v17 = vpop.f32.mrb[10].mxu1 }
 0x12c   : > { %v870_v18 = vpop.f32.mrb[10].mxu0  ;;  %v867_v19 = vadd.f32 %v866_v11, %v774_v12  ;;  %v778_v20 = vadd.f32 %v777_v17, %v1649_v29  ;;  %v779_v21 = vpop.f32.mrb[11].mxu1 }
 0x12d   : > { %v872_v22 = vpop.f32.mrb[11].mxu0  ;;  %1004 = vst [vmem:[%s1661_s27 + $0x18] sm:$0xff] %v1187_v15  ;;  %v869_v23 = vadd.f32 %v868_v14, %v776_v16  ;;  %v780_v24 = vadd.f32 %v779_v21, %v1651_v30 }
 0x12e   : > { %v913_v25 = vmax.f32 %v867_v19, 0.0  ;;  %v871_v26 = vadd.f32 %v870_v18, %v778_v20 }
 0x12f   : > { %v914_v27 = vmax.f32 %v869_v23, 0.0  ;;  %v873_v28 = vadd.f32 %v872_v22, %v780_v24 }
 0x130   : > { %v915_v31 = vmax.f32 %v871_v26, 0.0 }
 0x131   : > { %v1188_v32 = vpack.c.bf16 %v914_v27, %v913_v25  ;;  %v916_v33 = vmax.f32 %v873_v28, 0.0  ;;  %v783_v34 = vpop.f32.mrb[12].mxu1 }
 0x132   : > { %v876_v35 = vpop.f32.mrb[12].mxu0  ;;  %v784_v36 = vadd.f32 %v783_v34, %v1649_v29  ;;  %v785_v37 = vpop.f32.mrb[13].mxu1 }
 0x133   : > { %v878_v38 = vpop.f32.mrb[13].mxu0  ;;  %1005 = vst [vmem:[%s1661_s27 + $0x20] sm:$0xff] %v1188_v32  ;;  %v1189_v39 = vpack.c.bf16 %v916_v33, %v915_v31  ;;  %v786_v40 = vadd.f32 %v785_v37, %v1651_v30  ;;  %v787_v41 = vpop.f32.mrb[14].mxu1 }
 0x134   : > { %v880_v42 = vpop.f32.mrb[14].mxu0  ;;  %v877_v43 = vadd.f32 %v876_v35, %v784_v36  ;;  %v788_v44 = vadd.f32 %v787_v41, %v1649_v29  ;;  %v789_v45 = vpop.f32.mrb[15].mxu1 }
 0x135   : > { %v882_v46 = vpop.f32.mrb[15].mxu0  ;;  %1006 = vst [vmem:[%s1661_s27 + $0x28] sm:$0xff] %v1189_v39  ;;  %v879_v47 = vadd.f32 %v878_v38, %v786_v40  ;;  %v790_v48 = vadd.f32 %v789_v45, %v1651_v30 }
 0x136   : > { %v917_v49 = vmax.f32 %v877_v43, 0.0  ;;  %v881_v50 = vadd.f32 %v880_v42, %v788_v44 }
 0x137   : > { %v918_v51 = vmax.f32 %v879_v47, 0.0  ;;  %v883_v52 = vadd.f32 %v882_v46, %v790_v48 }
 0x138   : > { %v919_v53 = vmax.f32 %v881_v50, 0.0 }
 0x139   : > { %v1190_v54 = vpack.c.bf16 %v918_v51, %v917_v49  ;;  %v920_v55 = vmax.f32 %v883_v52, 0.0  ;;  %v793_v56 = vpop.f32.mrb[16].mxu1 }
 0x13a   : > { %v886_v57 = vpop.f32.mrb[16].mxu0  ;;  %v794_v58 = vadd.f32 %v793_v56, %v1649_v29  ;;  %v795_v59 = vpop.f32.mrb[17].mxu1 }
 0x13b   : > { %v888_v60 = vpop.f32.mrb[17].mxu0  ;;  %1007 = vst [vmem:[%s1661_s27 + $0x30] sm:$0xff] %v1190_v54  ;;  %v1191_v61 = vpack.c.bf16 %v920_v55, %v919_v53  ;;  %v796_v62 = vadd.f32 %v795_v59, %v1651_v30  ;;  %v797_v63 = vpop.f32.mrb[18].mxu1 }
 0x13c   : > { %v890_v0 = vpop.f32.mrb[18].mxu0  ;;  %v887_v1 = vadd.f32 %v886_v57, %v794_v58  ;;  %v798_v2 = vadd.f32 %v797_v63, %v1649_v29  ;;  %v799_v3 = vpop.f32.mrb[19].mxu1 }
 0x13d   : > { %v892_v4 = vpop.f32.mrb[19].mxu0  ;;  %1008 = vst [vmem:[%s1661_s27 + $0x38] sm:$0xff] %v1191_v61  ;;  %v889_v5 = vadd.f32 %v888_v60, %v796_v62  ;;  %v800_v6 = vadd.f32 %v799_v3, %v1651_v30 }
 0x13e   : > { %v921_v7 = vmax.f32 %v887_v1, 0.0  ;;  %v891_v8 = vadd.f32 %v890_v0, %v798_v2 }
 0x13f   : > { %v922_v9 = vmax.f32 %v889_v5, 0.0  ;;  %v893_v10 = vadd.f32 %v892_v4, %v800_v6 }
 0x140   : > { %v923_v11 = vmax.f32 %v891_v8, 0.0 }
 0x141   : > { %v1192_v12 = vpack.c.bf16 %v922_v9, %v921_v7  ;;  %v924_v13 = vmax.f32 %v893_v10, 0.0  ;;  %v803_v14 = vpop.f32.mrb[20].mxu1 }
 0x142   : > { %v896_v15 = vpop.f32.mrb[20].mxu0  ;;  %v804_v16 = vadd.f32 %v803_v14, %v1649_v29  ;;  %v805_v17 = vpop.f32.mrb[21].mxu1 }
 0x143   : > { %v898_v18 = vpop.f32.mrb[21].mxu0  ;;  %1009 = vst [vmem:[%s1661_s27 + $0x40] sm:$0xff] %v1192_v12  ;;  %v1193_v19 = vpack.c.bf16 %v924_v13, %v923_v11  ;;  %v806_v20 = vadd.f32 %v805_v17, %v1651_v30  ;;  %v807_v21 = vpop.f32.mrb[22].mxu1 }
 0x144   : > { %v900_v22 = vpop.f32.mrb[22].mxu0  ;;  %v897_v23 = vadd.f32 %v896_v15, %v804_v16  ;;  %v808_v24 = vadd.f32 %v807_v21, %v1649_v29  ;;  %v809_v25 = vpop.f32.mrb[23].mxu1 }
 0x145   : > { %v902_v26 = vpop.f32.mrb[23].mxu0  ;;  %1010 = vst [vmem:[%s1661_s27 + $0x48] sm:$0xff] %v1193_v19  ;;  %v899_v27 = vadd.f32 %v898_v18, %v806_v20  ;;  %v810_v28 = vadd.f32 %v809_v25, %v1651_v30 }
 0x146   : > { %v925_v31 = vmax.f32 %v897_v23, 0.0  ;;  %v901_v32 = vadd.f32 %v900_v22, %v808_v24 }
 0x147   : > { %v926_v33 = vmax.f32 %v899_v27, 0.0  ;;  %v903_v34 = vadd.f32 %v902_v26, %v810_v28 }
 0x148   : > { %v927_v35 = vmax.f32 %v901_v32, 0.0 }
 0x149   : > { %v1194_v36 = vpack.c.bf16 %v926_v33, %v925_v31  ;;  %v928_v37 = vmax.f32 %v903_v34, 0.0 }
 0x14b   : > { %1011 = vst [vmem:[%s1661_s27 + $0x50] sm:$0xff] %v1194_v36  ;;  %v1195_v38 = vpack.c.bf16 %v928_v37, %v927_v35 }
 0x14d   : > { %1012 = vst [vmem:[%s1661_s27 + $0x58] sm:$0xff] %v1195_v38 }
 0x14e PF: > { %s13_s12 = sadd.s32 1, %s1390_s12  }
 0x14f   : > { %p10_p4 = scmp.ge.s32.totalorder %s13_s12, 4  }
 0x151   :  { %12 = sbr.rel (!%p10_p4) target bundleno = 1 (0x1), region = 62 }

// kernel: fwd.8
= control target key start
LH: loop header
LB: loop body
LE: loop exit
PB: predicated region body
PF: predicated region fallthrough
CT: control target
= control target key end

     0   :  { %s1202_s12 = smov 0   ;;  %s1345_s0 = inlined_call_operand.vmem [shape: bf16[624,256], index: 0, kind: input, shape index: {}]   ;;  %s1346_s1 = inlined_call_operand.vmem [shape: bf16[256,128], index: 1, kind: input, shape index: {}]   ;;  %s1347_s2 = inlined_call_operand.vmem [shape: f32[1,128], index: 2, kind: input, shape index: {}]   ;;  %s1348_s3 = inlined_call_operand.vmem [shape: bf16[624,128], index: 3, kind: output, shape index: {}]  }
   0x1 LB: > { %s818_s13 = sadd.s32 4294967295, %s1180_s12   ;;  %p822_p0 = scmp.ge.s32.totalorder %s1180_s12, 1  ;;  %s1180_s12 = sphi %s1202_s12, %s13_s12  }
   0x2   : > { %p139_p1 = scmp.lt.s32.totalorder %s1180_s12, 4 }
   0x4   : > { %p140_p2 = pnand %p822_p0, %p139_p1 }
   0x5   : > { %v1119_v0 = vld [vmem:[%s1346_s1 + $0x40] sm:$0xff] (!%p140_p2)   ;;  %s164_s16 = smul.u32 (!%p140_p2), 26, %s818_s13  ;;  %v1121_v2 = vld [vmem:[%s1346_s1 + $0x48] sm:$0xff] (!%p140_p2)   ;;  %v1123_v4 = vld [vmem:[%s1346_s1 + $0x50] sm:$0xff] (!%p140_p2)  }
   0x6   : > { %143 = sbr.rel (%p140_p2) target bundleno = 310 (0x136), region = 32  ;;  %v1120_v1 = vld [vmem:[%s1346_s1] sm:$0xff] (!%p140_p2)   ;;  %1001 = vmatprep.subr.bf16.mxu0 (!%p140_p2), %v1119_v0  ;;  %1095 = vmatprep.subr.bf16.mxu1 (!%p140_p2), %v1119_v0  ;;  %v1122_v3 = vld [vmem:[%s1346_s1 + $0x8] sm:$0xff] (!%p140_p2)   ;;  %v1124_v5 = vld [vmem:[%s1346_s1 + $0x10] sm:$0xff] (!%p140_p2)  }
   0x7   : > { %1002 = vmatpush3.bf16.msra.mxu0 (!%p140_p2), %v1120_v1  ;;  %1103 = vmatpush3.bf16.msra.mxu1 (!%p140_p2), %v1120_v1  ;;  %p165_p3 = scmp.lt.s32.totalorder (!%p140_p2), %s164_s16, 77  ;;  %v1125_v6 = vld [vmem:[%s1346_s1 + $0x58] sm:$0xff] (!%p140_p2)   ;;  %v1127_v8 = vld [vmem:[%s1346_s1 + $0x60] sm:$0xff] (!%p140_p2)   ;;  %v1129_v10 = vld [vmem:[%s1346_s1 + $0x68] sm:$0xff] (!%p140_p2)  }
   0x8   : > { %1003 = vmatprep.subr.bf16.mxu0 (!%p140_p2), %v1121_v2  ;;  %1096 = vmatprep.subr.bf16.mxu1 (!%p140_p2), %v1121_v2  ;;  %v1126_v7 = vld [vmem:[%s1346_s1 + $0x18] sm:$0xff] (!%p140_p2)   ;;  %v1128_v9 = vld [vmem:[%s1346_s1 + $0x20] sm:$0xff] (!%p140_p2)   ;;  %v1130_v13 = vld [vmem:[%s1346_s1 + $0x28] sm:$0xff] (!%p140_p2)  }
   0x9   : > { %v1131_v14 = vld [vmem:[%s1346_s1 + $0x70] sm:$0xff] (!%p140_p2)   ;;  %v1133_v16 = vld [vmem:[%s1346_s1 + $0x78] sm:$0xff] (!%p140_p2)   ;;  %v1295_v44 = vld [vmem:[%s1347_s2] ss:$0 sm:$0xff] (!%p140_p2) }
   0xa   : > { %v1132_v15 = vld [vmem:[%s1346_s1 + $0x30] sm:$0xff] (!%p140_p2)   ;;  %v1134_v17 = vld [vmem:[%s1346_s1 + $0x38] sm:$0xff] (!%p140_p2)  }
   0xb   : > { %1004 = vmatpush3.bf16.msra.mxu0 (!%p140_p2), %v1122_v3  ;;  %1104 = vmatpush3.bf16.msra.mxu1 (!%p140_p2), %v1122_v3 }
   0xc   : > { %1005 = vmatprep.subr.bf16.mxu0 (!%p140_p2), %v1123_v4  ;;  %1097 = vmatprep.subr.bf16.mxu1 (!%p140_p2), %v1123_v4 }
   0xd   : > { %s1350_s16 = smov (!%p165_p3, %s164_s16), 77 }
   0xe   : > { %s897_s4 = sshll.u32 %s1350_s16, 3  ;;  %s825_s28 = sshll.u32 %s1350_s16, 2 }
   0xf   : > { %1006 = vmatpush3.bf16.msra.mxu0 %v1124_v5  ;;  %1105 = vmatpush3.bf16.msra.mxu1 %v1124_v5  ;;  %s1243_s9 = scalar_lea.vmem %s1345_s0, %s897_s4  ;;  %s1305_s4 = scalar_lea.vmem %s1348_s3, %s825_s28 }
  0x10   : > { %1007 = vmatprep.subr.bf16.mxu0 %v1125_v6  ;;  %1098 = vmatprep.subr.bf16.mxu1 %v1125_v6  ;;  %v1137_v11 = vld [vmem:[%s1243_s9 + $0x4] ss:$8 sps:$4 sm:$0xff]   ;;  %v1140_v12 = vld [vmem:[%s1243_s9 + $0x74] ss:$8 sps:$4 sm:$0xff]   ;;  %v1135_v18 = vld [vmem:[%s1243_s9] ss:$8 sps:$4 sm:$0xff]  }
  0x11   : > { %501 = vmatprep.mubr.bf16.mxu0 %v1137_v11  ;;  %557 = vmatprep.mubr.bf16.mxu1 %v1140_v12  ;;  %v1138_v19 = vld [vmem:[%s1243_s9 + $0x70] ss:$8 sps:$4 sm:$0xff]   ;;  %v1141_v20 = vld [vmem:[%s1243_s9 + $0x14] ss:$8 sps:$4 sm:$0xff]   ;;  %v1144_v21 = vld [vmem:[%s1243_s9 + $0x84] ss:$8 sps:$4 sm:$0xff]  }
  0x12   : > { %v1143_v22 = vld [vmem:[%s1243_s9 + $0x10] ss:$8 sps:$4 sm:$0xff]   ;;  %v1146_v23 = vld [vmem:[%s1243_s9 + $0x80] ss:$8 sps:$4 sm:$0xff]   ;;  %v1147_v24 = vld [vmem:[%s1243_s9 + $0x24] ss:$8 sps:$4 sm:$0xff]  }
  0x13   : > { %1008 = vmatpush3.bf16.msra.mxu0 %v1126_v7  ;;  %1106 = vmatpush3.bf16.msra.mxu1 %v1126_v7  ;;  %v1150_v25 = vld [vmem:[%s1243_s9 + $0x94] ss:$8 sps:$4 sm:$0xff]   ;;  %v1149_v26 = vld [vmem:[%s1243_s9 + $0x20] ss:$8 sps:$4 sm:$0xff]   ;;  %v1152_v27 = vld [vmem:[%s1243_s9 + $0x90] ss:$8 sps:$4 sm:$0xff]  }
  0x14   : > { %1009 = vmatprep.subr.bf16.mxu0 %v1127_v8  ;;  %1099 = vmatprep.subr.bf16.mxu1 %v1127_v8  ;;  %v1153_v28 = vld [vmem:[%s1243_s9 + $0x34] ss:$8 sps:$4 sm:$0xff]   ;;  %v1156_v29 = vld [vmem:[%s1243_s9 + $0xa4] ss:$8 sps:$4 sm:$0xff]   ;;  %v1155_v30 = vld [vmem:[%s1243_s9 + $0x30] ss:$8 sps:$4 sm:$0xff]  }
  0x15   : > { %v1158_v31 = vld [vmem:[%s1243_s9 + $0xa0] ss:$8 sps:$4 sm:$0xff]   ;;  %v1159_v32 = vld [vmem:[%s1243_s9 + $0x44] ss:$8 sps:$4 sm:$0xff]   ;;  %v1162_v33 = vld [vmem:[%s1243_s9 + $0xb4] ss:$8 sps:$4 sm:$0xff]  }
  0x16   : > { %v1161_v34 = vld [vmem:[%s1243_s9 + $0x40] ss:$8 sps:$4 sm:$0xff]   ;;  %v1164_v35 = vld [vmem:[%s1243_s9 + $0xb0] ss:$8 sps:$4 sm:$0xff]   ;;  %v1165_v36 = vld [vmem:[%s1243_s9 + $0x54] ss:$8 sps:$4 sm:$0xff]  }
  0x17   : > { %1010 = vmatpush3.bf16.msra.mxu0 %v1128_v9  ;;  %1107 = vmatpush3.bf16.msra.mxu1 %v1128_v9  ;;  %v1168_v37 = vld [vmem:[%s1243_s9 + $0xc4] ss:$8 sps:$4 sm:$0xff]   ;;  %v1167_v38 = vld [vmem:[%s1243_s9 + $0x50] ss:$8 sps:$4 sm:$0xff]   ;;  %v1170_v39 = vld [vmem:[%s1243_s9 + $0xc0] ss:$8 sps:$4 sm:$0xff]  }
  0x18   : > { %1011 = vmatprep.subr.bf16.mxu0 %v1129_v10  ;;  %1100 = vmatprep.subr.bf16.mxu1 %v1129_v10  ;;  %v1171_v40 = vld [vmem:[%s1243_s9 + $0x64] ss:$8 sps:$4 sm:$0xff]   ;;  %v1173_v41 = vld [vmem:[%s1243_s9 + $0x60] ss:$8 sps:$4 sm:$0xff]  }
  0x1b   : > { %1012 = vmatpush3.bf16.msra.mxu0 %v1130_v13  ;;  %1108 = vmatpush3.bf16.msra.mxu1 %v1130_v13 }
  0x1c   : > { %1013 = vmatprep.subr.bf16.mxu0 %v1131_v14  ;;  %1101 = vmatprep.subr.bf16.mxu1 %v1131_v14 }
  0x1f   : > { %1014 = vmatpush3.bf16.msra.mxu0 %v1132_v15  ;;  %1109 = vmatpush3.bf16.msra.mxu1 %v1132_v15 }
  0x20   : > { %1015 = vmatprep.subr.bf16.mxu0 %v1133_v16  ;;  %1102 = vmatprep.subr.bf16.mxu1 %v1133_v16 }
  0x23   : > { %1016 = vmatpush3.bf16.msra.mxu0 %v1134_v17  ;;  %1110 = vmatpush3.bf16.msra.mxu1 %v1134_v17 }
  0x26   : > { %502 = vmatmul.mubr.bf16.vlgmr.msra.gmra.mrb[0].mxu0 %v1135_v18  ;;  %558 = vmatmul.mubr.bf16.vlgmr.msra.gmra.mrb[0].mxu1 %v1138_v19 }
  0x27   : > { %509 = vmatprep.mubr.bf16.mxu0 %v1141_v20  ;;  %565 = vmatprep.mubr.bf16.mxu1 %v1144_v21 }
  0x2e   : > { %510 = vmatmul.mubr.bf16.gmra.mrb[4].mxu0 %v1143_v22  ;;  %566 = vmatmul.mubr.bf16.gmra.mrb[4].mxu1 %v1146_v23 }
  0x2f   : > { %517 = vmatprep.mubr.bf16.mxu0 %v1147_v24  ;;  %573 = vmatprep.mubr.bf16.mxu1 %v1150_v25 }
  0x36   : > { %518 = vmatmul.mubr.bf16.gmra.mrb[8].mxu0 %v1149_v26  ;;  %574 = vmatmul.mubr.bf16.gmra.mrb[8].mxu1 %v1152_v27 }
  0x37   : > { %525 = vmatprep.mubr.bf16.mxu0 %v1153_v28  ;;  %581 = vmatprep.mubr.bf16.mxu1 %v1156_v29 }
  0x3e   : > { %526 = vmatmul.mubr.bf16.gmra.mrb[12].mxu0 %v1155_v30  ;;  %582 = vmatmul.mubr.bf16.gmra.mrb[12].mxu1 %v1158_v31 }
  0x3f   : > { %533 = vmatprep.mubr.bf16.mxu0 %v1159_v32  ;;  %589 = vmatprep.mubr.bf16.mxu1 %v1162_v33 }
  0x46   : > { %534 = vmatmul.mubr.bf16.gmra.mrb[16].mxu0 %v1161_v34  ;;  %590 = vmatmul.mubr.bf16.gmra.mrb[16].mxu1 %v1164_v35 }
  0x47   : > { %541 = vmatprep.mubr.bf16.mxu0 %v1165_v36  ;;  %597 = vmatprep.mubr.bf16.mxu1 %v1168_v37 }
  0x4e   : > { %542 = vmatmul.mubr.bf16.gmra.mrb[20].mxu0 %v1167_v38  ;;  %598 = vmatmul.mubr.bf16.gmra.mrb[20].mxu1 %v1170_v39 }
  0x4f   : > { %549 = vmatprep.mubr.bf16.mxu0 %v1171_v40 }
  0x56   : > { %550 = vmatmul.mubr.bf16.gmra.mrb[24].mxu0 %v1173_v41 }
  0xf9   : > { %v1017_v42 = vpop.f32.mrb[0].mxu0  ;;  %v1059_v43 = vpop.f32.mrb[0].mxu1 }
  0xfa   : > { %v1018_v45 = vpop.f32.mrb[1].mxu0  ;;  %v1060_v46 = vpop.f32.mrb[1].mxu1 }
  0xfb   : > { %v1019_v47 = vadd.f32 %v1018_v45, %v1017_v42  ;;  %v1020_v48 = vpop.f32.mrb[2].mxu0  ;;  %v1061_v49 = vadd.f32 %v1060_v46, %v1059_v43  ;;  %v1062_v50 = vpop.f32.mrb[2].mxu1 }
  0xfc   : > { %v1021_v51 = vpop.f32.mrb[3].mxu0  ;;  %v1063_v52 = vpop.f32.mrb[3].mxu1 }
  0xfd   : > { %v504_v53 = vadd.f32 %v1019_v47, %v1295_v44  ;;  %v1022_v54 = vadd.f32 %v1021_v51, %v1020_v48  ;;  %v560_v55 = vadd.f32 %v1061_v49, %v1295_v44  ;;  %v1064_v56 = vadd.f32 %v1063_v52, %v1062_v50 }
  0xff   : > { %v507_v57 = vadd.f32 %v1022_v54, %v1295_v44  ;;  %v620_v58 = vmax.f32 %v560_v55, 0.0  ;;  %v563_v59 = vadd.f32 %v1064_v56, %v1295_v44  ;;  %v606_v60 = vmax.f32 %v504_v53, 0.0 }
 0x101   : > { %v607_v61 = vmax.f32 %v507_v57, 0.0  ;;  %v1023_v62 = vpop.f32.mrb[4].mxu0  ;;  %v621_v63 = vmax.f32 %v563_v59, 0.0  ;;  %v1065_v0 = vpop.f32.mrb[4].mxu1 }
 0x102   : > { %v1024_v1 = vpop.f32.mrb[5].mxu0  ;;  %v1066_v2 = vpop.f32.mrb[5].mxu1 }
 0x103   : > { %v927_v3 = vpack.c.bf16 %v607_v61, %v606_v60  ;;  %v962_v4 = vpack.c.bf16 %v621_v63, %v620_v58  ;;  %v1025_v5 = vadd.f32 %v1024_v1, %v1023_v62  ;;  %v1026_v6 = vpop.f32.mrb[6].mxu0  ;;  %v1067_v7 = vadd.f32 %v1066_v2, %v1065_v0  ;;  %v1068_v8 = vpop.f32.mrb[6].mxu1 }
 0x104   : > { %v1027_v9 = vpop.f32.mrb[7].mxu0  ;;  %v1069_v10 = vpop.f32.mrb[7].mxu1 }
 0x105   : > { %928 = vst [vmem:[%s1305_s4] sm:$0xff] %v927_v3   ;;  %995 = vst [vmem:[%s1305_s4 + $0x38] sm:$0xff] %v962_v4   ;;  %v512_v11 = vadd.f32 %v1025_v5, %v1295_v44  ;;  %v1028_v12 = vadd.f32 %v1027_v9, %v1026_v6  ;;  %v568_v13 = vadd.f32 %v1067_v7, %v1295_v44 }
 0x106   : > { %v1070_v14 = vadd.f32 %v1069_v10, %v1068_v8 }
 0x107   : > { %v515_v15 = vadd.f32 %v1028_v12, %v1295_v44  ;;  %v622_v16 = vmax.f32 %v568_v13, 0.0  ;;  %v608_v18 = vmax.f32 %v512_v11, 0.0 }
 0x108   : > { %v571_v17 = vadd.f32 %v1070_v14, %v1295_v44 }
 0x109   : > { %v609_v19 = vmax.f32 %v515_v15, 0.0  ;;  %v1029_v20 = vpop.f32.mrb[8].mxu0  ;;  %v1071_v22 = vpop.f32.mrb[8].mxu1 }
 0x10a   : > { %v623_v21 = vmax.f32 %v571_v17, 0.0  ;;  %v1030_v23 = vpop.f32.mrb[9].mxu0  ;;  %v1072_v24 = vpop.f32.mrb[9].mxu1 }
 0x10b   : > { %v932_v25 = vpack.c.bf16 %v609_v19, %v608_v18  ;;  %v1031_v27 = vadd.f32 %v1030_v23, %v1029_v20  ;;  %v1032_v28 = vpop.f32.mrb[10].mxu0  ;;  %v1073_v29 = vadd.f32 %v1072_v24, %v1071_v22  ;;  %v1074_v30 = vpop.f32.mrb[10].mxu1 }
 0x10c   : > { %v967_v26 = vpack.c.bf16 %v623_v21, %v622_v16  ;;  %v1033_v31 = vpop.f32.mrb[11].mxu0  ;;  %v1075_v32 = vpop.f32.mrb[11].mxu1 }
 0x10d   : > { %989 = vst [vmem:[%s1305_s4 + $0x8] sm:$0xff] %v932_v25   ;;  %v520_v33 = vadd.f32 %v1031_v27, %v1295_v44  ;;  %v1034_v34 = vadd.f32 %v1033_v31, %v1032_v28  ;;  %v576_v35 = vadd.f32 %v1073_v29, %v1295_v44  ;;  %v1076_v36 = vadd.f32 %v1075_v32, %v1074_v30 }
 0x10e   : > { %996 = vst [vmem:[%s1305_s4 + $0x40] sm:$0xff] %v967_v26  }
 0x10f   : > { %v523_v37 = vadd.f32 %v1034_v34, %v1295_v44  ;;  %v624_v38 = vmax.f32 %v576_v35, 0.0  ;;  %v579_v39 = vadd.f32 %v1076_v36, %v1295_v44  ;;  %v610_v40 = vmax.f32 %v520_v33, 0.0 }
 0x111   : > { %v611_v41 = vmax.f32 %v523_v37, 0.0  ;;  %v1035_v42 = vpop.f32.mrb[12].mxu0  ;;  %v625_v43 = vmax.f32 %v579_v39, 0.0  ;;  %v1077_v45 = vpop.f32.mrb[12].mxu1 }
 0x112   : > { %v1036_v46 = vpop.f32.mrb[13].mxu0  ;;  %v1078_v47 = vpop.f32.mrb[13].mxu1 }
 0x113   : > { %v937_v48 = vpack.c.bf16 %v611_v41, %v610_v40  ;;  %v972_v49 = vpack.c.bf16 %v625_v43, %v624_v38  ;;  %v1037_v50 = vadd.f32 %v1036_v46, %v1035_v42  ;;  %v1038_v51 = vpop.f32.mrb[14].mxu0  ;;  %v1079_v52 = vadd.f32 %v1078_v47, %v1077_v45  ;;  %v1080_v53 = vpop.f32.mrb[14].mxu1 }
 0x114   : > { %v1039_v54 = vpop.f32.mrb[15].mxu0  ;;  %v1081_v55 = vpop.f32.mrb[15].mxu1 }
 0x115   : > { %990 = vst [vmem:[%s1305_s4 + $0x10] sm:$0xff] %v937_v48   ;;  %997 = vst [vmem:[%s1305_s4 + $0x48] sm:$0xff] %v972_v49   ;;  %v528_v56 = vadd.f32 %v1037_v50, %v1295_v44  ;;  %v1040_v57 = vadd.f32 %v1039_v54, %v1038_v51  ;;  %v584_v58 = vadd.f32 %v1079_v52, %v1295_v44 }
 0x116   : > { %v1082_v59 = vadd.f32 %v1081_v55, %v1080_v53 }
 0x117   : > { %v531_v60 = vadd.f32 %v1040_v57, %v1295_v44  ;;  %v626_v61 = vmax.f32 %v584_v58, 0.0  ;;  %v612_v63 = vmax.f32 %v528_v56, 0.0 }
 0x118   : > { %v587_v62 = vadd.f32 %v1082_v59, %v1295_v44 }
 0x119   : > { %v613_v0 = vmax.f32 %v531_v60, 0.0  ;;  %v1041_v1 = vpop.f32.mrb[16].mxu0  ;;  %v1083_v3 = vpop.f32.mrb[16].mxu1 }
 0x11a   : > { %v627_v2 = vmax.f32 %v587_v62, 0.0  ;;  %v1042_v4 = vpop.f32.mrb[17].mxu0  ;;  %v1084_v5 = vpop.f32.mrb[17].mxu1 }
 0x11b   : > { %v942_v6 = vpack.c.bf16 %v613_v0, %v612_v63  ;;  %v1043_v8 = vadd.f32 %v1042_v4, %v1041_v1  ;;  %v1044_v9 = vpop.f32.mrb[18].mxu0  ;;  %v1085_v10 = vadd.f32 %v1084_v5, %v1083_v3  ;;  %v1086_v11 = vpop.f32.mrb[18].mxu1 }
 0x11c   : > { %v977_v7 = vpack.c.bf16 %v627_v2, %v626_v61  ;;  %v1045_v12 = vpop.f32.mrb[19].mxu0  ;;  %v1087_v13 = vpop.f32.mrb[19].mxu1 }
 0x11d   : > { %991 = vst [vmem:[%s1305_s4 + $0x18] sm:$0xff] %v942_v6   ;;  %v536_v14 = vadd.f32 %v1043_v8, %v1295_v44  ;;  %v1046_v15 = vadd.f32 %v1045_v12, %v1044_v9  ;;  %v592_v16 = vadd.f32 %v1085_v10, %v1295_v44  ;;  %v1088_v17 = vadd.f32 %v1087_v13, %v1086_v11 }
 0x11e   : > { %998 = vst [vmem:[%s1305_s4 + $0x50] sm:$0xff] %v977_v7  }
 0x11f   : > { %v539_v18 = vadd.f32 %v1046_v15, %v1295_v44  ;;  %v628_v19 = vmax.f32 %v592_v16, 0.0  ;;  %v595_v20 = vadd.f32 %v1088_v17, %v1295_v44  ;;  %v614_v21 = vmax.f32 %v536_v14, 0.0 }
 0x121   : > { %v615_v22 = vmax.f32 %v539_v18, 0.0  ;;  %v1047_v23 = vpop.f32.mrb[20].mxu0  ;;  %v629_v24 = vmax.f32 %v595_v20, 0.0  ;;  %v1089_v25 = vpop.f32.mrb[20].mxu1 }
 0x122   : > { %v1048_v26 = vpop.f32.mrb[21].mxu0  ;;  %v1090_v27 = vpop.f32.mrb[21].mxu1 }
 0x123   : > { %v947_v28 = vpack.c.bf16 %v615_v22, %v614_v21  ;;  %v982_v29 = vpack.c.bf16 %v629_v24, %v628_v19  ;;  %v1049_v30 = vadd.f32 %v1048_v26, %v1047_v23  ;;  %v1050_v31 = vpop.f32.mrb[22].mxu0  ;;  %v1091_v32 = vadd.f32 %v1090_v27, %v1089_v25  ;;  %v1092_v33 = vpop.f32.mrb[22].mxu1 }
 0x124   : > { %v1051_v34 = vpop.f32.mrb[23].mxu0  ;;  %v1093_v35 = vpop.f32.mrb[23].mxu1 }
 0x125   : > { %992 = vst [vmem:[%s1305_s4 + $0x20] sm:$0xff] %v947_v28   ;;  %999 = vst [vmem:[%s1305_s4 + $0x58] sm:$0xff] %v982_v29   ;;  %v544_v36 = vadd.f32 %v1049_v30, %v1295_v44  ;;  %v1052_v37 = vadd.f32 %v1051_v34, %v1050_v31  ;;  %v600_v38 = vadd.f32 %v1091_v32, %v1295_v44 }
 0x126   : > { %v1094_v39 = vadd.f32 %v1093_v35, %v1092_v33 }
 0x127   : > { %v547_v40 = vadd.f32 %v1052_v37, %v1295_v44  ;;  %v630_v41 = vmax.f32 %v600_v38, 0.0  ;;  %v616_v43 = vmax.f32 %v544_v36, 0.0 }
 0x128   : > { %v603_v42 = vadd.f32 %v1094_v39, %v1295_v44 }
 0x129   : > { %v617_v45 = vmax.f32 %v547_v40, 0.0  ;;  %v1053_v46 = vpop.f32.mrb[24].mxu0 }
 0x12a   : > { %v631_v47 = vmax.f32 %v603_v42, 0.0  ;;  %v1054_v48 = vpop.f32.mrb[25].mxu0 }
 0x12b   : > { %v952_v49 = vpack.c.bf16 %v617_v45, %v616_v43  ;;  %v1055_v51 = vadd.f32 %v1054_v48, %v1053_v46  ;;  %v1056_v52 = vpop.f32.mrb[26].mxu0 }
 0x12c   : > { %v987_v50 = vpack.c.bf16 %v631_v47, %v630_v41  ;;  %v1057_v53 = vpop.f32.mrb[27].mxu0 }
 0x12d   : > { %993 = vst [vmem:[%s1305_s4 + $0x28] sm:$0xff] %v952_v49   ;;  %v552_v54 = vadd.f32 %v1055_v51, %v1295_v44  ;;  %v1058_v55 = vadd.f32 %v1057_v53, %v1056_v52 }
 0x12e   : > { %1000 = vst [vmem:[%s1305_s4 + $0x60] sm:$0xff] %v987_v50  }
 0x12f   : > { %v555_v56 = vadd.f32 %v1058_v55, %v1295_v44  ;;  %v618_v57 = vmax.f32 %v552_v54, 0.0 }
 0x131   : > { %v619_v58 = vmax.f32 %v555_v56, 0.0 }
 0x133   : > { %v957_v59 = vpack.c.bf16 %v619_v58, %v618_v57 }
 0x135   : > { %994 = vst [vmem:[%s1305_s4 + $0x30] sm:$0xff] %v957_v59  }
 0x136 PF: > { %s13_s12 = sadd.s32 1, %s1180_s12  }
 0x137   : > { %p10_p4 = scmp.ge.s32.totalorder %s13_s12, 5  }
 0x139   :  { %12 = sbr.rel (!%p10_p4) target bundleno = 1 (0x1), region = 62 }

// kernel: fwd.9
= control target key start
LH: loop header
LB: loop body
LE: loop exit
PB: predicated region body
PF: predicated region fallthrough
CT: control target
= control target key end

     0   :  { %s1127_s12 = smov 0   ;;  %s1279_s0 = inlined_call_operand.vmem [shape: bf16[2048,128], index: 0, kind: input, shape index: {}]   ;;  %s1280_s1 = inlined_call_operand.vmem [shape: bf16[128,128], index: 1, kind: input, shape index: {}]   ;;  %s1281_s2 = inlined_call_operand.vmem [shape: f32[1,128], index: 2, kind: input, shape index: {}]   ;;  %s1282_s3 = inlined_call_operand.vmem [shape: f32[2048,128], index: 3, kind: output, shape index: {}]  }
   0x1 LB: > { %s815_s13 = sadd.s32 4294967295, %s1105_s12   ;;  %p819_p0 = scmp.ge.s32.totalorder %s1105_s12, 1  ;;  %s1105_s12 = sphi %s1127_s12, %s13_s12  }
   0x2   : > { %p138_p1 = scmp.lt.s32.totalorder %s1105_s12, 9 }
   0x4   : > { %p139_p2 = pnand %p819_p0, %p138_p1 }
   0x5   : > { %v947_v0 = vld [vmem:[%s1280_s1] sm:$0xff] (!%p139_p2)   ;;  %s820_s16 = sshll.u32 (!%p139_p2), %s815_s13, 5  ;;  %v948_v1 = vld [vmem:[%s1280_s1 + $0x8] sm:$0xff] (!%p139_p2)   ;;  %v949_v2 = vld [vmem:[%s1280_s1 + $0x10] sm:$0xff] (!%p139_p2)  }
   0x6   : > { %142 = sbr.rel (%p139_p2) target bundleno = 340 (0x154), region = 32  ;;  %p163_p3 = scmp.lt.s32.totalorder (!%p139_p2), %s820_s16, 255  ;;  %875 = vmatprep.subr.bf16.mxu0 (!%p139_p2), %v947_v0  ;;  %923 = vmatprep.subr.bf16.mxu1 (!%p139_p2), %v947_v0  ;;  %v950_v3 = vld [vmem:[%s1280_s1 + $0x18] sm:$0xff] (!%p139_p2)   ;;  %v951_v6 = vld [vmem:[%s1280_s1 + $0x20] sm:$0xff] (!%p139_p2)   ;;  %v952_v7 = vld [vmem:[%s1280_s1 + $0x28] sm:$0xff] (!%p139_p2)  }
   0x7   : > { %876 = vmatpush3.bf16.msra.mxu0 (!%p139_p2), %v947_v0  ;;  %931 = vmatpush3.bf16.msra.mxu1 (!%p139_p2), %v947_v0  ;;  %v953_v8 = vld [vmem:[%s1280_s1 + $0x30] sm:$0xff] (!%p139_p2)   ;;  %v954_v9 = vld [vmem:[%s1280_s1 + $0x38] sm:$0xff] (!%p139_p2)   ;;  %v1186_v24 = vld [vmem:[%s1281_s2] ss:$0 sm:$0xff] (!%p139_p2) }
   0x8   : > { %877 = vmatprep.subr.bf16.mxu0 (!%p139_p2), %v948_v1  ;;  %924 = vmatprep.subr.bf16.mxu1 (!%p139_p2), %v948_v1 }
   0xb   : > { %878 = vmatpush3.bf16.msra.mxu0 (!%p139_p2), %v948_v1  ;;  %932 = vmatpush3.bf16.msra.mxu1 (!%p139_p2), %v948_v1 }
   0xc   : > { %879 = vmatprep.subr.bf16.mxu0 (!%p139_p2), %v949_v2  ;;  %925 = vmatprep.subr.bf16.mxu1 (!%p139_p2), %v949_v2 }
   0xd   : > { %s1284_s16 = smov (!%p163_p3, %s820_s16), 255 }
   0xe   : > { %s821_s21 = sshll.u32 %s1284_s16, 2  ;;  %s823_s10 = sshll.u32 %s1284_s16, 3 }
   0xf   : > { %s1150_s24 = scalar_lea.vmem %s1279_s0, %s821_s21  ;;  %880 = vmatpush3.bf16.msra.mxu0 %v949_v2  ;;  %933 = vmatpush3.bf16.msra.mxu1 %v949_v2  ;;  %s1224_s14 = scalar_lea.vmem %s1282_s3, %s823_s10 }
  0x10   : > { %v955_v4 = vld [vmem:[%s1150_s24] sm:$0xff]   ;;  %881 = vmatprep.subr.bf16.mxu0 %v950_v3  ;;  %926 = vmatprep.subr.bf16.mxu1 %v950_v3  ;;  %v957_v10 = vld [vmem:[%s1150_s24 + $0x8] sm:$0xff]   ;;  %v959_v12 = vld [vmem:[%s1150_s24 + $0x10] sm:$0xff]  }
  0x11   : > { %v956_v5 = vld [vmem:[%s1150_s24 + $0x40] sm:$0xff]   ;;  %891 = vmatprep.mubr.bf16.mxu0 %v955_v4  ;;  %v958_v11 = vld [vmem:[%s1150_s24 + $0x48] sm:$0xff]   ;;  %v960_v13 = vld [vmem:[%s1150_s24 + $0x50] sm:$0xff]  }
  0x12   : > { %907 = vmatprep.mubr.bf16.mxu1 %v956_v5  ;;  %v961_v14 = vld [vmem:[%s1150_s24 + $0x18] sm:$0xff]   ;;  %v963_v16 = vld [vmem:[%s1150_s24 + $0x20] sm:$0xff]   ;;  %v965_v18 = vld [vmem:[%s1150_s24 + $0x28] sm:$0xff]  }
  0x13   : > { %882 = vmatpush3.bf16.msra.mxu0 %v950_v3  ;;  %934 = vmatpush3.bf16.msra.mxu1 %v950_v3  ;;  %v962_v15 = vld [vmem:[%s1150_s24 + $0x58] sm:$0xff]   ;;  %v964_v17 = vld [vmem:[%s1150_s24 + $0x60] sm:$0xff]   ;;  %v966_v19 = vld [vmem:[%s1150_s24 + $0x68] sm:$0xff]  }
  0x14   : > { %883 = vmatprep.subr.bf16.mxu0 %v951_v6  ;;  %927 = vmatprep.subr.bf16.mxu1 %v951_v6  ;;  %v967_v20 = vld [vmem:[%s1150_s24 + $0x30] sm:$0xff]   ;;  %v969_v22 = vld [vmem:[%s1150_s24 + $0x38] sm:$0xff]  }
  0x15   : > { %v968_v21 = vld [vmem:[%s1150_s24 + $0x70] sm:$0xff]   ;;  %v970_v23 = vld [vmem:[%s1150_s24 + $0x78] sm:$0xff]  }
  0x17   : > { %884 = vmatpush3.bf16.msra.mxu0 %v951_v6  ;;  %935 = vmatpush3.bf16.msra.mxu1 %v951_v6 }
  0x18   : > { %885 = vmatprep.subr.bf16.mxu0 %v952_v7  ;;  %928 = vmatprep.subr.bf16.mxu1 %v952_v7 }
  0x1b   : > { %886 = vmatpush3.bf16.msra.mxu0 %v952_v7  ;;  %936 = vmatpush3.bf16.msra.mxu1 %v952_v7 }
  0x1c   : > { %887 = vmatprep.subr.bf16.mxu0 %v953_v8  ;;  %929 = vmatprep.subr.bf16.mxu1 %v953_v8 }
  0x1f   : > { %888 = vmatpush3.bf16.msra.mxu0 %v953_v8  ;;  %937 = vmatpush3.bf16.msra.mxu1 %v953_v8 }
  0x20   : > { %889 = vmatprep.subr.bf16.mxu0 %v954_v9  ;;  %930 = vmatprep.subr.bf16.mxu1 %v954_v9 }
  0x23   : > { %890 = vmatpush3.bf16.msra.mxu0 %v954_v9  ;;  %938 = vmatpush3.bf16.msra.mxu1 %v954_v9 }
  0x26   : > { %892 = vmatmul.mubr.bf16.vlgmr.msra.gmra.mrb[0].mxu0 %v957_v10  ;;  %908 = vmatmul.mubr.bf16.vlgmr.msra.gmra.mrb[0].mxu1 %v958_v11 }
  0x27   : > { %895 = vmatprep.mubr.bf16.mxu0 %v959_v12  ;;  %911 = vmatprep.mubr.bf16.mxu1 %v960_v13 }
  0x2e   : > { %896 = vmatmul.mubr.bf16.gmra.mrb[4].mxu0 %v961_v14  ;;  %912 = vmatmul.mubr.bf16.gmra.mrb[4].mxu1 %v962_v15 }
  0x2f   : > { %899 = vmatprep.mubr.bf16.mxu0 %v963_v16  ;;  %915 = vmatprep.mubr.bf16.mxu1 %v964_v17 }
  0x36   : > { %900 = vmatmul.mubr.bf16.gmra.mrb[8].mxu0 %v965_v18  ;;  %916 = vmatmul.mubr.bf16.gmra.mrb[8].mxu1 %v966_v19 }
  0x37   : > { %903 = vmatprep.mubr.bf16.mxu0 %v967_v20  ;;  %919 = vmatprep.mubr.bf16.mxu1 %v968_v21 }
  0x3e   : > { %904 = vmatmul.mubr.bf16.gmra.mrb[12].mxu0 %v969_v22  ;;  %920 = vmatmul.mubr.bf16.gmra.mrb[12].mxu1 %v970_v23 }
  0xf9   : > { %v893_v25 = vpop.f32.mrb[0].mxu0  ;;  %v909_v26 = vpop.f32.mrb[0].mxu1 }
  0xfa   : > { %v417_v27 = vadd.f32 %v893_v25, %v1186_v24  ;;  %v481_v28 = vadd.f32 %v909_v26, %v1186_v24  ;;  %v408_v29 = vpop.f32.mrb[1].mxu0  ;;  %v472_v30 = vpop.f32.mrb[1].mxu1 }
  0xfb   : > { %v409_v31 = vadd.f32 %v1186_v24, %v408_v29  ;;  %v473_v32 = vadd.f32 %v1186_v24, %v472_v30  ;;  %v894_v33 = vpop.f32.mrb[2].mxu0  ;;  %v910_v34 = vpop.f32.mrb[2].mxu1 }
  0xfc   : > { %v537_v35 = vsub.f32 0.0, %v417_v27  ;;  %v553_v36 = vsub.f32 0.0, %v481_v28  ;;  %v420_v37 = vadd.f32 %v894_v33, %v1186_v24  ;;  %v484_v38 = vadd.f32 %v910_v34, %v1186_v24  ;;  %v411_v39 = vpop.f32.mrb[3].mxu0  ;;  %v475_v40 = vpop.f32.mrb[3].mxu1 }
  0xfd   : > { %v535_v41 = vsub.f32 0.0, %v409_v31  ;;  %v551_v42 = vsub.f32 0.0, %v473_v32  ;;  %v412_v43 = vadd.f32 %v1186_v24, %v411_v39  ;;  %v476_v44 = vadd.f32 %v1186_v24, %v475_v40 }
  0xfe   : > { %v571_v45 = vmul.f32 1.442695, %v537_v35  ;;  %v603_v46 = vmul.f32 1.442695, %v553_v36  ;;  %v538_v47 = vsub.f32 0.0, %v420_v37  ;;  %v554_v48 = vsub.f32 0.0, %v484_v38 }
  0xff   : > { %v567_v49 = vmul.f32 1.442695, %v535_v41  ;;  %v599_v50 = vmul.f32 1.442695, %v551_v42  ;;  %v536_v51 = vsub.f32 0.0, %v412_v43  ;;  %v552_v52 = vsub.f32 0.0, %v476_v44 }
 0x100   : > { %971 = vpow2.f32 %v571_v45  ;;  %v573_v53 = vmul.f32 1.442695, %v538_v47  ;;  %v605_v54 = vmul.f32 1.442695, %v554_v48 }
 0x101   : > { %973 = vpow2.f32 %v603_v46  ;;  %v897_v55 = vpop.f32.mrb[4].mxu0  ;;  %v913_v56 = vpop.f32.mrb[4].mxu1  ;;  %v569_v57 = vmul.f32 1.442695, %v536_v51  ;;  %v601_v62 = vmul.f32 1.442695, %v552_v52 }
 0x102   : > { %975 = vpow2.f32 %v567_v49  ;;  %v433_v58 = vadd.f32 %v897_v55, %v1186_v24  ;;  %v497_v59 = vadd.f32 %v913_v56, %v1186_v24  ;;  %v424_v60 = vpop.f32.mrb[5].mxu0  ;;  %v488_v61 = vpop.f32.mrb[5].mxu1 }
 0x103   : > { %977 = vpow2.f32 %v599_v50  ;;  %v425_v63 = vadd.f32 %v1186_v24, %v424_v60  ;;  %v489_v0 = vadd.f32 %v1186_v24, %v488_v61  ;;  %v898_v1 = vpop.f32.mrb[6].mxu0  ;;  %v914_v2 = vpop.f32.mrb[6].mxu1 }
 0x104   : > { %979 = vpow2.f32 %v573_v53  ;;  %v541_v3 = vsub.f32 0.0, %v433_v58  ;;  %v557_v4 = vsub.f32 0.0, %v497_v59  ;;  %v436_v5 = vadd.f32 %v898_v1, %v1186_v24  ;;  %v427_v6 = vpop.f32.mrb[7].mxu0  ;;  %v491_v7 = vpop.f32.mrb[7].mxu1 }
 0x105   : > { %981 = vpow2.f32 %v605_v54  ;;  %v539_v8 = vsub.f32 0.0, %v425_v63  ;;  %v555_v9 = vsub.f32 0.0, %v489_v0  ;;  %v500_v19 = vadd.f32 %v914_v2, %v1186_v24 }
 0x106   : > { %983 = vpow2.f32 %v569_v57  ;;  %v579_v10 = vmul.f32 1.442695, %v541_v3  ;;  %v611_v11 = vmul.f32 1.442695, %v557_v4  ;;  %v542_v12 = vsub.f32 0.0, %v436_v5 }
 0x107   : > { %985 = vpow2.f32 %v601_v62  ;;  %v575_v13 = vmul.f32 1.442695, %v539_v8  ;;  %v607_v14 = vmul.f32 1.442695, %v555_v9  ;;  %v428_v29 = vadd.f32 %v1186_v24, %v427_v6 }
 0x108   : > { %987 = vpow2.f32 %v579_v10  ;;  %v581_v15 = vmul.f32 1.442695, %v542_v12  ;;  %v558_v36 = vsub.f32 0.0, %v500_v19  ;;  %v492_v39 = vadd.f32 %v1186_v24, %v491_v7 }
 0x109   : > { %989 = vpow2.f32 %v611_v11  ;;  %v901_v16 = vpop.f32.mrb[8].mxu0  ;;  %v917_v17 = vpop.f32.mrb[8].mxu1  ;;  %v540_v42 = vsub.f32 0.0, %v428_v29 }
 0x10a   : > { %v972_v18 = vpop.eup %971  ;;  %991 = vpow2.f32 %v575_v13  ;;  %v440_v20 = vpop.f32.mrb[9].mxu0  ;;  %v449_v45 = vadd.f32 %v901_v16, %v1186_v24  ;;  %v613_v50 = vmul.f32 1.442695, %v558_v36  ;;  %v513_v51 = vadd.f32 %v917_v17, %v1186_v24 }
 0x10b   : > { %v504_v21 = vpop.f32.mrb[9].mxu1  ;;  %v974_v22 = vpop.eup %973  ;;  %v633_v23 = vadd.f32 1.0, %v972_v18  ;;  %993 = vpow2.f32 %v607_v14  ;;  %v556_v56 = vsub.f32 0.0, %v492_v39  ;;  %v441_v57 = vadd.f32 %v1186_v24, %v440_v20 }
 0x10c   : > { %v902_v25 = vpop.f32.mrb[10].mxu0  ;;  %v918_v26 = vpop.f32.mrb[10].mxu1  ;;  %v649_v28 = vadd.f32 1.0, %v974_v22  ;;  %995 = vpow2.f32 %v581_v15  ;;  %v577_v62 = vmul.f32 1.442695, %v540_v42  ;;  %v505_v63 = vadd.f32 %v1186_v24, %v504_v21 }
 0x10d   : > { %v976_v27 = vpop.eup %975  ;;  %v443_v30 = vpop.f32.mrb[11].mxu0  ;;  %997 = vrcp.f32 %v633_v23  ;;  %v545_v4 = vsub.f32 0.0, %v449_v45  ;;  %v452_v5 = vadd.f32 %v902_v25, %v1186_v24  ;;  %v561_v8 = vsub.f32 0.0, %v513_v51 }
 0x10e   : > { %v978_v31 = vpop.eup %977  ;;  %v631_v32 = vadd.f32 1.0, %v976_v27  ;;  %v507_v33 = vpop.f32.mrb[11].mxu1  ;;  %999 = vrcp.f32 %v649_v28  ;;  %v516_v9 = vadd.f32 %v918_v26, %v1186_v24  ;;  %v543_v12 = vsub.f32 0.0, %v441_v57 }
 0x10f   : > { %v980_v34 = vpop.eup %979  ;;  %v647_v35 = vadd.f32 1.0, %v978_v31  ;;  %v444_v13 = vadd.f32 %v1186_v24, %v443_v30  ;;  %v609_v15 = vmul.f32 1.442695, %v556_v56  ;;  %v559_v16 = vsub.f32 0.0, %v505_v63 }
 0x110   : > { %v982_v37 = vpop.eup %981  ;;  %1001 = vrcp.f32 %v631_v32  ;;  %v634_v38 = vadd.f32 1.0, %v980_v34  ;;  %v508_v17 = vadd.f32 %v1186_v24, %v507_v33  ;;  %v587_v19 = vmul.f32 1.442695, %v545_v4 }
 0x111   : > { %v984_v40 = vpop.eup %983  ;;  %1003 = vrcp.f32 %v647_v35  ;;  %v650_v41 = vadd.f32 1.0, %v982_v37  ;;  %v905_v46 = vpop.f32.mrb[12].mxu0  ;;  %v546_v20 = vsub.f32 0.0, %v452_v5  ;;  %v619_v23 = vmul.f32 1.442695, %v561_v8 }
 0x112   : > { %v986_v43 = vpop.eup %985  ;;  %1005 = vrcp.f32 %v634_v38  ;;  %v632_v44 = vadd.f32 1.0, %v984_v40  ;;  %v921_v47 = vpop.f32.mrb[12].mxu1  ;;  %v465_v21 = vadd.f32 %v905_v46, %v1186_v24  ;;  %v562_v25 = vsub.f32 0.0, %v516_v9 }
 0x113   : > { %v988_v48 = vpop.eup %987  ;;  %1007 = vrcp.f32 %v650_v41  ;;  %v648_v49 = vadd.f32 1.0, %v986_v43  ;;  %v1207_v52 = vpop.f32.mrb[13].mxu0  ;;  %v529_v26 = vadd.f32 %v921_v47, %v1186_v24  ;;  %v583_v28 = vmul.f32 1.442695, %v543_v12 }
 0x114   : > { %v1209_v53 = vpop.f32.mrb[13].mxu1  ;;  %v990_v54 = vpop.eup %989  ;;  %1009 = vrcp.f32 %v632_v44  ;;  %v637_v55 = vadd.f32 1.0, %v988_v48  ;;  %v544_v29 = vsub.f32 0.0, %v444_v13  ;;  %v615_v31 = vmul.f32 1.442695, %v559_v16 }
 0x115   : > { %v1212_v58 = vpop.f32.mrb[14].mxu0  ;;  %v1214_v59 = vpop.f32.mrb[14].mxu1  ;;  %1011 = vrcp.f32 %v648_v49  ;;  %v653_v61 = vadd.f32 1.0, %v990_v54  ;;  %v560_v32 = vsub.f32 0.0, %v508_v17  ;;  %v589_v34 = vmul.f32 1.442695, %v546_v20 }
 0x116   : > { %v992_v60 = vpop.eup %991  ;;  %v1217_v0 = vpop.f32.mrb[15].mxu0  ;;  %1013 = vrcp.f32 %v637_v55  ;;  %v549_v35 = vsub.f32 0.0, %v465_v21  ;;  %v621_v37 = vmul.f32 1.442695, %v562_v25  ;;  %v565_v38 = vsub.f32 0.0, %v529_v26 }
 0x117   : > { %v1219_v1 = vpop.f32.mrb[15].mxu1  ;;  %v994_v2 = vpop.eup %993  ;;  %v635_v3 = vadd.f32 1.0, %v992_v60  ;;  %1015 = vrcp.f32 %v653_v61  ;;  %v585_v40 = vmul.f32 1.442695, %v544_v29  ;;  %v617_v42 = vmul.f32 1.442695, %v560_v32 }
 0x118   : > { %v996_v6 = vpop.eup %995  ;;  %v651_v7 = vadd.f32 1.0, %v994_v2  ;;  %v595_v44 = vmul.f32 1.442695, %v549_v35  ;;  %v627_v46 = vmul.f32 1.442695, %v565_v38  ;;  %v457_v61 = vadd.f32 %v1186_v24, %v1207_v52 }
 0x119   : > { %v998_v10 = vpop.eup %997  ;;  %1017 = vrcp.f32 %v635_v3  ;;  %v638_v11 = vadd.f32 1.0, %v996_v6  ;;  %v521_v2 = vadd.f32 %v1186_v24, %v1209_v53  ;;  %v468_v5 = vadd.f32 %v1212_v58, %v1186_v24 }
 0x11a   : > { %v1000_v14 = vpop.eup %999  ;;  %729 = vst [vmem:[%s1224_s14 + $0x10] sm:$0xff] %v998_v10  ;;  %1019 = vrcp.f32 %v651_v7  ;;  %v532_v8 = vadd.f32 %v1214_v59, %v1186_v24  ;;  %v547_v10 = vsub.f32 0.0, %v457_v61  ;;  %v524_v58 = vadd.f32 %v1186_v24, %v1219_v1 }
 0x11b   : > { %v1002_v18 = vpop.eup %1001  ;;  %745 = vst [vmem:[%s1224_s14 + $0x90] sm:$0xff] %v1000_v14  ;;  %1021 = vrcp.f32 %v638_v11  ;;  %v460_v11 = vadd.f32 %v1186_v24, %v1217_v0  ;;  %v563_v13 = vsub.f32 0.0, %v521_v2  ;;  %v550_v16 = vsub.f32 0.0, %v468_v5 }
 0x11c   : > { %v1004_v22 = vpop.eup %1003  ;;  %727 = vst [vmem:[%s1224_s14] sm:$0xff] %v1002_v18  ;;  %1023 = vpow2.f32 %v613_v50  ;;  %v566_v18 = vsub.f32 0.0, %v532_v8  ;;  %v591_v20 = vmul.f32 1.442695, %v547_v10  ;;  %v564_v1 = vsub.f32 0.0, %v524_v58 }
 0x11d   : > { %v1006_v27 = vpop.eup %1005  ;;  %743 = vst [vmem:[%s1224_s14 + $0x80] sm:$0xff] %v1004_v22  ;;  %1025 = vpow2.f32 %v577_v62  ;;  %v548_v21 = vsub.f32 0.0, %v460_v11  ;;  %v623_v24 = vmul.f32 1.442695, %v563_v13  ;;  %v597_v26 = vmul.f32 1.442695, %v550_v16 }
 0x11e   : > { %v1008_v30 = vpop.eup %1007  ;;  %730 = vst [vmem:[%s1224_s14 + $0x18] sm:$0xff] %v1006_v27  ;;  %1027 = vpow2.f32 %v609_v15  ;;  %v625_v32 = vmul.f32 1.442695, %v564_v1 }
 0x11f   : > { %v1010_v33 = vpop.eup %1009  ;;  %746 = vst [vmem:[%s1224_s14 + $0x98] sm:$0xff] %v1008_v30  ;;  %1029 = vpow2.f32 %v587_v19  ;;  %v593_v30 = vmul.f32 1.442695, %v548_v21 }
 0x120   : > { %v1012_v36 = vpop.eup %1011  ;;  %728 = vst [vmem:[%s1224_s14 + $0x8] sm:$0xff] %v1010_v33  ;;  %1031 = vpow2.f32 %v619_v23 }
 0x121   : > { %v1014_v39 = vpop.eup %1013  ;;  %744 = vst [vmem:[%s1224_s14 + $0x88] sm:$0xff] %v1012_v36  ;;  %1033 = vpow2.f32 %v583_v28  ;;  %v629_v28 = vmul.f32 1.442695, %v566_v18 }
 0x122   : > { %v1016_v41 = vpop.eup %1015  ;;  %733 = vst [vmem:[%s1224_s14 + $0x30] sm:$0xff] %v1014_v39  ;;  %1035 = vpow2.f32 %v615_v31 }
 0x123   : > { %v1018_v43 = vpop.eup %1017  ;;  %749 = vst [vmem:[%s1224_s14 + $0xb0] sm:$0xff] %v1016_v41  ;;  %1037 = vpow2.f32 %v589_v34 }
 0x124   : > { %v1020_v45 = vpop.eup %1019  ;;  %731 = vst [vmem:[%s1224_s14 + $0x20] sm:$0xff] %v1018_v43  ;;  %1039 = vpow2.f32 %v621_v37 }
 0x125   : > { %v1022_v47 = vpop.eup %1021  ;;  %747 = vst [vmem:[%s1224_s14 + $0xa0] sm:$0xff] %v1020_v45  ;;  %1041 = vpow2.f32 %v585_v40 }
 0x126   : > { %v1024_v48 = vpop.eup %1023  ;;  %734 = vst [vmem:[%s1224_s14 + $0x38] sm:$0xff] %v1022_v47  ;;  %1043 = vpow2.f32 %v617_v42 }
 0x127   : > { %v1026_v49 = vpop.eup %1025  ;;  %v654_v50 = vadd.f32 1.0, %v1024_v48  ;;  %1045 = vpow2.f32 %v595_v44 }
 0x128   : > { %v1028_v51 = vpop.eup %1027  ;;  %v636_v54 = vadd.f32 1.0, %v1026_v49  ;;  %1047 = vpow2.f32 %v627_v46 }
 0x129   : > { %v1030_v55 = vpop.eup %1029  ;;  %1049 = vrcp.f32 %v654_v50  ;;  %v652_v56 = vadd.f32 1.0, %v1028_v51 }
 0x12a   : > { %v1032_v57 = vpop.eup %1031  ;;  %1051 = vrcp.f32 %v636_v54  ;;  %v641_v60 = vadd.f32 1.0, %v1030_v55 }
 0x12b   : > { %v1034_v62 = vpop.eup %1033  ;;  %1053 = vrcp.f32 %v652_v56  ;;  %v657_v63 = vadd.f32 1.0, %v1032_v57 }
 0x12c   : > { %v1036_v3 = vpop.eup %1035  ;;  %1055 = vrcp.f32 %v641_v60  ;;  %v639_v4 = vadd.f32 1.0, %v1034_v62 }
 0x12d   : > { %v1038_v6 = vpop.eup %1037  ;;  %1057 = vrcp.f32 %v657_v63  ;;  %v655_v7 = vadd.f32 1.0, %v1036_v3 }
 0x12e   : > { %v1040_v9 = vpop.eup %1039  ;;  %1059 = vrcp.f32 %v639_v4  ;;  %v642_v52 = vadd.f32 1.0, %v1038_v6 }
 0x12f   : > { %v1042_v53 = vpop.eup %1041  ;;  %1061 = vrcp.f32 %v655_v7  ;;  %v658_v12 = vadd.f32 1.0, %v1040_v9 }
 0x130   : > { %v1044_v14 = vpop.eup %1043  ;;  %1063 = vrcp.f32 %v642_v52  ;;  %v640_v15 = vadd.f32 1.0, %v1042_v53 }
 0x131   : > { %v1046_v59 = vpop.eup %1045  ;;  %1065 = vrcp.f32 %v658_v12  ;;  %v656_v17 = vadd.f32 1.0, %v1044_v14 }
 0x132   : > { %v1048_v19 = vpop.eup %1047  ;;  %1067 = vrcp.f32 %v640_v15  ;;  %v645_v0 = vadd.f32 1.0, %v1046_v59 }
 0x133   : > { %v1050_v22 = vpop.eup %1049  ;;  %1069 = vrcp.f32 %v656_v17  ;;  %v661_v23 = vadd.f32 1.0, %v1048_v19 }
 0x134   : > { %v1052_v25 = vpop.eup %1051  ;;  %750 = vst [vmem:[%s1224_s14 + $0xb8] sm:$0xff] %v1050_v22  ;;  %1071 = vrcp.f32 %v645_v0 }
 0x135   : > { %v1054_v27 = vpop.eup %1053  ;;  %732 = vst [vmem:[%s1224_s14 + $0x28] sm:$0xff] %v1052_v25  ;;  %1073 = vrcp.f32 %v661_v23 }
 0x136   : > { %v1056_v29 = vpop.eup %1055  ;;  %748 = vst [vmem:[%s1224_s14 + $0xa8] sm:$0xff] %v1054_v27  ;;  %1075 = vpow2.f32 %v591_v20 }
 0x137   : > { %v1058_v31 = vpop.eup %1057  ;;  %737 = vst [vmem:[%s1224_s14 + $0x50] sm:$0xff] %v1056_v29  ;;  %1077 = vpow2.f32 %v623_v24 }
 0x138   : > { %v1060_v33 = vpop.eup %1059  ;;  %753 = vst [vmem:[%s1224_s14 + $0xd0] sm:$0xff] %v1058_v31  ;;  %1079 = vpow2.f32 %v597_v26 }
 0x139   : > { %v1062_v34 = vpop.eup %1061  ;;  %735 = vst [vmem:[%s1224_s14 + $0x40] sm:$0xff] %v1060_v33  ;;  %1081 = vpow2.f32 %v629_v28 }
 0x13a   : > { %v1064_v35 = vpop.eup %1063  ;;  %751 = vst [vmem:[%s1224_s14 + $0xc0] sm:$0xff] %v1062_v34  ;;  %1083 = vpow2.f32 %v593_v30 }
 0x13b   : > { %v1066_v36 = vpop.eup %1065  ;;  %738 = vst [vmem:[%s1224_s14 + $0x58] sm:$0xff] %v1064_v35  ;;  %1085 = vpow2.f32 %v625_v32 }
 0x13c   : > { %v1068_v37 = vpop.eup %1067  ;;  %754 = vst [vmem:[%s1224_s14 + $0xd8] sm:$0xff] %v1066_v36 }
 0x13d   : > { %v1070_v38 = vpop.eup %1069  ;;  %736 = vst [vmem:[%s1224_s14 + $0x48] sm:$0xff] %v1068_v37 }
 0x13e   : > { %v1072_v39 = vpop.eup %1071  ;;  %752 = vst [vmem:[%s1224_s14 + $0xc8] sm:$0xff] %v1070_v38 }
 0x13f   : > { %v1074_v40 = vpop.eup %1073  ;;  %741 = vst [vmem:[%s1224_s14 + $0x70] sm:$0xff] %v1072_v39 }
 0x140   : > { %v1076_v41 = vpop.eup %1075  ;;  %757 = vst [vmem:[%s1224_s14 + $0xf0] sm:$0xff] %v1074_v40 }
 0x141   : > { %v1078_v42 = vpop.eup %1077  ;;  %v643_v43 = vadd.f32 1.0, %v1076_v41 }
 0x142   : > { %v1080_v44 = vpop.eup %1079  ;;  %v659_v45 = vadd.f32 1.0, %v1078_v42 }
 0x143   : > { %v1082_v46 = vpop.eup %1081  ;;  %1087 = vrcp.f32 %v643_v43  ;;  %v646_v47 = vadd.f32 1.0, %v1080_v44 }
 0x144   : > { %v1084_v48 = vpop.eup %1083  ;;  %1089 = vrcp.f32 %v659_v45  ;;  %v662_v49 = vadd.f32 1.0, %v1082_v46 }
 0x145   : > { %v1086_v50 = vpop.eup %1085  ;;  %1091 = vrcp.f32 %v646_v47  ;;  %v644_v51 = vadd.f32 1.0, %v1084_v48 }
 0x146   : > { %1093 = vrcp.f32 %v662_v49  ;;  %v660_v54 = vadd.f32 1.0, %v1086_v50 }
 0x147   : > { %1095 = vrcp.f32 %v644_v51 }
 0x148   : > { %1097 = vrcp.f32 %v660_v54 }
 0x14d   : > { %v1088_v55 = vpop.eup %1087 }
 0x14e   : > { %v1090_v56 = vpop.eup %1089  ;;  %739 = vst [vmem:[%s1224_s14 + $0x60] sm:$0xff] %v1088_v55 }
 0x14f   : > { %v1092_v57 = vpop.eup %1091  ;;  %755 = vst [vmem:[%s1224_s14 + $0xe0] sm:$0xff] %v1090_v56 }
 0x150   : > { %v1094_v60 = vpop.eup %1093  ;;  %742 = vst [vmem:[%s1224_s14 + $0x78] sm:$0xff] %v1092_v57 }
 0x151   : > { %v1096_v61 = vpop.eup %1095  ;;  %758 = vst [vmem:[%s1224_s14 + $0xf8] sm:$0xff] %v1094_v60 }
 0x152   : > { %v1098_v62 = vpop.eup %1097  ;;  %740 = vst [vmem:[%s1224_s14 + $0x68] sm:$0xff] %v1096_v61 }
 0x153   : > { %756 = vst [vmem:[%s1224_s14 + $0xe8] sm:$0xff] %v1098_v62 }
 0x154 PF: > { %s13_s12 = sadd.s32 1, %s1105_s12  }
 0x155   : > { %p10_p4 = scmp.ge.s32.totalorder %s13_s12, 10  }
 0x157   :  { %12 = sbr.rel (!%p10_p4) target bundleno = 1 (0x1), region = 62 }

</bundles_post_ra>
